<compile_context>
chip_gen: v6e
topology: v6e:2x2x1
jax: 0.10.0
libtpu: 0.0.40
codegen_flags: <defaults>
</compile_context>

<pallas_src>
import jax
import jax.numpy as jnp
from jax import lax
from jax.experimental import pallas as pl
from jax.experimental.pallas import tpu as pltpu

H = W = 64                       # input spatial dims implied by fc1 (18 * 32 * 32)
CIN, COUT = 3, 18
KH = KW = 3
PH = PW = 32                     # pooled spatial dims
QPIX = PH * PW                   # 1024 pixels per pooled image / per pool quadrant
FEAT = COUT * QPIX               # 18432
HID = 64
NCLS = 2
KTERMS = CIN * KH * KW           # 27 conv taps
KPAD = 32                        # taps zero-padded to a tile-friendly contraction dim


# ----------------------- fused conv + pool + MLP kernel -----------------------

def _fused_cnn_kernel(xs_ref, wc_ref, bc_ref, w1_ref, b1_ref, w2_ref, b2_ref, o_ref):
    # xs_ref : (blk, 32, 4096) bf16  -- pool-quadrant im2col (taps x (quadrant, i, j))
    # wc_ref : (18, 32)   bf16       -- conv weights, taps zero-padded
    # bc_ref : (18, 1)    f32        -- conv bias
    # w1_ref : (18432, 64) bf16      -- fc1 weights, resident in VMEM across the grid
    # b1_ref : (1, 64)    f32
    # w2_ref : (64, 2)    f32
    # b2_ref : (1, 2)     f32
    # o_ref  : (blk, 2)   f32
    blk = o_ref.shape[0]

    # ---- conv 3x3 (MXU) + 2x2 maxpool + bias + ReLU, per image (static, unrolled) ----
    pooled = []
    for b in range(blk):
        # (18, 32) @ (32, 4096) -> (18, 4096); columns ordered (quadrant, i, j).
        conv = jnp.dot(wc_ref[...], xs_ref[b], preferred_element_type=jnp.float32)
        m = jnp.maximum(jnp.maximum(conv[:, 0 * QPIX:1 * QPIX], conv[:, 1 * QPIX:2 * QPIX]),
                        jnp.maximum(conv[:, 2 * QPIX:3 * QPIX], conv[:, 3 * QPIX:4 * QPIX]))
        # bias + ReLU after the max (a per-channel constant shift commutes with max/ReLU)
        pooled.append(jnp.maximum(m + bc_ref[...], 0.0))          # (18, 1024), torch order

    # ---- fc1 (+ReLU) + fc2; w1 resident, contraction in 18 aligned K=1024 chunks ----
    acc = jnp.zeros((blk, HID), jnp.float32)
    for c in range(COUT):                                          # static, unrolled
        lhs = jnp.concatenate([pooled[b][c:c + 1, :] for b in range(blk)], axis=0)
        acc = acc + jnp.dot(lhs.astype(jnp.bfloat16),
                            w1_ref[c * QPIX:(c + 1) * QPIX, :],
                            preferred_element_type=jnp.float32)
    h = jnp.maximum(acc + b1_ref[...], 0.0)                        # (blk, 64)
    out = jnp.dot(h, w2_ref[...], preferred_element_type=jnp.float32) + b2_ref[...]
    o_ref[...] = out.astype(o_ref.dtype)


def _im2col_quadrants(x):
    """(n,3,64,64) f32 -> (n, 32, 4096) bf16 with
       xs[n, ci*9 + kh*3 + kw, (2p+q)*1024 + i*32 + j] = pad(x)[n, ci, 2i+p+kh, 2j+q+kw].
    Pure layout plumbing (pad / shift / parity split) so every in-kernel access is a
    full-width, 128-lane-aligned block."""
    n = x.shape[0]
    xp = jnp.pad(x, ((0, 0), (0, 0), (1, 1), (1, 1)))                       # (n,3,66,66)
    taps = jnp.stack([xp[:, :, kh:kh + H, kw:kw + W]
                      for kh in range(KH) for kw in range(KW)], axis=2)     # (n,3,9,64,64)
    taps = taps.reshape(n, CIN, KH * KW, PH, 2, PW, 2)                      # (n,ci,t,i,p,j,q)
    taps = taps.transpose(0, 1, 2, 4, 6, 3, 5)                              # (n,ci,t,p,q,i,j)
    taps = taps.reshape(n, KTERMS, 4 * QPIX)
    taps = jnp.pad(taps, ((0, 0), (0, KPAD - KTERMS), (0, 0)))              # zero taps 27..31
    return taps.astype(jnp.bfloat16)


def base_cnn_forward(x, params):
    w_conv, b_conv, w1, b1, w2, b2 = params
    n = x.shape[0]

    xs = _im2col_quadrants(x)                                               # (n, 32, 4096)
    wc = jnp.pad(w_conv.reshape(COUT, KTERMS),
                 ((0, 0), (0, KPAD - KTERMS))).astype(jnp.bfloat16)         # (18, 32)
    bc = b_conv.reshape(COUT, 1)
    w1b = w1.astype(jnp.bfloat16)                                           # (18432, 64)

    # Up to 8 images per grid step; pad the batch so every block is full.
    blk = n if n <= 8 else 8
    n_pad = ((n + blk - 1) // blk) * blk
    if n_pad != n:
        xs = jnp.pad(xs, ((0, n_pad - n), (0, 0), (0, 0)))

    out = pl.pallas_call(
        _fused_cnn_kernel,
        out_shape=jax.ShapeDtypeStruct((n_pad, NCLS), jnp.float32),
        grid=(n_pad // blk,),
        in_specs=[
            pl.BlockSpec((blk, KPAD, 4 * QPIX), lambda i: (i, 0, 0)),   # per-step image block
            pl.BlockSpec((COUT, KPAD), lambda i: (0, 0)),               # conv weights (resident)
            pl.BlockSpec((COUT, 1), lambda i: (0, 0)),                  # conv bias
            pl.BlockSpec((FEAT, HID), lambda i: (0, 0)),                # w1 (resident, 1 DMA/core)
            pl.BlockSpec((1, HID), lambda i: (0, 0)),                   # b1
            pl.BlockSpec((HID, NCLS), lambda i: (0, 0)),                # w2
            pl.BlockSpec((1, NCLS), lambda i: (0, 0)),                  # b2
        ],
        out_specs=pl.BlockSpec((blk, NCLS), lambda i: (i, 0)),
        compiler_params=pltpu.CompilerParams(
            dimension_semantics=("parallel",),
            vmem_limit_bytes=32 * 1024 * 1024,
        ),
    )(xs, wc, bc, w1b, b1.reshape(1, HID), w2, b2.reshape(1, NCLS))
    return out[:n]


# ---------------- deterministic synthetic parameters ----------------

def init_params(key):
    k = jax.random.split(key, 6)
    w_conv = 0.05 * jax.random.normal(k[0], (COUT, CIN, KH, KW), jnp.float32)
    b_conv = 0.05 * jax.random.normal(k[1], (COUT,), jnp.float32)
    w1 = 0.01 * jax.random.normal(k[2], (FEAT, HID), jnp.float32)
    b1 = 0.01 * jax.random.normal(k[3], (HID,), jnp.float32)
    w2 = 0.1 * jax.random.normal(k[4], (HID, NCLS), jnp.float32)
    b2 = 0.1 * jax.random.normal(k[5], (NCLS,), jnp.float32)
    return (w_conv, b_conv, w1, b1, w2, b2)


# ---------------- pure-JAX reference for correctness ----------------

def reference_forward(x, params):
    w_conv, b_conv, w1, b1, w2, b2 = params
    conv = lax.conv_general_dilated(
        x, w_conv, window_strides=(1, 1), padding=((1, 1), (1, 1)),
        dimension_numbers=('NCHW', 'OIHW', 'NCHW'))
    conv = jnp.maximum(conv + b_conv[None, :, None, None], 0.0)
    pooled = lax.reduce_window(conv, -jnp.inf, lax.max,
                               (1, 1, 2, 2), (1, 1, 2, 2), 'VALID')
    feat = pooled.reshape(x.shape[0], FEAT)
    h = jnp.maximum(feat @ w1 + b1, 0.0)
    return h @ w2 + b2


if __name__ == "__main__":
    key = jax.random.PRNGKey(0)
    kx, kp = jax.random.split(key)
    x = jax.random.normal(kx, (2, CIN, H, W), jnp.float32)
    params = init_params(kp)

    out = jax.jit(base_cnn_forward)(x, params)
    out = jax.block_until_ready(out)

    ref = reference_forward(x, params)
    assert out.shape == (2, NCLS), out.shape
    assert jnp.allclose(out, ref, rtol=1e-2, atol=1e-2), (out, ref)
    print("KERNEL_OK")
</pallas_src>

<mosaic_0001>
module attributes {stable_mosaic.version = 11 : i64} {
  func.func @_fused_cnn_kernel(%arg0: i32, %arg1: memref<2x32x4096xbf16, #tpu.memory_space<vmem>>, %arg2: memref<18x32xbf16, #tpu.memory_space<vmem>>, %arg3: memref<18x1xf32, #tpu.memory_space<vmem>>, %arg4: memref<18432x64xbf16, #tpu.memory_space<vmem>>, %arg5: memref<1x64xf32, #tpu.memory_space<vmem>>, %arg6: memref<64x2xf32, #tpu.memory_space<vmem>>, %arg7: memref<1x2xf32, #tpu.memory_space<vmem>>, %arg8: memref<2x2xf32, #tpu.memory_space<vmem>>) attributes {dimension_semantics = [#tpu.dimension_semantics<parallel>], iteration_bounds = array<i64: 1>, scalar_prefetch = 0 : i64, scratch_operands = 0 : i64, tpu.core_type = #tpu.core_type<tc>, window_params = [{transform_indices = @transform_0, window_bounds = array<i64: 2, 32, 4096>}, {pipeline_mode = #tpu.pipeline_mode<synchronous>, transform_indices = @transform_1, window_bounds = array<i64: 18, 32>}, {pipeline_mode = #tpu.pipeline_mode<synchronous>, transform_indices = @transform_2, window_bounds = array<i64: 18, 1>}, {pipeline_mode = #tpu.pipeline_mode<synchronous>, transform_indices = @transform_3, window_bounds = array<i64: 18432, 64>}, {pipeline_mode = #tpu.pipeline_mode<synchronous>, transform_indices = @transform_4, window_bounds = array<i64: 1, 64>}, {pipeline_mode = #tpu.pipeline_mode<synchronous>, transform_indices = @transform_5, window_bounds = array<i64: 64, 2>}, {pipeline_mode = #tpu.pipeline_mode<synchronous>, transform_indices = @transform_6, window_bounds = array<i64: 1, 2>}, {transform_indices = @transform_7, window_bounds = array<i64: 2, 2>}]} {
    %c0 = arith.constant 0 : index
    %c0_0 = arith.constant 0 : index
    %0 = vector.load %arg2[%c0, %c0_0] : memref<18x32xbf16, #tpu.memory_space<vmem>>, vector<18x32xbf16>
    %c0_1 = arith.constant 0 : index
    %c0_2 = arith.constant 0 : index
    %c0_3 = arith.constant 0 : index
    %1 = vector.load %arg1[%c0_1, %c0_2, %c0_3] : memref<2x32x4096xbf16, #tpu.memory_space<vmem>>, vector<1x32x4096xbf16>
    %2 = vector.shape_cast %1 : vector<1x32x4096xbf16> to vector<32x4096xbf16>
    %cst = arith.constant dense<0.000000e+00> : vector<18x4096xf32>
    %3 = tpu.matmul %0, %2, %cst {dimension_numbers = #tpu.dot_dimension_numbers<[1], [0], [0], [1], [0, 0, 1, 1], [], []>} : vector<18x32xbf16>, vector<32x4096xbf16>, vector<18x4096xf32> -> vector<18x4096xf32>
    %4 = vector.extract_strided_slice %3 {offsets = [0, 0], sizes = [18, 1024], strides = [1, 1]} : vector<18x4096xf32> to vector<18x1024xf32>
    %5 = vector.extract_strided_slice %3 {offsets = [0, 1024], sizes = [18, 1024], strides = [1, 1]} : vector<18x4096xf32> to vector<18x1024xf32>
    %6 = arith.maximumf %4, %5 : vector<18x1024xf32>
    %7 = vector.extract_strided_slice %3 {offsets = [0, 2048], sizes = [18, 1024], strides = [1, 1]} : vector<18x4096xf32> to vector<18x1024xf32>
    %8 = vector.extract_strided_slice %3 {offsets = [0, 3072], sizes = [18, 1024], strides = [1, 1]} : vector<18x4096xf32> to vector<18x1024xf32>
    %9 = arith.maximumf %7, %8 : vector<18x1024xf32>
    %10 = arith.maximumf %6, %9 : vector<18x1024xf32>
    %c0_4 = arith.constant 0 : index
    %c0_5 = arith.constant 0 : index
    %11 = vector.load %arg3[%c0_4, %c0_5] : memref<18x1xf32, #tpu.memory_space<vmem>>, vector<18x1xf32>
    %12 = vector.broadcast %11 : vector<18x1xf32> to vector<18x1024xf32>
    %13 = arith.addf %10, %12 : vector<18x1024xf32>
    %cst_6 = arith.constant 0.000000e+00 : f32
    %14 = vector.broadcast %cst_6 : f32 to vector<18x1024xf32>
    %15 = arith.maximumf %13, %14 : vector<18x1024xf32>
    %c0_7 = arith.constant 0 : index
    %c0_8 = arith.constant 0 : index
    %16 = vector.load %arg2[%c0_7, %c0_8] : memref<18x32xbf16, #tpu.memory_space<vmem>>, vector<18x32xbf16>
    %c1 = arith.constant 1 : index
    %c0_9 = arith.constant 0 : index
    %c0_10 = arith.constant 0 : index
    %17 = vector.load %arg1[%c1, %c0_9, %c0_10] : memref<2x32x4096xbf16, #tpu.memory_space<vmem>>, vector<1x32x4096xbf16>
    %18 = vector.shape_cast %17 : vector<1x32x4096xbf16> to vector<32x4096xbf16>
    %cst_11 = arith.constant dense<0.000000e+00> : vector<18x4096xf32>
    %19 = tpu.matmul %16, %18, %cst_11 {dimension_numbers = #tpu.dot_dimension_numbers<[1], [0], [0], [1], [0, 0, 1, 1], [], []>} : vector<18x32xbf16>, vector<32x4096xbf16>, vector<18x4096xf32> -> vector<18x4096xf32>
    %20 = vector.extract_strided_slice %19 {offsets = [0, 0], sizes = [18, 1024], strides = [1, 1]} : vector<18x4096xf32> to vector<18x1024xf32>
    %21 = vector.extract_strided_slice %19 {offsets = [0, 1024], sizes = [18, 1024], strides = [1, 1]} : vector<18x4096xf32> to vector<18x1024xf32>
    %22 = arith.maximumf %20, %21 : vector<18x1024xf32>
    %23 = vector.extract_strided_slice %19 {offsets = [0, 2048], sizes = [18, 1024], strides = [1, 1]} : vector<18x4096xf32> to vector<18x1024xf32>
    %24 = vector.extract_strided_slice %19 {offsets = [0, 3072], sizes = [18, 1024], strides = [1, 1]} : vector<18x4096xf32> to vector<18x1024xf32>
    %25 = arith.maximumf %23, %24 : vector<18x1024xf32>
    %26 = arith.maximumf %22, %25 : vector<18x1024xf32>
    %c0_12 = arith.constant 0 : index
    %c0_13 = arith.constant 0 : index
    %27 = vector.load %arg3[%c0_12, %c0_13] : memref<18x1xf32, #tpu.memory_space<vmem>>, vector<18x1xf32>
    %28 = vector.broadcast %27 : vector<18x1xf32> to vector<18x1024xf32>
    %29 = arith.addf %26, %28 : vector<18x1024xf32>
    %cst_14 = arith.constant 0.000000e+00 : f32
    %30 = vector.broadcast %cst_14 : f32 to vector<18x1024xf32>
    %31 = arith.maximumf %29, %30 : vector<18x1024xf32>
    %cst_15 = arith.constant 0.000000e+00 : f32
    %32 = vector.broadcast %cst_15 : f32 to vector<2x64xf32>
    %33 = vector.extract_strided_slice %15 {offsets = [0, 0], sizes = [1, 1024], strides = [1, 1]} : vector<18x1024xf32> to vector<1x1024xf32>
    %34 = vector.extract_strided_slice %31 {offsets = [0, 0], sizes = [1, 1024], strides = [1, 1]} : vector<18x1024xf32> to vector<1x1024xf32>
    %35 = tpu.concatenate %33, %34 in 0 : vector<1x1024xf32>, vector<1x1024xf32> -> vector<2x1024xf32>
    %36 = arith.truncf %35 : vector<2x1024xf32> to vector<2x1024xbf16>
    %c0_16 = arith.constant 0 : index
    %c0_17 = arith.constant 0 : index
    %37 = vector.load %arg4[%c0_16, %c0_17] : memref<18432x64xbf16, #tpu.memory_space<vmem>>, vector<1024x64xbf16>
    %cst_18 = arith.constant dense<0.000000e+00> : vector<2x64xf32>
    %38 = tpu.matmul %36, %37, %cst_18 {dimension_numbers = #tpu.dot_dimension_numbers<[1], [0], [0], [1], [0, 0, 1, 1], [], []>} : vector<2x1024xbf16>, vector<1024x64xbf16>, vector<2x64xf32> -> vector<2x64xf32>
    %39 = arith.addf %32, %38 : vector<2x64xf32>
    %40 = vector.extract_strided_slice %15 {offsets = [1, 0], sizes = [1, 1024], strides = [1, 1]} : vector<18x1024xf32> to vector<1x1024xf32>
    %41 = vector.extract_strided_slice %31 {offsets = [1, 0], sizes = [1, 1024], strides = [1, 1]} : vector<18x1024xf32> to vector<1x1024xf32>
    %42 = tpu.concatenate %40, %41 in 0 : vector<1x1024xf32>, vector<1x1024xf32> -> vector<2x1024xf32>
    %43 = arith.truncf %42 : vector<2x1024xf32> to vector<2x1024xbf16>
    %c1024 = arith.constant 1024 : index
    %c0_19 = arith.constant 0 : index
    %44 = vector.load %arg4[%c1024, %c0_19] : memref<18432x64xbf16, #tpu.memory_space<vmem>>, vector<1024x64xbf16>
    %cst_20 = arith.constant dense<0.000000e+00> : vector<2x64xf32>
    %45 = tpu.matmul %43, %44, %cst_20 {dimension_numbers = #tpu.dot_dimension_numbers<[1], [0], [0], [1], [0, 0, 1, 1], [], []>} : vector<2x1024xbf16>, vector<1024x64xbf16>, vector<2x64xf32> -> vector<2x64xf32>
    %46 = arith.addf %39, %45 : vector<2x64xf32>
    %47 = vector.extract_strided_slice %15 {offsets = [2, 0], sizes = [1, 1024], strides = [1, 1]} : vector<18x1024xf32> to vector<1x1024xf32>
    %48 = vector.extract_strided_slice %31 {offsets = [2, 0], sizes = [1, 1024], strides = [1, 1]} : vector<18x1024xf32> to vector<1x1024xf32>
    %49 = tpu.concatenate %47, %48 in 0 : vector<1x1024xf32>, vector<1x1024xf32> -> vector<2x1024xf32>
    %50 = arith.truncf %49 : vector<2x1024xf32> to vector<2x1024xbf16>
    %c2048 = arith.constant 2048 : index
    %c0_21 = arith.constant 0 : index
    %51 = vector.load %arg4[%c2048, %c0_21] : memref<18432x64xbf16, #tpu.memory_space<vmem>>, vector<1024x64xbf16>
    %cst_22 = arith.constant dense<0.000000e+00> : vector<2x64xf32>
    %52 = tpu.matmul %50, %51, %cst_22 {dimension_numbers = #tpu.dot_dimension_numbers<[1], [0], [0], [1], [0, 0, 1, 1], [], []>} : vector<2x1024xbf16>, vector<1024x64xbf16>, vector<2x64xf32> -> vector<2x64xf32>
    %53 = arith.addf %46, %52 : vector<2x64xf32>
    %54 = vector.extract_strided_slice %15 {offsets = [3, 0], sizes = [1, 1024], strides = [1, 1]} : vector<18x1024xf32> to vector<1x1024xf32>
    %55 = vector.extract_strided_slice %31 {offsets = [3, 0], sizes = [1, 1024], strides = [1, 1]} : vector<18x1024xf32> to vector<1x1024xf32>
    %56 = tpu.concatenate %54, %55 in 0 : vector<1x1024xf32>, vector<1x1024xf32> -> vector<2x1024xf32>
    %57 = arith.truncf %56 : vector<2x1024xf32> to vector<2x1024xbf16>
    %c3072 = arith.constant 3072 : index
    %c0_23 = arith.constant 0 : index
    %58 = vector.load %arg4[%c3072, %c0_23] : memref<18432x64xbf16, #tpu.memory_space<vmem>>, vector<1024x64xbf16>
    %cst_24 = arith.constant dense<0.000000e+00> : vector<2x64xf32>
    %59 = tpu.matmul %57, %58, %cst_24 {dimension_numbers = #tpu.dot_dimension_numbers<[1], [0], [0], [1], [0, 0, 1, 1], [], []>} : vector<2x1024xbf16>, vector<1024x64xbf16>, vector<2x64xf32> -> vector<2x64xf32>
    %60 = arith.addf %53, %59 : vector<2x64xf32>
    %61 = vector.extract_strided_slice %15 {offsets = [4, 0], sizes = [1, 1024], strides = [1, 1]} : vector<18x1024xf32> to vector<1x1024xf32>
    %62 = vector.extract_strided_slice %31 {offsets = [4, 0], sizes = [1, 1024], strides = [1, 1]} : vector<18x1024xf32> to vector<1x1024xf32>
    %63 = tpu.concatenate %61, %62 in 0 : vector<1x1024xf32>, vector<1x1024xf32> -> vector<2x1024xf32>
    %64 = arith.truncf %63 : vector<2x1024xf32> to vector<2x1024xbf16>
    %c4096 = arith.constant 4096 : index
    %c0_25 = arith.constant 0 : index
    %65 = vector.load %arg4[%c4096, %c0_25] : memref<18432x64xbf16, #tpu.memory_space<vmem>>, vector<1024x64xbf16>
    %cst_26 = arith.constant dense<0.000000e+00> : vector<2x64xf32>
    %66 = tpu.matmul %64, %65, %cst_26 {dimension_numbers = #tpu.dot_dimension_numbers<[1], [0], [0], [1], [0, 0, 1, 1], [], []>} : vector<2x1024xbf16>, vector<1024x64xbf16>, vector<2x64xf32> -> vector<2x64xf32>
    %67 = arith.addf %60, %66 : vector<2x64xf32>
    %68 = vector.extract_strided_slice %15 {offsets = [5, 0], sizes = [1, 1024], strides = [1, 1]} : vector<18x1024xf32> to vector<1x1024xf32>
    %69 = vector.extract_strided_slice %31 {offsets = [5, 0], sizes = [1, 1024], strides = [1, 1]} : vector<18x1024xf32> to vector<1x1024xf32>
    %70 = tpu.concatenate %68, %69 in 0 : vector<1x1024xf32>, vector<1x1024xf32> -> vector<2x1024xf32>
    %71 = arith.truncf %70 : vector<2x1024xf32> to vector<2x1024xbf16>
    %c5120 = arith.constant 5120 : index
    %c0_27 = arith.constant 0 : index
    %72 = vector.load %arg4[%c5120, %c0_27] : memref<18432x64xbf16, #tpu.memory_space<vmem>>, vector<1024x64xbf16>
    %cst_28 = arith.constant dense<0.000000e+00> : vector<2x64xf32>
    %73 = tpu.matmul %71, %72, %cst_28 {dimension_numbers = #tpu.dot_dimension_numbers<[1], [0], [0], [1], [0, 0, 1, 1], [], []>} : vector<2x1024xbf16>, vector<1024x64xbf16>, vector<2x64xf32> -> vector<2x64xf32>
    %74 = arith.addf %67, %73 : vector<2x64xf32>
    %75 = vector.extract_strided_slice %15 {offsets = [6, 0], sizes = [1, 1024], strides = [1, 1]} : vector<18x1024xf32> to vector<1x1024xf32>
    %76 = vector.extract_strided_slice %31 {offsets = [6, 0], sizes = [1, 1024], strides = [1, 1]} : vector<18x1024xf32> to vector<1x1024xf32>
    %77 = tpu.concatenate %75, %76 in 0 : vector<1x1024xf32>, vector<1x1024xf32> -> vector<2x1024xf32>
    %78 = arith.truncf %77 : vector<2x1024xf32> to vector<2x1024xbf16>
    %c6144 = arith.constant 6144 : index
    %c0_29 = arith.constant 0 : index
    %79 = vector.load %arg4[%c6144, %c0_29] : memref<18432x64xbf16, #tpu.memory_space<vmem>>, vector<1024x64xbf16>
    %cst_30 = arith.constant dense<0.000000e+00> : vector<2x64xf32>
    %80 = tpu.matmul %78, %79, %cst_30 {dimension_numbers = #tpu.dot_dimension_numbers<[1], [0], [0], [1], [0, 0, 1, 1], [], []>} : vector<2x1024xbf16>, vector<1024x64xbf16>, vector<2x64xf32> -> vector<2x64xf32>
    %81 = arith.addf %74, %80 : vector<2x64xf32>
    %82 = vector.extract_strided_slice %15 {offsets = [7, 0], sizes = [1, 1024], strides = [1, 1]} : vector<18x1024xf32> to vector<1x1024xf32>
    %83 = vector.extract_strided_slice %31 {offsets = [7, 0], sizes = [1, 1024], strides = [1, 1]} : vector<18x1024xf32> to vector<1x1024xf32>
    %84 = tpu.concatenate %82, %83 in 0 : vector<1x1024xf32>, vector<1x1024xf32> -> vector<2x1024xf32>
    %85 = arith.truncf %84 : vector<2x1024xf32> to vector<2x1024xbf16>
    %c7168 = arith.constant 7168 : index
    %c0_31 = arith.constant 0 : index
    %86 = vector.load %arg4[%c7168, %c0_31] : memref<18432x64xbf16, #tpu.memory_space<vmem>>, vector<1024x64xbf16>
    %cst_32 = arith.constant dense<0.000000e+00> : vector<2x64xf32>
    %87 = tpu.matmul %85, %86, %cst_32 {dimension_numbers = #tpu.dot_dimension_numbers<[1], [0], [0], [1], [0, 0, 1, 1], [], []>} : vector<2x1024xbf16>, vector<1024x64xbf16>, vector<2x64xf32> -> vector<2x64xf32>
    %88 = arith.addf %81, %87 : vector<2x64xf32>
    %89 = vector.extract_strided_slice %15 {offsets = [8, 0], sizes = [1, 1024], strides = [1, 1]} : vector<18x1024xf32> to vector<1x1024xf32>
    %90 = vector.extract_strided_slice %31 {offsets = [8, 0], sizes = [1, 1024], strides = [1, 1]} : vector<18x1024xf32> to vector<1x1024xf32>
    %91 = tpu.concatenate %89, %90 in 0 : vector<1x1024xf32>, vector<1x1024xf32> -> vector<2x1024xf32>
    %92 = arith.truncf %91 : vector<2x1024xf32> to vector<2x1024xbf16>
    %c8192 = arith.constant 8192 : index
    %c0_33 = arith.constant 0 : index
    %93 = vector.load %arg4[%c8192, %c0_33] : memref<18432x64xbf16, #tpu.memory_space<vmem>>, vector<1024x64xbf16>
    %cst_34 = arith.constant dense<0.000000e+00> : vector<2x64xf32>
    %94 = tpu.matmul %92, %93, %cst_34 {dimension_numbers = #tpu.dot_dimension_numbers<[1], [0], [0], [1], [0, 0, 1, 1], [], []>} : vector<2x1024xbf16>, vector<1024x64xbf16>, vector<2x64xf32> -> vector<2x64xf32>
    %95 = arith.addf %88, %94 : vector<2x64xf32>
    %96 = vector.extract_strided_slice %15 {offsets = [9, 0], sizes = [1, 1024], strides = [1, 1]} : vector<18x1024xf32> to vector<1x1024xf32>
    %97 = vector.extract_strided_slice %31 {offsets = [9, 0], sizes = [1, 1024], strides = [1, 1]} : vector<18x1024xf32> to vector<1x1024xf32>
    %98 = tpu.concatenate %96, %97 in 0 : vector<1x1024xf32>, vector<1x1024xf32> -> vector<2x1024xf32>
    %99 = arith.truncf %98 : vector<2x1024xf32> to vector<2x1024xbf16>
    %c9216 = arith.constant 9216 : index
    %c0_35 = arith.constant 0 : index
    %100 = vector.load %arg4[%c9216, %c0_35] : memref<18432x64xbf16, #tpu.memory_space<vmem>>, vector<1024x64xbf16>
    %cst_36 = arith.constant dense<0.000000e+00> : vector<2x64xf32>
    %101 = tpu.matmul %99, %100, %cst_36 {dimension_numbers = #tpu.dot_dimension_numbers<[1], [0], [0], [1], [0, 0, 1, 1], [], []>} : vector<2x1024xbf16>, vector<1024x64xbf16>, vector<2x64xf32> -> vector<2x64xf32>
    %102 = arith.addf %95, %101 : vector<2x64xf32>
    %103 = vector.extract_strided_slice %15 {offsets = [10, 0], sizes = [1, 1024], strides = [1, 1]} : vector<18x1024xf32> to vector<1x1024xf32>
    %104 = vector.extract_strided_slice %31 {offsets = [10, 0], sizes = [1, 1024], strides = [1, 1]} : vector<18x1024xf32> to vector<1x1024xf32>
    %105 = tpu.concatenate %103, %104 in 0 : vector<1x1024xf32>, vector<1x1024xf32> -> vector<2x1024xf32>
    %106 = arith.truncf %105 : vector<2x1024xf32> to vector<2x1024xbf16>
    %c10240 = arith.constant 10240 : index
    %c0_37 = arith.constant 0 : index
    %107 = vector.load %arg4[%c10240, %c0_37] : memref<18432x64xbf16, #tpu.memory_space<vmem>>, vector<1024x64xbf16>
    %cst_38 = arith.constant dense<0.000000e+00> : vector<2x64xf32>
    %108 = tpu.matmul %106, %107, %cst_38 {dimension_numbers = #tpu.dot_dimension_numbers<[1], [0], [0], [1], [0, 0, 1, 1], [], []>} : vector<2x1024xbf16>, vector<1024x64xbf16>, vector<2x64xf32> -> vector<2x64xf32>
    %109 = arith.addf %102, %108 : vector<2x64xf32>
    %110 = vector.extract_strided_slice %15 {offsets = [11, 0], sizes = [1, 1024], strides = [1, 1]} : vector<18x1024xf32> to vector<1x1024xf32>
    %111 = vector.extract_strided_slice %31 {offsets = [11, 0], sizes = [1, 1024], strides = [1, 1]} : vector<18x1024xf32> to vector<1x1024xf32>
    %112 = tpu.concatenate %110, %111 in 0 : vector<1x1024xf32>, vector<1x1024xf32> -> vector<2x1024xf32>
    %113 = arith.truncf %112 : vector<2x1024xf32> to vector<2x1024xbf16>
    %c11264 = arith.constant 11264 : index
    %c0_39 = arith.constant 0 : index
    %114 = vector.load %arg4[%c11264, %c0_39] : memref<18432x64xbf16, #tpu.memory_space<vmem>>, vector<1024x64xbf16>
    %cst_40 = arith.constant dense<0.000000e+00> : vector<2x64xf32>
    %115 = tpu.matmul %113, %114, %cst_40 {dimension_numbers = #tpu.dot_dimension_numbers<[1], [0], [0], [1], [0, 0, 1, 1], [], []>} : vector<2x1024xbf16>, vector<1024x64xbf16>, vector<2x64xf32> -> vector<2x64xf32>
    %116 = arith.addf %109, %115 : vector<2x64xf32>
    %117 = vector.extract_strided_slice %15 {offsets = [12, 0], sizes = [1, 1024], strides = [1, 1]} : vector<18x1024xf32> to vector<1x1024xf32>
    %118 = vector.extract_strided_slice %31 {offsets = [12, 0], sizes = [1, 1024], strides = [1, 1]} : vector<18x1024xf32> to vector<1x1024xf32>
    %119 = tpu.concatenate %117, %118 in 0 : vector<1x1024xf32>, vector<1x1024xf32> -> vector<2x1024xf32>
    %120 = arith.truncf %119 : vector<2x1024xf32> to vector<2x1024xbf16>
    %c12288 = arith.constant 12288 : index
    %c0_41 = arith.constant 0 : index
    %121 = vector.load %arg4[%c12288, %c0_41] : memref<18432x64xbf16, #tpu.memory_space<vmem>>, vector<1024x64xbf16>
    %cst_42 = arith.constant dense<0.000000e+00> : vector<2x64xf32>
    %122 = tpu.matmul %120, %121, %cst_42 {dimension_numbers = #tpu.dot_dimension_numbers<[1], [0], [0], [1], [0, 0, 1, 1], [], []>} : vector<2x1024xbf16>, vector<1024x64xbf16>, vector<2x64xf32> -> vector<2x64xf32>
    %123 = arith.addf %116, %122 : vector<2x64xf32>
    %124 = vector.extract_strided_slice %15 {offsets = [13, 0], sizes = [1, 1024], strides = [1, 1]} : vector<18x1024xf32> to vector<1x1024xf32>
    %125 = vector.extract_strided_slice %31 {offsets = [13, 0], sizes = [1, 1024], strides = [1, 1]} : vector<18x1024xf32> to vector<1x1024xf32>
    %126 = tpu.concatenate %124, %125 in 0 : vector<1x1024xf32>, vector<1x1024xf32> -> vector<2x1024xf32>
    %127 = arith.truncf %126 : vector<2x1024xf32> to vector<2x1024xbf16>
    %c13312 = arith.constant 13312 : index
    %c0_43 = arith.constant 0 : index
    %128 = vector.load %arg4[%c13312, %c0_43] : memref<18432x64xbf16, #tpu.memory_space<vmem>>, vector<1024x64xbf16>
    %cst_44 = arith.constant dense<0.000000e+00> : vector<2x64xf32>
    %129 = tpu.matmul %127, %128, %cst_44 {dimension_numbers = #tpu.dot_dimension_numbers<[1], [0], [0], [1], [0, 0, 1, 1], [], []>} : vector<2x1024xbf16>, vector<1024x64xbf16>, vector<2x64xf32> -> vector<2x64xf32>
    %130 = arith.addf %123, %129 : vector<2x64xf32>
    %131 = vector.extract_strided_slice %15 {offsets = [14, 0], sizes = [1, 1024], strides = [1, 1]} : vector<18x1024xf32> to vector<1x1024xf32>
    %132 = vector.extract_strided_slice %31 {offsets = [14, 0], sizes = [1, 1024], strides = [1, 1]} : vector<18x1024xf32> to vector<1x1024xf32>
    %133 = tpu.concatenate %131, %132 in 0 : vector<1x1024xf32>, vector<1x1024xf32> -> vector<2x1024xf32>
    %134 = arith.truncf %133 : vector<2x1024xf32> to vector<2x1024xbf16>
    %c14336 = arith.constant 14336 : index
    %c0_45 = arith.constant 0 : index
    %135 = vector.load %arg4[%c14336, %c0_45] : memref<18432x64xbf16, #tpu.memory_space<vmem>>, vector<1024x64xbf16>
    %cst_46 = arith.constant dense<0.000000e+00> : vector<2x64xf32>
    %136 = tpu.matmul %134, %135, %cst_46 {dimension_numbers = #tpu.dot_dimension_numbers<[1], [0], [0], [1], [0, 0, 1, 1], [], []>} : vector<2x1024xbf16>, vector<1024x64xbf16>, vector<2x64xf32> -> vector<2x64xf32>
    %137 = arith.addf %130, %136 : vector<2x64xf32>
    %138 = vector.extract_strided_slice %15 {offsets = [15, 0], sizes = [1, 1024], strides = [1, 1]} : vector<18x1024xf32> to vector<1x1024xf32>
    %139 = vector.extract_strided_slice %31 {offsets = [15, 0], sizes = [1, 1024], strides = [1, 1]} : vector<18x1024xf32> to vector<1x1024xf32>
    %140 = tpu.concatenate %138, %139 in 0 : vector<1x1024xf32>, vector<1x1024xf32> -> vector<2x1024xf32>
    %141 = arith.truncf %140 : vector<2x1024xf32> to vector<2x1024xbf16>
    %c15360 = arith.constant 15360 : index
    %c0_47 = arith.constant 0 : index
    %142 = vector.load %arg4[%c15360, %c0_47] : memref<18432x64xbf16, #tpu.memory_space<vmem>>, vector<1024x64xbf16>
    %cst_48 = arith.constant dense<0.000000e+00> : vector<2x64xf32>
    %143 = tpu.matmul %141, %142, %cst_48 {dimension_numbers = #tpu.dot_dimension_numbers<[1], [0], [0], [1], [0, 0, 1, 1], [], []>} : vector<2x1024xbf16>, vector<1024x64xbf16>, vector<2x64xf32> -> vector<2x64xf32>
    %144 = arith.addf %137, %143 : vector<2x64xf32>
    %145 = vector.extract_strided_slice %15 {offsets = [16, 0], sizes = [1, 1024], strides = [1, 1]} : vector<18x1024xf32> to vector<1x1024xf32>
    %146 = vector.extract_strided_slice %31 {offsets = [16, 0], sizes = [1, 1024], strides = [1, 1]} : vector<18x1024xf32> to vector<1x1024xf32>
    %147 = tpu.concatenate %145, %146 in 0 : vector<1x1024xf32>, vector<1x1024xf32> -> vector<2x1024xf32>
    %148 = arith.truncf %147 : vector<2x1024xf32> to vector<2x1024xbf16>
    %c16384 = arith.constant 16384 : index
    %c0_49 = arith.constant 0 : index
    %149 = vector.load %arg4[%c16384, %c0_49] : memref<18432x64xbf16, #tpu.memory_space<vmem>>, vector<1024x64xbf16>
    %cst_50 = arith.constant dense<0.000000e+00> : vector<2x64xf32>
    %150 = tpu.matmul %148, %149, %cst_50 {dimension_numbers = #tpu.dot_dimension_numbers<[1], [0], [0], [1], [0, 0, 1, 1], [], []>} : vector<2x1024xbf16>, vector<1024x64xbf16>, vector<2x64xf32> -> vector<2x64xf32>
    %151 = arith.addf %144, %150 : vector<2x64xf32>
    %152 = vector.extract_strided_slice %15 {offsets = [17, 0], sizes = [1, 1024], strides = [1, 1]} : vector<18x1024xf32> to vector<1x1024xf32>
    %153 = vector.extract_strided_slice %31 {offsets = [17, 0], sizes = [1, 1024], strides = [1, 1]} : vector<18x1024xf32> to vector<1x1024xf32>
    %154 = tpu.concatenate %152, %153 in 0 : vector<1x1024xf32>, vector<1x1024xf32> -> vector<2x1024xf32>
    %155 = arith.truncf %154 : vector<2x1024xf32> to vector<2x1024xbf16>
    %c17408 = arith.constant 17408 : index
    %c0_51 = arith.constant 0 : index
    %156 = vector.load %arg4[%c17408, %c0_51] : memref<18432x64xbf16, #tpu.memory_space<vmem>>, vector<1024x64xbf16>
    %cst_52 = arith.constant dense<0.000000e+00> : vector<2x64xf32>
    %157 = tpu.matmul %155, %156, %cst_52 {dimension_numbers = #tpu.dot_dimension_numbers<[1], [0], [0], [1], [0, 0, 1, 1], [], []>} : vector<2x1024xbf16>, vector<1024x64xbf16>, vector<2x64xf32> -> vector<2x64xf32>
    %158 = arith.addf %151, %157 : vector<2x64xf32>
    %c0_53 = arith.constant 0 : index
    %c0_54 = arith.constant 0 : index
    %159 = vector.load %arg5[%c0_53, %c0_54] : memref<1x64xf32, #tpu.memory_space<vmem>>, vector<1x64xf32>
    %160 = vector.broadcast %159 : vector<1x64xf32> to vector<2x64xf32>
    %161 = arith.addf %158, %160 : vector<2x64xf32>
    %cst_55 = arith.constant 0.000000e+00 : f32
    %162 = vector.broadcast %cst_55 : f32 to vector<2x64xf32>
    %163 = arith.maximumf %161, %162 : vector<2x64xf32>
    %c0_56 = arith.constant 0 : index
    %c0_57 = arith.constant 0 : index
    %164 = vector.load %arg6[%c0_56, %c0_57] : memref<64x2xf32, #tpu.memory_space<vmem>>, vector<64x2xf32>
    %cst_58 = arith.constant dense<0.000000e+00> : vector<2x2xf32>
    %165 = tpu.matmul %163, %164, %cst_58 {dimension_numbers = #tpu.dot_dimension_numbers<[1], [0], [0], [1], [0, 0, 1, 1], [], []>} : vector<2x64xf32>, vector<64x2xf32>, vector<2x2xf32> -> vector<2x2xf32>
    %c0_59 = arith.constant 0 : index
    %c0_60 = arith.constant 0 : index
    %166 = vector.load %arg7[%c0_59, %c0_60] : memref<1x2xf32, #tpu.memory_space<vmem>>, vector<1x2xf32>
    %167 = vector.broadcast %166 : vector<1x2xf32> to vector<2x2xf32>
    %168 = arith.addf %165, %167 : vector<2x2xf32>
    %c0_61 = arith.constant 0 : index
    %c0_62 = arith.constant 0 : index
    %169 = vector.load %arg8[%c0_61, %c0_62] : memref<2x2xf32, #tpu.memory_space<vmem>>, vector<2x2xf32>
    tpu.vector_store %arg8[%c0_61, %c0_62], %168 {strides = array<i32>} : memref<2x2xf32, #tpu.memory_space<vmem>>, vector<2x2xf32>,
    return
  }
  func.func @transform_0(%arg0: i32) -> (i32, i32, i32) {
    %c0_i32 = arith.constant 0 : i32
    %c0_i32_0 = arith.constant 0 : i32
    %c0_i32_1 = arith.constant 0 : i32
    return %arg0, %c0_i32, %c0_i32_0 : i32, i32, i32
  }
  func.func @transform_1(%arg0: i32) -> (i32, i32) {
    %c0_i32 = arith.constant 0 : i32
    %c0_i32_0 = arith.constant 0 : i32
    %c0_i32_1 = arith.constant 0 : i32
    return %c0_i32, %c0_i32_0 : i32, i32
  }
  func.func @transform_2(%arg0: i32) -> (i32, i32) {
    %c0_i32 = arith.constant 0 : i32
    %c0_i32_0 = arith.constant 0 : i32
    %c0_i32_1 = arith.constant 0 : i32
    return %c0_i32, %c0_i32_0 : i32, i32
  }
  func.func @transform_3(%arg0: i32) -> (i32, i32) {
    %c0_i32 = arith.constant 0 : i32
    %c0_i32_0 = arith.constant 0 : i32
    %c0_i32_1 = arith.constant 0 : i32
    return %c0_i32, %c0_i32_0 : i32, i32
  }
  func.func @transform_4(%arg0: i32) -> (i32, i32) {
    %c0_i32 = arith.constant 0 : i32
    %c0_i32_0 = arith.constant 0 : i32
    %c0_i32_1 = arith.constant 0 : i32
    return %c0_i32, %c0_i32_0 : i32, i32
  }
  func.func @transform_5(%arg0: i32) -> (i32, i32) {
    %c0_i32 = arith.constant 0 : i32
    %c0_i32_0 = arith.constant 0 : i32
    %c0_i32_1 = arith.constant 0 : i32
    return %c0_i32, %c0_i32_0 : i32, i32
  }
  func.func @transform_6(%arg0: i32) -> (i32, i32) {
    %c0_i32 = arith.constant 0 : i32
    %c0_i32_0 = arith.constant 0 : i32
    %c0_i32_1 = arith.constant 0 : i32
    return %c0_i32, %c0_i32_0 : i32, i32
  }
  func.func @transform_7(%arg0: i32) -> (i32, i32) {
    %c0_i32 = arith.constant 0 : i32
    %c0_i32_0 = arith.constant 0 : i32
    return %arg0, %c0_i32 : i32, i32
  }
}

</mosaic_0001>

<bundles_post_ra>
// kernel: base_cnn_forward.1
= control target key start
LH: loop header
LB: loop body
LE: loop exit
PB: predicated region body
PF: predicated region fallthrough
CT: control target
= control target key end

     0   :  { %v19963_v6 = vmov 0   ;;  %vm423_vm0 = vcmask 261120   ;;  %vm2729_vm1 = vcmask 1040384   ;;  %s25424_s0 = inlined_call_operand.vmem [shape: bf16[2,32,4096], index: 0, kind: input, shape index: {}]   ;;  %s25425_s1 = inlined_call_operand.vmem [shape: bf16[18,32], index: 1, kind: input, shape index: {}]   ;;  %s25426_s2 = inlined_call_operand.vmem [shape: f32[18,1], index: 2, kind: input, shape index: {}]   ;;  %s25427_s3 = inlined_call_operand.vmem [shape: bf16[18432,64], index: 3, kind: input, shape index: {}]   ;;  %s25428_s4 = inlined_call_operand.vmem [shape: f32[1,64], index: 4, kind: input, shape index: {}]   ;;  %s25429_s5 = inlined_call_operand.vmem [shape: f32[64,2], index: 5, kind: input, shape index: {}]   ;;  %s25430_s6 = inlined_call_operand.vmem [shape: f32[1,2], index: 6, kind: input, shape index: {}]   ;;  %s25431_s7 = inlined_call_operand.hbm [shape: f32[2,2], index: 7, kind: output, shape index: {}]  }
   0x1   :  { %v63_v0 = vld [vmem:[%s25424_s0 + $0x100] sm:$0xff]  ;;  %462 = vmatprep.mubr.bf16.mxu0 %v19963_v6  ;;  %472 = vmatprep.mubr.bf16.mxu1 %v19963_v6  ;;  %v64_v8 = vld [vmem:[%s25424_s0 + $0x108] sm:$0xff]  ;;  %v65_v10 = vld [vmem:[%s25424_s0 + $0x110] sm:$0xff] }
   0x2   :  { %v79_v1 = vld [vmem:[%s25424_s0 + $0x180] sm:$0xff]  ;;  %18781 = vset.pattern.permute.xlu0 %v19963_v6  ;;  %18782 = vset.pattern.permute.xlu1 %v19963_v6  ;;  %v80_v9 = vld [vmem:[%s25424_s0 + $0x188] sm:$0xff]  ;;  %v81_v12 = vld [vmem:[%s25424_s0 + $0x190] sm:$0xff] }
   0x3   :  { %v31_v2 = vld [vmem:[%s25424_s0] sm:$0xff]  ;;  %v15783_v3 = vcombine.high %v63_v0, %v79_v1  ;;  %v15782_v4 = vcombine.low %v63_v0, %v79_v1  ;;  %v15785_v13 = vcombine.high %v64_v8, %v80_v9  ;;  %v15787_v14 = vcombine.high %v65_v10, %v81_v12  ;;  %v32_v15 = vld [vmem:[%s25424_s0 + $0x8] sm:$0xff]  ;;  %v33_v17 = vld [vmem:[%s25424_s0 + $0x10] sm:$0xff] }
   0x4   :  { %v47_v5 = vld [vmem:[%s25424_s0 + $0x80] sm:$0xff]  ;;  %v48_v16 = vld [vmem:[%s25424_s0 + $0x88] sm:$0xff]  ;;  %v49_v18 = vld [vmem:[%s25424_s0 + $0x90] sm:$0xff]  ;;  %v15784_v21 = vcombine.low %v64_v8, %v80_v9  ;;  %v15786_v22 = vcombine.low %v65_v10, %v81_v12 }
   0x5   :  { %v15751_v7 = vcombine.high %v31_v2, %v47_v5  ;;  %442 = vmatprep.subr.bf16.mxu0 %v15783_v3  ;;  %18773 = vmatprep.subr.bf16.mxu1 %v15783_v3  ;;  %v15750_v11 = vcombine.low %v31_v2, %v47_v5  ;;  %v20050_v19 = vld [vmem:[%s25425_s1] sm:$0xff]   ;;  %v20055_v20 = vld [vmem:[%s25425_s1 + $0x8] ss:$0 sps:$4 sm:$0x11]   ;;  %v15753_v23 = vcombine.high %v32_v15, %v48_v16  ;;  %v66_v25 = vld [vmem:[%s25424_s0 + $0x118] sm:$0xff] }
   0x6   :  { %443 = vmatpush1.bf16.msra.mxu0 %v15782_v4  ;;  %18775 = vmatpush1.bf16.msra.mxu1 %v15782_v4  ;;  %v15755_v24 = vcombine.high %v33_v17, %v49_v18  ;;  %v82_v26 = vld [vmem:[%s25424_s0 + $0x198] sm:$0xff]  ;;  %v67_v27 = vld [vmem:[%s25424_s0 + $0x120] sm:$0xff]  ;;  %v15752_v29 = vcombine.low %v32_v15, %v48_v16  ;;  %v15754_v30 = vcombine.low %v33_v17, %v49_v18  ;;  %v68_v40 = vld [vmem:[%s25424_s0 + $0x128] sm:$0xff] }
   0x7   :  { %444 = vmatprep.subr.bf16.mxu0 %v15751_v7  ;;  %18774 = vmatprep.subr.bf16.mxu1 %v15751_v7  ;;  %v83_v28 = vld [vmem:[%s25424_s0 + $0x1a0] sm:$0xff]  ;;  %v15789_v31 = vcombine.high %v66_v25, %v82_v26  ;;  %v34_v33 = vld [vmem:[%s25424_s0 + $0x18] sm:$0xff]  ;;  %v15788_v35 = vcombine.low %v66_v25, %v82_v26  ;;  %v84_v41 = vld [vmem:[%s25424_s0 + $0x1a8] sm:$0xff] }
   0x8   :  { %v15791_v32 = vcombine.high %v67_v27, %v83_v28  ;;  %v50_v34 = vld [vmem:[%s25424_s0 + $0x98] sm:$0xff]  ;;  %v35_v36 = vld [vmem:[%s25424_s0 + $0x20] sm:$0xff]  ;;  %v15790_v39 = vcombine.low %v67_v27, %v83_v28  ;;  %v15793_v44 = vcombine.high %v68_v40, %v84_v41  ;;  %v69_v46 = vld [vmem:[%s25424_s0 + $0x130] sm:$0xff]  ;;  %v15792_v53 = vcombine.low %v68_v40, %v84_v41 }
   0x9   :  { %v51_v37 = vld [vmem:[%s25424_s0 + $0xa0] sm:$0xff]  ;;  %v15757_v38 = vcombine.high %v34_v33, %v50_v34  ;;  %v15756_v43 = vcombine.low %v34_v33, %v50_v34  ;;  %v85_v47 = vld [vmem:[%s25424_s0 + $0x1b0] sm:$0xff]  ;;  %v36_v49 = vld [vmem:[%s25424_s0 + $0x28] sm:$0xff] }
   0xa   :  { %445 = vmatpush1.bf16.msra.mxu0 %v15750_v11  ;;  %18776 = vmatpush1.bf16.msra.mxu1 %v15750_v11  ;;  %v15759_v42 = vcombine.high %v35_v36, %v51_v37  ;;  %v15758_v45 = vcombine.low %v35_v36, %v51_v37  ;;  %v15795_v48 = vcombine.high %v69_v46, %v85_v47  ;;  %v52_v50 = vld [vmem:[%s25424_s0 + $0xa8] sm:$0xff]  ;;  %v37_v51 = vld [vmem:[%s25424_s0 + $0x30] sm:$0xff]  ;;  %v70_v54 = vld [vmem:[%s25424_s0 + $0x138] sm:$0xff] }
   0xb   :  { %493 = vmatprep.subr.bf16.mxu1 %v15785_v13  ;;  %544 = vmatprep.subr.bf16.mxu0 %v15787_v14  ;;  %v53_v52 = vld [vmem:[%s25424_s0 + $0xb0] sm:$0xff]  ;;  %v86_v55 = vld [vmem:[%s25424_s0 + $0x1b8] sm:$0xff]  ;;  %v15761_v56 = vcombine.high %v36_v49, %v52_v50  ;;  %v15794_v57 = vcombine.low %v69_v46, %v85_v47  ;;  %v15760_v59 = vcombine.low %v36_v49, %v52_v50  ;;  %v71_v60 = vld [vmem:[%s25424_s0 + $0x140] sm:$0xff] }
   0xc   :  { %v15763_v58 = vcombine.high %v37_v51, %v53_v52  ;;  %v87_v61 = vld [vmem:[%s25424_s0 + $0x1c0] sm:$0xff]  ;;  %v15797_v62 = vcombine.high %v70_v54, %v86_v55  ;;  %v15762_v63 = vcombine.low %v37_v51, %v53_v52  ;;  %v38_v2 = vld [vmem:[%s25424_s0 + $0x38] sm:$0xff]  ;;  %v1319_v4 = vld [vmem:[%s25426_s2 + $0x8] sm:$0xff]  ;;  %v15796_v8 = vcombine.low %v70_v54, %v86_v55 }
   0xd   :  { %15814 = vmatmul.mubr.msk.bf16.vlgmr.msra.gmra.mxu0 %vm423_vm0, %v20050_v19  ;;  %15815 = vmatmul.mubr.msk.bf16.vlgmr.msra.gmra.mxu1 %vm423_vm0, %v20055_v20  ;;  %v15799_v0 = vcombine.high %v71_v60, %v87_v61  ;;  %v1318_v1 = vld [vmem:[%s25426_s2] sm:$0xff]  ;;  %v54_v3 = vld [vmem:[%s25424_s0 + $0xb8] sm:$0xff]  ;;  %v72_v9 = vld [vmem:[%s25424_s0 + $0x148] sm:$0xff]  ;;  %v15798_v12 = vcombine.low %v71_v60, %v87_v61 }
   0xe   :  { %494 = vmatpush1.bf16.msra.mxu1 %v15784_v21  ;;  %545 = vmatpush1.bf16.msra.mxu0 %v15786_v22  ;;  %v39_v5 = vld [vmem:[%s25424_s0 + $0x40] sm:$0xff]  ;;  %v88_v10 = vld [vmem:[%s25424_s0 + $0x1c8] sm:$0xff]  ;;  %v15765_v11 = vcombine.high %v38_v2, %v54_v3  ;;  %v1320_v14 = vld [vmem:[%s25426_s2 + $0x10] sm:$0x3]  ;;  %v15764_v15 = vcombine.low %v38_v2, %v54_v3 }
   0xf   :  { %495 = vmatprep.subr.bf16.mxu1 %v15753_v23  ;;  %546 = vmatprep.subr.bf16.mxu0 %v15755_v24  ;;  %v55_v7 = vld [vmem:[%s25424_s0 + $0xc0] sm:$0xff]  ;;  %v73_v16 = vld [vmem:[%s25424_s0 + $0x150] sm:$0xff]  ;;  %v15801_v18 = vcombine.high %v72_v9, %v88_v10  ;;  %v40_v23 = vld [vmem:[%s25424_s0 + $0x48] sm:$0xff]  ;;  %v15800_v27 = vcombine.low %v72_v9, %v88_v10 }
  0x10   :  { %513 = vmatprep.mubr.bf16.mxu1 %v19963_v6  ;;  %564 = vmatprep.mubr.bf16.mxu0 %v19963_v6  ;;  %v15767_v13 = vcombine.high %v39_v5, %v55_v7  ;;  %v89_v17 = vld [vmem:[%s25424_s0 + $0x1d0] sm:$0xff]  ;;  %v15766_v21 = vcombine.low %v39_v5, %v55_v7  ;;  %v56_v24 = vld [vmem:[%s25424_s0 + $0xc8] sm:$0xff]  ;;  %v74_v28 = vld [vmem:[%s25424_s0 + $0x158] sm:$0xff] }
  0x11   :  { %1323 = vperm.xlu0 %18781, %v1318_v1   ;;  %1333 = vperm.xlu1 %18782, %v1320_v14   ;;  %v15803_v22 = vcombine.high %v73_v16, %v89_v17  ;;  %v41_v25 = vld [vmem:[%s25424_s0 + $0x50] sm:$0xff]  ;;  %v15768_v33 = vcombine.low %v40_v23, %v56_v24  ;;  %v75_v34 = vld [vmem:[%s25424_s0 + $0x160] sm:$0xff]  ;;  %v58_v40 = vld [vmem:[%s25424_s0 + $0xd8] sm:$0xff] }
  0x12   :  { %496 = vmatpush1.bf16.msra.mxu1 %v15752_v29  ;;  %547 = vmatpush1.bf16.msra.mxu0 %v15754_v30  ;;  %v57_v26 = vld [vmem:[%s25424_s0 + $0xd0] sm:$0xff]  ;;  %v90_v29 = vld [vmem:[%s25424_s0 + $0x1d8] sm:$0xff]  ;;  %v15769_v30 = vcombine.high %v40_v23, %v56_v24  ;;  %v43_v41 = vld [vmem:[%s25424_s0 + $0x60] sm:$0xff] }
  0x13   :  { %595 = vmatprep.subr.bf16.mxu1 %v15789_v31  ;;  %646 = vmatprep.subr.bf16.mxu0 %v15791_v32  ;;  %v15802_v31 = vcombine.low %v73_v16, %v89_v17  ;;  %v15771_v32 = vcombine.high %v41_v25, %v57_v26  ;;  %v15805_v36 = vcombine.high %v74_v28, %v90_v29  ;;  %v77_v50 = vld [vmem:[%s25424_s0 + $0x170] sm:$0xff]  ;;  %v44_v55 = vld [vmem:[%s25424_s0 + $0x68] sm:$0xff]  ;;  %v78_v60 = vld [vmem:[%s25424_s0 + $0x178] sm:$0xff] }
  0x14   :  { %v15770_v37 = vcombine.low %v41_v25, %v57_v26  ;;  %v93_v51 = vld [vmem:[%s25424_s0 + $0x1f0] sm:$0xff]  ;;  %v94_v61 = vld [vmem:[%s25424_s0 + $0x1f8] sm:$0xff]  ;;  %v15878_v2 = vld [vmem:[%s25424_s0 + $0x300] sm:$0xff] }
  0x15   :  { %15816 = vmatmul.mubr.msk.bf16.vlgmr.msra.gmra.mxu1 %vm423_vm0, %v20050_v19  ;;  %15818 = vmatmul.mubr.msk.bf16.vlgmr.msra.gmra.mxu0 %vm423_vm0, %v20050_v19  ;;  %v15811_v54 = vcombine.high %v77_v50, %v93_v51  ;;  %v15894_v3 = vld [vmem:[%s25424_s0 + $0x380] sm:$0xff]  ;;  %v62_v9 = vld [vmem:[%s25424_s0 + $0xf8] sm:$0xff]  ;;  %v15895_v14 = vld [vmem:[%s25424_s0 + $0x388] sm:$0xff] }
  0x16   :  { %596 = vmatpush1.bf16.msra.mxu1 %v15788_v35  ;;  %523 = vmatprep.mubr.bf16.mxu1 %v19963_v6  ;;  %v91_v35 = vld [vmem:[%s25424_s0 + $0x1e0] sm:$0xff]  ;;  %v15943_v7 = vcombine.high %v15878_v2, %v15894_v3  ;;  %v15942_v16 = vcombine.low %v15878_v2, %v15894_v3  ;;  %v15847_v25 = vld [vmem:[%s25424_s0 + $0x208] sm:$0xff] }
  0x17   :  { %574 = vmatprep.mubr.bf16.mxu0 %v19963_v6  ;;  %597 = vmatprep.subr.bf16.mxu1 %v15757_v38  ;;  %v15807_v38 = vcombine.high %v75_v34, %v91_v35  ;;  %v15806_v47 = vcombine.low %v75_v34, %v91_v35  ;;  %v15846_v10 = vld [vmem:[%s25424_s0 + $0x200] sm:$0xff]  ;;  %v15863_v26 = vld [vmem:[%s25424_s0 + $0x288] sm:$0xff] }
  0x18   :  { %647 = vmatpush1.bf16.msra.mxu0 %v15790_v39  ;;  %1328 = vperm.xlu0 %18781, %v1319_v4   ;;  %v42_v39 = vld [vmem:[%s25424_s0 + $0x58] sm:$0xff]  ;;  %v15813_v4 = vcombine.high %v78_v60, %v94_v61  ;;  %v15912_v35 = vcombine.low %v15847_v25, %v15863_v26 }
  0x19   :  { %648 = vmatprep.subr.bf16.mxu0 %v15759_v42  ;;  %v59_v42 = vld [vmem:[%s25424_s0 + $0xe0] sm:$0xff]  ;;  %v15773_v46 = vcombine.high %v42_v39, %v58_v40  ;;  %v15772_v49 = vcombine.low %v42_v39, %v58_v40 }
  0x1a   :  { %598 = vmatpush1.bf16.msra.mxu1 %v15756_v43  ;;  %v15804_v43 = vcombine.low %v74_v28, %v90_v29  ;;  %v15881_v29 = vld [vmem:[%s25424_s0 + $0x318] sm:$0xff] }
  0x1b   :  { %697 = vmatprep.subr.bf16.mxu1 %v15793_v44  ;;  %v76_v44 = vld [vmem:[%s25424_s0 + $0x168] sm:$0xff] }
  0x1c   :  { %649 = vmatpush1.bf16.msra.mxu0 %v15758_v45  ;;  %v92_v45 = vld [vmem:[%s25424_s0 + $0x1e8] sm:$0xff] }
  0x1d   :  { %15817 = vmatmul.mubr.msk.bf16.gmra.mxu1 %vm423_vm0, %v20055_v20  ;;  %15819 = vmatmul.mubr.msk.bf16.gmra.mxu0 %vm423_vm0, %v20055_v20  ;;  %v15809_v52 = vcombine.high %v76_v44, %v92_v45 }
  0x1e   :  { %615 = vmatprep.mubr.bf16.mxu1 %v19963_v6  ;;  %666 = vmatprep.mubr.bf16.mxu0 %v19963_v6 }
  0x1f   :  { %748 = vmatprep.subr.bf16.mxu0 %v15795_v48  ;;  %v15775_v48 = vcombine.high %v43_v41, %v59_v42 }
  0x25   :  { %15820 = vmatmul.mubr.msk.bf16.vlgmr.msra.gmra.mxu1 %vm423_vm0, %v20050_v19  ;;  %15822 = vmatmul.mubr.msk.bf16.vlgmr.msra.gmra.mxu0 %vm423_vm0, %v20050_v19 }
  0x26   :  { %698 = vmatpush1.bf16.msra.mxu1 %v15792_v53  ;;  %625 = vmatprep.mubr.bf16.mxu1 %v19963_v6  ;;  %v15774_v53 = vcombine.low %v43_v41, %v59_v42  ;;  %v20374_v41 = vld [vmem:[%s25425_s1 + $0x8] ss:$0 sps:$4 sm:$0x11]   ;;  %v15849_v42 = vld [vmem:[%s25424_s0 + $0x218] sm:$0xff] }
  0x27   :  { %676 = vmatprep.mubr.bf16.mxu0 %v19963_v6  ;;  %699 = vmatprep.subr.bf16.mxu1 %v15761_v56  ;;  %v60_v56 = vld [vmem:[%s25424_s0 + $0xe8] sm:$0xff] }
  0x28   :  { %749 = vmatpush1.bf16.msra.mxu0 %v15794_v57  ;;  %v45_v57 = vld [vmem:[%s25424_s0 + $0x70] sm:$0xff]  ;;  %v15776_v1 = vcombine.low %v44_v55, %v60_v56 }
  0x29   :  { %750 = vmatprep.subr.bf16.mxu0 %v15763_v58  ;;  %v61_v58 = vld [vmem:[%s25424_s0 + $0xf0] sm:$0xff] }
  0x2a   :  { %700 = vmatpush1.bf16.msra.mxu1 %v15760_v59  ;;  %v15808_v59 = vcombine.low %v76_v44, %v92_v45  ;;  %v15778_v5 = vcombine.low %v45_v57, %v61_v58  ;;  %v15850_v44 = vld [vmem:[%s25424_s0 + $0x220] sm:$0xff] }
  0x2b   :  { %799 = vmatprep.subr.bf16.mxu1 %v15797_v62  ;;  %v15777_v62 = vcombine.high %v44_v55, %v60_v56  ;;  %v15866_v45 = vld [vmem:[%s25424_s0 + $0x2a0] sm:$0xff] }
  0x2c   :  { %751 = vmatpush1.bf16.msra.mxu0 %v15762_v63  ;;  %v15810_v63 = vcombine.low %v77_v50, %v93_v51  ;;  %v15919_v51 = vcombine.high %v15850_v44, %v15866_v45  ;;  %v15918_v56 = vcombine.low %v15850_v44, %v15866_v45 }
  0x2d   :  { %15821 = vmatmul.mubr.msk.bf16.gmra.mxu1 %vm423_vm0, %v20055_v20  ;;  %15823 = vmatmul.mubr.msk.bf16.gmra.mxu0 %vm423_vm0, %v20055_v20 }
  0x2e   :  { %717 = vmatprep.mubr.bf16.mxu1 %v19963_v6  ;;  %768 = vmatprep.mubr.bf16.mxu0 %v19963_v6 }
  0x2f   :  { %850 = vmatprep.subr.bf16.mxu0 %v15799_v0  ;;  %v15779_v0 = vcombine.high %v45_v57, %v61_v58  ;;  %v15851_v58 = vld [vmem:[%s25424_s0 + $0x228] sm:$0xff] }
  0x35   :  { %15824 = vmatmul.mubr.msk.bf16.vlgmr.msra.gmra.mxu1 %vm423_vm0, %v20050_v19  ;;  %15826 = vmatmul.mubr.msk.bf16.vlgmr.msra.gmra.mxu0 %vm423_vm0, %v20050_v19 }
  0x36   :  { %800 = vmatpush1.bf16.msra.mxu1 %v15796_v8  ;;  %727 = vmatprep.mubr.bf16.mxu1 %v19963_v6  ;;  %v46_v8 = vld [vmem:[%s25424_s0 + $0x78] sm:$0xff] }
  0x37   :  { %778 = vmatprep.mubr.bf16.mxu0 %v19963_v6  ;;  %801 = vmatprep.subr.bf16.mxu1 %v15765_v11  ;;  %v15862_v11 = vld [vmem:[%s25424_s0 + $0x280] sm:$0xff] }
  0x38   :  { %851 = vmatpush1.bf16.msra.mxu0 %v15798_v12  ;;  %v15812_v12 = vcombine.low %v78_v60, %v94_v61  ;;  %v15911_v17 = vcombine.high %v15846_v10, %v15862_v11  ;;  %v15910_v24 = vcombine.low %v15846_v10, %v15862_v11  ;;  %v15852_v60 = vld [vmem:[%s25424_s0 + $0x230] sm:$0xff]  ;;  %v15853_v11 = vld [vmem:[%s25424_s0 + $0x238] sm:$0xff] }
  0x39   :  { %852 = vmatprep.subr.bf16.mxu0 %v15767_v13  ;;  %v15879_v13 = vld [vmem:[%s25424_s0 + $0x308] sm:$0xff]  ;;  %v15868_v61 = vld [vmem:[%s25424_s0 + $0x2b0] sm:$0xff] }
  0x3a   :  { %802 = vmatpush1.bf16.msra.mxu1 %v15764_v15  ;;  %v15781_v15 = vcombine.high %v46_v8, %v62_v9  ;;  %v15945_v23 = vcombine.high %v15879_v13, %v15895_v14  ;;  %v15944_v28 = vcombine.low %v15879_v13, %v15895_v14  ;;  %v15923_v3 = vcombine.high %v15852_v60, %v15868_v61  ;;  %v15854_v13 = vld [vmem:[%s25424_s0 + $0x240] sm:$0xff] }
  0x3b   :  { %901 = vmatprep.subr.bf16.mxu1 %v15801_v18  ;;  %v15780_v18 = vcombine.low %v46_v8, %v62_v9  ;;  %v15922_v9 = vcombine.low %v15852_v60, %v15868_v61  ;;  %v15870_v14 = vld [vmem:[%s25424_s0 + $0x2c0] sm:$0xff] }
  0x3c   :  { %853 = vmatpush1.bf16.msra.mxu0 %v15766_v21  ;;  %v15880_v21 = vld [vmem:[%s25424_s0 + $0x310] sm:$0xff] }
  0x3d   :  { %15825 = vmatmul.mubr.msk.bf16.gmra.mxu1 %vm423_vm0, %v20055_v20  ;;  %15827 = vmatmul.mubr.msk.bf16.gmra.mxu0 %vm423_vm0, %v20055_v20 }
  0x3e   :  { %819 = vmatprep.mubr.bf16.mxu1 %v19963_v6  ;;  %870 = vmatprep.mubr.bf16.mxu0 %v19963_v6 }
  0x3f   :  { %952 = vmatprep.subr.bf16.mxu0 %v15803_v22  ;;  %v15896_v22 = vld [vmem:[%s25424_s0 + $0x390] sm:$0xff] }
  0x45   :  { %15828 = vmatmul.mubr.msk.bf16.vlgmr.msra.gmra.mxu1 %vm423_vm0, %v20050_v19  ;;  %15830 = vmatmul.mubr.msk.bf16.vlgmr.msra.gmra.mxu0 %vm423_vm0, %v20050_v19 }
  0x46   :  { %902 = vmatpush1.bf16.msra.mxu1 %v15800_v27  ;;  %829 = vmatprep.mubr.bf16.mxu1 %v19963_v6  ;;  %v15848_v27 = vld [vmem:[%s25424_s0 + $0x210] sm:$0xff] }
  0x47   :  { %880 = vmatprep.mubr.bf16.mxu0 %v19963_v6  ;;  %903 = vmatprep.subr.bf16.mxu1 %v15769_v30  ;;  %v15897_v30 = vld [vmem:[%s25424_s0 + $0x398] sm:$0xff] }
  0x48   :  { %953 = vmatpush1.bf16.msra.mxu0 %v15802_v31  ;;  %v15913_v31 = vcombine.high %v15847_v25, %v15863_v26  ;;  %v15926_v26 = vcombine.low %v15854_v13, %v15870_v14 }
  0x49   :  { %954 = vmatprep.subr.bf16.mxu0 %v15771_v32  ;;  %v15946_v32 = vcombine.low %v15880_v21, %v15896_v22 }
  0x4a   :  { %904 = vmatpush1.bf16.msra.mxu1 %v15768_v33  ;;  %v20357_v33 = vld [vmem:[%s25425_s1] sm:$0xff]  }
  0x4b   :  { %1003 = vmatprep.subr.bf16.mxu1 %v15805_v36  ;;  %v15882_v36 = vld [vmem:[%s25424_s0 + $0x320] sm:$0xff] }
  0x4c   :  { %955 = vmatpush1.bf16.msra.mxu0 %v15770_v37  ;;  %v15898_v37 = vld [vmem:[%s25424_s0 + $0x3a0] sm:$0xff] }
  0x4d   :  { %15829 = vmatmul.mubr.msk.bf16.gmra.mxu1 %vm423_vm0, %v20055_v20  ;;  %15831 = vmatmul.mubr.msk.bf16.gmra.mxu0 %vm423_vm0, %v20055_v20  ;;  %v15951_v40 = vcombine.high %v15882_v36, %v15898_v37  ;;  %v15950_v50 = vcombine.low %v15882_v36, %v15898_v37 }
  0x4e   :  { %921 = vmatprep.mubr.bf16.mxu1 %v19963_v6  ;;  %972 = vmatprep.mubr.bf16.mxu0 %v19963_v6 }
  0x4f   :  { %1054 = vmatprep.subr.bf16.mxu0 %v15807_v38  ;;  %v15949_v38 = vcombine.high %v15881_v29, %v15897_v30 }
  0x55   :  { %15832 = vmatmul.mubr.msk.bf16.vlgmr.msra.gmra.mxu1 %vm423_vm0, %v20050_v19  ;;  %15834 = vmatmul.mubr.msk.bf16.vlgmr.msra.gmra.mxu0 %vm423_vm0, %v20050_v19 }
  0x56   :  { %1004 = vmatpush1.bf16.msra.mxu1 %v15804_v43  ;;  %931 = vmatprep.mubr.bf16.mxu1 %v19963_v6  ;;  %v15865_v43 = vld [vmem:[%s25424_s0 + $0x298] sm:$0xff] }
  0x57   :  { %982 = vmatprep.mubr.bf16.mxu0 %v19963_v6  ;;  %1005 = vmatprep.subr.bf16.mxu1 %v15773_v46  ;;  %v15948_v46 = vcombine.low %v15881_v29, %v15897_v30  ;;  %v15856_v29 = vld [vmem:[%s25424_s0 + $0x250] sm:$0xff] }
  0x58   :  { %1055 = vmatpush1.bf16.msra.mxu0 %v15806_v47  ;;  %v15883_v47 = vld [vmem:[%s25424_s0 + $0x328] sm:$0xff]  ;;  %v15872_v30 = vld [vmem:[%s25424_s0 + $0x2d0] sm:$0xff] }
  0x59   :  { %1056 = vmatprep.subr.bf16.mxu0 %v15775_v48  ;;  %v15899_v48 = vld [vmem:[%s25424_s0 + $0x3a8] sm:$0xff]  ;;  %v15931_v37 = vcombine.high %v15856_v29, %v15872_v30 }
  0x5a   :  { %1006 = vmatpush1.bf16.msra.mxu1 %v15772_v49  ;;  %v15917_v49 = vcombine.high %v15849_v42, %v15865_v43  ;;  %v15953_v55 = vcombine.high %v15883_v47, %v15899_v48 }
  0x5b   :  { %1105 = vmatprep.subr.bf16.mxu1 %v15809_v52  ;;  %v15916_v52 = vcombine.low %v15849_v42, %v15865_v43  ;;  %v15930_v43 = vcombine.low %v15856_v29, %v15872_v30 }
  0x5c   :  { %1057 = vmatpush1.bf16.msra.mxu0 %v15774_v53  ;;  %v15884_v53 = vld [vmem:[%s25424_s0 + $0x330] sm:$0xff] }
  0x5d   :  { %15833 = vmatmul.mubr.msk.bf16.gmra.mxu1 %vm423_vm0, %v20055_v20  ;;  %15835 = vmatmul.mubr.msk.bf16.gmra.mxu0 %vm423_vm0, %v20055_v20 }
  0x5e   :  { %1023 = vmatprep.mubr.bf16.mxu1 %v19963_v6  ;;  %1074 = vmatprep.mubr.bf16.mxu0 %v19963_v6 }
  0x5f   :  { %1156 = vmatprep.subr.bf16.mxu0 %v15811_v54  ;;  %v15900_v54 = vld [vmem:[%s25424_s0 + $0x3b0] sm:$0xff] }
  0x60   :  { %v15955_v57 = vcombine.high %v15884_v53, %v15900_v54  ;;  %v15954_v2 = vcombine.low %v15884_v53, %v15900_v54 }
  0x65   :  { %15836 = vmatmul.mubr.msk.bf16.vlgmr.msra.gmra.mxu1 %vm423_vm0, %v20050_v19  ;;  %15838 = vmatmul.mubr.msk.bf16.vlgmr.msra.gmra.mxu0 %vm423_vm0, %v20050_v19 }
  0x66   :  { %1106 = vmatpush1.bf16.msra.mxu1 %v15808_v59  ;;  %1033 = vmatprep.mubr.bf16.mxu1 %v19963_v6  ;;  %v15867_v59 = vld [vmem:[%s25424_s0 + $0x2a8] sm:$0xff] }
  0x67   :  { %1084 = vmatprep.mubr.bf16.mxu0 %v19963_v6  ;;  %1107 = vmatprep.subr.bf16.mxu1 %v15777_v62  ;;  %v15952_v62 = vcombine.low %v15883_v47, %v15899_v48  ;;  %v15857_v47 = vld [vmem:[%s25424_s0 + $0x258] sm:$0xff] }
  0x68   :  { %1157 = vmatpush1.bf16.msra.mxu0 %v15810_v63  ;;  %v15885_v63 = vld [vmem:[%s25424_s0 + $0x338] sm:$0xff] }
  0x69   :  { %1158 = vmatprep.subr.bf16.mxu0 %v15779_v0  ;;  %v15901_v0 = vld [vmem:[%s25424_s0 + $0x3b8] sm:$0xff] }
  0x6a   :  { %1108 = vmatpush1.bf16.msra.mxu1 %v15776_v1  ;;  %v15921_v1 = vcombine.high %v15851_v58, %v15867_v59  ;;  %v15957_v8 = vcombine.high %v15885_v63, %v15901_v0  ;;  %v15873_v48 = vld [vmem:[%s25424_s0 + $0x2d8] sm:$0xff] }
  0x6b   :  { %1207 = vmatprep.subr.bf16.mxu1 %v15813_v4  ;;  %v15920_v4 = vcombine.low %v15851_v58, %v15867_v59  ;;  %v15933_v60 = vcombine.high %v15857_v47, %v15873_v48 }
  0x6c   :  { %1159 = vmatpush1.bf16.msra.mxu0 %v15778_v5  ;;  %v15886_v5 = vld [vmem:[%s25424_s0 + $0x340] sm:$0xff] }
  0x6d   :  { %15837 = vmatmul.mubr.msk.bf16.gmra.mxu1 %vm423_vm0, %v20055_v20  ;;  %15839 = vmatmul.mubr.msk.bf16.gmra.mxu0 %vm423_vm0, %v20055_v20 }
  0x6e   :  { %1125 = vmatprep.mubr.bf16.mxu1 %v19963_v6  ;;  %1176 = vmatprep.mubr.bf16.mxu0 %v19963_v6 }
  0x6f   :  { %1781 = vmatprep.subr.bf16.mxu0 %v15943_v7  ;;  %v15902_v7 = vld [vmem:[%s25424_s0 + $0x3c0] sm:$0xff] }
  0x70   :  { %v15959_v10 = vcombine.high %v15886_v5, %v15902_v7 }
  0x75   :  { %15840 = vmatmul.mubr.msk.bf16.vlgmr.msra.gmra.mxu1 %vm423_vm0, %v20050_v19  ;;  %15842 = vmatmul.mubr.msk.bf16.vlgmr.msra.gmra.mxu0 %vm423_vm0, %v20050_v19  ;;  %v15947_v19 = vcombine.high %v15880_v21, %v15896_v22  ;;  %v15958_v21 = vcombine.low %v15886_v5, %v15902_v7  ;;  %v15927_v22 = vcombine.high %v15854_v13, %v15870_v14 }
  0x76   :  { %1208 = vmatpush1.bf16.msra.mxu1 %v15812_v12  ;;  %1135 = vmatprep.mubr.bf16.mxu1 %v19963_v6  ;;  %v15869_v12 = vld [vmem:[%s25424_s0 + $0x2b8] sm:$0xff] }
  0x77   :  { %1186 = vmatprep.mubr.bf16.mxu0 %v19963_v6  ;;  %1209 = vmatprep.subr.bf16.mxu1 %v15781_v15  ;;  %v15956_v15 = vcombine.low %v15885_v63, %v15901_v0 }
  0x78   :  { %1782 = vmatpush1.bf16.msra.mxu0 %v15942_v16  ;;  %v15887_v16 = vld [vmem:[%s25424_s0 + $0x348] sm:$0xff] }
  0x79   :  { %1783 = vmatprep.subr.bf16.mxu0 %v15911_v17  ;;  %v15903_v17 = vld [vmem:[%s25424_s0 + $0x3c8] sm:$0xff] }
  0x7a   :  { %1210 = vmatpush1.bf16.msra.mxu1 %v15780_v18  ;;  %v15925_v18 = vcombine.high %v15853_v11, %v15869_v12  ;;  %v15961_v25 = vcombine.high %v15887_v16, %v15903_v17 }
  0x7b   :  { %1832 = vmatprep.subr.bf16.mxu1 %v15945_v23  ;;  %v15924_v23 = vcombine.low %v15853_v11, %v15869_v12 }
  0x7c   :  { %1784 = vmatpush1.bf16.msra.mxu0 %v15910_v24  ;;  %v15888_v24 = vld [vmem:[%s25424_s0 + $0x350] sm:$0xff] }
  0x7d   :  { %15841 = vmatmul.mubr.msk.bf16.gmra.mxu1 %vm423_vm0, %v20055_v20  ;;  %15843 = vmatmul.mubr.msk.bf16.gmra.mxu0 %vm423_vm0, %v20055_v20  ;;  %v15864_v20 = vld [vmem:[%s25424_s0 + $0x290] sm:$0xff] }
  0x7e   :  { %1227 = vmatprep.mubr.bf16.mxu1 %v19963_v6  ;;  %1801 = vmatprep.mubr.bf16.mxu0 %v19963_v6  ;;  %v15915_v34 = vcombine.high %v15848_v27, %v15864_v20  ;;  %v15914_v39 = vcombine.low %v15848_v27, %v15864_v20  ;;  %v15855_v20 = vld [vmem:[%s25424_s0 + $0x248] sm:$0xff] }
  0x7f   :  { %1883 = vmatprep.subr.bf16.mxu0 %v15947_v19  ;;  %v15904_v19 = vld [vmem:[%s25424_s0 + $0x3d0] sm:$0xff] }
  0x80   :  { %v15963_v27 = vcombine.high %v15888_v24, %v15904_v19  ;;  %v15962_v36 = vcombine.low %v15888_v24, %v15904_v19 }
  0x85   :  { %15844 = vmatmul.mubr.msk.bf16.vlgmr.msra.gmra.mxu1 %vm423_vm0, %v20357_v33  ;;  %15974 = vmatmul.mubr.msk.bf16.vlgmr.msra.gmra.mxu0 %vm423_vm0, %v20357_v33 }
  0x86   :  { %1833 = vmatpush1.bf16.msra.mxu1 %v15944_v28  ;;  %1237 = vmatprep.mubr.bf16.mxu1 %v19963_v6  ;;  %v15871_v28 = vld [vmem:[%s25424_s0 + $0x2c8] sm:$0xff] }
  0x87   :  { %1811 = vmatprep.mubr.bf16.mxu0 %v19963_v6  ;;  %1834 = vmatprep.subr.bf16.mxu1 %v15913_v31  ;;  %v15960_v31 = vcombine.low %v15887_v16, %v15903_v17  ;;  %v15859_v16 = vld [vmem:[%s25424_s0 + $0x268] sm:$0xff] }
  0x88   :  { %1884 = vmatpush1.bf16.msra.mxu0 %v15946_v32  ;;  %v15889_v32 = vld [vmem:[%s25424_s0 + $0x358] sm:$0xff]  ;;  %v15875_v17 = vld [vmem:[%s25424_s0 + $0x2e8] sm:$0xff] }
  0x89   :  { %1885 = vmatprep.subr.bf16.mxu0 %v15915_v34  ;;  %v15905_v34 = vld [vmem:[%s25424_s0 + $0x3d8] sm:$0xff] }
  0x8a   :  { %1835 = vmatpush1.bf16.msra.mxu1 %v15912_v35  ;;  %v15929_v35 = vcombine.high %v15855_v20, %v15871_v28  ;;  %v15965_v42 = vcombine.high %v15889_v32, %v15905_v34 }
  0x8b   :  { %1934 = vmatprep.subr.bf16.mxu1 %v15949_v38  ;;  %v15928_v38 = vcombine.low %v15855_v20, %v15871_v28  ;;  %v15937_v28 = vcombine.high %v15859_v16, %v15875_v17 }
  0x8c   :  { %1886 = vmatpush1.bf16.msra.mxu0 %v15914_v39  ;;  %v15890_v39 = vld [vmem:[%s25424_s0 + $0x360] sm:$0xff] }
  0x8d   :  { %15845 = vmatmul.mubr.msk.bf16.gmra.mxu1 %vm423_vm0, %v20374_v41  ;;  %15975 = vmatmul.mubr.msk.bf16.gmra.mxu0 %vm423_vm0, %v20374_v41 }
  0x8e   :  { %1852 = vmatprep.mubr.bf16.mxu1 %v19963_v6  ;;  %1903 = vmatprep.mubr.bf16.mxu0 %v19963_v6 }
  0x8f   :  { %1985 = vmatprep.subr.bf16.mxu0 %v15951_v40  ;;  %v15906_v40 = vld [vmem:[%s25424_s0 + $0x3e0] sm:$0xff] }
  0x90   :  { %v15967_v44 = vcombine.high %v15890_v39, %v15906_v40  ;;  %v15966_v61 = vcombine.low %v15890_v39, %v15906_v40 }
  0x95   :  { %15976 = vmatmul.mubr.msk.bf16.vlgmr.msra.gmra.mxu1 %vm423_vm0, %v20357_v33  ;;  %15978 = vmatmul.mubr.msk.bf16.vlgmr.msra.gmra.mxu0 %vm423_vm0, %v20357_v33 }
  0x96   :  { %1935 = vmatpush1.bf16.msra.mxu1 %v15948_v46  ;;  %1862 = vmatprep.mubr.bf16.mxu1 %v19963_v6 }
  0x97   :  { %1913 = vmatprep.mubr.bf16.mxu0 %v19963_v6  ;;  %1936 = vmatprep.subr.bf16.mxu1 %v15917_v49 }
  0x98   :  { %1986 = vmatpush1.bf16.msra.mxu0 %v15950_v50 }
  0x99   :  { %1987 = vmatprep.subr.bf16.mxu0 %v15919_v51  ;;  %v15858_v51 = vld [vmem:[%s25424_s0 + $0x260] sm:$0xff] }
  0x9a   :  { %1937 = vmatpush1.bf16.msra.mxu1 %v15916_v52  ;;  %v15874_v52 = vld [vmem:[%s25424_s0 + $0x2e0] sm:$0xff] }
  0x9b   :  { %2036 = vmatprep.subr.bf16.mxu1 %v15953_v55  ;;  %v15964_v55 = vcombine.low %v15889_v32, %v15905_v34  ;;  %v15935_v0 = vcombine.high %v15858_v51, %v15874_v52 }
  0x9c   :  { %1988 = vmatpush1.bf16.msra.mxu0 %v15918_v56  ;;  %v15891_v56 = vld [vmem:[%s25424_s0 + $0x368] sm:$0xff] }
  0x9d   :  { %15977 = vmatmul.mubr.msk.bf16.gmra.mxu1 %vm423_vm0, %v20374_v41  ;;  %15979 = vmatmul.mubr.msk.bf16.gmra.mxu0 %vm423_vm0, %v20374_v41 }
  0x9e   :  { %1954 = vmatprep.mubr.bf16.mxu1 %v19963_v6  ;;  %2005 = vmatprep.mubr.bf16.mxu0 %v19963_v6 }
  0x9f   :  { %2087 = vmatprep.subr.bf16.mxu0 %v15955_v57  ;;  %v15907_v57 = vld [vmem:[%s25424_s0 + $0x3e8] sm:$0xff] }
  0xa0   :  { %v15969_v7 = vcombine.high %v15891_v56, %v15907_v57  ;;  %v15968_v19 = vcombine.low %v15891_v56, %v15907_v57  ;;  %v15861_v57 = vld [vmem:[%s25424_s0 + $0x278] sm:$0xff] }
  0xa5   :  { %15980 = vmatmul.mubr.msk.bf16.vlgmr.msra.gmra.mxu1 %vm423_vm0, %v20357_v33  ;;  %15982 = vmatmul.mubr.msk.bf16.vlgmr.msra.gmra.mxu0 %vm423_vm0, %v20357_v33 }
  0xa6   :  { %2037 = vmatpush1.bf16.msra.mxu1 %v15952_v62  ;;  %1964 = vmatprep.mubr.bf16.mxu1 %v19963_v6 }
  0xa7   :  { %2015 = vmatprep.mubr.bf16.mxu0 %v19963_v6  ;;  %2038 = vmatprep.subr.bf16.mxu1 %v15921_v1  ;;  %v15932_v1 = vcombine.low %v15857_v47, %v15873_v48 }
  0xa8   :  { %2088 = vmatpush1.bf16.msra.mxu0 %v15954_v2  ;;  %v15892_v2 = vld [vmem:[%s25424_s0 + $0x370] sm:$0xff] }
  0xa9   :  { %2089 = vmatprep.subr.bf16.mxu0 %v15923_v3  ;;  %v15908_v3 = vld [vmem:[%s25424_s0 + $0x3f0] sm:$0xff] }
  0xaa   :  { %2039 = vmatpush1.bf16.msra.mxu1 %v15920_v4  ;;  %v15971_v13 = vcombine.high %v15892_v2, %v15908_v3  ;;  %v15970_v29 = vcombine.low %v15892_v2, %v15908_v3 }
  0xab   :  { %2138 = vmatprep.subr.bf16.mxu1 %v15957_v8  ;;  %v15934_v8 = vcombine.low %v15858_v51, %v15874_v52  ;;  %v20651_v52 = vld [vmem:[%s25425_s1 + $0x8] ss:$0 sps:$4 sm:$0x11]  }
  0xac   :  { %2090 = vmatpush1.bf16.msra.mxu0 %v15922_v9 }
  0xad   :  { %15981 = vmatmul.mubr.msk.bf16.gmra.mxu1 %vm423_vm0, %v20374_v41  ;;  %15983 = vmatmul.mubr.msk.bf16.gmra.mxu0 %vm423_vm0, %v20374_v41 }
  0xae   :  { %2056 = vmatprep.mubr.bf16.mxu1 %v19963_v6  ;;  %2107 = vmatprep.mubr.bf16.mxu0 %v19963_v6 }
  0xaf   :  { %2189 = vmatprep.subr.bf16.mxu0 %v15959_v10 }
  0xb5   :  { %15984 = vmatmul.mubr.msk.bf16.vlgmr.msra.gmra.mxu1 %vm423_vm0, %v20357_v33  ;;  %15986 = vmatmul.mubr.msk.bf16.vlgmr.msra.gmra.mxu0 %vm423_vm0, %v20357_v33 }
  0xb6   :  { %2139 = vmatpush1.bf16.msra.mxu1 %v15956_v15  ;;  %2066 = vmatprep.mubr.bf16.mxu1 %v19963_v6 }
  0xb7   :  { %2117 = vmatprep.mubr.bf16.mxu0 %v19963_v6  ;;  %2140 = vmatprep.subr.bf16.mxu1 %v15925_v18 }
  0xb8   :  { %2190 = vmatpush1.bf16.msra.mxu0 %v15958_v21 }
  0xb9   :  { %2191 = vmatprep.subr.bf16.mxu0 %v15927_v22  ;;  %v15876_v22 = vld [vmem:[%s25424_s0 + $0x2f0] sm:$0xff] }
  0xba   :  { %2141 = vmatpush1.bf16.msra.mxu1 %v15924_v23 }
  0xbb   :  { %2240 = vmatprep.subr.bf16.mxu1 %v15961_v25  ;;  %v15893_v25 = vld [vmem:[%s25424_s0 + $0x378] sm:$0xff] }
  0xbc   :  { %2192 = vmatpush1.bf16.msra.mxu0 %v15926_v26  ;;  %v15909_v26 = vld [vmem:[%s25424_s0 + $0x3f8] sm:$0xff] }
  0xbd   :  { %15985 = vmatmul.mubr.msk.bf16.gmra.mxu1 %vm423_vm0, %v20374_v41  ;;  %15987 = vmatmul.mubr.msk.bf16.gmra.mxu0 %vm423_vm0, %v20374_v41  ;;  %v15972_v3 = vcombine.low %v15893_v25, %v15909_v26 }
  0xbe   :  { %2158 = vmatprep.mubr.bf16.mxu1 %v19963_v6  ;;  %2209 = vmatprep.mubr.bf16.mxu0 %v19963_v6 }
  0xbf   :  { %2291 = vmatprep.subr.bf16.mxu0 %v15963_v27 }
  0xc5   :  { %15988 = vmatmul.mubr.msk.bf16.vlgmr.msra.gmra.mxu1 %vm423_vm0, %v20357_v33  ;;  %15990 = vmatmul.mubr.msk.bf16.vlgmr.msra.gmra.mxu0 %vm423_vm0, %v20357_v33 }
  0xc6   :  { %2241 = vmatpush1.bf16.msra.mxu1 %v15960_v31  ;;  %2168 = vmatprep.mubr.bf16.mxu1 %v19963_v6 }
  0xc7   :  { %2219 = vmatprep.mubr.bf16.mxu0 %v19963_v6  ;;  %2242 = vmatprep.subr.bf16.mxu1 %v15929_v35  ;;  %v15936_v35 = vcombine.low %v15859_v16, %v15875_v17  ;;  %v19940_v16 = vld [vmem:[%s25425_s1] sm:$0xff]  }
  0xc8   :  { %2292 = vmatpush1.bf16.msra.mxu0 %v15962_v36 }
  0xc9   :  { %2293 = vmatprep.subr.bf16.mxu0 %v15931_v37 }
  0xca   :  { %2243 = vmatpush1.bf16.msra.mxu1 %v15928_v38  ;;  %v15973_v38 = vcombine.high %v15893_v25, %v15909_v26 }
  0xcb   :  { %2342 = vmatprep.subr.bf16.mxu1 %v15965_v42 }
  0xcc   :  { %2294 = vmatpush1.bf16.msra.mxu0 %v15930_v43 }
  0xcd   :  { %v20520_v45 = vpop.f32.mrf.mxu0  ;;  %v20522_v46 = vpop.f32.mrf.mxu1  ;;  %15989 = vmatmul.mubr.msk.bf16.gmra.mxu1 %vm423_vm0, %v20374_v41  ;;  %15991 = vmatmul.mubr.msk.bf16.gmra.mxu0 %vm423_vm0, %v20374_v41 }
  0xce   :  { %2260 = vmatprep.mubr.bf16.mxu1 %v19963_v6  ;;  %2311 = vmatprep.mubr.bf16.mxu0 %v19963_v6 }
  0xcf   :  { %v20536_v49 = vpop.f32.mrf.mxu0  ;;  %v20538_v50 = vpop.f32.mrf.mxu1  ;;  %2393 = vmatprep.subr.bf16.mxu0 %v15967_v44 }
  0xd1   :  { %v20546_v53 = vpop.f32.mrf.mxu0  ;;  %v478_v54 = vpop.f32.mrf.mxu1 }
  0xd3   :  { %v20554_v58 = vpop.f32.mrf.mxu0  ;;  %v479_v59 = vpop.f32.mrf.mxu1 }
  0xd4   :  { %25453 = vst [vmem:[#allocation5_spill] sm:$0xff] %v20554_v58  ;;  %v15877_v59 = vld [vmem:[%s25424_s0 + $0x2f8] sm:$0xff] }
  0xd5   :  { %v20556_v62 = vpop.f32.mrf.mxu1  ;;  %v20558_v63 = vpop.f32.mrf.mxu0  ;;  %15992 = vmatmul.mubr.msk.bf16.vlgmr.msra.gmra.mxu1 %vm423_vm0, %v20357_v33  ;;  %15994 = vmatmul.mubr.msk.bf16.vlgmr.msra.gmra.mxu0 %vm423_vm0, %v20357_v33 }
  0xd6   :  { %2343 = vmatpush1.bf16.msra.mxu1 %v15964_v55  ;;  %2270 = vmatprep.mubr.bf16.mxu1 %v19963_v6 }
  0xd7   :  { %v20571_v4 = vpop.f32.mrf.mxu1  ;;  %v20573_v5 = vpop.f32.mrf.mxu0  ;;  %2321 = vmatprep.mubr.bf16.mxu0 %v19963_v6  ;;  %2344 = vmatprep.subr.bf16.mxu1 %v15933_v60  ;;  %v18785_v60 = vld [vmem:[%s25427_s3 + $0x278] sm:$0xff]  }
  0xd8   :  { %2394 = vmatpush1.bf16.msra.mxu0 %v15966_v61 }
  0xd9   :  { %v20576_v9 = vpop.f32.mrf.mxu1  ;;  %v20578_v10 = vpop.f32.mrf.mxu0  ;;  %2395 = vmatprep.subr.bf16.mxu0 %v15935_v0 }
  0xda   :  { %2345 = vmatpush1.bf16.msra.mxu1 %v15932_v1 }
  0xdb   :  { %v20580_v11 = vpop.f32.mrf.mxu1  ;;  %v20582_v12 = vpop.f32.mrf.mxu0  ;;  %2444 = vmatprep.subr.bf16.mxu1 %v15969_v7  ;;  %v15941_v7 = vcombine.high %v15861_v57, %v15877_v59 }
  0xdc   :  { %25454 = vst [vmem:[#allocation6_spill] sm:$0xff] %v20580_v11  ;;  %25455 = vst [vmem:[#allocation7_spill] sm:$0xff] %v20582_v12  ;;  %2396 = vmatpush1.bf16.msra.mxu0 %v15934_v8 }
  0xdd   :  { %v20584_v14 = vpop.f32.mrf.mxu1  ;;  %v20586_v15 = vpop.f32.mrf.mxu0  ;;  %15993 = vmatmul.mubr.msk.bf16.gmra.mxu1 %vm423_vm0, %v20374_v41  ;;  %15995 = vmatmul.mubr.msk.bf16.gmra.mxu0 %vm423_vm0, %v20374_v41  ;;  %v15860_v41 = vld [vmem:[%s25424_s0 + $0x270] sm:$0xff] }
  0xde   :  { %2362 = vmatprep.mubr.bf16.mxu1 %v19963_v6  ;;  %2413 = vmatprep.mubr.bf16.mxu0 %v19963_v6  ;;  %v15939_v32 = vcombine.high %v15860_v41, %v15876_v22 }
  0xdf   :  { %v20600_v18 = vpop.f32.mrf.mxu1  ;;  %v20602_v21 = vpop.f32.mrf.mxu0  ;;  %2495 = vmatprep.subr.bf16.mxu0 %v15971_v13 }
  0xe1   :  { %v529_v23 = vpop.f32.mrf.mxu1  ;;  %v580_v24 = vpop.f32.mrf.mxu0 }
  0xe2   :  { %v15940_v24 = vcombine.low %v15861_v57, %v15877_v59 }
  0xe3   :  { %v530_v27 = vpop.f32.mrf.mxu1  ;;  %v581_v20 = vpop.f32.mrf.mxu0 }
  0xe5   :  { %v20616_v30 = vpop.f32.mrf.mxu1  ;;  %v20618_v31 = vpop.f32.mrf.mxu0  ;;  %15996 = vmatmul.mubr.msk.bf16.vlgmr.msra.gmra.mxu1 %vm423_vm0, %v20357_v33  ;;  %15998 = vmatmul.mubr.msk.bf16.vlgmr.msra.gmra.mxu0 %vm423_vm0, %v20357_v33  ;;  %v15938_v33 = vcombine.low %v15860_v41, %v15876_v22 }
  0xe6   :  { %2445 = vmatpush1.bf16.msra.mxu1 %v15968_v19  ;;  %2372 = vmatprep.mubr.bf16.mxu1 %v19963_v6 }
  0xe7   :  { %v20627_v36 = vpop.f32.mrf.mxu1  ;;  %v20629_v37 = vpop.f32.mrf.mxu0  ;;  %2423 = vmatprep.mubr.bf16.mxu0 %v19963_v6  ;;  %2446 = vmatprep.subr.bf16.mxu1 %v15937_v28 }
  0xe8   :  { %2496 = vmatpush1.bf16.msra.mxu0 %v15970_v29 }
  0xe9   :  { %v20634_v40 = vpop.f32.mrf.mxu1  ;;  %v20636_v42 = vpop.f32.mrf.mxu0  ;;  %2497 = vmatprep.subr.bf16.mxu0 %v15939_v32 }
  0xea   :  { %25456 = vst [vmem:[#allocation8_spill] sm:$0xff] %v20634_v40  ;;  %2447 = vmatpush1.bf16.msra.mxu1 %v15936_v35 }
  0xeb   :  { %v20640_v44 = vpop.f32.mrf.mxu1  ;;  %v20642_v47 = vpop.f32.mrf.mxu0  ;;  %2546 = vmatprep.subr.bf16.mxu1 %v15973_v38 }
  0xec   :  { %25457 = vst [vmem:[#allocation9_spill] sm:$0xff] %v20640_v44  ;;  %25458 = vst [vmem:[#allocation10_spill] sm:$0xff] %v20642_v47  ;;  %2498 = vmatpush1.bf16.msra.mxu0 %v15938_v33 }
  0xed   :  { %v20644_v48 = vpop.f32.mrf.mxu1  ;;  %v20646_v51 = vpop.f32.mrf.mxu0  ;;  %15997 = vmatmul.mubr.msk.bf16.gmra.mxu1 %vm423_vm0, %v20651_v52  ;;  %15999 = vmatmul.mubr.msk.bf16.gmra.mxu0 %vm423_vm0, %v20651_v52 }
  0xee   :  { %25459 = vst [vmem:[#allocation11_spill] sm:$0xff] %v20644_v48  ;;  %2464 = vmatprep.mubr.bf16.mxu1 %v19963_v6  ;;  %2515 = vmatprep.mubr.bf16.mxu0 %v19963_v6  ;;  %v25471_v48 = vmax.f32 %v20536_v49, %v20629_v37  ;;  %v18803_v49 = vld [vmem:[%s25427_s3 + $0x208] sm:$0xff]  }
  0xef   :  { %v20661_v55 = vpop.f32.mrf.mxu1  ;;  %v20663_v56 = vpop.f32.mrf.mxu0  ;;  %17161 = vmatprep.subr.bf16.mxu0 %v18785_v60  ;;  %v18804_v37 = vld [vmem:[%s25427_s3 + $0x2a8] sm:$0xff]  }
  0xf0   :  { %25460 = vst [vmem:[#allocation12_spill] sm:$0xff] %v20661_v55 }
  0xf1   :  { %v631_v61 = vpop.f32.mrf.mxu1  ;;  %v682_v0 = vpop.f32.mrf.mxu0 }
  0xf3   :  { %v632_v1 = vpop.f32.mrf.mxu1  ;;  %v683_v2 = vpop.f32.mrf.mxu0 }
  0xf5   :  { %v20673_v8 = vpop.f32.mrf.mxu1  ;;  %v20675_v13 = vpop.f32.mrf.mxu0  ;;  %16000 = vmatmul.mubr.msk.bf16.vlgmr.msra.gmra.mxu1 %vm423_vm0, %v19940_v16  ;;  %16002 = vmatmul.mubr.msk.bf16.vlgmr.msra.gmra.mxu0 %vm423_vm0, %v19940_v16 }
  0xf6   :  { %2474 = vmatprep.mubr.bf16.mxu1 %v19963_v6  ;;  %2525 = vmatprep.mubr.bf16.mxu0 %v19963_v6 }
  0xf7   :  { %v20688_v22 = vpop.f32.mrf.mxu1  ;;  %v20690_v23 = vpop.f32.mrf.mxu0  ;;  %2547 = vmatpush1.bf16.msra.mxu1 %v15972_v3 }
  0xf8   :  { %2548 = vmatprep.subr.bf16.mxu1 %v15941_v7 }
  0xf9   :  { %v20696_v26 = vpop.f32.mrf.mxu1  ;;  %v20698_v27 = vpop.f32.mrf.mxu0 }
  0xfb   :  { %v20704_v29 = vpop.f32.mrf.mxu1  ;;  %v20706_v32 = vpop.f32.mrf.mxu0  ;;  %2549 = vmatpush1.bf16.msra.mxu1 %v15940_v24 }
  0xfc   :  { %25461 = vst [vmem:[#allocation13_spill] sm:$0xff] %v20704_v29  ;;  %25462 = vst [vmem:[#allocation14_spill] sm:$0xff] %v20706_v32 }
  0xfd   :  { %v20708_v35 = vpop.f32.mrf.mxu1  ;;  %v20710_v38 = vpop.f32.mrf.mxu0  ;;  %16001 = vmatmul.mubr.msk.bf16.gmra.mxu1 %vm423_vm0, %v20651_v52  ;;  %16003 = vmatmul.mubr.msk.bf16.gmra.mxu0 %vm423_vm0, %v20651_v52 }
  0xfe   :  { %2566 = vmatprep.mubr.bf16.mxu1 %v19963_v6 }
  0xff   :  { %v20721_v59 = vpop.f32.mrf.mxu1  ;;  %v20723_v61 = vpop.f32.mrf.mxu0 }
 0x101   :  { %v733_v2 = vpop.f32.mrf.mxu1  ;;  %v784_v3 = vpop.f32.mrf.mxu0 }
 0x103   :  { %v734_v7 = vpop.f32.mrf.mxu1  ;;  %v785_v24 = vpop.f32.mrf.mxu0 }
 0x105   :  { %v20729_v33 = vpop.f32.mrf.mxu1  ;;  %v20731_v28 = vpop.f32.mrf.mxu0  ;;  %16004 = vmatmul.mubr.msk.bf16.vlgmr.msra.gmra.mxu1 %vm423_vm0, %v19940_v16 }
 0x106   :  { %2576 = vmatprep.mubr.bf16.mxu1 %v19963_v6 }
 0x107   :  { %v20737_v20 = vpop.f32.mrf.mxu1  ;;  %v20739_v0 = vpop.f32.mrf.mxu0 }
 0x109   :  { %v20743_v3 = vpop.f32.mrf.mxu1  ;;  %v20745_v7 = vpop.f32.mrf.mxu0 }
 0x10a   :  { %25463 = vst [vmem:[#allocation15_spill] sm:$0xff] %v20743_v3 }
 0x10b   :  { %v20749_v16 = vpop.f32.mrf.mxu1  ;;  %v20751_v1 = vpop.f32.mrf.mxu0 }
 0x10c   :  { %25464 = vst [vmem:[#allocation16_spill] sm:$0xff] %v20749_v16  ;;  %25465 = vst [vmem:[#allocation17_spill] sm:$0xff] %v20751_v1  ;;  %v18790_v16 = vld [vmem:[%s25427_s3 + $0x228] sm:$0xff]   ;;  %v18795_v1 = vld [vmem:[%s25427_s3 + $0x218] sm:$0xff]  }
 0x10d   :  { %v20753_v57 = vpop.f32.mrf.mxu1  ;;  %v20755_v6 = vpop.f32.mrf.mxu0  ;;  %16005 = vmatmul.mubr.msk.bf16.gmra.mxu1 %vm423_vm0, %v20651_v52  ;;  %v18786_v52 = vld [vmem:[%s25427_s3 + $0x238] sm:$0xff]  }
 0x10e   :  { %25466 = vst [vmem:[#allocation18_spill] sm:$0xff] %v20753_v57  ;;  %17162 = vmatpush3.bf16.msra.mxu0 %v18786_v52  ;;  %v18789_v52 = vld [vmem:[%s25427_s3 + $0x268] sm:$0xff]  }
 0x10f   :  { %v20761_v25 = vpop.f32.mrf.mxu1  ;;  %v20763_v19 = vpop.f32.mrf.mxu0 }
 0x110   :  { %25467 = vst [vmem:[#allocation19_spill] sm:$0xff] %v20761_v25 }
 0x111   :  { %v835_v41 = vpop.f32.mrf.mxu1  ;;  %v886_v17 = vpop.f32.mrf.mxu0 }
 0x112   :  { %v18787_v17 = vld [vmem:[%s25427_s3 + $0x270] sm:$0xff]  }
 0x113   :  { %v836_v54 = vpop.f32.mrf.mxu1  ;;  %v887_v43 = vpop.f32.mrf.mxu0  ;;  %17163 = vmatprep.subr.bf16.mxu0 %v18787_v17 }
 0x114   :  { %v18788_v43 = vld [vmem:[%s25427_s3 + $0x230] sm:$0xff]  }
 0x115   :  { %v20773_v2 = vpop.f32.mrf.mxu1  ;;  %v20775_v39 = vpop.f32.mrf.mxu0  ;;  %17164 = vmatpush3.bf16.msra.mxu0 %v18788_v43  ;;  %v18791_v43 = vld [vmem:[%s25427_s3 + $0x260] sm:$0xff]  }
 0x116   :  { %17165 = vmatprep.subr.bf16.mxu0 %v18789_v52 }
 0x117   :  { %v20780_v41 = vpop.f32.mrf.mxu1  ;;  %v20782_v24 = vpop.f32.mrf.mxu0 }
 0x119   :  { %v20787_v54 = vpop.f32.mrf.mxu1  ;;  %v20789_v60 = vpop.f32.mrf.mxu0  ;;  %17166 = vmatpush3.bf16.msra.mxu0 %v18790_v16  ;;  %v18793_v16 = vld [vmem:[%s25427_s3 + $0x258] sm:$0xff]  }
 0x11a   :  { %17167 = vmatprep.subr.bf16.mxu0 %v18791_v43 }
 0x11b   :  { %v20794_v34 = vpop.f32.mrf.mxu1  ;;  %v20796_v44 = vpop.f32.mrf.mxu0 }
 0x11c   :  { %25468 = vst [vmem:[#allocation20_spill] sm:$0xff] %v20794_v34  ;;  %25469 = vst [vmem:[#allocation21_spill] sm:$0xff] %v20796_v44  ;;  %v18792_v44 = vld [vmem:[%s25427_s3 + $0x220] sm:$0xff]   ;;  %v18794_v34 = vld [vmem:[%s25427_s3 + $0x2f8] sm:$0xff]  }
 0x11d   :  { %v20801_v12 = vpop.f32.mrf.mxu1  ;;  %v20803_v17 = vpop.f32.mrf.mxu0  ;;  %17168 = vmatpush3.bf16.msra.mxu0 %v18792_v44  ;;  %17183 = vmatprep.subr.bf16.mxu1 %v18794_v34  ;;  %v18799_v34 = vld [vmem:[%s25427_s3 + $0x210] sm:$0xff]  }
 0x11e   :  { %17169 = vmatprep.subr.bf16.mxu0 %v18793_v16 }
 0x11f   :  { %v20808_v32 = vpop.f32.mrf.mxu1  ;;  %v20810_v11 = vpop.f32.mrf.mxu0 }
 0x121   :  { %v937_v29 = vpop.f32.mrf.mxu1  ;;  %v988_v52 = vpop.f32.mrf.mxu0  ;;  %17170 = vmatpush3.bf16.msra.mxu0 %v18795_v1  ;;  %v18800_v1 = vld [vmem:[%s25427_s3 + $0x2b0] sm:$0xff]  }
 0x122   :  { %v18796_v29 = vld [vmem:[%s25427_s3 + $0x2b8] sm:$0xff]  }
 0x123   :  { %v938_v58 = vpop.f32.mrf.mxu1  ;;  %v989_v47 = vpop.f32.mrf.mxu0  ;;  %17184 = vmatpush3.bf16.msra.mxu1 %v18796_v29 }
 0x124   :  { %v18797_v58 = vld [vmem:[%s25427_s3 + $0x250] sm:$0xff]  }
 0x125   :  { %v20827_v44 = vpop.f32.mrf.mxu1  ;;  %v1076_v43 = vpop.f32.mrf.mxu0  ;;  %v18798_v47 = vld [vmem:[%s25427_s3 + $0x2f0] sm:$0xff]   ;;  %17171 = vmatprep.subr.bf16.mxu0 %v18797_v58 }
 0x126   :  { %v1270_v52 = vmax.f32 %v20731_v28, %v1076_v43  ;;  %v25470_v28 = vmax.f32 %v20520_v45, %v20618_v31  ;;  %17185 = vmatprep.subr.bf16.mxu1 %v18798_v47  ;;  %17172 = vmatpush3.bf16.msra.mxu0 %v18799_v34  ;;  %v18801_v45 = vld [vmem:[%s25427_s3 + $0x248] sm:$0xff]   ;;  %v18805_v47 = vld [vmem:[%s25427_s3 + $0x240] sm:$0xff]  }
 0x127   :  { %v20836_v25 = vpop.f32.mrf.mxu1  ;;  %v1078_v55 = vpop.f32.mrf.mxu0  ;;  %17186 = vmatpush3.bf16.msra.mxu1 %v18800_v1  ;;  %v18802_v31 = vld [vmem:[%s25427_s3 + $0x2e8] sm:$0xff]   ;;  %17173 = vmatprep.subr.bf16.mxu0 %v18801_v45  ;;  %v18806_v34 = vld [vmem:[%s25427_s3 + $0x2e0] sm:$0xff]  }
 0x128   :  { %v20847_v16 = vmax.f32 %v25470_v28, %v1270_v52  ;;  %v1271_v29 = vmax.f32 %v20739_v0, %v1078_v55  ;;  %17187 = vmatprep.subr.bf16.mxu1 %v18802_v31  ;;  %v18808_v1 = vld [vmem:[%s25427_s3 + $0x2a0] sm:$0xff]  }
 0x129   :  { %v20850_v43 = vpop.f32.mrf.mxu1  ;;  %v1080_v57 = vpop.f32.mrf.mxu0 }
 0x12a   :  { %v20855_v3 = vmax.f32 %v25471_v48, %v1271_v29  ;;  %v1278_v40 = vmax.f32 %v20745_v7, %v1080_v57  ;;  %v25474_v48 = vmax.f32 %v20546_v53, %v20636_v42  ;;  %17174 = vmatpush3.bf16.msra.mxu0 %v18803_v49  ;;  %v18807_v42 = vld [vmem:[%s25427_s3 + $0x200] sm:$0xff]   ;;  %v25477_v49 = vmax.f32 %v20538_v50, %v20663_v56 }
 0x12b   :  { %v20864_v55 = vpop.f32.mrf.mxu1  ;;  %v20866_v0 = vpop.f32.mrf.mxu0  ;;  %17188 = vmatpush3.bf16.msra.mxu1 %v18804_v37  ;;  %17175 = vmatprep.subr.bf16.mxu0 %v18805_v47 }
 0x12c   :  { %25472 = vst [vmem:[#allocation22_spill] sm:$0xff] %v20864_v55  ;;  %25473 = vst [vmem:[#allocation23_spill] sm:$0xff] %v20866_v0  ;;  %v20877_v57 = vmax.f32 %v25474_v48, %v1278_v40  ;;  %17189 = vmatprep.subr.bf16.mxu1 %v18806_v34  ;;  %v18809_v48 = vld [vmem:[%s25427_s3 + $0x2d8] sm:$0xff]  }
 0x12d   :  { %v20879_v7 = vpop.f32.mrf.mxu1  ;;  %v1086_v52 = vpop.f32.mrf.mxu0 }
 0x12e   :  { %25475 = vst [vmem:[#allocation24_spill] sm:$0xff] %v20877_v57  ;;  %v1286_v58 = vmax.f32 %v20755_v6, %v1086_v52  ;;  %v25476_v6 = vmax.f32 %v20522_v46, %v20646_v51  ;;  %17176 = vmatpush3.bf16.msra.mxu0 %v18807_v42  ;;  %v18810_v46 = vld [vmem:[%s25427_s3 + $0x378] sm:$0xff]   ;;  %v18813_v42 = vld [vmem:[%s25427_s3 + $0x2d0] sm:$0xff]  }
 0x12f   :  { %v20888_v53 = vpop.f32.mrf.mxu1  ;;  %v1088_v40 = vpop.f32.mrf.mxu0  ;;  %17190 = vmatpush3.bf16.msra.mxu1 %v18808_v1  ;;  %17205 = vmatprep.subr.bf16.mxu0 %v18810_v46  ;;  %v18811_v52 = vld [vmem:[%s25427_s3 + $0x298] sm:$0xff]   ;;  %v25479_v1 = vmax.f32 %v20556_v62, %v20673_v8  ;;  %v25482_v62 = vmax.f32 %v20571_v4, %v20688_v22  ;;  %v18817_v4 = vld [vmem:[%s25427_s3 + $0x2c8] sm:$0xff]  }
 0x130   :  { %v20899_v28 = vmax.f32 %v25476_v6, %v1286_v58  ;;  %v1287_v29 = vmax.f32 %v20763_v19, %v1088_v40  ;;  %17191 = vmatprep.subr.bf16.mxu1 %v18809_v48  ;;  %v18819_v22 = vld [vmem:[%s25427_s3 + $0x288] sm:$0xff]  }
 0x131   :  { %v1039_v45 = vpop.f32.mrf.mxu1  ;;  %v1090_v31 = vpop.f32.mrf.mxu0 }
 0x132   :  { %v20905_v37 = vmax.f32 %v25477_v49, %v1287_v29  ;;  %v25480_v29 = vmax.f32 %v20558_v63, %v20675_v13  ;;  %v18815_v31 = vld [vmem:[%s25427_s3 + $0x290] sm:$0xff]   ;;  %v25483_v63 = vmax.f32 %v20573_v5, %v20690_v23  ;;  %v25486_v5 = vmax.f32 %v20576_v9, %v20696_v26  ;;  %v18821_v9 = vld [vmem:[%s25427_s3 + $0x2c0] sm:$0xff]  }
 0x133   :  { %v1040_v51 = vpop.f32.mrf.mxu1  ;;  %v1091_v19 = vpop.f32.mrf.mxu0  ;;  %17192 = vmatpush3.bf16.msra.mxu1 %v18811_v52  ;;  %v25490_v26 = vmax.f32 %v20584_v14, %v20708_v35  ;;  %v25492_v14 = vmax.f32 %v20600_v18, %v20721_v59 }
 0x134   :  { %25478 = vst [vmem:[#allocation25_spill] sm:$0xff] %v20905_v37  ;;  %17193 = vmatprep.subr.bf16.mxu1 %v18813_v42 }
 0x135   :  { %v1127_v58 = vpop.f32.mrf.mxu1  ;;  %v1178_v50 = vpop.f32.mrf.mxu0 }
 0x136   :  { %v1272_v56 = vmax.f32 %v20773_v2, %v1127_v58  ;;  %v1274_v47 = vmax.f32 %v20775_v39, %v1178_v50 }
 0x137   :  { %v1129_v34 = vpop.f32.mrf.mxu1  ;;  %v1180_v40 = vpop.f32.mrf.mxu0  ;;  %17194 = vmatpush3.bf16.msra.mxu1 %v18815_v31 }
 0x138   :  { %v20924_v6 = vmax.f32 %v25479_v1, %v1272_v56  ;;  %v20929_v45 = vmax.f32 %v25480_v29, %v1274_v47  ;;  %v1273_v2 = vmax.f32 %v20780_v41, %v1129_v34  ;;  %v1275_v39 = vmax.f32 %v20782_v24, %v1180_v40  ;;  %17195 = vmatprep.subr.bf16.mxu1 %v18817_v4  ;;  %v18823_v40 = vld [vmem:[%s25427_s3 + $0x280] sm:$0xff]   ;;  %v18826_v29 = vld [vmem:[%s25427_s3 + $0x3f8] sm:$0xff]  }
 0x139   :  { %v1131_v49 = vpop.f32.mrf.mxu1  ;;  %v1182_v48 = vpop.f32.mrf.mxu0 }
 0x13a   :  { %25481 = vst [vmem:[#allocation26_spill] sm:$0xff] %v20929_v45  ;;  %v20939_v8 = vmax.f32 %v25482_v62, %v1273_v2  ;;  %v20944_v13 = vmax.f32 %v25483_v63, %v1275_v39  ;;  %v1280_v24 = vmax.f32 %v20787_v54, %v1131_v49  ;;  %v1282_v41 = vmax.f32 %v20789_v60, %v1182_v48 }
 0x13b   :  { %v20948_v46 = vpop.f32.mrf.mxu1  ;;  %v20950_v51 = vpop.f32.mrf.mxu0  ;;  %v25488_v54 = vmax.f32 %v20578_v10, %v20698_v27  ;;  %17196 = vmatpush3.bf16.msra.mxu1 %v18819_v22  ;;  %v25491_v27 = vmax.f32 %v20586_v15, %v20710_v38  ;;  %v25494_v15 = vmax.f32 %v20602_v21, %v20723_v61  ;;  %v25496_v61 = vmax.f32 %v20616_v30, %v20729_v33  ;;  %v25503_v22 = vld [vmem:[#allocation15_spill] sm:$0xff] }
 0x13c   :  { %25484 = vst [vmem:[#allocation27_spill] sm:$0xff] %v20948_v46  ;;  %25485 = vst [vmem:[#allocation28_spill] sm:$0xff] %v20950_v51  ;;  %v20961_v23 = vmax.f32 %v25486_v5, %v1280_v24  ;;  %17197 = vmatprep.subr.bf16.mxu1 %v18821_v9  ;;  %v25498_v63 = vmax.f32 %v20627_v36, %v20737_v20  ;;  %v25506_v20 = vld [vmem:[#allocation11_spill] sm:$0xff] }
 0x13d   :  { %v20966_v60 = vmax.f32 %v25488_v54, %v1282_v41  ;;  %v1137_v19 = vpop.f32.mrf.mxu1  ;;  %v1188_v52 = vpop.f32.mrf.mxu0 }
 0x13e   :  { %25487 = vst [vmem:[#allocation29_spill] sm:$0xff] %v20961_v23  ;;  %v1288_v58 = vmax.f32 %v20801_v12, %v1137_v19  ;;  %v1290_v50 = vmax.f32 %v20803_v17, %v1188_v52 }
 0x13f   :  { %25489 = vst [vmem:[#allocation30_spill] sm:$0xff] %v20966_v60  ;;  %v1139_v56 = vpop.f32.mrf.mxu1  ;;  %v1190_v47 = vpop.f32.mrf.mxu0  ;;  %17198 = vmatpush3.bf16.msra.mxu1 %v18823_v40 }
 0x140   :  { %v20976_v10 = vmax.f32 %v25490_v26, %v1288_v58  ;;  %v20981_v34 = vmax.f32 %v25491_v27, %v1290_v50  ;;  %v1289_v12 = vmax.f32 %v20808_v32, %v1139_v56  ;;  %v1291_v17 = vmax.f32 %v20810_v11, %v1190_v47  ;;  %17227 = vmatprep.subr.bf16.mxu1 %v18826_v29  ;;  %v25507_v58 = vld [vmem:[#allocation18_spill] sm:$0xff]  ;;  %v25510_v26 = vld [vmem:[#allocation12_spill] sm:$0xff]  ;;  %v25511_v27 = vld [vmem:[#allocation19_spill] sm:$0xff] }
 0x141   :  { %v1141_v42 = vpop.f32.mrf.mxu1  ;;  %v1192_v1 = vpop.f32.mrf.mxu0 }
 0x142   :  { %v20991_v35 = vmax.f32 %v25492_v14, %v1289_v12  ;;  %v20996_v38 = vmax.f32 %v25494_v15, %v1291_v17  ;;  %v25512_v12 = vmax.f32 %v25510_v26, %v25511_v27 }
 0x143   :  { %v1142_v32 = vpop.f32.mrf.mxu1  ;;  %v1193_v11 = vpop.f32.mrf.mxu0 }
 0x144   :  { %25493 = vst [vmem:[#allocation31_spill] sm:$0xff] %v20991_v35  ;;  %25495 = vst [vmem:[#allocation32_spill] sm:$0xff] %v20996_v38 }
 0x145   :  { %v1229_v2 = vpop.f32.mrf.mxu1  ;;  %v21001_v39 = vpop.f32.mrf.mxu0 }
 0x146   :  { %v1276_v18 = vmax.f32 %v20827_v44, %v1229_v2 }
 0x147   :  { %v1231_v59 = vpop.f32.mrf.mxu1  ;;  %v21004_v31 = vpop.f32.mrf.mxu0 }
 0x148   :  { %v1277_v21 = vmax.f32 %v20836_v25, %v1231_v59  ;;  %v21010_v49 = vmax.f32 %v25496_v61, %v1276_v18  ;;  %v25502_v25 = vld [vmem:[#allocation8_spill] sm:$0xff] }
 0x149   :  { %v1233_v48 = vpop.f32.mrf.mxu1  ;;  %v21012_v62 = vpop.f32.mrf.mxu0  ;;  %v25504_v5 = vmax.f32 %v25502_v25, %v25503_v22 }
 0x14a   :  { %25497 = vst [vmem:[#allocation33_spill] sm:$0xff] %v21010_v49  ;;  %v21017_v24 = vmax.f32 %v25498_v63, %v1277_v21  ;;  %v1284_v44 = vmax.f32 %v20850_v43, %v1233_v48  ;;  %v25508_v43 = vmax.f32 %v25506_v20, %v25507_v58 }
 0x14b   :  { %v21020_v41 = vpop.f32.mrf.mxu1  ;;  %v21022_v4 = vpop.f32.mrf.mxu0 }
 0x14c   :  { %25499 = vst [vmem:[#allocation34_spill] sm:$0xff] %v21017_v24  ;;  %25500 = vst [vmem:[#allocation35_spill] sm:$0xff] %v21020_v41  ;;  %v21027_v30 = vmax.f32 %v25504_v5, %v1284_v44 }
 0x14d   :  { %25501 = vst [vmem:[#allocation36_spill] sm:$0xff] %v21022_v4  ;;  %v1239_v33 = vpop.f32.mrf.mxu1  ;;  %v21029_v54 = vpop.f32.mrf.mxu0 }
 0x14e   :  { %25505 = vst [vmem:[#allocation8_spill] sm:$0xff] %v21027_v30  ;;  %v1292_v19 = vmax.f32 %v20879_v7, %v1239_v33 }
 0x14f   :  { %v1241_v52 = vpop.f32.mrf.mxu1  ;;  %v21032_v36 = vpop.f32.mrf.mxu0 }
 0x150   :  { %v21037_v50 = vmax.f32 %v25508_v43, %v1292_v19  ;;  %v1293_v56 = vmax.f32 %v20888_v53, %v1241_v52 }
 0x151   :  { %v1243_v47 = vpop.f32.mrf.mxu1  ;;  %v1817_v9 = vpop.f32.mrf.mxu0 }
 0x152   :  { %25509 = vst [vmem:[#allocation15_spill] sm:$0xff] %v21037_v50  ;;  %v21043_v17 = vmax.f32 %v25512_v12, %v1293_v56 }
 0x153   :  { %v1244_v40 = vpop.f32.mrf.mxu1  ;;  %v1818_v42 = vpop.f32.mrf.mxu0 }
 0x154   :  { %25513 = vst [vmem:[#allocation11_spill] sm:$0xff] %v21043_v17 }
 0x155   :  { %v21045_v7 = vpop.f32.mrf.mxu1  ;;  %v21047_v1 = vpop.f32.mrf.mxu0 }
 0x156   :  { %25514 = vst [vmem:[#allocation18_spill] sm:$0xff] %v21047_v1 }
 0x157   :  { %v21049_v14 = vpop.f32.mrf.mxu1  ;;  %v21051_v15 = vpop.f32.mrf.mxu0 }
 0x159   :  { %v21053_v32 = vpop.f32.mrf.mxu1  ;;  %v21055_v53 = vpop.f32.mrf.mxu0 }
 0x15b   :  { %v21057_v11 = vpop.f32.mrf.mxu1  ;;  %v21059_v29 = vpop.f32.mrf.mxu0 }
 0x15c   :  { %25515 = vst [vmem:[#allocation12_spill] sm:$0xff] %v21057_v11  ;;  %25516 = vst [vmem:[#allocation19_spill] sm:$0xff] %v21059_v29 }
 0x15d   :  { %v21061_v2 = vpop.f32.mrf.mxu1  ;;  %v21063_v18 = vpop.f32.mrf.mxu0 }
 0x15f   :  { %v21065_v59 = vpop.f32.mrf.mxu1  ;;  %v21067_v21 = vpop.f32.mrf.mxu0 }
 0x160   :  { %25517 = vst [vmem:[#allocation37_spill] sm:$0xff] %v21067_v21 }
 0x161   :  { %v1868_v61 = vpop.f32.mrf.mxu1  ;;  %v1919_v48 = vpop.f32.mrf.mxu0 }
 0x163   :  { %v1869_v63 = vpop.f32.mrf.mxu1  ;;  %v1920_v44 = vpop.f32.mrf.mxu0 }
 0x165   :  { %v21069_v25 = vpop.f32.mrf.mxu1  ;;  %v21071_v22 = vpop.f32.mrf.mxu0 }
 0x166   :  { %25518 = vst [vmem:[#allocation38_spill] sm:$0xff] %v21069_v25 }
 0x167   :  { %v21075_v33 = vpop.f32.mrf.mxu1  ;;  %v21077_v19 = vpop.f32.mrf.mxu0 }
 0x168   :  { %25519 = vst [vmem:[#allocation39_spill] sm:$0xff] %v21075_v33 }
 0x169   :  { %v21081_v20 = vpop.f32.mrf.mxu1  ;;  %v21083_v58 = vpop.f32.mrf.mxu0 }
 0x16a   :  { %25520 = vst [vmem:[#allocation40_spill] sm:$0xff] %v21081_v20 }
 0x16b   :  { %v21087_v56 = vpop.f32.mrf.mxu1  ;;  %v21089_v47 = vpop.f32.mrf.mxu0 }
 0x16c   :  { %25521 = vst [vmem:[#allocation41_spill] sm:$0xff] %v21087_v56  ;;  %25522 = vst [vmem:[#allocation42_spill] sm:$0xff] %v21089_v47 }
 0x16d   :  { %v21091_v9 = vpop.f32.mrf.mxu1  ;;  %v21093_v26 = vpop.f32.mrf.mxu0 }
 0x16e   :  { %25523 = vst [vmem:[#allocation43_spill] sm:$0xff] %v21091_v9 }
 0x16f   :  { %v21097_v12 = vpop.f32.mrf.mxu1  ;;  %v21099_v40 = vpop.f32.mrf.mxu0 }
 0x170   :  { %25524 = vst [vmem:[#allocation44_spill] sm:$0xff] %v21097_v12  ;;  %v21197_v12 = vpop.permute.xlu0 %1323 }
 0x171   :  { %v1970_v61 = vpop.f32.mrf.mxu1  ;;  %v2021_v48 = vpop.f32.mrf.mxu0  ;;  %v1337_v24 = vadd.f32 %v21197_v12, %v20855_v3 }
 0x173   :  { %v1971_v63 = vpop.f32.mrf.mxu1  ;;  %v2022_v44 = vpop.f32.mrf.mxu0 }
 0x175   :  { %v21103_v43 = vpop.f32.mrf.mxu1  ;;  %v21105_v52 = vpop.f32.mrf.mxu0 }
 0x176   :  { %25525 = vst [vmem:[#allocation45_spill] sm:$0xff] %v21105_v52 }
 0x177   :  { %v21111_v37 = vpop.f32.mrf.mxu1  ;;  %v21113_v30 = vpop.f32.mrf.mxu0 }
 0x179   :  { %v21119_v63 = vpop.f32.mrf.mxu1  ;;  %v21121_v44 = vpop.f32.mrf.mxu0 }
 0x17b   :  { %v21127_v42 = vpop.f32.mrf.mxu1  ;;  %v21129_v60 = vpop.f32.mrf.mxu0 }
 0x17c   :  { %25526 = vst [vmem:[#allocation46_spill] sm:$0xff] %v21127_v42  ;;  %25527 = vst [vmem:[#allocation47_spill] sm:$0xff] %v21129_v60 }
 0x17d   :  { %v21131_v23 = vpop.f32.mrf.mxu1  ;;  %v21133_v61 = vpop.f32.mrf.mxu0 }
 0x17f   :  { %v21139_v41 = vpop.f32.mrf.mxu1  ;;  %v21141_v5 = vpop.f32.mrf.mxu0 }
 0x180   :  { %25528 = vst [vmem:[#allocation48_spill] sm:$0xff] %v21139_v41  ;;  %25529 = vst [vmem:[#allocation49_spill] sm:$0xff] %v21141_v5  ;;  %v21207_v5 = vpop.permute.xlu1 %1333  ;;  %v21224_v41 = vmax.f32 %v1337_v24, 0.0 }
 0x181   :  { %v2072_v57 = vpop.f32.mrf.mxu1  ;;  %v2123_v51 = vpop.f32.mrf.mxu0 }
 0x183   :  { %v2073_v29 = vpop.f32.mrf.mxu1  ;;  %v2124_v60 = vpop.f32.mrf.mxu0 }
 0x185   :  { %v21147_v46 = vpop.f32.mrf.mxu1  ;;  %v2211_v48 = vpop.f32.mrf.mxu0 }
 0x186   :  { %25530 = vst [vmem:[#allocation50_spill] sm:$0xff] %v21147_v46 }
 0x187   :  { %v21151_v11 = vpop.f32.mrf.mxu1  ;;  %v2213_v42 = vpop.f32.mrf.mxu0 }
 0x188   :  { %25531 = vst [vmem:[#allocation51_spill] sm:$0xff] %v21151_v11 }
 0x189   :  { %v21155_v27 = vpop.f32.mrf.mxu1  ;;  %v2215_v4 = vpop.f32.mrf.mxu0 }
 0x18a   :  { %25532 = vst [vmem:[#allocation52_spill] sm:$0xff] %v21155_v27 }
 0x18b   :  { %v21159_v51 = vpop.f32.mrf.mxu1  ;;  %v21161_v60 = vpop.f32.mrf.mxu0 }
 0x18c   :  { %25533 = vst [vmem:[#allocation53_spill] sm:$0xff] %v21159_v51  ;;  %25534 = vst [vmem:[#allocation54_spill] sm:$0xff] %v21161_v60 }
 0x18d   :  { %v21163_v29 = vpop.f32.mrf.mxu1  ;;  %v2221_v56 = vpop.f32.mrf.mxu0 }
 0x18e   :  { %25535 = vst [vmem:[#allocation55_spill] sm:$0xff] %v21163_v29 }
 0x18f   :  { %v21167_v47 = vpop.f32.mrf.mxu1  ;;  %v21169_v17 = vpop.f32.mrf.mxu0 }
 0x190   :  { %25536 = vst [vmem:[#allocation56_spill] sm:$0xff] %v21167_v47 }
 0x191   :  { %v2174_v38 = vpop.f32.mrf.mxu1  ;;  %v2225_v35 = vpop.f32.mrf.mxu0 }
 0x193   :  { %v2175_v57 = vpop.f32.mrf.mxu1  ;;  %v2226_v49 = vpop.f32.mrf.mxu0 }
 0x195   :  { %v21173_v51 = vpop.f32.mrf.mxu1  ;;  %v21175_v60 = vpop.f32.mrf.mxu0 }
 0x197   :  { %v21177_v46 = vpop.f32.mrf.mxu1  ;;  %v21179_v25 = vpop.f32.mrf.mxu0 }
 0x199   :  { %v21181_v55 = vpop.f32.mrf.mxu1  ;;  %v21183_v29 = vpop.f32.mrf.mxu0 }
 0x19b   :  { %v21185_v9 = vpop.f32.mrf.mxu1  ;;  %v21187_v27 = vpop.f32.mrf.mxu0 }
 0x19c   :  { %25537 = vst [vmem:[#allocation57_spill] sm:$0xff] %v21185_v9  ;;  %25538 = vst [vmem:[#allocation58_spill] sm:$0xff] %v21187_v27  ;;  %v1336_v27 = vadd.f32 %v21197_v12, %v20847_v16  ;;  %v25542_v16 = vmax.f32 %v21004_v31, %v21077_v19  ;;  %v1352_v31 = vadd.f32 %v21207_v5, %v20899_v28 }
 0x19d   :  { %v21189_v38 = vpop.f32.mrf.mxu1  ;;  %v21191_v35 = vpop.f32.mrf.mxu0 }
 0x19e   :  { %v21218_v21 = vmax.f32 %v1336_v27, 0.0 }
 0x19f   :  { %v21193_v49 = vpop.f32.mrf.mxu1  ;;  %v21195_v57 = vpop.f32.mrf.mxu0 }
 0x1a0   :  { %v2882_v27 = vrot.slane %v21218_v21, 1 }
 0x1a1   :  { %v2276_v0 = vpop.f32.mrf.mxu1  ;;  %v2327_v47 = vpop.f32.mrf.mxu0 }
 0x1a2   :  { %v25541_v0 = vmax.f32 %v21001_v39, %v21071_v22  ;;  %v25543_v22 = vmax.f32 %v21012_v62, %v21083_v58  ;;  %v1376_v62 = vmax.f32 %v1352_v31, 0.0 }
 0x1a3   :  { %v2277_v20 = vpop.f32.mrf.mxu1  ;;  %v2328_v11 = vpop.f32.mrf.mxu0 }
 0x1a5   :  { %v21199_v33 = vpop.f32.mrf.mxu1  ;;  %v2415_v50 = vpop.f32.mrf.mxu0 }
 0x1a6   :  { %25539 = vst [vmem:[#allocation59_spill] sm:$0xff] %v21199_v33  ;;  %v2609_v9 = vmax.f32 %v2211_v48, %v2415_v50 }
 0x1a7   :  { %v21203_v52 = vpop.f32.mrf.mxu1  ;;  %v2417_v1 = vpop.f32.mrf.mxu0 }
 0x1a8   :  { %25540 = vst [vmem:[#allocation60_spill] sm:$0xff] %v21203_v52  ;;  %v2633_v20 = vmax.f32 %v25541_v0, %v2609_v9  ;;  %v2610_v11 = vmax.f32 %v2213_v42, %v2417_v1 }
 0x1a9   :  { %v21212_v47 = vpop.f32.mrf.mxu1  ;;  %v2419_v33 = vpop.f32.mrf.mxu0 }
 0x1aa   :  { %v2657_v50 = vadd.f32 %v2633_v20, %v21197_v12  ;;  %v2634_v48 = vmax.f32 %v25542_v16, %v2610_v11  ;;  %v2617_v52 = vmax.f32 %v2215_v4, %v2419_v33  ;;  %v2883_v20 = vrot.slane %v21224_v41, 1 }
 0x1ab   :  { %v21220_v3 = vpop.f32.mrf.mxu1  ;;  %v21222_v45 = vpop.f32.mrf.mxu0 }
 0x1ac   :  { %v21226_v39 = vmax.f32 %v2657_v50, 0.0  ;;  %v2658_v1 = vadd.f32 %v2634_v48, %v21197_v12  ;;  %v21232_v9 = vmax.f32 %v25543_v22, %v2617_v52  ;;  %v25544_v52 = vmax.f32 %v21029_v54, %v21093_v26  ;;  %v18812_v54 = vld [vmem:[%s25427_s3 + $0x338] sm:$0xff]  }
 0x1ad   :  { %v21236_v4 = vpop.f32.mrf.mxu1  ;;  %v2425_v33 = vpop.f32.mrf.mxu0 }
 0x1ae   :  { %v21238_v19 = vmax.f32 %v2658_v1, 0.0  ;;  %v2625_v24 = vmax.f32 %v2221_v56, %v2425_v33  ;;  %v2898_v11 = vsel %vm2729_vm1, %v2882_v27, %v21226_v39  ;;  %v25545_v1 = vmax.f32 %v21032_v36, %v21099_v40 }
 0x1af   :  { %v21241_v42 = vpop.f32.mrf.mxu1  ;;  %v2427_v0 = vpop.f32.mrf.mxu0  ;;  %v2906_v33 = vpack.c.bf16 %v2898_v11, %v2898_v11  ;;  %v1338_v27 = vadd.f32 %v21197_v12, %v20924_v6  ;;  %v1339_v36 = vadd.f32 %v21197_v12, %v20939_v8  ;;  %v1341_v40 = vadd.f32 %v21197_v12, %v20944_v13  ;;  %v18818_v8 = vld [vmem:[%s25427_s3 + $0x368] sm:$0xff]  }
 0x1b0   :  { %v2649_v58 = vmax.f32 %v25544_v52, %v2625_v24  ;;  %v2626_v28 = vmax.f32 %v21169_v17, %v2427_v0  ;;  %v2899_v56 = vsel %vm2729_vm1, %v2883_v20, %v21238_v19  ;;  %v18814_v24 = vld [vmem:[%s25427_s3 + $0x370] sm:$0xff]   ;;  %v14929_v20 = vrot.slane %v1376_v62, 1 }
 0x1b1   :  { %v2378_v50 = vpop.f32.mrf.mxu1  ;;  %v2429_v16 = vpop.f32.mrf.mxu0  ;;  %v2907_v31 = vpack.c.bf16 %v2899_v56, %v2899_v56  ;;  %v21282_v56 = vmax.f32 %v1338_v27, 0.0 }
 0x1b2   :  { %v2673_v48 = vadd.f32 %v2649_v58, %v21207_v5  ;;  %v21256_v22 = vmax.f32 %v25545_v1, %v2626_v28  ;;  %v18816_v50 = vld [vmem:[%s25427_s3 + $0x330] sm:$0xff]  }
 0x1b3   :  { %v2379_v17 = vpop.f32.mrf.mxu1  ;;  %v2430_v26 = vpop.f32.mrf.mxu0  ;;  %3458 = vmatprep.mubr.bf16.mxu0 %v2907_v31  ;;  %v21292_v31 = vmax.f32 %v1339_v36, 0.0 }
 0x1b4   :  { %v2697_v0 = vmax.f32 %v2673_v48, 0.0  ;;  %3459 = vmatmul.mubr.bf16.vlgmr.msra.gmra.mxu0 %v2906_v33  ;;  %v21286_v48 = vadd.f32 %v21207_v5, %v20976_v10  ;;  %v25546_v17 = vmax.f32 %v21045_v7, %v21103_v43  ;;  %v21302_v10 = vadd.f32 %v21207_v5, %v20981_v34  ;;  %v18820_v7 = vld [vmem:[%s25427_s3 + $0x328] sm:$0xff]  }
 0x1b5   :  { %v2466_v52 = vpop.f32.mrf.mxu1  ;;  %v21270_v58 = vpop.f32.mrf.mxu0  ;;  %17206 = vmatpush3.bf16.msra.mxu0 %v18812_v54  ;;  %v21294_v54 = vmax.f32 %v1341_v40, 0.0  ;;  %v25548_v34 = vmax.f32 %v21051_v15, %v21113_v30 }
 0x1b6   :  { %v14216_v28 = vrot.slane %v2697_v0, 7  ;;  %v21273_v11 = vsel %vm2729_vm1, %v14929_v20, %v2697_v0  ;;  %v2611_v6 = vmax.f32 %v21173_v51, %v2466_v52  ;;  %17207 = vmatprep.subr.bf16.mxu0 %v18814_v24  ;;  %v25550_v52 = vmax.f32 %v21055_v53, %v21121_v44  ;;  %v18824_v53 = vld [vmem:[%s25427_s3 + $0x320] sm:$0xff]  }
 0x1b7   :  { %v2468_v13 = vpop.f32.mrf.mxu1  ;;  %v2519_v16 = vpop.f32.mrf.mxu0 }
 0x1b8   :  { %v21289_v1 = vsel %vm2729_vm1, %v1376_v62, %v14216_v28  ;;  %v2612_v51 = vmax.f32 %v21177_v46, %v2468_v13  ;;  %v2635_v26 = vmax.f32 %v25546_v17, %v2611_v6  ;;  %v2614_v33 = vmax.f32 %v21179_v25, %v2519_v16  ;;  %v18822_v25 = vld [vmem:[%s25427_s3 + $0x360] sm:$0xff]  }
 0x1b9   :  { %v2470_v24 = vpop.f32.mrf.mxu1  ;;  %v2521_v27 = vpop.f32.mrf.mxu0  ;;  %v25547_v62 = vmax.f32 %v21049_v14, %v21111_v37  ;;  %17208 = vmatpush3.bf16.msra.mxu0 %v18816_v50  ;;  %v1380_v13 = vmax.f32 %v21302_v10, 0.0  ;;  %v25566_v10 = vld [vmem:[#allocation51_spill] sm:$0xff] }
 0x1ba   :  { %v2619_v0 = vmax.f32 %v21181_v55, %v2470_v24  ;;  %v2621_v20 = vmax.f32 %v21183_v29, %v2521_v27  ;;  %v2638_v43 = vmax.f32 %v25548_v34, %v2614_v33  ;;  %17209 = vmatprep.subr.bf16.mxu0 %v18818_v8  ;;  %v1378_v55 = vmax.f32 %v21286_v48, 0.0  ;;  %v18825_v33 = vld [vmem:[%s25427_s3 + $0x358] sm:$0xff]  }
 0x1bb   :  { %v2636_v46 = vmax.f32 %v25547_v62, %v2612_v51  ;;  %v21318_v36 = vpop.f32.mrf.mxu1  ;;  %v21320_v37 = vpop.f32.mrf.mxu0  ;;  %v25549_v29 = vmax.f32 %v21053_v32, %v21119_v63  ;;  %v2659_v30 = vadd.f32 %v2635_v26, %v21197_v12  ;;  %v2885_v8 = vrot.slane %v21292_v31, 1  ;;  %v25564_v48 = vld [vmem:[#allocation60_spill] sm:$0xff] }
 0x1bc   :  { %v21332_v28 = vmax.f32 %v25550_v52, %v2621_v20  ;;  %v2662_v15 = vadd.f32 %v2638_v43, %v21197_v12  ;;  %v2887_v63 = vrot.slane %v21294_v54, 1  ;;  %v25551_v24 = vmax.f32 %v21061_v2, %v21131_v23  ;;  %v25553_v2 = vld [vmem:[#allocation48_spill] sm:$0xff]  ;;  %v25556_v52 = vld [vmem:[#allocation37_spill] sm:$0xff] }
 0x1bd   :  { %v2660_v14 = vadd.f32 %v2636_v46, %v21197_v12  ;;  %v21327_v40 = vmax.f32 %v25549_v29, %v2619_v0  ;;  %v2476_v6 = vpop.f32.mrf.mxu1  ;;  %v2527_v50 = vpop.f32.mrf.mxu0  ;;  %17210 = vmatpush3.bf16.msra.mxu0 %v18820_v7  ;;  %v2884_v46 = vrot.slane %v21282_v56, 1  ;;  %v21358_v0 = vmax.f32 %v2659_v30, 0.0  ;;  %v25557_v30 = vld [vmem:[#allocation49_spill] sm:$0xff] }
 0x1be   :  { %v2627_v32 = vmax.f32 %v21189_v38, %v2476_v6  ;;  %v21345_v44 = vmax.f32 %v2662_v15, 0.0  ;;  %v2629_v51 = vmax.f32 %v21191_v35, %v2527_v50  ;;  %17211 = vmatprep.subr.bf16.mxu0 %v18822_v25  ;;  %v14931_v38 = vrot.slane %v1378_v55, 1  ;;  %v18827_v50 = vld [vmem:[%s25427_s3 + $0x318] sm:$0xff]  }
 0x1bf   :  { %v21338_v16 = vmax.f32 %v2660_v14, 0.0  ;;  %v2478_v17 = vpop.f32.mrf.mxu1  ;;  %v2529_v26 = vpop.f32.mrf.mxu0  ;;  %v2613_v35 = vmax.f32 %v21175_v60, %v21270_v58  ;;  %v25552_v20 = vmax.f32 %v21063_v18, %v21133_v61  ;;  %v25555_v18 = vld [vmem:[#allocation26_spill] sm:$0xff] }
 0x1c0   :  { %v2651_v27 = vmax.f32 %v25551_v24, %v2627_v32  ;;  %v2628_v62 = vmax.f32 %v21193_v49, %v2478_v17  ;;  %v2630_v25 = vmax.f32 %v21195_v57, %v2529_v26  ;;  %v25554_v49 = vmax.f32 %v21065_v59, %v25553_v2  ;;  %v25559_v32 = vld [vmem:[#allocation34_spill] sm:$0xff] }
 0x1c1   :  { %v2653_v7 = vmax.f32 %v25552_v20, %v2629_v51  ;;  %v2480_v34 = vpop.f32.mrf.mxu1  ;;  %v2531_v43 = vpop.f32.mrf.mxu0  ;;  %17212 = vmatpush3.bf16.msra.mxu0 %v18824_v53  ;;  %v2901_v29 = vsel %vm2729_vm1, %v2885_v8, %v21338_v16  ;;  %v2903_v60 = vsel %vm2729_vm1, %v2887_v63, %v21345_v44  ;;  %v1340_v61 = vadd.f32 %v21197_v12, %v25555_v18  ;;  %v18829_v26 = vld [vmem:[%s25427_s3 + $0x350] sm:$0xff]  }
 0x1c2   :  { %v2675_v23 = vadd.f32 %v2651_v27, %v21207_v5  ;;  %v21370_v14 = vmax.f32 %v25554_v49, %v2628_v62  ;;  %v14933_v57 = vrot.slane %v1380_v13, 1  ;;  %v25558_v59 = vmax.f32 %v25556_v52, %v25557_v30  ;;  %17213 = vmatprep.subr.bf16.mxu0 %v18825_v33  ;;  %v25560_v24 = vld [vmem:[#allocation18_spill] sm:$0xff]  ;;  %v25561_v27 = vld [vmem:[#allocation45_spill] sm:$0xff]  ;;  %v25563_v52 = vld [vmem:[#allocation15_spill] sm:$0xff] }
 0x1c3   :  { %v2677_v58 = vadd.f32 %v2653_v7, %v21207_v5  ;;  %v2481_v6 = vpop.f32.mrf.mxu1  ;;  %v2532_v8 = vpop.f32.mrf.mxu0  ;;  %v1343_v53 = vadd.f32 %v21197_v12, %v25559_v32  ;;  %v2909_v51 = vpack.c.bf16 %v2901_v29, %v2901_v29  ;;  %v2911_v17 = vpack.c.bf16 %v2903_v60, %v2903_v60  ;;  %v18831_v60 = vld [vmem:[%s25427_s3 + $0x310] sm:$0xff]   ;;  %v18834_v32 = vld [vmem:[%s25427_s3 + $0x3e8] sm:$0xff]  }
 0x1c4   :  { %v21384_v15 = vmax.f32 %v25558_v59, %v2630_v25  ;;  %v2699_v63 = vmax.f32 %v2675_v23, 0.0  ;;  %v25562_v62 = vmax.f32 %v25560_v24, %v25561_v27  ;;  %v2900_v7 = vsel %vm2729_vm1, %v2884_v46, %v21358_v0  ;;  %v18828_v25 = vld [vmem:[%s25427_s3 + $0x3b8] sm:$0xff]   ;;  %v18832_v6 = vld [vmem:[%s25427_s3 + $0x3b0] sm:$0xff]  }
 0x1c5   :  { %v2701_v33 = vmax.f32 %v2677_v58, 0.0  ;;  %v21402_v34 = vpop.f32.mrf.mxu1  ;;  %3498 = vmatprep.mubr.bf16.mxu1 %v2909_v51  ;;  %3538 = vmatprep.mubr.bf16.mxu0 %v2911_v17  ;;  %v2908_v2 = vpack.c.bf16 %v2900_v7, %v2900_v7  ;;  %v21416_v18 = vmax.f32 %v1340_v61, 0.0  ;;  %v21430_v30 = vadd.f32 %v21207_v5, %v25563_v52  ;;  %v18835_v17 = vld [vmem:[%s25427_s3 + $0x308] sm:$0xff]   ;;  %v25569_v24 = vld [vmem:[#allocation52_spill] sm:$0xff] }
 0x1c6   :  { %v2637_v20 = vmax.f32 %v25562_v62, %v2613_v35  ;;  %v14218_v43 = vrot.slane %v2699_v63, 7  ;;  %v21405_v23 = vsel %vm2729_vm1, %v14931_v38, %v2699_v63  ;;  %v18830_v35 = vld [vmem:[%s25427_s3 + $0x3f0] sm:$0xff]   ;;  %17214 = vmatpush3.bf16.msra.mxu0 %v18827_v50  ;;  %v21418_v38 = vmax.f32 %v1343_v53, 0.0 }
 0x1c7   :  { %v14220_v49 = vrot.slane %v2701_v33, 7  ;;  %v21411_v46 = vsel %vm2729_vm1, %v14933_v57, %v2701_v33  ;;  %v2570_v29 = vpop.f32.mrf.mxu1  ;;  %3499 = vmatmul.mubr.bf16.vlgmr.msra.gmra.mxu1 %v2908_v2  ;;  %17215 = vmatprep.subr.bf16.mxu0 %v18829_v26  ;;  %v18833_v57 = vld [vmem:[%s25427_s3 + $0x348] sm:$0xff]   ;;  %v25565_v53 = vld [vmem:[#allocation39_spill] sm:$0xff]  ;;  %v25568_v26 = vld [vmem:[#allocation40_spill] sm:$0xff]  ;;  %v1382_v33 = vmax.f32 %v21430_v30, 0.0 }
 0x1c8   :  { %v21423_v58 = vsel %vm2729_vm1, %v1378_v55, %v14218_v43  ;;  %v2661_v61 = vadd.f32 %v2637_v20, %v21197_v12  ;;  %17228 = vmatpush3.bf16.msra.mxu1 %v18828_v25  ;;  %v2616_v55 = vmax.f32 %v25564_v48, %v2570_v29  ;;  %v25567_v63 = vmax.f32 %v25565_v53, %v25566_v10  ;;  %v18836_v43 = vld [vmem:[%s25427_s3 + $0x3a8] sm:$0xff]   ;;  %v18838_v29 = vld [vmem:[%s25427_s3 + $0x3e0] sm:$0xff]   ;;  %v25572_v48 = vld [vmem:[#allocation55_spill] sm:$0xff] }
 0x1c9   :  { %v21436_v59 = vsel %vm2729_vm1, %v1380_v13, %v14220_v49  ;;  %v2572_v50 = vpop.f32.mrf.mxu1  ;;  %17229 = vmatprep.subr.bf16.mxu1 %v18830_v35  ;;  %v25570_v27 = vmax.f32 %v25568_v26, %v25569_v24  ;;  %v2886_v20 = vrot.slane %v21416_v18, 1  ;;  %v2889_v35 = vrot.slane %v21418_v38, 1  ;;  %v18839_v30 = vld [vmem:[%s25427_s3 + $0x300] sm:$0xff]   ;;  %v18841_v24 = vld [vmem:[%s25427_s3 + $0x3d8] sm:$0xff]  }
 0x1ca   :  { %v2623_v8 = vmax.f32 %v21212_v47, %v2572_v50  ;;  %v2640_v13 = vmax.f32 %v25567_v63, %v2616_v55  ;;  %17216 = vmatpush3.bf16.msra.mxu0 %v18831_v60  ;;  %v18837_v47 = vld [vmem:[%s25427_s3 + $0x340] sm:$0xff]   ;;  %v21464_v7 = vmax.f32 %v2661_v61, 0.0  ;;  %v2714_v60 = vrot.slane %v21238_v19, 7  ;;  %v25571_v61 = vld [vmem:[#allocation43_spill] sm:$0xff] }
 0x1cb   :  { %v21449_v51 = vpop.f32.mrf.mxu1  ;;  %17217 = vmatprep.subr.bf16.mxu0 %v18833_v57  ;;  %v25573_v55 = vmax.f32 %v25571_v61, %v25572_v48  ;;  %v18842_v50 = vld [vmem:[%s25427_s3 + $0x78] sm:$0xff]   ;;  %v18845_v48 = vld [vmem:[%s25427_s3 + $0x3d0] sm:$0xff]  }
 0x1cc   :  { %v21457_v62 = vmax.f32 %v25570_v27, %v2623_v8  ;;  %v2664_v25 = vadd.f32 %v2640_v13, %v21197_v12  ;;  %17230 = vmatpush3.bf16.msra.mxu1 %v18832_v6  ;;  %v18840_v8 = vld [vmem:[%s25427_s3 + $0x3a0] sm:$0xff]  }
 0x1cd   :  { %v2578_v2 = vpop.f32.mrf.mxu1  ;;  %17231 = vmatprep.subr.bf16.mxu1 %v18834_v32  ;;  %v2902_v32 = vsel %vm2729_vm1, %v2886_v20, %v21464_v7  ;;  %v25575_v13 = vld [vmem:[#allocation56_spill] sm:$0xff]  ;;  %v14935_v20 = vrot.slane %v1382_v33, 1 }
 0x1ce   :  { %v2631_v49 = vmax.f32 %v21236_v4, %v2578_v2  ;;  %v21476_v57 = vmax.f32 %v2664_v25, 0.0  ;;  %17218 = vmatpush3.bf16.msra.mxu0 %v18835_v17  ;;  %v25577_v25 = vld [vmem:[#allocation59_spill] sm:$0xff] }
 0x1cf   :  { %v2580_v52 = vpop.f32.mrf.mxu1  ;;  %17219 = vmatprep.subr.bf16.mxu0 %v18837_v47  ;;  %v2731_v47 = vsel %vm2729_vm1, %v21224_v41, %v2714_v60  ;;  %v18844_v2 = vld [vmem:[%s25427_s3 + $0x38] sm:$0xff]  }
 0x1d0   :  { %v2655_v6 = vmax.f32 %v25573_v55, %v2631_v49  ;;  %v2632_v4 = vmax.f32 %v21241_v42, %v2580_v52  ;;  %17232 = vmatpush3.bf16.msra.mxu1 %v18836_v43  ;;  %v2905_v53 = vsel %vm2729_vm1, %v2889_v35, %v21476_v57  ;;  %v25574_v42 = vld [vmem:[#allocation44_spill] sm:$0xff]  ;;  %v2615_v43 = vmax.f32 %v25577_v25, %v21402_v34  ;;  %v18846_v52 = vld [vmem:[%s25427_s3 + $0x70] sm:$0xff]  }
 0x1d1   :  { %v2582_v10 = vpop.f32.mrf.mxu1  ;;  %v25576_v17 = vmax.f32 %v25574_v42, %v25575_v13  ;;  %17233 = vmatprep.subr.bf16.mxu1 %v18838_v29  ;;  %v2913_v27 = vpack.c.bf16 %v2905_v53, %v2905_v53  ;;  %v2910_v29 = vpack.c.bf16 %v2902_v32, %v2902_v32  ;;  %v18843_v60 = vld [vmem:[%s25427_s3 + $0x398] sm:$0xff]   ;;  %v2739_v34 = vpack.c.bf16 %v2731_v47, %v2731_v47  ;;  %v25578_v55 = vld [vmem:[#allocation38_spill] sm:$0xff]  ;;  %v18856_v25 = vld [vmem:[%s25427_s3 + $0x20] sm:$0xff]  }
 0x1d2   :  { %v2679_v63 = vadd.f32 %v2655_v6, %v21207_v5  ;;  %17220 = vmatpush3.bf16.msra.mxu0 %v18839_v30  ;;  %v25579_v6 = vld [vmem:[#allocation50_spill] sm:$0xff]  ;;  %v25581_v10 = vld [vmem:[#allocation33_spill] sm:$0xff] }
 0x1d3   :  { %v21499_v26 = vmax.f32 %v25576_v17, %v2632_v4  ;;  %v2583_v35 = vpop.f32.mrf.mxu1  ;;  %3578 = vmatprep.mubr.bf16.mxu1 %v2913_v27  ;;  %17249 = vmatprep.subr.bf16.mxu0 %v18842_v50  ;;  %v25580_v4 = vmax.f32 %v25578_v55, %v25579_v6  ;;  %v18850_v53 = vld [vmem:[%s25427_s3 + $0x68] sm:$0xff]   ;;  %v18847_v42 = vld [vmem:[%s25427_s3 + $0x390] sm:$0xff]  }
 0x1d4   :  { %v2703_v49 = vmax.f32 %v2679_v63, 0.0  ;;  %17234 = vmatpush3.bf16.msra.mxu1 %v18840_v8  ;;  %v18848_v8 = vld [vmem:[%s25427_s3 + $0x30] sm:$0xff]   ;;  %v1342_v63 = vadd.f32 %v21197_v12, %v25581_v10  ;;  %v18849_v13 = vld [vmem:[%s25427_s3 + $0x3c8] sm:$0xff]   ;;  %v18855_v35 = vld [vmem:[%s25427_s3 + $0x380] sm:$0xff]  }
 0x1d5   :  { %3539 = vmatmul.mubr.bf16.vlgmr.msra.gmra.mxu0 %v2910_v29  ;;  %17235 = vmatprep.subr.bf16.mxu1 %v18841_v24  ;;  %v2639_v50 = vmax.f32 %v25580_v4, %v2615_v43  ;;  %v18852_v17 = vld [vmem:[%s25427_s3 + $0x28] sm:$0xff]   ;;  %v18854_v24 = vld [vmem:[%s25427_s3 + $0x60] sm:$0xff]   ;;  %v18857_v43 = vld [vmem:[%s25427_s3 + $0x58] sm:$0xff]  }
 0x1d6   :  { %v14222_v30 = vrot.slane %v2703_v49, 7  ;;  %v21518_v61 = vsel %vm2729_vm1, %v14935_v20, %v2703_v49  ;;  %17250 = vmatpush3.bf16.msra.mxu0 %v18844_v2  ;;  %4002 = vmatprep.mubr.bf16.mxu0 %v2739_v34  ;;  %v21550_v27 = vmax.f32 %v1342_v63, 0.0  ;;  %v18851_v47 = vld [vmem:[%s25427_s3 + $0x388] sm:$0xff]   ;;  %v2716_v2 = vrot.slane %v21338_v16, 7  ;;  %v18858_v29 = vld [vmem:[%s25427_s3 + $0xf8] sm:$0xff]   ;;  %v18862_v6 = vld [vmem:[%s25427_s3 + $0xf0] sm:$0xff]  }
 0x1d7   :  { %17251 = vmatprep.subr.bf16.mxu0 %v18846_v52  ;;  %v18859_v52 = vld [vmem:[%s25427_s3 + $0x18] sm:$0xff]   ;;  %v18866_v10 = vld [vmem:[%s25427_s3 + $0xe8] sm:$0xff]  }
 0x1d8   :  { %v21530_v32 = vsel %vm2729_vm1, %v1382_v33, %v14222_v30  ;;  %17236 = vmatpush3.bf16.msra.mxu1 %v18843_v60  ;;  %v2663_v33 = vadd.f32 %v2639_v50, %v21197_v12  ;;  %v18853_v12 = vld [vmem:[%s25427_s3 + $0x3c0] sm:$0xff]   ;;  %v2888_v49 = vrot.slane %v21550_v27, 1  ;;  %v18861_v60 = vld [vmem:[%s25427_s3 + $0x50] sm:$0xff]   ;;  %v2733_v30 = vsel %vm2729_vm1, %v21292_v31, %v2716_v2  ;;  %v18867_v63 = vld [vmem:[%s25427_s3 + $0x8] sm:$0xff]  }
 0x1d9   :  { %17237 = vmatprep.subr.bf16.mxu1 %v18845_v48  ;;  %v18860_v48 = vld [vmem:[%s25427_s3 + $0xb8] sm:$0xff]   ;;  %v2741_v4 = vpack.c.bf16 %v2733_v30, %v2733_v30  ;;  %v18863_v50 = vld [vmem:[%s25427_s3 + $0x10] sm:$0xff]  }
 0x1da   :  { %17252 = vmatpush3.bf16.msra.mxu0 %v18848_v8  ;;  %v21558_v20 = vmax.f32 %v2663_v33, 0.0  ;;  %v18865_v8 = vld [vmem:[%s25427_s3 + $0x48] sm:$0xff]   ;;  %v2713_v33 = vrot.slane %v21226_v39, 7  ;;  %v18873_v2 = vld [vmem:[%s25427_s3 + $0xd8] sm:$0xff]  }
 0x1db   :  { %17253 = vmatprep.subr.bf16.mxu0 %v18850_v53  ;;  %v18864_v53 = vld [vmem:[%s25427_s3 + $0xb0] sm:$0xff]  }
 0x1dc   :  { %17238 = vmatpush3.bf16.msra.mxu1 %v18847_v42  ;;  %v2904_v34 = vsel %vm2729_vm1, %v2888_v49, %v21558_v20  ;;  %v18869_v42 = vld [vmem:[%s25427_s3 + $0x40] sm:$0xff]   ;;  %v18875_v49 = vld [vmem:[%s25427_s3 + $0x98] sm:$0xff]  }
 0x1dd   :  { %17239 = vmatprep.subr.bf16.mxu1 %v18849_v13  ;;  %v2912_v55 = vpack.c.bf16 %v2904_v34, %v2904_v34  ;;  %v18868_v13 = vld [vmem:[%s25427_s3 + $0xa8] sm:$0xff]   ;;  %v21643_v34 = vadd.f32 %v21370_v14, %v21207_v5  ;;  %v18880_v14 = vld [vmem:[%s25427_s3 + $0x130] sm:$0xff]  }
 0x1de   :  { %17254 = vmatpush3.bf16.msra.mxu0 %v18852_v17  ;;  %v18870_v17 = vld [vmem:[%s25427_s3 + $0xe0] sm:$0xff]  }
 0x1df   :  { %17255 = vmatprep.subr.bf16.mxu0 %v18854_v24  ;;  %v18871_v24 = vld [vmem:[%s25427_s3] sm:$0xff]  }
 0x1e0   :  { %17240 = vmatpush3.bf16.msra.mxu1 %v18851_v47  ;;  %v2718_v47 = vrot.slane %v21345_v44, 7 }
 0x1e1   :  { %17241 = vmatprep.subr.bf16.mxu1 %v18853_v12  ;;  %v18874_v12 = vld [vmem:[%s25427_s3 + $0x178] sm:$0xff]  }
 0x1e2   :  { %17256 = vmatpush3.bf16.msra.mxu0 %v18856_v25  ;;  %v18872_v25 = vld [vmem:[%s25427_s3 + $0xa0] sm:$0xff]  }
 0x1e3   :  { %17257 = vmatprep.subr.bf16.mxu0 %v18857_v43  ;;  %v2730_v43 = vsel %vm2729_vm1, %v21218_v21, %v2713_v33  ;;  %v2680_v33 = vadd.f32 %v21499_v26, %v21207_v5 }
 0x1e4   :  { %17242 = vmatpush3.bf16.msra.mxu1 %v18855_v35  ;;  %v2735_v35 = vsel %vm2729_vm1, %v21294_v54, %v2718_v47  ;;  %v18883_v47 = vld [vmem:[%s25427_s3 + $0x88] sm:$0xff]  }
 0x1e5   :  { %17271 = vmatprep.subr.bf16.mxu1 %v18858_v29  ;;  %v18876_v29 = vld [vmem:[%s25427_s3 + $0x138] sm:$0xff]   ;;  %v2743_v30 = vpack.c.bf16 %v2735_v35, %v2735_v35  ;;  %v18888_v35 = vld [vmem:[%s25427_s3 + $0x120] sm:$0xff]  }
 0x1e6   :  { %17258 = vmatpush3.bf16.msra.mxu0 %v18859_v52  ;;  %v2738_v52 = vpack.c.bf16 %v2730_v43, %v2730_v43 }
 0x1e7   :  { %3579 = vmatmul.mubr.bf16.vlgmr.msra.gmra.mxu1 %v2912_v55  ;;  %17259 = vmatprep.subr.bf16.mxu0 %v18861_v60  ;;  %v18878_v60 = vld [vmem:[%s25427_s3 + $0x170] sm:$0xff]  }
 0x1e8   :  { %17272 = vmatpush3.bf16.msra.mxu1 %v18860_v48  ;;  %4042 = vmatprep.mubr.bf16.mxu1 %v2741_v4  ;;  %v25582_v48 = vld [vmem:[#allocation31_spill] sm:$0xff] }
 0x1e9   :  { %17273 = vmatprep.subr.bf16.mxu1 %v18862_v6  ;;  %v1355_v55 = vadd.f32 %v21207_v5, %v25582_v48  ;;  %v21649_v6 = vadd.f32 %v21384_v15, %v21207_v5  ;;  %v18877_v4 = vld [vmem:[%s25427_s3 + $0xd0] sm:$0xff]  }
 0x1ea   :  { %17260 = vmatpush3.bf16.msra.mxu0 %v18863_v50  ;;  %v18882_v50 = vld [vmem:[%s25427_s3 + $0x168] sm:$0xff]  }
 0x1eb   :  { %17261 = vmatprep.subr.bf16.mxu0 %v18865_v8  ;;  %v25583_v8 = vld [vmem:[#allocation32_spill] sm:$0xff] }
 0x1ec   :  { %17274 = vmatpush3.bf16.msra.mxu1 %v18864_v53  ;;  %v1357_v15 = vadd.f32 %v21207_v5, %v25583_v8  ;;  %v2700_v53 = vmax.f32 %v21643_v34, 0.0  ;;  %v2720_v34 = vrot.slane %v21476_v57, 7  ;;  %v18893_v8 = vld [vmem:[%s25427_s3 + $0x150] sm:$0xff]  }
 0x1ed   :  { %17275 = vmatprep.subr.bf16.mxu1 %v18866_v10  ;;  %v18879_v10 = vld [vmem:[%s25427_s3 + $0x90] sm:$0xff]  }
 0x1ee   :  { %17262 = vmatpush3.bf16.msra.mxu0 %v18867_v63  ;;  %v18881_v63 = vld [vmem:[%s25427_s3 + $0xc8] sm:$0xff]   ;;  %v14219_v26 = vrot.slane %v2700_v53, 7 }
 0x1ef   :  { %17263 = vmatprep.subr.bf16.mxu0 %v18869_v42  ;;  %v1379_v42 = vmax.f32 %v1355_v55, 0.0  ;;  %v18887_v55 = vld [vmem:[%s25427_s3 + $0x80] sm:$0xff]  }
 0x1f0   :  { %17276 = vmatpush3.bf16.msra.mxu1 %v18868_v13  ;;  %v2702_v13 = vmax.f32 %v21649_v6, 0.0  ;;  %v18890_v6 = vld [vmem:[%s25427_s3 + $0x1f8] sm:$0xff]  }
 0x1f1   :  { %17277 = vmatprep.subr.bf16.mxu1 %v18870_v17  ;;  %v18884_v17 = vld [vmem:[%s25427_s3 + $0x128] sm:$0xff]  }
 0x1f2   :  { %17264 = vmatpush3.bf16.msra.mxu0 %v18871_v24  ;;  %v18886_v24 = vld [vmem:[%s25427_s3 + $0x160] sm:$0xff]  }
 0x1f3   :  { %17293 = vmatprep.subr.bf16.mxu0 %v18874_v12  ;;  %v1381_v12 = vmax.f32 %v1357_v15, 0.0 }
 0x1f4   :  { %17278 = vmatpush3.bf16.msra.mxu1 %v18872_v25  ;;  %v25584_v25 = vld [vmem:[#allocation11_spill] sm:$0xff] }
 0x1f5   :  { %4003 = vmatmul.mubr.bf16.vlgmr.msra.gmra.mxu0 %v2738_v52  ;;  %17279 = vmatprep.subr.bf16.mxu1 %v18873_v2  ;;  %v1359_v43 = vadd.f32 %v21207_v5, %v25584_v25  ;;  %v18885_v2 = vld [vmem:[%s25427_s3 + $0xc0] sm:$0xff]   ;;  %v2715_v52 = vrot.slane %v21358_v0, 7  ;;  %v18895_v25 = vld [vmem:[%s25427_s3 + $0x110] sm:$0xff]  }
 0x1f6   :  { %17294 = vmatpush3.bf16.msra.mxu0 %v18876_v29  ;;  %4082 = vmatprep.mubr.bf16.mxu0 %v2743_v30  ;;  %v2704_v29 = vmax.f32 %v2680_v33, 0.0  ;;  %v14932_v30 = vrot.slane %v1379_v42, 1 }
 0x1f7   :  { %17295 = vmatprep.subr.bf16.mxu0 %v18878_v60  ;;  %v18889_v60 = vld [vmem:[%s25427_s3 + $0x158] sm:$0xff]   ;;  %v1383_v48 = vmax.f32 %v1359_v43, 0.0  ;;  %v2732_v15 = vsel %vm2729_vm1, %v21282_v56, %v2715_v52 }
 0x1f8   :  { %17280 = vmatpush3.bf16.msra.mxu1 %v18875_v49  ;;  %v14221_v49 = vrot.slane %v2702_v13, 7  ;;  %v2740_v43 = vpack.c.bf16 %v2732_v15, %v2732_v15  ;;  %v18908_v15 = vld [vmem:[%s25427_s3 + $0x438] sm:$0xff]  }
 0x1f9   :  { %17281 = vmatprep.subr.bf16.mxu1 %v18877_v4  ;;  %v14934_v4 = vrot.slane %v1381_v12, 1 }
 0x1fa   :  { %17296 = vmatpush3.bf16.msra.mxu0 %v18880_v14  ;;  %v14223_v14 = vrot.slane %v2704_v29, 7  ;;  %v21715_v33 = vsel %vm2729_vm1, %v1381_v12, %v14221_v49  ;;  %v21729_v12 = vsel %vm2729_vm1, %v14932_v30, %v2700_v53  ;;  %v18898_v49 = vld [vmem:[%s25427_s3 + $0x1e8] sm:$0xff]  }
 0x1fb   :  { %17297 = vmatprep.subr.bf16.mxu0 %v18882_v50  ;;  %v18891_v50 = vld [vmem:[%s25427_s3 + $0x118] sm:$0xff]   ;;  %v18899_v53 = vld [vmem:[%s25427_s3 + $0x108] sm:$0xff]   ;;  %v21744_v52 = vsel %vm2729_vm1, %v14934_v4, %v2702_v13  ;;  %v18902_v13 = vld [vmem:[%s25427_s3 + $0x1e0] sm:$0xff]   ;;  %v4131_v4 = vrot.slane %v21224_v41, 2 }
 0x1fc   :  { %17282 = vmatpush3.bf16.msra.mxu1 %v18879_v10  ;;  %v18892_v10 = vld [vmem:[%s25427_s3 + $0x1b8] sm:$0xff]   ;;  %v18900_v30 = vld [vmem:[%s25427_s3 + $0x1a8] sm:$0xff]  }
 0x1fd   :  { %17283 = vmatprep.subr.bf16.mxu1 %v18881_v63  ;;  %v21712_v63 = vsel %vm2729_vm1, %v1379_v42, %v14219_v26  ;;  %v21726_v42 = vsel %vm2729_vm1, %v1383_v48, %v14223_v14  ;;  %v18904_v14 = vld [vmem:[%s25427_s3 + $0x1a0] sm:$0xff]  }
 0x1fe   :  { %17298 = vmatpush3.bf16.msra.mxu0 %v18884_v17  ;;  %v2737_v17 = vsel %vm2729_vm1, %v21418_v38, %v2720_v34  ;;  %v18901_v34 = vld [vmem:[%s25427_s3 + $0x140] sm:$0xff]  }
 0x1ff   :  { %17299 = vmatprep.subr.bf16.mxu0 %v18886_v24  ;;  %v18894_v24 = vld [vmem:[%s25427_s3 + $0x1f0] sm:$0xff]   ;;  %v2745_v26 = vpack.c.bf16 %v2737_v17, %v2737_v17  ;;  %v18907_v17 = vld [vmem:[%s25427_s3 + $0x198] sm:$0xff]  }
 0x200   :  { %17284 = vmatpush3.bf16.msra.mxu1 %v18883_v47  ;;  %v14936_v47 = vrot.slane %v1383_v48, 1  ;;  %v2717_v48 = vrot.slane %v21464_v7, 7 }
 0x201   :  { %17285 = vmatprep.subr.bf16.mxu1 %v18885_v2  ;;  %v18896_v2 = vld [vmem:[%s25427_s3 + $0x1b0] sm:$0xff]  }
 0x202   :  { %17300 = vmatpush3.bf16.msra.mxu0 %v18888_v35  ;;  %v18897_v35 = vld [vmem:[%s25427_s3 + $0x148] sm:$0xff]  }
 0x203   :  { %17301 = vmatprep.subr.bf16.mxu0 %v18889_v60  ;;  %v21747_v60 = vsel %vm2729_vm1, %v14936_v47, %v2704_v29  ;;  %v4147_v29 = vrot.slane %v21238_v19, 1 }
 0x204   :  { %17286 = vmatpush3.bf16.msra.mxu1 %v18887_v55  ;;  %v18903_v55 = vld [vmem:[%s25427_s3 + $0x100] sm:$0xff]  }
 0x205   :  { %17315 = vmatprep.subr.bf16.mxu1 %v18890_v6  ;;  %v18906_v6 = vld [vmem:[%s25427_s3 + $0x478] sm:$0xff]  }
 0x206   :  { %17302 = vmatpush3.bf16.msra.mxu0 %v18891_v50  ;;  %v2734_v50 = vsel %vm2729_vm1, %v21416_v18, %v2717_v48  ;;  %v18917_v48 = vld [vmem:[%s25427_s3 + $0x1c0] sm:$0xff]  }
 0x207   :  { %4043 = vmatmul.mubr.bf16.vlgmr.msra.gmra.mxu1 %v2740_v43  ;;  %17303 = vmatprep.subr.bf16.mxu0 %v18893_v8  ;;  %v18905_v8 = vld [vmem:[%s25427_s3 + $0x1d8] sm:$0xff]   ;;  %v2742_v47 = vpack.c.bf16 %v2734_v50, %v2734_v50  ;;  %v18909_v43 = vld [vmem:[%s25427_s3 + $0x1d0] sm:$0xff]  }
 0x208   :  { %17316 = vmatpush3.bf16.msra.mxu1 %v18892_v10  ;;  %4122 = vmatprep.mubr.bf16.mxu1 %v2745_v26  ;;  %v4163_v10 = vsel %vm2729_vm1, %v4131_v4, %v4147_v29  ;;  %v18912_v26 = vld [vmem:[%s25427_s3 + $0x430] sm:$0xff]   ;;  %v2719_v29 = vrot.slane %v21558_v20, 7  ;;  %v18919_v4 = vld [vmem:[%s25427_s3 + $0x180] sm:$0xff]   ;;  %v18923_v50 = vld [vmem:[%s25427_s3 + $0x418] sm:$0xff]  }
 0x209   :  { %17317 = vmatprep.subr.bf16.mxu1 %v18894_v24  ;;  %v18910_v24 = vld [vmem:[%s25427_s3 + $0x470] sm:$0xff]  }
 0x20a   :  { %17304 = vmatpush3.bf16.msra.mxu0 %v18895_v25  ;;  %v4171_v25 = vpack.c.bf16 %v4163_v10, %v4163_v10  ;;  %v2736_v10 = vsel %vm2729_vm1, %v21550_v27, %v2719_v29  ;;  %v4151_v29 = vrot.slane %v21345_v44, 1 }
 0x20b   :  { %17305 = vmatprep.subr.bf16.mxu0 %v18897_v35  ;;  %v18911_v35 = vld [vmem:[%s25427_s3 + $0x190] sm:$0xff]  }
 0x20c   :  { %17318 = vmatpush3.bf16.msra.mxu1 %v18896_v2  ;;  %v18914_v2 = vld [vmem:[%s25427_s3 + $0x468] sm:$0xff]  }
 0x20d   :  { %17319 = vmatprep.subr.bf16.mxu1 %v18898_v49  ;;  %v18913_v49 = vld [vmem:[%s25427_s3 + $0x1c8] sm:$0xff]  }
 0x20e   :  { %17306 = vmatpush3.bf16.msra.mxu0 %v18899_v53  ;;  %v18916_v53 = vld [vmem:[%s25427_s3 + $0x428] sm:$0xff]  }
 0x20f   :  { %17307 = vmatprep.subr.bf16.mxu0 %v18901_v34  ;;  %v18918_v34 = vld [vmem:[%s25427_s3 + $0x460] sm:$0xff]  }
 0x210   :  { %17320 = vmatpush3.bf16.msra.mxu1 %v18900_v30  ;;  %v18915_v30 = vld [vmem:[%s25427_s3 + $0x188] sm:$0xff]  }
 0x211   :  { %17321 = vmatprep.subr.bf16.mxu1 %v18902_v13  ;;  %v18920_v13 = vld [vmem:[%s25427_s3 + $0x420] sm:$0xff]  }
 0x212   :  { %17308 = vmatpush3.bf16.msra.mxu0 %v18903_v55  ;;  %v18921_v55 = vld [vmem:[%s25427_s3 + $0x458] sm:$0xff]  }
 0x213   :  { %17337 = vmatprep.subr.bf16.mxu0 %v18906_v6  ;;  %v4149_v6 = vrot.slane %v21338_v16, 1 }
 0x214   :  { %17322 = vmatpush3.bf16.msra.mxu1 %v18904_v14  ;;  %v18922_v14 = vld [vmem:[%s25427_s3 + $0x4f8] sm:$0xff]  }
 0x215   :  { %4083 = vmatmul.mubr.bf16.vlgmr.msra.gmra.mxu0 %v2742_v47  ;;  %17323 = vmatprep.subr.bf16.mxu1 %v18905_v8  ;;  %v4133_v8 = vrot.slane %v21292_v31, 2  ;;  %v18926_v47 = vld [vmem:[%s25427_s3 + $0x4f0] sm:$0xff]  }
 0x216   :  { %17338 = vmatpush3.bf16.msra.mxu0 %v18908_v15  ;;  %4722 = vmatprep.mubr.bf16.mxu0 %v4171_v25  ;;  %v18925_v15 = vld [vmem:[%s25427_s3 + $0x450] sm:$0xff]  }
 0x217   :  { %17339 = vmatprep.subr.bf16.mxu0 %v18910_v24  ;;  %v4165_v24 = vsel %vm2729_vm1, %v4133_v8, %v4149_v6  ;;  %v18927_v25 = vld [vmem:[%s25427_s3 + $0x410] sm:$0xff]   ;;  %v4130_v6 = vrot.slane %v21218_v21, 2 }
 0x218   :  { %17324 = vmatpush3.bf16.msra.mxu1 %v18907_v17  ;;  %v18924_v17 = vld [vmem:[%s25427_s3 + $0x4b8] sm:$0xff]  }
 0x219   :  { %17325 = vmatprep.subr.bf16.mxu1 %v18909_v43  ;;  %v2744_v43 = vpack.c.bf16 %v2736_v10, %v2736_v10  ;;  %v18940_v10 = vld [vmem:[%s25427_s3 + $0x538] sm:$0xff]  }
 0x21a   :  { %17340 = vmatpush3.bf16.msra.mxu0 %v18912_v26  ;;  %v4173_v26 = vpack.c.bf16 %v4165_v24, %v4165_v24  ;;  %v18939_v24 = vld [vmem:[%s25427_s3 + $0x498] sm:$0xff]  }
 0x21b   :  { %17341 = vmatprep.subr.bf16.mxu0 %v18914_v2  ;;  %v18928_v2 = vld [vmem:[%s25427_s3 + $0x4b0] sm:$0xff]  }
 0x21c   :  { %17326 = vmatpush3.bf16.msra.mxu1 %v18911_v35  ;;  %v18929_v35 = vld [vmem:[%s25427_s3 + $0x448] sm:$0xff]  }
 0x21d   :  { %17327 = vmatprep.subr.bf16.mxu1 %v18913_v49  ;;  %v18930_v49 = vld [vmem:[%s25427_s3 + $0x4e8] sm:$0xff]  }
 0x21e   :  { %17342 = vmatpush3.bf16.msra.mxu0 %v18916_v53  ;;  %v18931_v53 = vld [vmem:[%s25427_s3 + $0x408] sm:$0xff]  }
 0x21f   :  { %17343 = vmatprep.subr.bf16.mxu0 %v18918_v34  ;;  %v18933_v34 = vld [vmem:[%s25427_s3 + $0x440] sm:$0xff]  }
 0x220   :  { %17328 = vmatpush3.bf16.msra.mxu1 %v18915_v30  ;;  %v18932_v30 = vld [vmem:[%s25427_s3 + $0x4a8] sm:$0xff]  }
 0x221   :  { %17329 = vmatprep.subr.bf16.mxu1 %v18917_v48  ;;  %v4146_v48 = vrot.slane %v21226_v39, 1 }
 0x222   :  { %17344 = vmatpush3.bf16.msra.mxu0 %v18920_v13  ;;  %v18934_v13 = vld [vmem:[%s25427_s3 + $0x4e0] sm:$0xff]  }
 0x223   :  { %17345 = vmatprep.subr.bf16.mxu0 %v18921_v55  ;;  %v18935_v55 = vld [vmem:[%s25427_s3 + $0x400] sm:$0xff]   ;;  %v4162_v8 = vsel %vm2729_vm1, %v4130_v6, %v4146_v48  ;;  %v18947_v48 = vld [vmem:[%s25427_s3 + $0x488] sm:$0xff]   ;;  %v18953_v6 = vld [vmem:[%s25427_s3 + $0x558] sm:$0xff]  }
 0x224   :  { %17330 = vmatpush3.bf16.msra.mxu1 %v18919_v4  ;;  %v18938_v4 = vld [vmem:[%s25427_s3 + $0x578] sm:$0xff]  }
 0x225   :  { %17359 = vmatprep.subr.bf16.mxu1 %v18922_v14  ;;  %v4135_v14 = vrot.slane %v21294_v54, 2 }
 0x226   :  { %17346 = vmatpush3.bf16.msra.mxu0 %v18923_v50  ;;  %v18936_v50 = vld [vmem:[%s25427_s3 + $0x4a0] sm:$0xff]  }
 0x227   :  { %4123 = vmatmul.mubr.bf16.vlgmr.msra.gmra.mxu1 %v2744_v43  ;;  %17347 = vmatprep.subr.bf16.mxu0 %v18925_v15  ;;  %v18937_v15 = vld [vmem:[%s25427_s3 + $0x4d8] sm:$0xff]  }
 0x228   :  { %17360 = vmatpush3.bf16.msra.mxu1 %v18924_v17  ;;  %4762 = vmatprep.mubr.bf16.mxu1 %v4173_v26  ;;  %v4167_v17 = vsel %vm2729_vm1, %v4135_v14, %v4151_v29  ;;  %v18941_v26 = vld [vmem:[%s25427_s3 + $0x4d0] sm:$0xff]   ;;  %v18952_v29 = vld [vmem:[%s25427_s3 + $0x520] sm:$0xff]  }
 0x229   :  { %17361 = vmatprep.subr.bf16.mxu1 %v18926_v47  ;;  %v18942_v47 = vld [vmem:[%s25427_s3 + $0x570] sm:$0xff]   ;;  %v4175_v43 = vpack.c.bf16 %v4167_v17, %v4167_v17  ;;  %v18951_v14 = vld [vmem:[%s25427_s3 + $0x480] sm:$0xff]  }
 0x22a   :  { %17348 = vmatpush3.bf16.msra.mxu0 %v18927_v25  ;;  %v4170_v25 = vpack.c.bf16 %v4162_v8, %v4162_v8  ;;  %v18954_v8 = vld [vmem:[%s25427_s3 + $0x5f8] sm:$0xff]   ;;  %v18957_v17 = vld [vmem:[%s25427_s3 + $0x550] sm:$0xff]  }
 0x22b   :  { %17349 = vmatprep.subr.bf16.mxu0 %v18929_v35  ;;  %v18946_v35 = vld [vmem:[%s25427_s3 + $0x568] sm:$0xff]  }
 0x22c   :  { %17362 = vmatpush3.bf16.msra.mxu1 %v18928_v2  ;;  %v18944_v2 = vld [vmem:[%s25427_s3 + $0x530] sm:$0xff]  }
 0x22d   :  { %17363 = vmatprep.subr.bf16.mxu1 %v18930_v49  ;;  %v18943_v49 = vld [vmem:[%s25427_s3 + $0x490] sm:$0xff]  }
 0x22e   :  { %17350 = vmatpush3.bf16.msra.mxu0 %v18931_v53  ;;  %v18945_v53 = vld [vmem:[%s25427_s3 + $0x4c8] sm:$0xff]  }
 0x22f   :  { %17351 = vmatprep.subr.bf16.mxu0 %v18933_v34  ;;  %v18948_v34 = vld [vmem:[%s25427_s3 + $0x528] sm:$0xff]  }
 0x230   :  { %17364 = vmatpush3.bf16.msra.mxu1 %v18932_v30  ;;  %v18950_v30 = vld [vmem:[%s25427_s3 + $0x560] sm:$0xff]  }
 0x231   :  { %17365 = vmatprep.subr.bf16.mxu1 %v18934_v13  ;;  %v18949_v13 = vld [vmem:[%s25427_s3 + $0x4c0] sm:$0xff]  }
 0x232   :  { %17352 = vmatpush3.bf16.msra.mxu0 %v18935_v55  ;;  %v4148_v55 = vrot.slane %v21358_v0, 1 }
 0x233   :  { %17381 = vmatprep.subr.bf16.mxu0 %v18938_v4  ;;  %v4153_v4 = vrot.slane %v21476_v57, 1 }
 0x234   :  { %17366 = vmatpush3.bf16.msra.mxu1 %v18936_v50  ;;  %v4132_v50 = vrot.slane %v21282_v56, 2 }
 0x235   :  { %4723 = vmatmul.mubr.bf16.vlgmr.msra.gmra.mxu0 %v4170_v25  ;;  %17367 = vmatprep.subr.bf16.mxu1 %v18937_v15  ;;  %v18955_v15 = vld [vmem:[%s25427_s3 + $0x518] sm:$0xff]  }
 0x236   :  { %17382 = vmatpush3.bf16.msra.mxu0 %v18940_v10  ;;  %4802 = vmatprep.mubr.bf16.mxu0 %v4175_v43  ;;  %v4137_v10 = vrot.slane %v21418_v38, 2  ;;  %v18958_v43 = vld [vmem:[%s25427_s3 + $0x5f0] sm:$0xff]  }
 0x237   :  { %17383 = vmatprep.subr.bf16.mxu0 %v18942_v47  ;;  %v18956_v47 = vld [vmem:[%s25427_s3 + $0x5b8] sm:$0xff]  }
 0x238   :  { %17368 = vmatpush3.bf16.msra.mxu1 %v18939_v24  ;;  %v4164_v24 = vsel %vm2729_vm1, %v4132_v50, %v4148_v55  ;;  %v4169_v25 = vsel %vm2729_vm1, %v4137_v10, %v4153_v4  ;;  %v18966_v55 = vld [vmem:[%s25427_s3 + $0x5e0] sm:$0xff]   ;;  %v18970_v50 = vld [vmem:[%s25427_s3 + $0x678] sm:$0xff]  }
 0x239   :  { %17369 = vmatprep.subr.bf16.mxu1 %v18941_v26  ;;  %v18959_v26 = vld [vmem:[%s25427_s3 + $0x510] sm:$0xff]   ;;  %v18967_v4 = vld [vmem:[%s25427_s3 + $0x500] sm:$0xff]  }
 0x23a   :  { %17384 = vmatpush3.bf16.msra.mxu0 %v18944_v2  ;;  %v4172_v2 = vpack.c.bf16 %v4164_v24, %v4164_v24  ;;  %v18972_v24 = vld [vmem:[%s25427_s3 + $0x638] sm:$0xff]  }
 0x23b   :  { %17385 = vmatprep.subr.bf16.mxu0 %v18946_v35  ;;  %v4177_v35 = vpack.c.bf16 %v4169_v25, %v4169_v25  ;;  %v18971_v25 = vld [vmem:[%s25427_s3 + $0x598] sm:$0xff]  }
 0x23c   :  { %17370 = vmatpush3.bf16.msra.mxu1 %v18943_v49  ;;  %v18960_v49 = vld [vmem:[%s25427_s3 + $0x5b0] sm:$0xff]  }
 0x23d   :  { %17371 = vmatprep.subr.bf16.mxu1 %v18945_v53  ;;  %v18961_v53 = vld [vmem:[%s25427_s3 + $0x548] sm:$0xff]  }
 0x23e   :  { %17386 = vmatpush3.bf16.msra.mxu0 %v18948_v34  ;;  %v18962_v34 = vld [vmem:[%s25427_s3 + $0x5e8] sm:$0xff]  }
 0x23f   :  { %17387 = vmatprep.subr.bf16.mxu0 %v18950_v30  ;;  %v18963_v30 = vld [vmem:[%s25427_s3 + $0x508] sm:$0xff]  }
 0x240   :  { %17372 = vmatpush3.bf16.msra.mxu1 %v18947_v48  ;;  %v18965_v48 = vld [vmem:[%s25427_s3 + $0x540] sm:$0xff]  }
 0x241   :  { %17373 = vmatprep.subr.bf16.mxu1 %v18949_v13  ;;  %v18964_v13 = vld [vmem:[%s25427_s3 + $0x5a8] sm:$0xff]  }
 0x242   :  { %17388 = vmatpush3.bf16.msra.mxu0 %v18952_v29  ;;  %v4150_v29 = vrot.slane %v21464_v7, 1 }
 0x243   :  { %17389 = vmatprep.subr.bf16.mxu0 %v18953_v6  ;;  %v4868_v6 = vrot.slane %v21238_v19, 2 }
 0x244   :  { %17374 = vmatpush3.bf16.msra.mxu1 %v18951_v14  ;;  %v4134_v14 = vrot.slane %v21416_v18, 2 }
 0x245   :  { %17403 = vmatprep.subr.bf16.mxu1 %v18954_v8  ;;  %v4852_v8 = vrot.slane %v21224_v41, 3 }
 0x246   :  { %17390 = vmatpush3.bf16.msra.mxu0 %v18955_v15  ;;  %v18968_v15 = vld [vmem:[%s25427_s3 + $0x5a0] sm:$0xff]   ;;  %v4166_v10 = vsel %vm2729_vm1, %v4134_v14, %v4150_v29  ;;  %v18979_v29 = vld [vmem:[%s25427_s3 + $0x588] sm:$0xff]   ;;  %v18985_v14 = vld [vmem:[%s25427_s3 + $0x658] sm:$0xff]  }
 0x247   :  { %4763 = vmatmul.mubr.bf16.vlgmr.msra.gmra.mxu1 %v4172_v2  ;;  %17391 = vmatprep.subr.bf16.mxu0 %v18957_v17  ;;  %v18969_v17 = vld [vmem:[%s25427_s3 + $0x5d8] sm:$0xff]  }
 0x248   :  { %17404 = vmatpush3.bf16.msra.mxu1 %v18956_v47  ;;  %4842 = vmatprep.mubr.bf16.mxu1 %v4177_v35  ;;  %v4884_v47 = vsel %vm2729_vm1, %v4852_v8, %v4868_v6  ;;  %v18973_v35 = vld [vmem:[%s25427_s3 + $0x5d0] sm:$0xff]   ;;  %v18984_v6 = vld [vmem:[%s25427_s3 + $0x620] sm:$0xff]  }
 0x249   :  { %17405 = vmatprep.subr.bf16.mxu1 %v18958_v43  ;;  %v18974_v43 = vld [vmem:[%s25427_s3 + $0x670] sm:$0xff]   ;;  %v4892_v2 = vpack.c.bf16 %v4884_v47, %v4884_v47  ;;  %v18983_v8 = vld [vmem:[%s25427_s3 + $0x580] sm:$0xff]  }
 0x24a   :  { %17392 = vmatpush3.bf16.msra.mxu0 %v18959_v26  ;;  %v4174_v26 = vpack.c.bf16 %v4166_v10, %v4166_v10  ;;  %v18986_v10 = vld [vmem:[%s25427_s3 + $0x6f8] sm:$0xff]   ;;  %v18989_v47 = vld [vmem:[%s25427_s3 + $0x650] sm:$0xff]  }
 0x24b   :  { %17393 = vmatprep.subr.bf16.mxu0 %v18961_v53  ;;  %v18978_v53 = vld [vmem:[%s25427_s3 + $0x668] sm:$0xff]  }
 0x24c   :  { %17406 = vmatpush3.bf16.msra.mxu1 %v18960_v49  ;;  %v18976_v49 = vld [vmem:[%s25427_s3 + $0x630] sm:$0xff]  }
 0x24d   :  { %17407 = vmatprep.subr.bf16.mxu1 %v18962_v34  ;;  %v18975_v34 = vld [vmem:[%s25427_s3 + $0x590] sm:$0xff]  }
 0x24e   :  { %17394 = vmatpush3.bf16.msra.mxu0 %v18963_v30  ;;  %v18977_v30 = vld [vmem:[%s25427_s3 + $0x5c8] sm:$0xff]  }
 0x24f   :  { %17395 = vmatprep.subr.bf16.mxu0 %v18965_v48  ;;  %v18980_v48 = vld [vmem:[%s25427_s3 + $0x628] sm:$0xff]  }
 0x250   :  { %17408 = vmatpush3.bf16.msra.mxu1 %v18964_v13  ;;  %v18982_v13 = vld [vmem:[%s25427_s3 + $0x660] sm:$0xff]  }
 0x251   :  { %17409 = vmatprep.subr.bf16.mxu1 %v18966_v55  ;;  %v18981_v55 = vld [vmem:[%s25427_s3 + $0x5c0] sm:$0xff]  }
 0x252   :  { %17396 = vmatpush3.bf16.msra.mxu0 %v18967_v4  ;;  %v4152_v4 = vrot.slane %v21558_v20, 1 }
 0x253   :  { %17425 = vmatprep.subr.bf16.mxu0 %v18970_v50  ;;  %v4870_v50 = vrot.slane %v21338_v16, 2 }
 0x254   :  { %17410 = vmatpush3.bf16.msra.mxu1 %v18968_v15  ;;  %v4136_v15 = vrot.slane %v21550_v27, 2 }
 0x255   :  { %4803 = vmatmul.mubr.bf16.vlgmr.msra.gmra.mxu0 %v4174_v26  ;;  %17411 = vmatprep.subr.bf16.mxu1 %v18969_v17  ;;  %v18987_v17 = vld [vmem:[%s25427_s3 + $0x618] sm:$0xff]  }
 0x256   :  { %17426 = vmatpush3.bf16.msra.mxu0 %v18972_v24  ;;  %5443 = vmatprep.mubr.bf16.mxu0 %v4892_v2  ;;  %v4854_v24 = vrot.slane %v21292_v31, 3  ;;  %v18990_v2 = vld [vmem:[%s25427_s3 + $0x6f0] sm:$0xff]  }
 0x257   :  { %17427 = vmatprep.subr.bf16.mxu0 %v18974_v43  ;;  %v18988_v43 = vld [vmem:[%s25427_s3 + $0x6b8] sm:$0xff]  }
 0x258   :  { %17412 = vmatpush3.bf16.msra.mxu1 %v18971_v25  ;;  %v4168_v25 = vsel %vm2729_vm1, %v4136_v15, %v4152_v4  ;;  %v4886_v26 = vsel %vm2729_vm1, %v4854_v24, %v4870_v50  ;;  %v18998_v4 = vld [vmem:[%s25427_s3 + $0x6e0] sm:$0xff]   ;;  %v19002_v15 = vld [vmem:[%s25427_s3 + $0x778] sm:$0xff]  }
 0x259   :  { %17413 = vmatprep.subr.bf16.mxu1 %v18973_v35  ;;  %v18991_v35 = vld [vmem:[%s25427_s3 + $0x610] sm:$0xff]   ;;  %v18999_v50 = vld [vmem:[%s25427_s3 + $0x600] sm:$0xff]  }
 0x25a   :  { %17428 = vmatpush3.bf16.msra.mxu0 %v18976_v49  ;;  %v4176_v49 = vpack.c.bf16 %v4168_v25, %v4168_v25  ;;  %v19004_v25 = vld [vmem:[%s25427_s3 + $0x738] sm:$0xff]  }
 0x25b   :  { %17429 = vmatprep.subr.bf16.mxu0 %v18978_v53  ;;  %v4894_v53 = vpack.c.bf16 %v4886_v26, %v4886_v26  ;;  %v19003_v26 = vld [vmem:[%s25427_s3 + $0x698] sm:$0xff]  }
 0x25c   :  { %17414 = vmatpush3.bf16.msra.mxu1 %v18975_v34  ;;  %v18992_v34 = vld [vmem:[%s25427_s3 + $0x6b0] sm:$0xff]  }
 0x25d   :  { %17415 = vmatprep.subr.bf16.mxu1 %v18977_v30  ;;  %v18993_v30 = vld [vmem:[%s25427_s3 + $0x648] sm:$0xff]  }
 0x25e   :  { %17430 = vmatpush3.bf16.msra.mxu0 %v18980_v48  ;;  %v18994_v48 = vld [vmem:[%s25427_s3 + $0x6e8] sm:$0xff]  }
 0x25f   :  { %17431 = vmatprep.subr.bf16.mxu0 %v18982_v13  ;;  %v18995_v13 = vld [vmem:[%s25427_s3 + $0x608] sm:$0xff]  }
 0x260   :  { %17416 = vmatpush3.bf16.msra.mxu1 %v18979_v29  ;;  %v18997_v29 = vld [vmem:[%s25427_s3 + $0x640] sm:$0xff]  }
 0x261   :  { %17417 = vmatprep.subr.bf16.mxu1 %v18981_v55  ;;  %v18996_v55 = vld [vmem:[%s25427_s3 + $0x6a8] sm:$0xff]  }
 0x262   :  { %17432 = vmatpush3.bf16.msra.mxu0 %v18984_v6  ;;  %v4867_v6 = vrot.slane %v21226_v39, 2 }
 0x263   :  { %17433 = vmatprep.subr.bf16.mxu0 %v18985_v14  ;;  %v4872_v14 = vrot.slane %v21345_v44, 2 }
 0x264   :  { %17418 = vmatpush3.bf16.msra.mxu1 %v18983_v8  ;;  %v4851_v8 = vrot.slane %v21218_v21, 3 }
 0x265   :  { %17447 = vmatprep.subr.bf16.mxu1 %v18986_v10  ;;  %v4856_v10 = vrot.slane %v21294_v54, 3 }
 0x266   :  { %17434 = vmatpush3.bf16.msra.mxu0 %v18987_v17  ;;  %v19000_v17 = vld [vmem:[%s25427_s3 + $0x6a0] sm:$0xff]   ;;  %v4883_v24 = vsel %vm2729_vm1, %v4851_v8, %v4867_v6  ;;  %v19007_v6 = vld [vmem:[%s25427_s3 + $0x690] sm:$0xff]  }
 0x267   :  { %4843 = vmatmul.mubr.bf16.vlgmr.msra.gmra.mxu1 %v4176_v49  ;;  %17435 = vmatprep.subr.bf16.mxu0 %v18989_v47  ;;  %v19001_v47 = vld [vmem:[%s25427_s3 + $0x6d8] sm:$0xff]  }
 0x268   :  { %17448 = vmatpush3.bf16.msra.mxu1 %v18988_v43  ;;  %5483 = vmatprep.mubr.bf16.mxu1 %v4894_v53  ;;  %v4888_v43 = vsel %vm2729_vm1, %v4856_v10, %v4872_v14  ;;  %v19012_v14 = vld [vmem:[%s25427_s3 + $0x728] sm:$0xff]   ;;  %v19013_v10 = vld [vmem:[%s25427_s3 + $0x6c0] sm:$0xff]  }
 0x269   :  { %17449 = vmatprep.subr.bf16.mxu1 %v18990_v2  ;;  %v19006_v2 = vld [vmem:[%s25427_s3 + $0x770] sm:$0xff]   ;;  %v4896_v53 = vpack.c.bf16 %v4888_v43, %v4888_v43  ;;  %v19015_v43 = vld [vmem:[%s25427_s3 + $0x680] sm:$0xff]  }
 0x26a   :  { %17436 = vmatpush3.bf16.msra.mxu0 %v18991_v35  ;;  %v4891_v35 = vpack.c.bf16 %v4883_v24, %v4883_v24  ;;  %v4869_v24 = vrot.slane %v21358_v0, 2 }
 0x26b   :  { %17437 = vmatprep.subr.bf16.mxu0 %v18993_v30  ;;  %v19008_v30 = vld [vmem:[%s25427_s3 + $0x730] sm:$0xff]  }
 0x26c   :  { %17450 = vmatpush3.bf16.msra.mxu1 %v18992_v34  ;;  %v19005_v34 = vld [vmem:[%s25427_s3 + $0x6d0] sm:$0xff]  }
 0x26d   :  { %17451 = vmatprep.subr.bf16.mxu1 %v18994_v48  ;;  %v19010_v48 = vld [vmem:[%s25427_s3 + $0x768] sm:$0xff]  }
 0x26e   :  { %17438 = vmatpush3.bf16.msra.mxu0 %v18995_v13 }
 0x26f   :  { %17439 = vmatprep.subr.bf16.mxu0 %v18997_v29 }
 0x270   :  { %17452 = vmatpush3.bf16.msra.mxu1 %v18996_v55 }
 0x271   :  { %17453 = vmatprep.subr.bf16.mxu1 %v18998_v4  ;;  %v19009_v4 = vld [vmem:[%s25427_s3 + $0x6c8] sm:$0xff]  }
 0x272   :  { %17440 = vmatpush3.bf16.msra.mxu0 %v18999_v50  ;;  %v19014_v50 = vld [vmem:[%s25427_s3 + $0x760] sm:$0xff]  }
 0x273   :  { %17469 = vmatprep.subr.bf16.mxu0 %v19002_v15  ;;  %v19011_v15 = vld [vmem:[%s25427_s3 + $0x688] sm:$0xff]  }
 0x274   :  { %17454 = vmatpush3.bf16.msra.mxu1 %v19000_v17  ;;  %v17177_v49 = vpop.f32.mrf.mxu0  ;;  %v19016_v17 = vld [vmem:[%s25427_s3 + $0x720] sm:$0xff]  }
 0x275   :  { %5444 = vmatmul.mubr.bf16.vlgmr.msra.gmra.mxu0 %v4891_v35  ;;  %17455 = vmatprep.subr.bf16.mxu1 %v19001_v47  ;;  %v19017_v47 = vld [vmem:[%s25427_s3 + $0x758] sm:$0xff]  }
 0x276   :  { %17470 = vmatpush3.bf16.msra.mxu0 %v19004_v25  ;;  %5523 = vmatprep.mubr.bf16.mxu0 %v4896_v53  ;;  %v17178_v13 = vpop.f32.mrf.mxu0  ;;  %v4874_v25 = vrot.slane %v21476_v57, 2  ;;  %v19019_v35 = vld [vmem:[%s25427_s3 + $0x718] sm:$0xff]   ;;  %v19021_v53 = vld [vmem:[%s25427_s3 + $0x750] sm:$0xff]  }
 0x277   :  { %v17179_v29 = vadd.f32 %v17178_v13, %v17177_v49  ;;  %17471 = vmatprep.subr.bf16.mxu0 %v19006_v2  ;;  %v19018_v2 = vld [vmem:[%s25427_s3 + $0x7f8] sm:$0xff]   ;;  %v4858_v49 = vrot.slane %v21418_v38, 3  ;;  %v19022_v13 = vld [vmem:[%s25427_s3 + $0x7f0] sm:$0xff]  }
 0x278   :  { %17456 = vmatpush3.bf16.msra.mxu1 %v19003_v26  ;;  %v17180_v55 = vpop.f32.mrf.mxu0  ;;  %v4853_v26 = vrot.slane %v21282_v56, 3 }
 0x279   :  { %17457 = vmatprep.subr.bf16.mxu1 %v19005_v34  ;;  %v19023_v55 = vld [vmem:[%s25427_s3 + $0x710] sm:$0xff]  }
 0x27a   :  { %17472 = vmatpush3.bf16.msra.mxu0 %v19008_v30  ;;  %v17181_v8 = vpop.f32.mrf.mxu0  ;;  %v4885_v34 = vsel %vm2729_vm1, %v4853_v26, %v4869_v24  ;;  %v19020_v30 = vld [vmem:[%s25427_s3 + $0x7b8] sm:$0xff]   ;;  %v19029_v24 = vld [vmem:[%s25427_s3 + $0x740] sm:$0xff]   ;;  %v19028_v26 = vld [vmem:[%s25427_s3 + $0x7a8] sm:$0xff]  }
 0x27b   :  { %17473 = vmatprep.subr.bf16.mxu0 %v19010_v48  ;;  %v4890_v48 = vsel %vm2729_vm1, %v4858_v49, %v4874_v25  ;;  %v19025_v8 = vld [vmem:[%s25427_s3 + $0x748] sm:$0xff]   ;;  %v19030_v49 = vld [vmem:[%s25427_s3 + $0x7e0] sm:$0xff]  }
 0x27c   :  { %17458 = vmatpush3.bf16.msra.mxu1 %v19007_v6  ;;  %v4893_v6 = vpack.c.bf16 %v4885_v34, %v4885_v34  ;;  %v4855_v34 = vrot.slane %v21416_v18, 3 }
 0x27d   :  { %17459 = vmatprep.subr.bf16.mxu1 %v19009_v4  ;;  %v4898_v4 = vpack.c.bf16 %v4890_v48, %v4890_v48  ;;  %v5573_v48 = vrot.slane %v21224_v41, 4 }
 0x27e   :  { %17474 = vmatpush3.bf16.msra.mxu0 %v19012_v14 }
 0x27f   :  { %17475 = vmatprep.subr.bf16.mxu0 %v19014_v50  ;;  %v19024_v50 = vld [vmem:[%s25427_s3 + $0x7b0] sm:$0xff]  }
 0x280   :  { %17460 = vmatpush3.bf16.msra.mxu1 %v19011_v15  ;;  %v19026_v15 = vld [vmem:[%s25427_s3 + $0x7e8] sm:$0xff]  }
 0x281   :  { %17461 = vmatprep.subr.bf16.mxu1 %v19013_v10  ;;  %v19027_v10 = vld [vmem:[%s25427_s3 + $0x708] sm:$0xff]  }
 0x282   :  { %17476 = vmatpush3.bf16.msra.mxu0 %v19016_v17 }
 0x283   :  { %17477 = vmatprep.subr.bf16.mxu0 %v19017_v47 }
 0x284   :  { %17462 = vmatpush3.bf16.msra.mxu1 %v19015_v43 }
 0x285   :  { %17491 = vmatprep.subr.bf16.mxu1 %v19018_v2  ;;  %v4871_v2 = vrot.slane %v21464_v7, 2 }
 0x286   :  { %17478 = vmatpush3.bf16.msra.mxu0 %v19019_v35 }
 0x287   :  { %5484 = vmatmul.mubr.bf16.vlgmr.msra.gmra.mxu1 %v4893_v6  ;;  %v17199_v14 = vpop.f32.mrf.mxu1  ;;  %17479 = vmatprep.subr.bf16.mxu0 %v19021_v53  ;;  %v5589_v53 = vrot.slane %v21238_v19, 3  ;;  %v19033_v6 = vld [vmem:[%s25427_s3 + $0x7d8] sm:$0xff]  }
 0x288   :  { %17492 = vmatpush3.bf16.msra.mxu1 %v19020_v30  ;;  %5563 = vmatprep.mubr.bf16.mxu1 %v4898_v4  ;;  %v19034_v30 = vld [vmem:[%s25427_s3 + $0x878] sm:$0xff]  }
 0x289   :  { %v17200_v17 = vpop.f32.mrf.mxu1  ;;  %17493 = vmatprep.subr.bf16.mxu1 %v19022_v13  ;;  %v19032_v13 = vld [vmem:[%s25427_s3 + $0x7a0] sm:$0xff]   ;;  %v19036_v4 = vld [vmem:[%s25427_s3 + $0x838] sm:$0xff]  }
 0x28a   :  { %v17201_v47 = vadd.f32 %v17200_v17, %v17199_v14  ;;  %17480 = vmatpush3.bf16.msra.mxu0 %v19023_v55  ;;  %v4887_v55 = vsel %vm2729_vm1, %v4855_v34, %v4871_v2  ;;  %v5605_v14 = vsel %vm2729_vm1, %v5573_v48, %v5589_v53  ;;  %v19044_v34 = vld [vmem:[%s25427_s3 + $0x828] sm:$0xff]  }
 0x28b   :  { %v17202_v25 = vpop.f32.mrf.mxu1  ;;  %17481 = vmatprep.subr.bf16.mxu0 %v19025_v8  ;;  %v19038_v8 = vld [vmem:[%s25427_s3 + $0x870] sm:$0xff]  }
 0x28c   :  { %v3501_v43 = vadd.f32 %v17201_v47, %v17179_v29  ;;  %17494 = vmatpush3.bf16.msra.mxu1 %v19024_v50  ;;  %v19031_v29 = vld [vmem:[%s25427_s3 + $0x700] sm:$0xff]   ;;  %v19035_v50 = vld [vmem:[%s25427_s3 + $0x798] sm:$0xff]   ;;  %v19040_v47 = vld [vmem:[%s25427_s3 + $0x830] sm:$0xff]  }
 0x28d   :  { %v17203_v35 = vpop.f32.mrf.mxu1  ;;  %17495 = vmatprep.subr.bf16.mxu1 %v19026_v15  ;;  %v4895_v15 = vpack.c.bf16 %v4887_v55, %v4887_v55  ;;  %v19042_v25 = vld [vmem:[%s25427_s3 + $0x868] sm:$0xff]   ;;  %v19048_v55 = vld [vmem:[%s25427_s3 + $0x820] sm:$0xff]  }
 0x28e   :  { %17482 = vmatpush3.bf16.msra.mxu0 %v19027_v10  ;;  %v5613_v10 = vpack.c.bf16 %v5605_v14, %v5605_v14  ;;  %v5591_v14 = vrot.slane %v21338_v16, 3 }
 0x28f   :  { %17483 = vmatprep.subr.bf16.mxu0 %v19029_v24  ;;  %v19037_v24 = vld [vmem:[%s25427_s3 + $0x7d0] sm:$0xff]  }
 0x290   :  { %17496 = vmatpush3.bf16.msra.mxu1 %v19028_v26  ;;  %v19039_v26 = vld [vmem:[%s25427_s3 + $0x790] sm:$0xff]  }
 0x291   :  { %17497 = vmatprep.subr.bf16.mxu1 %v19030_v49  ;;  %v19041_v49 = vld [vmem:[%s25427_s3 + $0x7c8] sm:$0xff]  }
 0x292   :  { %17484 = vmatpush3.bf16.msra.mxu0 %v19031_v29 }
 0x293   :  { %17513 = vmatprep.subr.bf16.mxu0 %v19034_v30  ;;  %v19046_v30 = vld [vmem:[%s25427_s3 + $0x860] sm:$0xff]  }
 0x294   :  { %17498 = vmatpush3.bf16.msra.mxu1 %v19032_v13  ;;  %v19043_v13 = vld [vmem:[%s25427_s3 + $0x788] sm:$0xff]  }
 0x295   :  { %v17221_v17 = vpop.f32.mrf.mxu0  ;;  %5524 = vmatmul.mubr.bf16.vlgmr.msra.gmra.mxu0 %v4895_v15  ;;  %17499 = vmatprep.subr.bf16.mxu1 %v19033_v6  ;;  %v4873_v6 = vrot.slane %v21558_v20, 2  ;;  %v19050_v15 = vld [vmem:[%s25427_s3 + $0x8f8] sm:$0xff]  }
 0x296   :  { %17514 = vmatpush3.bf16.msra.mxu0 %v19036_v4  ;;  %6164 = vmatprep.mubr.bf16.mxu0 %v5613_v10  ;;  %v19049_v4 = vld [vmem:[%s25427_s3 + $0x858] sm:$0xff]  }
 0x297   :  { %v17222_v2 = vpop.f32.mrf.mxu0  ;;  %17515 = vmatprep.subr.bf16.mxu0 %v19038_v8  ;;  %v4857_v8 = vrot.slane %v21550_v27, 3  ;;  %v19051_v10 = vld [vmem:[%s25427_s3 + $0x818] sm:$0xff]  }
 0x298   :  { %17500 = vmatpush3.bf16.msra.mxu1 %v19035_v50  ;;  %v17223_v35 = vadd.f32 %v17222_v2, %v17221_v17  ;;  %v19047_v50 = vld [vmem:[%s25427_s3 + $0x780] sm:$0xff]   ;;  %v5575_v17 = vrot.slane %v21292_v31, 4  ;;  %v19054_v2 = vld [vmem:[%s25427_s3 + $0x8f0] sm:$0xff]  }
 0x299   :  { %v17224_v53 = vpop.f32.mrf.mxu0  ;;  %17501 = vmatprep.subr.bf16.mxu1 %v19037_v24  ;;  %v19053_v24 = vld [vmem:[%s25427_s3 + $0x850] sm:$0xff]  }
 0x29a   :  { %v3541_v29 = vadd.f32 %v17223_v35, %v3501_v43  ;;  %17516 = vmatpush3.bf16.msra.mxu0 %v19040_v47  ;;  %v19045_v43 = vld [vmem:[%s25427_s3 + $0x7c0] sm:$0xff]   ;;  %v4889_v47 = vsel %vm2729_vm1, %v4857_v8, %v4873_v6  ;;  %v19055_v35 = vld [vmem:[%s25427_s3 + $0x810] sm:$0xff]   ;;  %v5593_v6 = vrot.slane %v21345_v44, 3  ;;  %v19060_v8 = vld [vmem:[%s25427_s3 + $0x8a8] sm:$0xff]  }
 0x29b   :  { %v17225_v48 = vpop.f32.mrf.mxu0  ;;  %17517 = vmatprep.subr.bf16.mxu0 %v19042_v25  ;;  %v19052_v25 = vld [vmem:[%s25427_s3 + $0x8b8] sm:$0xff]  }
 0x29c   :  { %17502 = vmatpush3.bf16.msra.mxu1 %v19039_v26  ;;  %v5607_v26 = vsel %vm2729_vm1, %v5575_v17, %v5591_v14  ;;  %v19057_v48 = vld [vmem:[%s25427_s3 + $0x848] sm:$0xff]   ;;  %v19061_v14 = vld [vmem:[%s25427_s3 + $0x840] sm:$0xff]  }
 0x29d   :  { %17503 = vmatprep.subr.bf16.mxu1 %v19041_v49  ;;  %v4897_v49 = vpack.c.bf16 %v4889_v47, %v4889_v47  ;;  %v5615_v53 = vpack.c.bf16 %v5607_v26, %v5607_v26  ;;  %v19063_v47 = vld [vmem:[%s25427_s3 + $0x800] sm:$0xff]   ;;  %v19066_v26 = vld [vmem:[%s25427_s3 + $0x978] sm:$0xff]  }
 0x29e   :  { %17518 = vmatpush3.bf16.msra.mxu0 %v19044_v34 }
 0x29f   :  { %17519 = vmatprep.subr.bf16.mxu0 %v19046_v30  ;;  %v19056_v30 = vld [vmem:[%s25427_s3 + $0x8b0] sm:$0xff]  }
 0x2a0   :  { %17504 = vmatpush3.bf16.msra.mxu1 %v19043_v13  ;;  %v19058_v13 = vld [vmem:[%s25427_s3 + $0x8e8] sm:$0xff]  }
 0x2a1   :  { %17505 = vmatprep.subr.bf16.mxu1 %v19045_v43  ;;  %v5588_v43 = vrot.slane %v21226_v39, 3 }
 0x2a2   :  { %17520 = vmatpush3.bf16.msra.mxu0 %v19048_v55  ;;  %v19059_v55 = vld [vmem:[%s25427_s3 + $0x808] sm:$0xff]  }
 0x2a3   :  { %17521 = vmatprep.subr.bf16.mxu0 %v19049_v4 }
 0x2a4   :  { %17506 = vmatpush3.bf16.msra.mxu1 %v19047_v50 }
 0x2a5   :  { %17535 = vmatprep.subr.bf16.mxu1 %v19050_v15 }
 0x2a6   :  { %17522 = vmatpush3.bf16.msra.mxu0 %v19051_v10  ;;  %v19062_v10 = vld [vmem:[%s25427_s3 + $0x8e0] sm:$0xff]  }
 0x2a7   :  { %v17243_v34 = vpop.f32.mrf.mxu1  ;;  %5564 = vmatmul.mubr.bf16.vlgmr.msra.gmra.mxu1 %v4897_v49  ;;  %17523 = vmatprep.subr.bf16.mxu0 %v19053_v24  ;;  %v19065_v49 = vld [vmem:[%s25427_s3 + $0x8d8] sm:$0xff]  }
 0x2a8   :  { %17536 = vmatpush3.bf16.msra.mxu1 %v19052_v25  ;;  %6204 = vmatprep.mubr.bf16.mxu1 %v5615_v53  ;;  %v5572_v25 = vrot.slane %v21218_v21, 4  ;;  %v19068_v53 = vld [vmem:[%s25427_s3 + $0x938] sm:$0xff]  }
 0x2a9   :  { %v17244_v4 = vpop.f32.mrf.mxu1  ;;  %17537 = vmatprep.subr.bf16.mxu1 %v19054_v2  ;;  %v5577_v2 = vrot.slane %v21294_v54, 4 }
 0x2aa   :  { %v17245_v50 = vadd.f32 %v17244_v4, %v17243_v34  ;;  %17524 = vmatpush3.bf16.msra.mxu0 %v19055_v35  ;;  %v5604_v35 = vsel %vm2729_vm1, %v5572_v25, %v5588_v43  ;;  %v19072_v4 = vld [vmem:[%s25427_s3 + $0x930] sm:$0xff]   ;;  %v19078_v25 = vld [vmem:[%s25427_s3 + $0x960] sm:$0xff]  }
 0x2ab   :  { %v17246_v15 = vpop.f32.mrf.mxu1  ;;  %17525 = vmatprep.subr.bf16.mxu0 %v19057_v48  ;;  %v5609_v34 = vsel %vm2729_vm1, %v5577_v2, %v5593_v6  ;;  %v19070_v48 = vld [vmem:[%s25427_s3 + $0x970] sm:$0xff]  }
 0x2ac   :  { %v3581_v17 = vadd.f32 %v17245_v50, %v3541_v29  ;;  %17538 = vmatpush3.bf16.msra.mxu1 %v19056_v30  ;;  %v19064_v29 = vld [vmem:[%s25427_s3 + $0x8a0] sm:$0xff]   ;;  %v19067_v30 = vld [vmem:[%s25427_s3 + $0x898] sm:$0xff]   ;;  %v5617_v43 = vpack.c.bf16 %v5609_v34, %v5609_v34  ;;  %v19069_v6 = vld [vmem:[%s25427_s3 + $0x8d0] sm:$0xff]   ;;  %v5595_v34 = vrot.slane %v21476_v57, 3 }
 0x2ad   :  { %v17247_v24 = vpop.f32.mrf.mxu1  ;;  %17539 = vmatprep.subr.bf16.mxu1 %v19058_v13  ;;  %v5612_v13 = vpack.c.bf16 %v5604_v35, %v5604_v35  ;;  %v19071_v15 = vld [vmem:[%s25427_s3 + $0x890] sm:$0xff]   ;;  %v19077_v35 = vld [vmem:[%s25427_s3 + $0x8c0] sm:$0xff]  }
 0x2ae   :  { %17526 = vmatpush3.bf16.msra.mxu0 %v19059_v55  ;;  %v19073_v24 = vld [vmem:[%s25427_s3 + $0x8c8] sm:$0xff]  }
 0x2af   :  { %17527 = vmatprep.subr.bf16.mxu0 %v19061_v14  ;;  %v19074_v14 = vld [vmem:[%s25427_s3 + $0x968] sm:$0xff]  }
 0x2b0   :  { %17540 = vmatpush3.bf16.msra.mxu1 %v19060_v8 }
 0x2b1   :  { %17541 = vmatprep.subr.bf16.mxu1 %v19062_v10 }
 0x2b2   :  { %17528 = vmatpush3.bf16.msra.mxu0 %v19063_v47  ;;  %v19076_v47 = vld [vmem:[%s25427_s3 + $0x928] sm:$0xff]  }
 0x2b3   :  { %17557 = vmatprep.subr.bf16.mxu0 %v19066_v26 }
 0x2b4   :  { %17542 = vmatpush3.bf16.msra.mxu1 %v19064_v29  ;;  %v19075_v29 = vld [vmem:[%s25427_s3 + $0x888] sm:$0xff]  }
 0x2b5   :  { %v17265_v55 = vpop.f32.mrf.mxu0  ;;  %6165 = vmatmul.mubr.bf16.vlgmr.msra.gmra.mxu0 %v5612_v13  ;;  %17543 = vmatprep.subr.bf16.mxu1 %v19065_v49  ;;  %v19080_v49 = vld [vmem:[%s25427_s3 + $0x920] sm:$0xff]   ;;  %v19082_v13 = vld [vmem:[%s25427_s3 + $0x9f8] sm:$0xff]  }
 0x2b6   :  { %17558 = vmatpush3.bf16.msra.mxu0 %v19068_v53  ;;  %6244 = vmatprep.mubr.bf16.mxu0 %v5617_v43  ;;  %v5590_v53 = vrot.slane %v21358_v0, 3  ;;  %v19083_v43 = vld [vmem:[%s25427_s3 + $0x918] sm:$0xff]  }
 0x2b7   :  { %v17266_v50 = vpop.f32.mrf.mxu0  ;;  %17559 = vmatprep.subr.bf16.mxu0 %v19070_v48  ;;  %v5574_v48 = vrot.slane %v21282_v56, 4 }
 0x2b8   :  { %17544 = vmatpush3.bf16.msra.mxu1 %v19067_v30  ;;  %v17267_v8 = vadd.f32 %v17266_v50, %v17265_v55  ;;  %v19079_v30 = vld [vmem:[%s25427_s3 + $0x880] sm:$0xff]   ;;  %v5579_v55 = vrot.slane %v21418_v38, 4 }
 0x2b9   :  { %v17268_v10 = vpop.f32.mrf.mxu0  ;;  %17545 = vmatprep.subr.bf16.mxu1 %v19069_v6  ;;  %v19085_v6 = vld [vmem:[%s25427_s3 + $0x950] sm:$0xff]  }
 0x2ba   :  { %v4005_v26 = vadd.f32 %v17267_v8, %v3581_v17  ;;  %17560 = vmatpush3.bf16.msra.mxu0 %v19072_v4  ;;  %v19081_v17 = vld [vmem:[%s25427_s3 + $0x958] sm:$0xff]   ;;  %v5606_v4 = vsel %vm2729_vm1, %v5574_v48, %v5590_v53  ;;  %v5611_v50 = vsel %vm2729_vm1, %v5579_v55, %v5595_v34  ;;  %v19086_v8 = vld [vmem:[%s25427_s3 + $0x9f0] sm:$0xff]   ;;  %v19093_v53 = vld [vmem:[%s25427_s3 + $0x940] sm:$0xff]  }
 0x2bb   :  { %v17269_v2 = vpop.f32.mrf.mxu0  ;;  %17561 = vmatprep.subr.bf16.mxu0 %v19074_v14  ;;  %v19084_v14 = vld [vmem:[%s25427_s3 + $0x9b8] sm:$0xff]   ;;  %v5614_v10 = vpack.c.bf16 %v5606_v4, %v5606_v4  ;;  %v19092_v48 = vld [vmem:[%s25427_s3 + $0x9a8] sm:$0xff]   ;;  %v19094_v55 = vld [vmem:[%s25427_s3 + $0x9e0] sm:$0xff]   ;;  %v5576_v4 = vrot.slane %v21416_v18, 4 }
 0x2bc   :  { %17546 = vmatpush3.bf16.msra.mxu1 %v19071_v15  ;;  %v19087_v15 = vld [vmem:[%s25427_s3 + $0x910] sm:$0xff]   ;;  %v19089_v2 = vld [vmem:[%s25427_s3 + $0x948] sm:$0xff]  }
 0x2bd   :  { %17547 = vmatprep.subr.bf16.mxu1 %v19073_v24  ;;  %v5619_v24 = vpack.c.bf16 %v5611_v50, %v5611_v50  ;;  %v6294_v50 = vrot.slane %v21224_v41, 5 }
 0x2be   :  { %17562 = vmatpush3.bf16.msra.mxu0 %v19076_v47 }
 0x2bf   :  { %17563 = vmatprep.subr.bf16.mxu0 %v19078_v25  ;;  %v19088_v25 = vld [vmem:[%s25427_s3 + $0x9b0] sm:$0xff]  }
 0x2c0   :  { %17548 = vmatpush3.bf16.msra.mxu1 %v19075_v29  ;;  %v19090_v29 = vld [vmem:[%s25427_s3 + $0x9e8] sm:$0xff]  }
 0x2c1   :  { %17549 = vmatprep.subr.bf16.mxu1 %v19077_v35  ;;  %v19091_v35 = vld [vmem:[%s25427_s3 + $0x908] sm:$0xff]  }
 0x2c2   :  { %17564 = vmatpush3.bf16.msra.mxu0 %v19080_v49 }
 0x2c3   :  { %17565 = vmatprep.subr.bf16.mxu0 %v19081_v17 }
 0x2c4   :  { %17550 = vmatpush3.bf16.msra.mxu1 %v19079_v30 }
 0x2c5   :  { %17579 = vmatprep.subr.bf16.mxu1 %v19082_v13  ;;  %v5592_v13 = vrot.slane %v21464_v7, 3 }
 0x2c6   :  { %17566 = vmatpush3.bf16.msra.mxu0 %v19083_v43 }
 0x2c7   :  { %v17287_v47 = vpop.f32.mrf.mxu1  ;;  %6205 = vmatmul.mubr.bf16.vlgmr.msra.gmra.mxu1 %v5614_v10  ;;  %17567 = vmatprep.subr.bf16.mxu0 %v19085_v6  ;;  %v6310_v6 = vrot.slane %v21238_v19, 4  ;;  %v19097_v10 = vld [vmem:[%s25427_s3 + $0x9d8] sm:$0xff]  }
 0x2c8   :  { %17580 = vmatpush3.bf16.msra.mxu1 %v19084_v14  ;;  %6284 = vmatprep.mubr.bf16.mxu1 %v5619_v24  ;;  %v19098_v14 = vld [vmem:[%s25427_s3 + $0xa78] sm:$0xff]  }
 0x2c9   :  { %v17288_v49 = vpop.f32.mrf.mxu1  ;;  %17581 = vmatprep.subr.bf16.mxu1 %v19086_v8  ;;  %v19096_v8 = vld [vmem:[%s25427_s3 + $0x9a0] sm:$0xff]   ;;  %v19100_v24 = vld [vmem:[%s25427_s3 + $0xa38] sm:$0xff]  }
 0x2ca   :  { %v17289_v17 = vadd.f32 %v17288_v49, %v17287_v47  ;;  %17568 = vmatpush3.bf16.msra.mxu0 %v19087_v15  ;;  %v5608_v15 = vsel %vm2729_vm1, %v5576_v4, %v5592_v13  ;;  %v6326_v47 = vsel %vm2729_vm1, %v6294_v50, %v6310_v6  ;;  %v19108_v4 = vld [vmem:[%s25427_s3 + $0xa28] sm:$0xff]  }
 0x2cb   :  { %v17290_v34 = vpop.f32.mrf.mxu1  ;;  %17569 = vmatprep.subr.bf16.mxu0 %v19089_v2  ;;  %v19102_v2 = vld [vmem:[%s25427_s3 + $0xa70] sm:$0xff]  }
 0x2cc   :  { %v4045_v30 = vadd.f32 %v17289_v17, %v4005_v26  ;;  %17582 = vmatpush3.bf16.msra.mxu1 %v19088_v25  ;;  %v19095_v26 = vld [vmem:[%s25427_s3 + $0x900] sm:$0xff]   ;;  %v19099_v25 = vld [vmem:[%s25427_s3 + $0x998] sm:$0xff]   ;;  %v19104_v17 = vld [vmem:[%s25427_s3 + $0xa30] sm:$0xff]  }
 0x2cd   :  { %v17291_v43 = vpop.f32.mrf.mxu1  ;;  %17583 = vmatprep.subr.bf16.mxu1 %v19090_v29  ;;  %v5616_v29 = vpack.c.bf16 %v5608_v15, %v5608_v15  ;;  %v19106_v34 = vld [vmem:[%s25427_s3 + $0xa68] sm:$0xff]   ;;  %v19112_v15 = vld [vmem:[%s25427_s3 + $0xa20] sm:$0xff]  }
 0x2ce   :  { %17570 = vmatpush3.bf16.msra.mxu0 %v19091_v35  ;;  %v6334_v35 = vpack.c.bf16 %v6326_v47, %v6326_v47  ;;  %v6312_v47 = vrot.slane %v21338_v16, 4 }
 0x2cf   :  { %17571 = vmatprep.subr.bf16.mxu0 %v19093_v53  ;;  %v19101_v53 = vld [vmem:[%s25427_s3 + $0x9d0] sm:$0xff]  }
 0x2d0   :  { %17584 = vmatpush3.bf16.msra.mxu1 %v19092_v48  ;;  %v19103_v48 = vld [vmem:[%s25427_s3 + $0x990] sm:$0xff]  }
 0x2d1   :  { %17585 = vmatprep.subr.bf16.mxu1 %v19094_v55  ;;  %v19105_v55 = vld [vmem:[%s25427_s3 + $0x9c8] sm:$0xff]  }
 0x2d2   :  { %17572 = vmatpush3.bf16.msra.mxu0 %v19095_v26 }
 0x2d3   :  { %17601 = vmatprep.subr.bf16.mxu0 %v19098_v14  ;;  %v19110_v14 = vld [vmem:[%s25427_s3 + $0xa60] sm:$0xff]  }
 0x2d4   :  { %17586 = vmatpush3.bf16.msra.mxu1 %v19096_v8  ;;  %v19107_v8 = vld [vmem:[%s25427_s3 + $0x988] sm:$0xff]  }
 0x2d5   :  { %v17309_v49 = vpop.f32.mrf.mxu0  ;;  %6245 = vmatmul.mubr.bf16.vlgmr.msra.gmra.mxu0 %v5616_v29  ;;  %17587 = vmatprep.subr.bf16.mxu1 %v19097_v10  ;;  %v5594_v10 = vrot.slane %v21558_v20, 3  ;;  %v19114_v29 = vld [vmem:[%s25427_s3 + $0xaf8] sm:$0xff]  }
 0x2d6   :  { %17602 = vmatpush3.bf16.msra.mxu0 %v19100_v24  ;;  %6885 = vmatprep.mubr.bf16.mxu0 %v6334_v35  ;;  %v19113_v24 = vld [vmem:[%s25427_s3 + $0xa58] sm:$0xff]  }
 0x2d7   :  { %v17310_v13 = vpop.f32.mrf.mxu0  ;;  %17603 = vmatprep.subr.bf16.mxu0 %v19102_v2  ;;  %v5578_v2 = vrot.slane %v21550_v27, 4  ;;  %v19115_v35 = vld [vmem:[%s25427_s3 + $0xa18] sm:$0xff]  }
 0x2d8   :  { %17588 = vmatpush3.bf16.msra.mxu1 %v19099_v25  ;;  %v17311_v43 = vadd.f32 %v17310_v13, %v17309_v49  ;;  %v19111_v25 = vld [vmem:[%s25427_s3 + $0x980] sm:$0xff]   ;;  %v6296_v49 = vrot.slane %v21292_v31, 5  ;;  %v19118_v13 = vld [vmem:[%s25427_s3 + $0xaf0] sm:$0xff]  }
 0x2d9   :  { %v17312_v6 = vpop.f32.mrf.mxu0  ;;  %17589 = vmatprep.subr.bf16.mxu1 %v19101_v53  ;;  %v19117_v53 = vld [vmem:[%s25427_s3 + $0xa50] sm:$0xff]  }
 0x2da   :  { %v4085_v26 = vadd.f32 %v17311_v43, %v4045_v30  ;;  %17604 = vmatpush3.bf16.msra.mxu0 %v19104_v17  ;;  %v19109_v30 = vld [vmem:[%s25427_s3 + $0x9c0] sm:$0xff]   ;;  %v5610_v17 = vsel %vm2729_vm1, %v5578_v2, %v5594_v10  ;;  %v19119_v43 = vld [vmem:[%s25427_s3 + $0xa10] sm:$0xff]   ;;  %v6314_v10 = vrot.slane %v21345_v44, 4  ;;  %v19124_v2 = vld [vmem:[%s25427_s3 + $0xaa8] sm:$0xff]  }
 0x2db   :  { %v17313_v50 = vpop.f32.mrf.mxu0  ;;  %17605 = vmatprep.subr.bf16.mxu0 %v19106_v34  ;;  %v19116_v34 = vld [vmem:[%s25427_s3 + $0xab8] sm:$0xff]  }
 0x2dc   :  { %17590 = vmatpush3.bf16.msra.mxu1 %v19103_v48  ;;  %v6328_v48 = vsel %vm2729_vm1, %v6296_v49, %v6312_v47  ;;  %v19121_v50 = vld [vmem:[%s25427_s3 + $0xa48] sm:$0xff]   ;;  %v19125_v47 = vld [vmem:[%s25427_s3 + $0xa40] sm:$0xff]  }
 0x2dd   :  { %17591 = vmatprep.subr.bf16.mxu1 %v19105_v55  ;;  %v5618_v55 = vpack.c.bf16 %v5610_v17, %v5610_v17  ;;  %v6336_v6 = vpack.c.bf16 %v6328_v48, %v6328_v48  ;;  %v19127_v17 = vld [vmem:[%s25427_s3 + $0xa00] sm:$0xff]   ;;  %v19130_v48 = vld [vmem:[%s25427_s3 + $0xb78] sm:$0xff]  }
 0x2de   :  { %17606 = vmatpush3.bf16.msra.mxu0 %v19108_v4 }
 0x2df   :  { %17607 = vmatprep.subr.bf16.mxu0 %v19110_v14  ;;  %v19120_v14 = vld [vmem:[%s25427_s3 + $0xab0] sm:$0xff]  }
 0x2e0   :  { %17592 = vmatpush3.bf16.msra.mxu1 %v19107_v8  ;;  %v19122_v8 = vld [vmem:[%s25427_s3 + $0xae8] sm:$0xff]  }
 0x2e1   :  { %17593 = vmatprep.subr.bf16.mxu1 %v19109_v30  ;;  %v6309_v30 = vrot.slane %v21226_v39, 4 }
 0x2e2   :  { %17608 = vmatpush3.bf16.msra.mxu0 %v19112_v15  ;;  %v19123_v15 = vld [vmem:[%s25427_s3 + $0xa08] sm:$0xff]  }
 0x2e3   :  { %17609 = vmatprep.subr.bf16.mxu0 %v19113_v24 }
 0x2e4   :  { %17594 = vmatpush3.bf16.msra.mxu1 %v19111_v25 }
 0x2e5   :  { %17623 = vmatprep.subr.bf16.mxu1 %v19114_v29 }
 0x2e6   :  { %17610 = vmatpush3.bf16.msra.mxu0 %v19115_v35  ;;  %v19126_v35 = vld [vmem:[%s25427_s3 + $0xae0] sm:$0xff]  }
 0x2e7   :  { %v17331_v4 = vpop.f32.mrf.mxu1  ;;  %6285 = vmatmul.mubr.bf16.vlgmr.msra.gmra.mxu1 %v5618_v55  ;;  %17611 = vmatprep.subr.bf16.mxu0 %v19117_v53  ;;  %v19129_v55 = vld [vmem:[%s25427_s3 + $0xad8] sm:$0xff]  }
 0x2e8   :  { %17624 = vmatpush3.bf16.msra.mxu1 %v19116_v34  ;;  %6925 = vmatprep.mubr.bf16.mxu1 %v6336_v6  ;;  %v6293_v34 = vrot.slane %v21218_v21, 5  ;;  %v19132_v6 = vld [vmem:[%s25427_s3 + $0xb38] sm:$0xff]  }
 0x2e9   :  { %v17332_v24 = vpop.f32.mrf.mxu1  ;;  %17625 = vmatprep.subr.bf16.mxu1 %v19118_v13  ;;  %v6298_v13 = vrot.slane %v21294_v54, 5 }
 0x2ea   :  { %v17333_v25 = vadd.f32 %v17332_v24, %v17331_v4  ;;  %17612 = vmatpush3.bf16.msra.mxu0 %v19119_v43  ;;  %v6325_v43 = vsel %vm2729_vm1, %v6293_v34, %v6309_v30  ;;  %v19136_v24 = vld [vmem:[%s25427_s3 + $0xb30] sm:$0xff]   ;;  %v19142_v34 = vld [vmem:[%s25427_s3 + $0xb60] sm:$0xff]  }
 0x2eb   :  { %v17334_v29 = vpop.f32.mrf.mxu1  ;;  %17613 = vmatprep.subr.bf16.mxu0 %v19121_v50  ;;  %v6330_v4 = vsel %vm2729_vm1, %v6298_v13, %v6314_v10  ;;  %v19134_v50 = vld [vmem:[%s25427_s3 + $0xb70] sm:$0xff]   ;;  %v19139_v13 = vld [vmem:[%s25427_s3 + $0xa88] sm:$0xff]  }
 0x2ec   :  { %v22516_v49 = vadd.f32 %v17333_v25, %v4085_v26  ;;  %17626 = vmatpush3.bf16.msra.mxu1 %v19120_v14  ;;  %v19128_v26 = vld [vmem:[%s25427_s3 + $0xaa0] sm:$0xff]   ;;  %v19131_v14 = vld [vmem:[%s25427_s3 + $0xa98] sm:$0xff]   ;;  %v6338_v30 = vpack.c.bf16 %v6330_v4, %v6330_v4  ;;  %v19133_v10 = vld [vmem:[%s25427_s3 + $0xad0] sm:$0xff]   ;;  %v6316_v4 = vrot.slane %v21476_v57, 4 }
 0x2ed   :  { %v17335_v53 = vpop.f32.mrf.mxu1  ;;  %17627 = vmatprep.subr.bf16.mxu1 %v19122_v8  ;;  %v6333_v8 = vpack.c.bf16 %v6325_v43, %v6325_v43  ;;  %v19135_v29 = vld [vmem:[%s25427_s3 + $0xa90] sm:$0xff]   ;;  %v19144_v43 = vld [vmem:[%s25427_s3 + $0xb20] sm:$0xff]  }
 0x2ee   :  { %17614 = vmatpush3.bf16.msra.mxu0 %v19123_v15  ;;  %v19137_v53 = vld [vmem:[%s25427_s3 + $0xac8] sm:$0xff]  }
 0x2ef   :  { %17615 = vmatprep.subr.bf16.mxu0 %v19125_v47  ;;  %v19138_v47 = vld [vmem:[%s25427_s3 + $0xb68] sm:$0xff]  }
 0x2f0   :  { %17628 = vmatpush3.bf16.msra.mxu1 %v19124_v2 }
 0x2f1   :  { %17629 = vmatprep.subr.bf16.mxu1 %v19126_v35 }
 0x2f2   :  { %17616 = vmatpush3.bf16.msra.mxu0 %v19127_v17  ;;  %v19140_v17 = vld [vmem:[%s25427_s3 + $0xb28] sm:$0xff]  }
 0x2f3   :  { %17645 = vmatprep.subr.bf16.mxu0 %v19130_v48 }
 0x2f4   :  { %17630 = vmatpush3.bf16.msra.mxu1 %v19128_v26  ;;  %v19141_v26 = vld [vmem:[%s25427_s3 + $0xac0] sm:$0xff]  }
 0x2f5   :  { %v17353_v15 = vpop.f32.mrf.mxu0  ;;  %6886 = vmatmul.mubr.bf16.vlgmr.msra.gmra.mxu0 %v6333_v8  ;;  %17631 = vmatprep.subr.bf16.mxu1 %v19129_v55  ;;  %v6311_v55 = vrot.slane %v21358_v0, 4  ;;  %v19146_v8 = vld [vmem:[%s25427_s3 + $0xbf8] sm:$0xff]  }
 0x2f6   :  { %17646 = vmatpush3.bf16.msra.mxu0 %v19132_v6  ;;  %6965 = vmatprep.mubr.bf16.mxu0 %v6338_v30  ;;  %v19145_v6 = vld [vmem:[%s25427_s3 + $0xb58] sm:$0xff]  }
 0x2f7   :  { %v17354_v25 = vpop.f32.mrf.mxu0  ;;  %17647 = vmatprep.subr.bf16.mxu0 %v19134_v50  ;;  %v6295_v50 = vrot.slane %v21282_v56, 5  ;;  %v19147_v30 = vld [vmem:[%s25427_s3 + $0xb18] sm:$0xff]  }
 0x2f8   :  { %17632 = vmatpush3.bf16.msra.mxu1 %v19131_v14  ;;  %v17355_v2 = vadd.f32 %v17354_v25, %v17353_v15  ;;  %v19143_v14 = vld [vmem:[%s25427_s3 + $0xa80] sm:$0xff]   ;;  %v6300_v15 = vrot.slane %v21418_v38, 5 }
 0x2f9   :  { %v17356_v35 = vpop.f32.mrf.mxu0  ;;  %17633 = vmatprep.subr.bf16.mxu1 %v19133_v10  ;;  %v19149_v10 = vld [vmem:[%s25427_s3 + $0xb50] sm:$0xff]  }
 0x2fa   :  { %17648 = vmatpush3.bf16.msra.mxu0 %v19136_v24  ;;  %v6327_v24 = vsel %vm2729_vm1, %v6295_v50, %v6311_v55  ;;  %v6332_v25 = vsel %vm2729_vm1, %v6300_v15, %v6316_v4  ;;  %v19151_v35 = vld [vmem:[%s25427_s3 + $0xb10] sm:$0xff]  }
 0x2fb   :  { %v17357_v48 = vpop.f32.mrf.mxu0  ;;  %17649 = vmatprep.subr.bf16.mxu0 %v19138_v47  ;;  %v19148_v47 = vld [vmem:[%s25427_s3 + $0xbb8] sm:$0xff]  }
 0x2fc   :  { %17634 = vmatpush3.bf16.msra.mxu1 %v19135_v29  ;;  %v19150_v29 = vld [vmem:[%s25427_s3 + $0xbf0] sm:$0xff]  }
 0x2fd   :  { %17635 = vmatprep.subr.bf16.mxu1 %v19137_v53  ;;  %v6335_v53 = vpack.c.bf16 %v6327_v24, %v6327_v24  ;;  %v19152_v48 = vld [vmem:[%s25427_s3 + $0xbb0] sm:$0xff]   ;;  %v7031_v24 = vrot.slane %v21238_v19, 5 }
 0x2fe   :  { %17650 = vmatpush3.bf16.msra.mxu0 %v19140_v17  ;;  %v6340_v17 = vpack.c.bf16 %v6332_v25, %v6332_v25  ;;  %v19162_v25 = vld [vmem:[%s25427_s3 + $0xc78] sm:$0xff]  }
 0x2ff   :  { %17651 = vmatprep.subr.bf16.mxu0 %v19142_v34 }
 0x300   :  { %17636 = vmatpush3.bf16.msra.mxu1 %v19139_v13  ;;  %v19153_v13 = vld [vmem:[%s25427_s3 + $0xb48] sm:$0xff]  }
 0x301   :  { %17637 = vmatprep.subr.bf16.mxu1 %v19141_v26  ;;  %v19154_v26 = vld [vmem:[%s25427_s3 + $0xbe8] sm:$0xff]  }
 0x302   :  { %17652 = vmatpush3.bf16.msra.mxu0 %v19144_v43  ;;  %v19155_v43 = vld [vmem:[%s25427_s3 + $0xb08] sm:$0xff]  }
 0x303   :  { %17653 = vmatprep.subr.bf16.mxu0 %v19145_v6  ;;  %v19157_v6 = vld [vmem:[%s25427_s3 + $0xb40] sm:$0xff]  }
 0x304   :  { %17638 = vmatpush3.bf16.msra.mxu1 %v19143_v14 }
 0x305   :  { %17667 = vmatprep.subr.bf16.mxu1 %v19146_v8  ;;  %v19156_v8 = vld [vmem:[%s25427_s3 + $0xba8] sm:$0xff]  }
 0x306   :  { %17654 = vmatpush3.bf16.msra.mxu0 %v19147_v30  ;;  %v6313_v30 = vrot.slane %v21464_v7, 4 }
 0x307   :  { %v17375_v34 = vpop.f32.mrf.mxu1  ;;  %6926 = vmatmul.mubr.bf16.vlgmr.msra.gmra.mxu1 %v6335_v53  ;;  %17655 = vmatprep.subr.bf16.mxu0 %v19149_v10  ;;  %v19158_v10 = vld [vmem:[%s25427_s3 + $0xbe0] sm:$0xff]  }
 0x308   :  { %17668 = vmatpush3.bf16.msra.mxu1 %v19148_v47  ;;  %7005 = vmatprep.mubr.bf16.mxu1 %v6340_v17  ;;  %v6297_v47 = vrot.slane %v21416_v18, 5  ;;  %v19161_v17 = vld [vmem:[%s25427_s3 + $0xbd8] sm:$0xff]  }
 0x309   :  { %v17376_v55 = vpop.f32.mrf.mxu1  ;;  %17669 = vmatprep.subr.bf16.mxu1 %v19150_v29  ;;  %v7015_v29 = vrot.slane %v21224_v41, 6 }
 0x30a   :  { %v17377_v4 = vadd.f32 %v17376_v55, %v17375_v34  ;;  %17656 = vmatpush3.bf16.msra.mxu0 %v19151_v35  ;;  %v19160_v35 = vld [vmem:[%s25427_s3 + $0xba0] sm:$0xff]   ;;  %v6329_v53 = vsel %vm2729_vm1, %v6297_v47, %v6313_v30  ;;  %v19164_v34 = vld [vmem:[%s25427_s3 + $0xc38] sm:$0xff]   ;;  %v19167_v30 = vld [vmem:[%s25427_s3 + $0xb90] sm:$0xff]  }
 0x30b   :  { %v17378_v14 = vpop.f32.mrf.mxu1  ;;  %17657 = vmatprep.subr.bf16.mxu0 %v19153_v13  ;;  %v19163_v13 = vld [vmem:[%s25427_s3 + $0xb98] sm:$0xff]  }
 0x30c   :  { %v4765_v50 = vadd.f32 %v17377_v4, %v17355_v2  ;;  %17670 = vmatpush3.bf16.msra.mxu1 %v19152_v48  ;;  %v19159_v2 = vld [vmem:[%s25427_s3 + $0xb00] sm:$0xff]   ;;  %v7047_v48 = vsel %vm2729_vm1, %v7015_v29, %v7031_v24  ;;  %v19165_v4 = vld [vmem:[%s25427_s3 + $0xbd0] sm:$0xff]   ;;  %v19169_v24 = vld [vmem:[%s25427_s3 + $0xbc8] sm:$0xff]  }
 0x30d   :  { %v17379_v15 = vpop.f32.mrf.mxu1  ;;  %17671 = vmatprep.subr.bf16.mxu1 %v19154_v26  ;;  %v19166_v26 = vld [vmem:[%s25427_s3 + $0xc70] sm:$0xff]   ;;  %v7055_v55 = vpack.c.bf16 %v7047_v48, %v7047_v48  ;;  %v19174_v29 = vld [vmem:[%s25427_s3 + $0xc60] sm:$0xff]   ;;  %v19177_v48 = vld [vmem:[%s25427_s3 + $0xc58] sm:$0xff]  }
 0x30e   :  { %17658 = vmatpush3.bf16.msra.mxu0 %v19155_v43  ;;  %v6337_v43 = vpack.c.bf16 %v6329_v53, %v6329_v53  ;;  %v19168_v14 = vld [vmem:[%s25427_s3 + $0xc30] sm:$0xff]   ;;  %v19171_v53 = vld [vmem:[%s25427_s3 + $0xb88] sm:$0xff]  }
 0x30f   :  { %17659 = vmatprep.subr.bf16.mxu0 %v19157_v6 }
 0x310   :  { %17672 = vmatpush3.bf16.msra.mxu1 %v19156_v8  ;;  %v19170_v8 = vld [vmem:[%s25427_s3 + $0xc68] sm:$0xff]  }
 0x311   :  { %17673 = vmatprep.subr.bf16.mxu1 %v19158_v10 }
 0x312   :  { %17660 = vmatpush3.bf16.msra.mxu0 %v19159_v2 }
 0x313   :  { %17689 = vmatprep.subr.bf16.mxu0 %v19162_v25  ;;  %v19172_v25 = vld [vmem:[%s25427_s3 + $0xc28] sm:$0xff]  }
 0x314   :  { %17674 = vmatpush3.bf16.msra.mxu1 %v19160_v35 }
 0x315   :  { %v17397_v6 = vpop.f32.mrf.mxu0  ;;  %6966 = vmatmul.mubr.bf16.vlgmr.msra.gmra.mxu0 %v6337_v43  ;;  %17675 = vmatprep.subr.bf16.mxu1 %v19161_v17  ;;  %v19176_v17 = vld [vmem:[%s25427_s3 + $0xc20] sm:$0xff]   ;;  %v6299_v43 = vrot.slane %v21550_v27, 5 }
 0x316   :  { %17690 = vmatpush3.bf16.msra.mxu0 %v19164_v34  ;;  %7606 = vmatprep.mubr.bf16.mxu0 %v7055_v55  ;;  %v6315_v34 = vrot.slane %v21558_v20, 4  ;;  %v19178_v55 = vld [vmem:[%s25427_s3 + $0xcf8] sm:$0xff]  }
 0x317   :  { %v17398_v15 = vpop.f32.mrf.mxu0  ;;  %17691 = vmatprep.subr.bf16.mxu0 %v19166_v26  ;;  %v19175_v26 = vld [vmem:[%s25427_s3 + $0xb80] sm:$0xff]  }
 0x318   :  { %17676 = vmatpush3.bf16.msra.mxu1 %v19163_v13  ;;  %v17399_v10 = vadd.f32 %v17398_v15, %v17397_v6  ;;  %v7033_v13 = vrot.slane %v21338_v16, 5  ;;  %v19179_v6 = vld [vmem:[%s25427_s3 + $0xc18] sm:$0xff]  }
 0x319   :  { %v17400_v2 = vpop.f32.mrf.mxu0  ;;  %17677 = vmatprep.subr.bf16.mxu1 %v19165_v4  ;;  %v7017_v4 = vrot.slane %v21292_v31, 6 }
 0x31a   :  { %v4805_v47 = vadd.f32 %v17399_v10, %v4765_v50  ;;  %17692 = vmatpush3.bf16.msra.mxu0 %v19168_v14  ;;  %v19173_v50 = vld [vmem:[%s25427_s3 + $0xbc0] sm:$0xff]   ;;  %v19181_v14 = vld [vmem:[%s25427_s3 + $0xc50] sm:$0xff]  }
 0x31b   :  { %v17401_v35 = vpop.f32.mrf.mxu0  ;;  %17693 = vmatprep.subr.bf16.mxu0 %v19170_v8  ;;  %v6331_v8 = vsel %vm2729_vm1, %v6299_v43, %v6315_v34  ;;  %v7049_v15 = vsel %vm2729_vm1, %v7017_v4, %v7033_v13  ;;  %v19182_v10 = vld [vmem:[%s25427_s3 + $0xcf0] sm:$0xff]   ;;  %v19187_v34 = vld [vmem:[%s25427_s3 + $0xc08] sm:$0xff]   ;;  %v19190_v4 = vld [vmem:[%s25427_s3 + $0xce0] sm:$0xff]  }
 0x31c   :  { %17678 = vmatpush3.bf16.msra.mxu1 %v19167_v30  ;;  %v19180_v30 = vld [vmem:[%s25427_s3 + $0xcb8] sm:$0xff]   ;;  %v6339_v2 = vpack.c.bf16 %v6331_v8, %v6331_v8  ;;  %v19184_v35 = vld [vmem:[%s25427_s3 + $0xcb0] sm:$0xff]  }
 0x31d   :  { %17679 = vmatprep.subr.bf16.mxu1 %v19169_v24  ;;  %v19183_v24 = vld [vmem:[%s25427_s3 + $0xc10] sm:$0xff]  }
 0x31e   :  { %17694 = vmatpush3.bf16.msra.mxu0 %v19172_v25  ;;  %v7057_v25 = vpack.c.bf16 %v7049_v15, %v7049_v15  ;;  %v19191_v15 = vld [vmem:[%s25427_s3 + $0xc00] sm:$0xff]  }
 0x31f   :  { %17695 = vmatprep.subr.bf16.mxu0 %v19174_v29 }
 0x320   :  { %17680 = vmatpush3.bf16.msra.mxu1 %v19171_v53  ;;  %v19185_v53 = vld [vmem:[%s25427_s3 + $0xc48] sm:$0xff]  }
 0x321   :  { %17681 = vmatprep.subr.bf16.mxu1 %v19173_v50  ;;  %v19186_v50 = vld [vmem:[%s25427_s3 + $0xce8] sm:$0xff]  }
 0x322   :  { %17696 = vmatpush3.bf16.msra.mxu0 %v19176_v17  ;;  %v7030_v17 = vrot.slane %v21226_v39, 5 }
 0x323   :  { %17697 = vmatprep.subr.bf16.mxu0 %v19177_v48  ;;  %v7035_v48 = vrot.slane %v21345_v44, 5 }
 0x324   :  { %17682 = vmatpush3.bf16.msra.mxu1 %v19175_v26  ;;  %v19189_v26 = vld [vmem:[%s25427_s3 + $0xc40] sm:$0xff]  }
 0x325   :  { %17711 = vmatprep.subr.bf16.mxu1 %v19178_v55  ;;  %v19188_v55 = vld [vmem:[%s25427_s3 + $0xca8] sm:$0xff]  }
 0x326   :  { %17698 = vmatpush3.bf16.msra.mxu0 %v19179_v6 }
 0x327   :  { %v17419_v29 = vpop.f32.mrf.mxu1  ;;  %7006 = vmatmul.mubr.bf16.vlgmr.msra.gmra.mxu1 %v6339_v2  ;;  %17699 = vmatprep.subr.bf16.mxu0 %v19181_v14 }
 0x328   :  { %17712 = vmatpush3.bf16.msra.mxu1 %v19180_v30  ;;  %7646 = vmatprep.mubr.bf16.mxu1 %v7057_v25  ;;  %v19193_v25 = vld [vmem:[%s25427_s3 + $0xcd8] sm:$0xff]  }
 0x329   :  { %v17420_v13 = vpop.f32.mrf.mxu1  ;;  %17713 = vmatprep.subr.bf16.mxu1 %v19182_v10  ;;  %v7014_v10 = vrot.slane %v21218_v21, 6 }
 0x32a   :  { %v17421_v43 = vadd.f32 %v17420_v13, %v17419_v29  ;;  %17700 = vmatpush3.bf16.msra.mxu0 %v19183_v24  ;;  %v19194_v24 = vld [vmem:[%s25427_s3 + $0xd78] sm:$0xff]  }
 0x32b   :  { %v17422_v6 = vpop.f32.mrf.mxu1  ;;  %17701 = vmatprep.subr.bf16.mxu0 %v19185_v53  ;;  %v7046_v2 = vsel %vm2729_vm1, %v7014_v10, %v7030_v17  ;;  %v19196_v29 = vld [vmem:[%s25427_s3 + $0xd38] sm:$0xff]   ;;  %v19206_v10 = vld [vmem:[%s25427_s3 + $0xd60] sm:$0xff]  }
 0x32c   :  { %v4845_v14 = vadd.f32 %v17421_v43, %v4805_v47  ;;  %17714 = vmatpush3.bf16.msra.mxu1 %v19184_v35  ;;  %v7019_v47 = vrot.slane %v21294_v54, 6  ;;  %v19195_v53 = vld [vmem:[%s25427_s3 + $0xc98] sm:$0xff]   ;;  %v7054_v17 = vpack.c.bf16 %v7046_v2, %v7046_v2  ;;  %v19202_v43 = vld [vmem:[%s25427_s3 + $0xd68] sm:$0xff]   ;;  %v19208_v2 = vld [vmem:[%s25427_s3 + $0xd20] sm:$0xff]  }
 0x32d   :  { %v17423_v8 = vpop.f32.mrf.mxu1  ;;  %17715 = vmatprep.subr.bf16.mxu1 %v19186_v50  ;;  %v19198_v50 = vld [vmem:[%s25427_s3 + $0xd70] sm:$0xff]  }
 0x32e   :  { %v22735_v30 = vadd.f32 %v4845_v14, %v22516_v49  ;;  %17702 = vmatpush3.bf16.msra.mxu0 %v19187_v34  ;;  %v19192_v49 = vld [vmem:[%s25427_s3 + $0xca0] sm:$0xff]   ;;  %v7051_v35 = vsel %vm2729_vm1, %v7019_v47, %v7035_v48  ;;  %v19197_v48 = vld [vmem:[%s25427_s3 + $0xcd0] sm:$0xff]   ;;  %v19201_v8 = vld [vmem:[%s25427_s3 + $0xcc8] sm:$0xff]  }
 0x32f   :  { %17703 = vmatprep.subr.bf16.mxu0 %v19189_v26  ;;  %v7059_v34 = vpack.c.bf16 %v7051_v35, %v7051_v35  ;;  %v19200_v26 = vld [vmem:[%s25427_s3 + $0xd30] sm:$0xff]   ;;  %v19203_v47 = vld [vmem:[%s25427_s3 + $0xc88] sm:$0xff]   ;;  %v7037_v35 = vrot.slane %v21476_v57, 5 }
 0x330   :  { %17716 = vmatpush3.bf16.msra.mxu1 %v19188_v55 }
 0x331   :  { %17717 = vmatprep.subr.bf16.mxu1 %v19190_v4  ;;  %v19199_v4 = vld [vmem:[%s25427_s3 + $0xc90] sm:$0xff]  }
 0x332   :  { %17704 = vmatpush3.bf16.msra.mxu0 %v19191_v15  ;;  %v19204_v15 = vld [vmem:[%s25427_s3 + $0xd28] sm:$0xff]  }
 0x333   :  { %17733 = vmatprep.subr.bf16.mxu0 %v19194_v24 }
 0x334   :  { %17718 = vmatpush3.bf16.msra.mxu1 %v19192_v49  ;;  %v19205_v49 = vld [vmem:[%s25427_s3 + $0xcc0] sm:$0xff]  }
 0x335   :  { %v17441_v13 = vpop.f32.mrf.mxu0  ;;  %7607 = vmatmul.mubr.bf16.vlgmr.msra.gmra.mxu0 %v7054_v17  ;;  %17719 = vmatprep.subr.bf16.mxu1 %v19193_v25  ;;  %v7032_v25 = vrot.slane %v21358_v0, 5  ;;  %v19210_v17 = vld [vmem:[%s25427_s3 + $0xdf8] sm:$0xff]  }
 0x336   :  { %17734 = vmatpush3.bf16.msra.mxu0 %v19196_v29  ;;  %7686 = vmatprep.mubr.bf16.mxu0 %v7059_v34  ;;  %v19209_v29 = vld [vmem:[%s25427_s3 + $0xd58] sm:$0xff]  }
 0x337   :  { %v17442_v55 = vpop.f32.mrf.mxu0  ;;  %17735 = vmatprep.subr.bf16.mxu0 %v19198_v50  ;;  %v7016_v50 = vrot.slane %v21282_v56, 6  ;;  %v19211_v34 = vld [vmem:[%s25427_s3 + $0xd18] sm:$0xff]  }
 0x338   :  { %17720 = vmatpush3.bf16.msra.mxu1 %v19195_v53  ;;  %v17443_v6 = vadd.f32 %v17442_v55, %v17441_v13  ;;  %v19207_v53 = vld [vmem:[%s25427_s3 + $0xc80] sm:$0xff]   ;;  %v7021_v13 = vrot.slane %v21418_v38, 6 }
 0x339   :  { %v17444_v14 = vpop.f32.mrf.mxu0  ;;  %17721 = vmatprep.subr.bf16.mxu1 %v19197_v48  ;;  %v19213_v48 = vld [vmem:[%s25427_s3 + $0xd50] sm:$0xff]  }
 0x33a   :  { %17736 = vmatpush3.bf16.msra.mxu0 %v19200_v26  ;;  %v7048_v26 = vsel %vm2729_vm1, %v7016_v50, %v7032_v25  ;;  %v7053_v55 = vsel %vm2729_vm1, %v7021_v13, %v7037_v35  ;;  %v19215_v14 = vld [vmem:[%s25427_s3 + $0xd10] sm:$0xff]  }
 0x33b   :  { %v17445_v24 = vpop.f32.mrf.mxu0  ;;  %17737 = vmatprep.subr.bf16.mxu0 %v19202_v43  ;;  %v19212_v43 = vld [vmem:[%s25427_s3 + $0xdb8] sm:$0xff]  }
 0x33c   :  { %17722 = vmatpush3.bf16.msra.mxu1 %v19199_v4  ;;  %v19214_v4 = vld [vmem:[%s25427_s3 + $0xdf0] sm:$0xff]  }
 0x33d   :  { %17723 = vmatprep.subr.bf16.mxu1 %v19201_v8  ;;  %v7056_v8 = vpack.c.bf16 %v7048_v26, %v7048_v26  ;;  %v19216_v24 = vld [vmem:[%s25427_s3 + $0xdb0] sm:$0xff]   ;;  %v7752_v26 = vrot.slane %v21238_v19, 6 }
 0x33e   :  { %17738 = vmatpush3.bf16.msra.mxu0 %v19204_v15  ;;  %v7061_v15 = vpack.c.bf16 %v7053_v55, %v7053_v55  ;;  %v19226_v55 = vld [vmem:[%s25427_s3 + $0xe78] sm:$0xff]  }
 0x33f   :  { %17739 = vmatprep.subr.bf16.mxu0 %v19206_v10 }
 0x340   :  { %17724 = vmatpush3.bf16.msra.mxu1 %v19203_v47  ;;  %v19217_v47 = vld [vmem:[%s25427_s3 + $0xd48] sm:$0xff]  }
 0x341   :  { %17725 = vmatprep.subr.bf16.mxu1 %v19205_v49  ;;  %v19218_v49 = vld [vmem:[%s25427_s3 + $0xde8] sm:$0xff]  }
 0x342   :  { %17740 = vmatpush3.bf16.msra.mxu0 %v19208_v2  ;;  %v19219_v2 = vld [vmem:[%s25427_s3 + $0xd08] sm:$0xff]  }
 0x343   :  { %17741 = vmatprep.subr.bf16.mxu0 %v19209_v29  ;;  %v19221_v29 = vld [vmem:[%s25427_s3 + $0xd40] sm:$0xff]  }
 0x344   :  { %17726 = vmatpush3.bf16.msra.mxu1 %v19207_v53 }
 0x345   :  { %17755 = vmatprep.subr.bf16.mxu1 %v19210_v17  ;;  %v19220_v17 = vld [vmem:[%s25427_s3 + $0xda8] sm:$0xff]  }
 0x346   :  { %17742 = vmatpush3.bf16.msra.mxu0 %v19211_v34  ;;  %v7034_v34 = vrot.slane %v21464_v7, 5 }
 0x347   :  { %v17463_v10 = vpop.f32.mrf.mxu1  ;;  %7647 = vmatmul.mubr.bf16.vlgmr.msra.gmra.mxu1 %v7056_v8  ;;  %17743 = vmatprep.subr.bf16.mxu0 %v19213_v48  ;;  %v19222_v48 = vld [vmem:[%s25427_s3 + $0xde0] sm:$0xff]   ;;  %v19225_v8 = vld [vmem:[%s25427_s3 + $0xdd8] sm:$0xff]  }
 0x348   :  { %17756 = vmatpush3.bf16.msra.mxu1 %v19212_v43  ;;  %7726 = vmatprep.mubr.bf16.mxu1 %v7061_v15  ;;  %v7018_v43 = vrot.slane %v21416_v18, 6  ;;  %v19228_v15 = vld [vmem:[%s25427_s3 + $0xe38] sm:$0xff]  }
 0x349   :  { %v17464_v25 = vpop.f32.mrf.mxu1  ;;  %17757 = vmatprep.subr.bf16.mxu1 %v19214_v4  ;;  %v7736_v4 = vrot.slane %v21224_v41, 7  ;;  %v19227_v41 = vld [vmem:[%s25427_s3 + $0xd98] sm:$0xff]  }
 0x34a   :  { %v17465_v35 = vadd.f32 %v17464_v25, %v17463_v10  ;;  %17744 = vmatpush3.bf16.msra.mxu0 %v19215_v14  ;;  %v19224_v14 = vld [vmem:[%s25427_s3 + $0xda0] sm:$0xff]   ;;  %v7050_v19 = vsel %vm2729_vm1, %v7018_v43, %v7034_v34  ;;  %v19229_v25 = vld [vmem:[%s25427_s3 + $0xdd0] sm:$0xff]  }
 0x34b   :  { %v17466_v53 = vpop.f32.mrf.mxu1  ;;  %17745 = vmatprep.subr.bf16.mxu0 %v19217_v47  ;;  %v7768_v10 = vsel %vm2729_vm1, %v7736_v4, %v7752_v26  ;;  %v7058_v47 = vpack.c.bf16 %v7050_v19, %v7050_v19  ;;  %v19238_v43 = vld [vmem:[%s25427_s3 + $0xe60] sm:$0xff]   ;;  %v19235_v4 = vld [vmem:[%s25427_s3 + $0xd88] sm:$0xff]   ;;  %v7036_v19 = vrot.slane %v21558_v20, 5 }
 0x34c   :  { %v5486_v50 = vadd.f32 %v17465_v35, %v17443_v6  ;;  %17758 = vmatpush3.bf16.msra.mxu1 %v19216_v24  ;;  %v19223_v6 = vld [vmem:[%s25427_s3 + $0xd00] sm:$0xff]   ;;  %v19230_v24 = vld [vmem:[%s25427_s3 + $0xe70] sm:$0xff]   ;;  %v19234_v35 = vld [vmem:[%s25427_s3 + $0xe68] sm:$0xff]  }
 0x34d   :  { %v17467_v13 = vpop.f32.mrf.mxu1  ;;  %17759 = vmatprep.subr.bf16.mxu1 %v19218_v49  ;;  %v7776_v49 = vpack.c.bf16 %v7768_v10, %v7768_v10  ;;  %v19231_v53 = vld [vmem:[%s25427_s3 + $0xd90] sm:$0xff]   ;;  %v19239_v10 = vld [vmem:[%s25427_s3 + $0xd80] sm:$0xff]  }
 0x34e   :  { %17746 = vmatpush3.bf16.msra.mxu0 %v19219_v2  ;;  %v19233_v13 = vld [vmem:[%s25427_s3 + $0xdc8] sm:$0xff]  }
 0x34f   :  { %17747 = vmatprep.subr.bf16.mxu0 %v19221_v29  ;;  %v19232_v29 = vld [vmem:[%s25427_s3 + $0xe30] sm:$0xff]  }
 0x350   :  { %17760 = vmatpush3.bf16.msra.mxu1 %v19220_v17 }
 0x351   :  { %17761 = vmatprep.subr.bf16.mxu1 %v19222_v48 }
 0x352   :  { %17748 = vmatpush3.bf16.msra.mxu0 %v19223_v6  ;;  %v19236_v6 = vld [vmem:[%s25427_s3 + $0xe28] sm:$0xff]  }
 0x353   :  { %17777 = vmatprep.subr.bf16.mxu0 %v19226_v55 }
 0x354   :  { %17762 = vmatpush3.bf16.msra.mxu1 %v19224_v14  ;;  %v19240_v14 = vld [vmem:[%s25427_s3 + $0xe20] sm:$0xff]  }
 0x355   :  { %v17485_v2 = vpop.f32.mrf.mxu0  ;;  %7687 = vmatmul.mubr.bf16.vlgmr.msra.gmra.mxu0 %v7058_v47  ;;  %17763 = vmatprep.subr.bf16.mxu1 %v19225_v8  ;;  %v19241_v8 = vld [vmem:[%s25427_s3 + $0xe58] sm:$0xff]  }
 0x356   :  { %17778 = vmatpush3.bf16.msra.mxu0 %v19228_v15  ;;  %8327 = vmatprep.mubr.bf16.mxu0 %v7776_v49  ;;  %v7754_v15 = vrot.slane %v21338_v16, 6  ;;  %v19243_v47 = vld [vmem:[%s25427_s3 + $0xe18] sm:$0xff]   ;;  %v7738_v16 = vrot.slane %v21292_v31, 7  ;;  %v19245_v49 = vld [vmem:[%s25427_s3 + $0xe50] sm:$0xff]  }
 0x357   :  { %v17486_v17 = vpop.f32.mrf.mxu0  ;;  %17779 = vmatprep.subr.bf16.mxu0 %v19230_v24  ;;  %v19242_v24 = vld [vmem:[%s25427_s3 + $0xef8] sm:$0xff]   ;;  %v19247_v31 = vld [vmem:[%s25427_s3 + $0xe10] sm:$0xff]  }
 0x358   :  { %17764 = vmatpush3.bf16.msra.mxu1 %v19227_v41  ;;  %v17487_v34 = vadd.f32 %v17486_v17, %v17485_v2  ;;  %v7020_v41 = vrot.slane %v21550_v27, 6 }
 0x359   :  { %v17488_v48 = vpop.f32.mrf.mxu0  ;;  %17765 = vmatprep.subr.bf16.mxu1 %v19229_v25  ;;  %v19244_v25 = vld [vmem:[%s25427_s3 + $0xeb8] sm:$0xff]  }
 0x35a   :  { %v5526_v26 = vadd.f32 %v17487_v34, %v5486_v50  ;;  %17780 = vmatpush3.bf16.msra.mxu0 %v19232_v29  ;;  %v19237_v50 = vld [vmem:[%s25427_s3 + $0xdc0] sm:$0xff]   ;;  %v7052_v2 = vsel %vm2729_vm1, %v7020_v41, %v7036_v19  ;;  %v7770_v29 = vsel %vm2729_vm1, %v7738_v16, %v7754_v15  ;;  %v19249_v48 = vld [vmem:[%s25427_s3 + $0xe48] sm:$0xff]   ;;  %v19258_v16 = vld [vmem:[%s25427_s3 + $0xf78] sm:$0xff]  }
 0x35b   :  { %v17489_v55 = vpop.f32.mrf.mxu0  ;;  %17781 = vmatprep.subr.bf16.mxu0 %v19234_v35  ;;  %v19246_v35 = vld [vmem:[%s25427_s3 + $0xef0] sm:$0xff]   ;;  %v7778_v17 = vpack.c.bf16 %v7770_v29, %v7770_v29  ;;  %v19254_v15 = vld [vmem:[%s25427_s3 + $0xee0] sm:$0xff]  }
 0x35c   :  { %17766 = vmatpush3.bf16.msra.mxu1 %v19231_v53  ;;  %v7060_v53 = vpack.c.bf16 %v7052_v2, %v7052_v2  ;;  %v19251_v55 = vld [vmem:[%s25427_s3 + $0xe08] sm:$0xff]   ;;  %v19257_v2 = vld [vmem:[%s25427_s3 + $0xed8] sm:$0xff]   ;;  %v19262_v29 = vld [vmem:[%s25427_s3 + $0xf70] sm:$0xff]  }
 0x35d   :  { %17767 = vmatprep.subr.bf16.mxu1 %v19233_v13  ;;  %v19248_v13 = vld [vmem:[%s25427_s3 + $0xeb0] sm:$0xff]  }
 0x35e   :  { %17782 = vmatpush3.bf16.msra.mxu0 %v19236_v6  ;;  %v19250_v6 = vld [vmem:[%s25427_s3 + $0xee8] sm:$0xff]  }
 0x35f   :  { %17783 = vmatprep.subr.bf16.mxu0 %v19238_v43  ;;  %v7751_v43 = vrot.slane %v21226_v39, 6  ;;  %v19252_v39 = vld [vmem:[%s25427_s3 + $0xea8] sm:$0xff]  }
 0x360   :  { %17768 = vmatpush3.bf16.msra.mxu1 %v19235_v4  ;;  %v7756_v4 = vrot.slane %v21345_v44, 6 }
 0x361   :  { %17769 = vmatprep.subr.bf16.mxu1 %v19237_v50 }
 0x362   :  { %17784 = vmatpush3.bf16.msra.mxu0 %v19240_v14  ;;  %v19253_v14 = vld [vmem:[%s25427_s3 + $0xe40] sm:$0xff]  }
 0x363   :  { %17785 = vmatprep.subr.bf16.mxu0 %v19241_v8 }
 0x364   :  { %17770 = vmatpush3.bf16.msra.mxu1 %v19239_v10 }
 0x365   :  { %17799 = vmatprep.subr.bf16.mxu1 %v19242_v24  ;;  %v19255_v24 = vld [vmem:[%s25427_s3 + $0xe00] sm:$0xff]  }
 0x366   :  { %17786 = vmatpush3.bf16.msra.mxu0 %v19243_v47  ;;  %v7735_v47 = vrot.slane %v21218_v21, 7  ;;  %v19260_v21 = vld [vmem:[%s25427_s3 + $0xf38] sm:$0xff]  }
 0x367   :  { %v17507_v34 = vpop.f32.mrf.mxu1  ;;  %7727 = vmatmul.mubr.bf16.vlgmr.msra.gmra.mxu1 %v7060_v53  ;;  %17787 = vmatprep.subr.bf16.mxu0 %v19245_v49 }
 0x368   :  { %17800 = vmatpush3.bf16.msra.mxu1 %v19244_v25  ;;  %8367 = vmatprep.mubr.bf16.mxu1 %v7778_v17  ;;  %v7767_v49 = vsel %vm2729_vm1, %v7735_v47, %v7751_v43  ;;  %v19261_v17 = vld [vmem:[%s25427_s3 + $0xed0] sm:$0xff]  }
 0x369   :  { %v17508_v50 = vpop.f32.mrf.mxu1  ;;  %17801 = vmatprep.subr.bf16.mxu1 %v19246_v35  ;;  %v7775_v35 = vpack.c.bf16 %v7767_v49, %v7767_v49  ;;  %v25586_v47 = vld [vmem:[#allocation42_spill] sm:$0xff]  ;;  %v19271_v49 = vld [vmem:[%s25427_s3 + $0xe80] sm:$0xff]  }
 0x36a   :  { %v17509_v19 = vadd.f32 %v17508_v50, %v17507_v34  ;;  %17788 = vmatpush3.bf16.msra.mxu0 %v19247_v31  ;;  %v19264_v34 = vld [vmem:[%s25427_s3 + $0xf30] sm:$0xff]   ;;  %v19270_v50 = vld [vmem:[%s25427_s3 + $0xf60] sm:$0xff]  }
 0x36b   :  { %v17510_v8 = vpop.f32.mrf.mxu1  ;;  %17789 = vmatprep.subr.bf16.mxu0 %v19249_v48 }
 0x36c   :  { %v5566_v10 = vadd.f32 %v17509_v19, %v5526_v26  ;;  %17802 = vmatpush3.bf16.msra.mxu1 %v19248_v13  ;;  %v7740_v26 = vrot.slane %v21294_v54, 7  ;;  %v19259_v54 = vld [vmem:[%s25427_s3 + $0xe98] sm:$0xff]   ;;  %v19266_v13 = vld [vmem:[%s25427_s3 + $0xf68] sm:$0xff]  }
 0x36d   :  { %v17511_v44 = vpop.f32.mrf.mxu1  ;;  %17803 = vmatprep.subr.bf16.mxu1 %v19250_v6  ;;  %v19263_v6 = vld [vmem:[%s25427_s3 + $0xe90] sm:$0xff]   ;;  %v19267_v8 = vld [vmem:[%s25427_s3 + $0xe88] sm:$0xff]  }
 0x36e   :  { %v22954_v41 = vadd.f32 %v5566_v10, %v22735_v30  ;;  %17790 = vmatpush3.bf16.msra.mxu0 %v19251_v55  ;;  %v19256_v30 = vld [vmem:[%s25427_s3 + $0xea0] sm:$0xff]   ;;  %v7772_v25 = vsel %vm2729_vm1, %v7740_v26, %v7756_v4  ;;  %v19265_v55 = vld [vmem:[%s25427_s3 + $0xec8] sm:$0xff]   ;;  %v7753_v44 = vrot.slane %v21358_v0, 6  ;;  %v19274_v0 = vld [vmem:[%s25427_s3 + $0xff8] sm:$0xff]  }
 0x36f   :  { %17791 = vmatprep.subr.bf16.mxu0 %v19253_v14  ;;  %v7780_v31 = vpack.c.bf16 %v7772_v25, %v7772_v25  ;;  %v19268_v4 = vld [vmem:[%s25427_s3 + $0xf28] sm:$0xff]   ;;  %v19272_v10 = vld [vmem:[%s25427_s3 + $0xf20] sm:$0xff]   ;;  %v19277_v25 = vld [vmem:[%s25427_s3 + $0xf50] sm:$0xff]  }
 0x370   :  { %17804 = vmatpush3.bf16.msra.mxu1 %v19252_v39  ;;  %v25585_v19 = vld [vmem:[#allocation54_spill] sm:$0xff] }
 0x371   :  { %17805 = vmatprep.subr.bf16.mxu1 %v19254_v15  ;;  %v2618_v39 = vmax.f32 %v25585_v19, %v21222_v45  ;;  %v19269_v15 = vld [vmem:[%s25427_s3 + $0xec0] sm:$0xff]   ;;  %v19273_v45 = vld [vmem:[%s25427_s3 + $0xf58] sm:$0xff]  }
 0x372   :  { %17792 = vmatpush3.bf16.msra.mxu0 %v19255_v24  ;;  %v7758_v24 = vrot.slane %v21476_v57, 6  ;;  %v19275_v57 = vld [vmem:[%s25427_s3 + $0xf18] sm:$0xff]  }
 0x373   :  { %17821 = vmatprep.subr.bf16.mxu0 %v19258_v16  ;;  %v25587_v16 = vld [vmem:[#allocation36_spill] sm:$0xff] }
 0x374   :  { %17806 = vmatpush3.bf16.msra.mxu1 %v19256_v30  ;;  %v2594_v26 = vmax.f32 %v25587_v16, %v25586_v47  ;;  %v19285_v47 = vld [vmem:[%s25427_s3 + $0xf40] sm:$0xff]  }
 0x375   :  { %v22981_v53 = vpop.f32.mrf.mxu0  ;;  %8328 = vmatmul.mubr.bf16.vlgmr.msra.gmra.mxu0 %v7775_v35  ;;  %17807 = vmatprep.subr.bf16.mxu1 %v19257_v2  ;;  %v7737_v2 = vrot.slane %v21282_v56, 7 }
 0x376   :  { %17822 = vmatpush3.bf16.msra.mxu0 %v19260_v21  ;;  %8407 = vmatprep.mubr.bf16.mxu0 %v7780_v31  ;;  %v2642_v30 = vmax.f32 %v2594_v26, %v2618_v39  ;;  %v7742_v21 = vrot.slane %v21418_v38, 7  ;;  %v19276_v31 = vld [vmem:[%s25427_s3 + $0xfb8] sm:$0xff]   ;;  %v19278_v38 = vld [vmem:[%s25427_s3 + $0xff0] sm:$0xff]  }
 0x377   :  { %v22992_v48 = vpop.f32.mrf.mxu0  ;;  %17823 = vmatprep.subr.bf16.mxu0 %v19262_v29  ;;  %v25589_v29 = vld [vmem:[#allocation17_spill] sm:$0xff]  ;;  %v7769_v56 = vsel %vm2729_vm1, %v7737_v2, %v7753_v44 }
 0x378   :  { %17808 = vmatpush3.bf16.msra.mxu1 %v19259_v54  ;;  %v25588_v54 = vld [vmem:[#allocation23_spill] sm:$0xff]  ;;  %v17531_v16 = vadd.f32 %v22992_v48, %v22981_v53  ;;  %v25592_v2 = vld [vmem:[#allocation57_spill] sm:$0xff] }
 0x379   :  { %v17532_v43 = vpop.f32.mrf.mxu0  ;;  %17809 = vmatprep.subr.bf16.mxu1 %v19261_v17  ;;  %v1279_v35 = vmax.f32 %v25589_v29, %v25588_v54  ;;  %v23044_v17 = vpop.permute.xlu0 %1328  ;;  %v19286_v53 = vld [vmem:[%s25427_s3 + $0xfe0] sm:$0xff]   ;;  %v25593_v29 = vld [vmem:[#allocation46_spill] sm:$0xff] }
 0x37a   :  { %17824 = vmatpush3.bf16.msra.mxu0 %v19264_v34  ;;  %v7774_v34 = vsel %vm2729_vm1, %v7742_v21, %v7758_v24  ;;  %v19284_v21 = vld [vmem:[%s25427_s3 + $0xfa8] sm:$0xff]  }
 0x37b   :  { %v17533_v14 = vpop.f32.mrf.mxu0  ;;  %17825 = vmatprep.subr.bf16.mxu0 %v19266_v13  ;;  %v25590_v13 = vld [vmem:[#allocation10_spill] sm:$0xff]  ;;  %v7782_v19 = vpack.c.bf16 %v7774_v34, %v7774_v34 }
 0x37c   :  { %17810 = vmatpush3.bf16.msra.mxu1 %v19263_v6  ;;  %v25591_v6 = vld [vmem:[#allocation5_spill] sm:$0xff] }
 0x37d   :  { %17811 = vmatprep.subr.bf16.mxu1 %v19265_v55  ;;  %v1255_v43 = vmax.f32 %v25591_v6, %v25590_v13  ;;  %v2666_v55 = vadd.f32 %v2642_v30, %v23044_v17  ;;  %v19288_v13 = vld [vmem:[%s25427_s3 + $0xfa0] sm:$0xff]  }
 0x37e   :  { %17826 = vmatpush3.bf16.msra.mxu0 %v19268_v4  ;;  %v19279_v4 = vld [vmem:[%s25427_s3 + $0xf10] sm:$0xff]  }
 0x37f   :  { %17827 = vmatprep.subr.bf16.mxu0 %v19270_v50  ;;  %v7777_v50 = vpack.c.bf16 %v7769_v56, %v7769_v56  ;;  %v1303_v14 = vmax.f32 %v1255_v43, %v1279_v35  ;;  %v23065_v44 = vmax.f32 %v2666_v55, 0.0  ;;  %v25594_v35 = vld [vmem:[#allocation12_spill] sm:$0xff] }
 0x380   :  { %17812 = vmatpush3.bf16.msra.mxu1 %v19267_v8  ;;  %v19280_v8 = vld [vmem:[%s25427_s3 + $0xfb0] sm:$0xff]   ;;  %v2596_v56 = vmax.f32 %v25594_v35, %v25593_v29  ;;  %v19289_v43 = vld [vmem:[%s25427_s3 + $0xfd8] sm:$0xff]  }
 0x381   :  { %17813 = vmatprep.subr.bf16.mxu1 %v19269_v15  ;;  %v19281_v15 = vld [vmem:[%s25427_s3 + $0xf48] sm:$0xff]   ;;  %v1345_v30 = vadd.f32 %v23044_v17, %v1303_v14  ;;  %v8465_v48 = vrot.slane %v23065_v44, 7 }
 0x382   :  { %17828 = vmatpush3.bf16.msra.mxu0 %v19272_v10  ;;  %v19282_v10 = vld [vmem:[%s25427_s3 + $0xfe8] sm:$0xff]  }
 0x383   :  { %17829 = vmatprep.subr.bf16.mxu0 %v19273_v45  ;;  %v19283_v45 = vld [vmem:[%s25427_s3 + $0xf08] sm:$0xff]   ;;  %v23095_v34 = vmax.f32 %v1345_v30, 0.0 }
 0x384   :  { %17814 = vmatpush3.bf16.msra.mxu1 %v19271_v49  ;;  %v25597_v30 = vld [vmem:[#allocation13_spill] sm:$0xff] }
 0x385   :  { %17843 = vmatprep.subr.bf16.mxu1 %v19274_v0  ;;  %v2620_v0 = vmax.f32 %v25592_v2, %v21318_v36  ;;  %v19287_v36 = vld [vmem:[%s25427_s3 + $0xf00] sm:$0xff]   ;;  %v8481_v55 = vsel %vm2729_vm1, %v23095_v34, %v8465_v48  ;;  %v19297_v48 = vld [vmem:[%s25427_s3 + $0xfc8] sm:$0xff]  }
 0x386   :  { %17830 = vmatpush3.bf16.msra.mxu0 %v19275_v57 }
 0x387   :  { %v17551_v39 = vpop.f32.mrf.mxu1  ;;  %8368 = vmatmul.mubr.bf16.vlgmr.msra.gmra.mxu1 %v7777_v50  ;;  %17831 = vmatprep.subr.bf16.mxu0 %v19277_v25  ;;  %v7755_v25 = vrot.slane %v21464_v7, 6  ;;  %v19290_v7 = vld [vmem:[%s25427_s3 + $0x1078] sm:$0xff]   ;;  %v19294_v50 = vld [vmem:[%s25427_s3 + $0x1070] sm:$0xff]  }
 0x388   :  { %17844 = vmatpush3.bf16.msra.mxu1 %v19276_v31  ;;  %8447 = vmatprep.mubr.bf16.mxu1 %v7782_v19  ;;  %v7739_v31 = vrot.slane %v21416_v18, 7  ;;  %v19292_v18 = vld [vmem:[%s25427_s3 + $0x1038] sm:$0xff]  }
 0x389   :  { %v17552_v24 = vpop.f32.mrf.mxu1  ;;  %17845 = vmatprep.subr.bf16.mxu1 %v19278_v38  ;;  %v2644_v38 = vmax.f32 %v2596_v56, %v2620_v0  ;;  %v25600_v56 = vld [vmem:[#allocation47_spill] sm:$0xff] }
 0x38a   :  { %v17553_v26 = vadd.f32 %v17552_v24, %v17551_v39  ;;  %17832 = vmatpush3.bf16.msra.mxu0 %v19279_v4  ;;  %v7771_v6 = vsel %vm2729_vm1, %v7739_v31, %v7755_v25  ;;  %v19291_v4 = vld [vmem:[%s25427_s3 + $0xf98] sm:$0xff]   ;;  %v8489_v39 = vpack.c.bf16 %v8481_v55, %v8481_v55  ;;  %v19293_v24 = vld [vmem:[%s25427_s3 + $0xfd0] sm:$0xff]   ;;  %v2665_v55 = vadd.f32 %v21232_v9, %v23044_v17  ;;  %v19303_v9 = vld [vmem:[%s25427_s3 + $0xf80] sm:$0xff]  }
 0x38b   :  { %v17554_v49 = vpop.f32.mrf.mxu1  ;;  %17833 = vmatprep.subr.bf16.mxu0 %v19281_v15  ;;  %v7779_v14 = vpack.c.bf16 %v7771_v6, %v7771_v6  ;;  %v2668_v19 = vadd.f32 %v2644_v38, %v23044_v17  ;;  %v25596_v15 = vld [vmem:[#allocation20_spill] sm:$0xff]  ;;  %v25599_v25 = vld [vmem:[#allocation58_spill] sm:$0xff] }
 0x38c   :  { %v6207_v57 = vadd.f32 %v17553_v26, %v17531_v16  ;;  %17846 = vmatpush3.bf16.msra.mxu1 %v19280_v8  ;;  %v25595_v8 = vld [vmem:[#allocation27_spill] sm:$0xff]  ;;  %v19298_v16 = vld [vmem:[%s25427_s3 + $0x1068] sm:$0xff]  }
 0x38d   :  { %v17555_v54 = vpop.f32.mrf.mxu1  ;;  %17847 = vmatprep.subr.bf16.mxu1 %v19282_v10  ;;  %v1281_v10 = vmax.f32 %v25596_v15, %v25595_v8  ;;  %v19295_v26 = vld [vmem:[%s25427_s3 + $0xf90] sm:$0xff]   ;;  %v19300_v38 = vld [vmem:[%s25427_s3 + $0x1028] sm:$0xff]   ;;  %v7741_v8 = vrot.slane %v21550_v27, 7 }
 0x38e   :  { %17834 = vmatpush3.bf16.msra.mxu0 %v19283_v45  ;;  %v25598_v49 = vld [vmem:[#allocation6_spill] sm:$0xff]  ;;  %v2622_v54 = vmax.f32 %v25599_v25, %v21320_v37  ;;  %v19302_v37 = vld [vmem:[%s25427_s3 + $0x1060] sm:$0xff]  }
 0x38f   :  { %17835 = vmatprep.subr.bf16.mxu0 %v19285_v47  ;;  %v19296_v47 = vld [vmem:[%s25427_s3 + $0x1030] sm:$0xff]   ;;  %v1257_v2 = vmax.f32 %v25598_v49, %v25597_v30 }
 0x390   :  { %17848 = vmatpush3.bf16.msra.mxu1 %v19284_v21  ;;  %v23132_v21 = vmax.f32 %v2668_v19, 0.0  ;;  %v19311_v25 = vld [vmem:[%s25427_s3 + $0x1010] sm:$0xff]  }
 0x391   :  { %17849 = vmatprep.subr.bf16.mxu1 %v19286_v53  ;;  %v1305_v29 = vmax.f32 %v1257_v2, %v1281_v10  ;;  %v23176_v10 = vmax.f32 %v2665_v55, 0.0  ;;  %v19310_v2 = vld [vmem:[%s25427_s3 + $0x10f0] sm:$0xff]  }
 0x392   :  { %17836 = vmatpush3.bf16.msra.mxu0 %v19287_v36  ;;  %v25601_v36 = vld [vmem:[#allocation19_spill] sm:$0xff]  ;;  %v8467_v19 = vrot.slane %v23132_v21, 7 }
 0x393   :  { %17865 = vmatprep.subr.bf16.mxu0 %v19290_v7  ;;  %v2598_v31 = vmax.f32 %v25601_v36, %v25600_v56 }
 0x394   :  { %17850 = vmatpush3.bf16.msra.mxu1 %v19288_v13 }
 0x395   :  { %v17573_v45 = vpop.f32.mrf.mxu0  ;;  %8408 = vmatmul.mubr.bf16.vlgmr.msra.gmra.mxu0 %v7779_v14  ;;  %17851 = vmatprep.subr.bf16.mxu1 %v19289_v43  ;;  %v2646_v6 = vmax.f32 %v2598_v31, %v2622_v54  ;;  %v19299_v43 = vld [vmem:[%s25427_s3 + $0xf88] sm:$0xff]   ;;  %v19305_v14 = vld [vmem:[%s25427_s3 + $0x1058] sm:$0xff]   ;;  %v19312_v31 = vld [vmem:[%s25427_s3 + $0x10b0] sm:$0xff]  }
 0x396   :  { %17866 = vmatpush3.bf16.msra.mxu0 %v19292_v18  ;;  %9040 = vmatprep.mubr.bf16.mxu0 %v8489_v39  ;;  %v1347_v18 = vadd.f32 %v23044_v17, %v1305_v29  ;;  %v25604_v54 = vld [vmem:[#allocation14_spill] sm:$0xff] }
 0x397   :  { %v17574_v0 = vpop.f32.mrf.mxu0  ;;  %17867 = vmatprep.subr.bf16.mxu0 %v19294_v50  ;;  %v7757_v50 = vrot.slane %v21558_v20, 6  ;;  %v2670_v39 = vadd.f32 %v2646_v6, %v23044_v17  ;;  %v19306_v20 = vld [vmem:[%s25427_s3 + $0x10f8] sm:$0xff]   ;;  %v19315_v6 = vld [vmem:[%s25427_s3 + $0x1008] sm:$0xff]  }
 0x398   :  { %17852 = vmatpush3.bf16.msra.mxu1 %v19291_v4  ;;  %v17575_v53 = vadd.f32 %v17574_v0, %v17573_v45  ;;  %v19304_v4 = vld [vmem:[%s25427_s3 + $0x1020] sm:$0xff]   ;;  %v23174_v15 = vmax.f32 %v1347_v18, 0.0  ;;  %v19307_v45 = vld [vmem:[%s25427_s3 + $0x1018] sm:$0xff]  }
 0x399   :  { %v17576_v35 = vpop.f32.mrf.mxu0  ;;  %17853 = vmatprep.subr.bf16.mxu1 %v19293_v24  ;;  %v19309_v24 = vld [vmem:[%s25427_s3 + $0x1050] sm:$0xff]   ;;  %v7773_v27 = vsel %vm2729_vm1, %v7741_v8, %v7757_v50  ;;  %v23195_v0 = vmax.f32 %v2670_v39, 0.0  ;;  %v19317_v18 = vld [vmem:[%s25427_s3 + $0x1040] sm:$0xff]  }
 0x39a   :  { %v23141_v7 = vadd.f32 %v17575_v53, %v6207_v57  ;;  %17868 = vmatpush3.bf16.msra.mxu0 %v19296_v47  ;;  %v19301_v57 = vld [vmem:[%s25427_s3 + $0xfc0] sm:$0xff]   ;;  %v19308_v47 = vld [vmem:[%s25427_s3 + $0x10b8] sm:$0xff]   ;;  %v8483_v49 = vsel %vm2729_vm1, %v23174_v15, %v8467_v19  ;;  %v7781_v29 = vpack.c.bf16 %v7773_v27, %v7773_v27 }
 0x39b   :  { %v17577_v13 = vpop.f32.mrf.mxu0  ;;  %17869 = vmatprep.subr.bf16.mxu0 %v19298_v16  ;;  %v25602_v16 = vld [vmem:[#allocation28_spill] sm:$0xff]  ;;  %v25605_v53 = vld [vmem:[#allocation7_spill] sm:$0xff]  ;;  %v8491_v35 = vpack.c.bf16 %v8483_v49, %v8483_v49 }
 0x39c   :  { %17854 = vmatpush3.bf16.msra.mxu1 %v19295_v26  ;;  %v25603_v26 = vld [vmem:[#allocation21_spill] sm:$0xff]  ;;  %v8464_v13 = vrot.slane %v23176_v10, 7  ;;  %v25606_v50 = vld [vmem:[#allocation24_spill] sm:$0xff] }
 0x39d   :  { %17855 = vmatprep.subr.bf16.mxu1 %v19297_v48  ;;  %v1283_v30 = vmax.f32 %v25603_v26, %v25602_v16  ;;  %v1259_v48 = vmax.f32 %v25605_v53, %v25604_v54  ;;  %v19319_v27 = vld [vmem:[%s25427_s3 + $0x1000] sm:$0xff]   ;;  %v19323_v53 = vld [vmem:[%s25427_s3 + $0x1098] sm:$0xff]  }
 0x39e   :  { %17870 = vmatpush3.bf16.msra.mxu0 %v19300_v38  ;;  %v19313_v38 = vld [vmem:[%s25427_s3 + $0x1048] sm:$0xff]  }
 0x39f   :  { %17871 = vmatprep.subr.bf16.mxu0 %v19302_v37  ;;  %v1307_v56 = vmax.f32 %v1259_v48, %v1283_v30  ;;  %v19314_v37 = vld [vmem:[%s25427_s3 + $0x10e8] sm:$0xff]   ;;  %v19326_v48 = vld [vmem:[%s25427_s3 + $0x1170] sm:$0xff]  }
 0x3a0   :  { %17856 = vmatpush3.bf16.msra.mxu1 %v19299_v43  ;;  %v8469_v43 = vrot.slane %v23195_v0, 7  ;;  %v25607_v26 = vld [vmem:[#allocation53_spill] sm:$0xff] }
 0x3a1   :  { %17857 = vmatprep.subr.bf16.mxu1 %v19301_v57  ;;  %v1349_v19 = vadd.f32 %v23044_v17, %v1307_v56  ;;  %v25609_v56 = vld [vmem:[#allocation35_spill] sm:$0xff] }
 0x3a2   :  { %17872 = vmatpush3.bf16.msra.mxu0 %v19304_v4  ;;  %v19316_v4 = vld [vmem:[%s25427_s3 + $0x10a8] sm:$0xff]  }
 0x3a3   :  { %17873 = vmatprep.subr.bf16.mxu0 %v19305_v14  ;;  %v1344_v14 = vadd.f32 %v23044_v17, %v25606_v50  ;;  %v23239_v16 = vmax.f32 %v1349_v19, 0.0 }
 0x3a4   :  { %17858 = vmatpush3.bf16.msra.mxu1 %v19303_v9  ;;  %v19318_v9 = vld [vmem:[%s25427_s3 + $0x10e0] sm:$0xff]  }
 0x3a5   :  { %17887 = vmatprep.subr.bf16.mxu1 %v19306_v20  ;;  %v2624_v20 = vmax.f32 %v21220_v3, %v21449_v51  ;;  %v19322_v3 = vld [vmem:[%s25427_s3 + $0x1178] sm:$0xff]   ;;  %v19320_v51 = vld [vmem:[%s25427_s3 + $0x10a0] sm:$0xff]   ;;  %v8485_v54 = vsel %vm2729_vm1, %v23239_v16, %v8469_v43  ;;  %v19328_v43 = vld [vmem:[%s25427_s3 + $0x1130] sm:$0xff]  }
 0x3a6   :  { %17874 = vmatpush3.bf16.msra.mxu0 %v19307_v45 }
 0x3a7   :  { %v17595_v36 = vpop.f32.mrf.mxu1  ;;  %8448 = vmatmul.mubr.bf16.vlgmr.msra.gmra.mxu1 %v7781_v29  ;;  %17875 = vmatprep.subr.bf16.mxu0 %v19309_v24 }
 0x3a8   :  { %17888 = vmatpush3.bf16.msra.mxu1 %v19308_v47  ;;  %9080 = vmatprep.mubr.bf16.mxu1 %v8491_v35  ;;  %v23237_v47 = vmax.f32 %v1344_v14, 0.0  ;;  %v8493_v35 = vpack.c.bf16 %v8485_v54, %v8485_v54  ;;  %v19327_v14 = vld [vmem:[%s25427_s3 + $0x1090] sm:$0xff]  }
 0x3a9   :  { %v17596_v57 = vpop.f32.mrf.mxu1  ;;  %17889 = vmatprep.subr.bf16.mxu1 %v19310_v2  ;;  %v19321_v2 = vld [vmem:[%s25427_s3 + $0x10d8] sm:$0xff]  }
 0x3aa   :  { %v17597_v55 = vadd.f32 %v17596_v57, %v17595_v36  ;;  %17876 = vmatpush3.bf16.msra.mxu0 %v19311_v25  ;;  %v19324_v25 = vld [vmem:[%s25427_s3 + $0x1138] sm:$0xff]   ;;  %v25610_v36 = vld [vmem:[#allocation22_spill] sm:$0xff] }
 0x3ab   :  { %v17598_v39 = vpop.f32.mrf.mxu1  ;;  %17877 = vmatprep.subr.bf16.mxu0 %v19313_v38  ;;  %v2667_v38 = vadd.f32 %v21327_v40, %v23044_v17  ;;  %v19330_v57 = vld [vmem:[%s25427_s3 + $0x1168] sm:$0xff]   ;;  %v25611_v40 = vld [vmem:[#allocation16_spill] sm:$0xff] }
 0x3ac   :  { %v6287_v8 = vadd.f32 %v17597_v55, %v23141_v7  ;;  %17890 = vmatpush3.bf16.msra.mxu1 %v19312_v31  ;;  %v25608_v7 = vld [vmem:[#allocation41_spill] sm:$0xff]  ;;  %v1285_v31 = vmax.f32 %v25610_v36, %v25609_v56  ;;  %v19339_v56 = vld [vmem:[%s25427_s3 + $0x1118] sm:$0xff]   ;;  %v19341_v36 = vld [vmem:[%s25427_s3 + $0x1150] sm:$0xff]  }
 0x3ad   :  { %v17599_v45 = vpop.f32.mrf.mxu1  ;;  %17891 = vmatprep.subr.bf16.mxu1 %v19314_v37  ;;  %v2600_v30 = vmax.f32 %v25608_v7, %v25607_v26  ;;  %v23286_v39 = vmax.f32 %v2667_v38, 0.0  ;;  %v25613_v7 = vld [vmem:[#allocation29_spill] sm:$0xff]  ;;  %v19340_v38 = vld [vmem:[%s25427_s3 + $0x11b8] sm:$0xff]  }
 0x3ae   :  { %v23232_v24 = vadd.f32 %v6287_v8, %v22954_v41  ;;  %17878 = vmatpush3.bf16.msra.mxu0 %v19315_v6  ;;  %v8480_v41 = vsel %vm2729_vm1, %v23237_v47, %v8464_v13  ;;  %v19325_v6 = vld [vmem:[%s25427_s3 + $0x10d0] sm:$0xff]   ;;  %v19332_v45 = vld [vmem:[%s25427_s3 + $0x1128] sm:$0xff]  }
 0x3af   :  { %17879 = vmatprep.subr.bf16.mxu0 %v19317_v18  ;;  %v2648_v49 = vmax.f32 %v2600_v30, %v2624_v20  ;;  %v8488_v29 = vpack.c.bf16 %v8480_v41, %v8480_v41  ;;  %v25612_v18 = vld [vmem:[#allocation9_spill] sm:$0xff]  ;;  %v1346_v30 = vadd.f32 %v23044_v17, %v25613_v7 }
 0x3b0   :  { %17892 = vmatpush3.bf16.msra.mxu1 %v19316_v4  ;;  %v1261_v55 = vmax.f32 %v25612_v18, %v25611_v40  ;;  %v19329_v20 = vld [vmem:[%s25427_s3 + $0x10c8] sm:$0xff]  }
 0x3b1   :  { %17893 = vmatprep.subr.bf16.mxu1 %v19318_v9  ;;  %v2672_v37 = vadd.f32 %v2648_v49, %v23044_v17  ;;  %v19336_v49 = vld [vmem:[%s25427_s3 + $0x1120] sm:$0xff]  }
 0x3b2   :  { %17880 = vmatpush3.bf16.msra.mxu0 %v19319_v27  ;;  %v1309_v19 = vmax.f32 %v1261_v55, %v1285_v31  ;;  %v19334_v27 = vld [vmem:[%s25427_s3 + $0x1160] sm:$0xff]   ;;  %v19344_v55 = vld [vmem:[%s25427_s3 + $0x11b0] sm:$0xff]  }
 0x3b3   :  { %17909 = vmatprep.subr.bf16.mxu0 %v19322_v3  ;;  %v23288_v9 = vmax.f32 %v2672_v37, 0.0  ;;  %v19331_v3 = vld [vmem:[%s25427_s3 + $0x1088] sm:$0xff]  }
 0x3b4   :  { %17894 = vmatpush3.bf16.msra.mxu1 %v19320_v51  ;;  %v19333_v51 = vld [vmem:[%s25427_s3 + $0x10c0] sm:$0xff]   ;;  %v1351_v41 = vadd.f32 %v23044_v17, %v1309_v19  ;;  %v19347_v19 = vld [vmem:[%s25427_s3 + $0x1108] sm:$0xff]  }
 0x3b5   :  { %v17617_v13 = vpop.f32.mrf.mxu0  ;;  %9041 = vmatmul.mubr.bf16.vlgmr.msra.gmra.mxu0 %v8488_v29  ;;  %17895 = vmatprep.subr.bf16.mxu1 %v19321_v2  ;;  %v8466_v2 = vrot.slane %v23286_v39, 7  ;;  %v8471_v54 = vrot.slane %v23288_v9, 7  ;;  %v19338_v29 = vld [vmem:[%s25427_s3 + $0x11f8] sm:$0xff]  }
 0x3b6   :  { %17910 = vmatpush3.bf16.msra.mxu0 %v19324_v25  ;;  %9120 = vmatprep.mubr.bf16.mxu0 %v8493_v35  ;;  %v19337_v25 = vld [vmem:[%s25427_s3 + $0x1158] sm:$0xff]   ;;  %v23324_v35 = vmax.f32 %v1351_v41, 0.0 }
 0x3b7   :  { %v17618_v4 = vpop.f32.mrf.mxu0  ;;  %17911 = vmatprep.subr.bf16.mxu0 %v19326_v48  ;;  %v19335_v48 = vld [vmem:[%s25427_s3 + $0x1080] sm:$0xff]  }
 0x3b8   :  { %17896 = vmatpush3.bf16.msra.mxu1 %v19323_v53  ;;  %v23281_v50 = vadd.f32 %v17618_v4, %v17617_v13  ;;  %v23316_v53 = vmax.f32 %v1346_v30, 0.0  ;;  %v8487_v37 = vsel %vm2729_vm1, %v23324_v35, %v8471_v54  ;;  %v19342_v13 = vld [vmem:[%s25427_s3 + $0x11f0] sm:$0xff]   ;;  %v19346_v4 = vld [vmem:[%s25427_s3 + $0x11e8] sm:$0xff]   ;;  %v9178_v54 = vrot.slane %v23095_v34, 1 }
 0x3b9   :  { %v17620_v8 = vpop.f32.mrf.mxu0  ;;  %17897 = vmatprep.subr.bf16.mxu1 %v19325_v6  ;;  %v2669_v6 = vadd.f32 %v21332_v28, %v23044_v17  ;;  %v8495_v40 = vpack.c.bf16 %v8487_v37, %v8487_v37  ;;  %v19345_v28 = vld [vmem:[%s25427_s3 + $0x1148] sm:$0xff]   ;;  %v19358_v37 = vld [vmem:[%s25427_s3 + $0x1270] sm:$0xff]  }
 0x3ba   :  { %17912 = vmatpush3.bf16.msra.mxu0 %v19328_v43  ;;  %v8482_v31 = vsel %vm2729_vm1, %v23316_v53, %v8466_v2  ;;  %v19343_v43 = vld [vmem:[%s25427_s3 + $0x1110] sm:$0xff]  }
 0x3bb   :  { %v17621_v26 = vpop.f32.mrf.mxu0  ;;  %17913 = vmatprep.subr.bf16.mxu0 %v19330_v57  ;;  %v8490_v57 = vpack.c.bf16 %v8482_v31, %v8482_v31  ;;  %v9194_v31 = vsel %vm2729_vm1, %v9178_v54, %v23065_v44  ;;  %v19367_v54 = vld [vmem:[%s25427_s3 + $0x1180] sm:$0xff]  }
 0x3bc   :  { %17898 = vmatpush3.bf16.msra.mxu1 %v19327_v14  ;;  %v23356_v14 = vmax.f32 %v2669_v6, 0.0  ;;  %v2671_v6 = vadd.f32 %v21457_v62, %v23044_v17  ;;  %v19359_v62 = vld [vmem:[%s25427_s3 + $0x1190] sm:$0xff]  }
 0x3bd   :  { %17899 = vmatprep.subr.bf16.mxu1 %v19329_v20  ;;  %v19349_v20 = vld [vmem:[%s25427_s3 + $0x1140] sm:$0xff]  }
 0x3be   :  { %17914 = vmatpush3.bf16.msra.mxu0 %v19332_v45  ;;  %v25614_v45 = vld [vmem:[#allocation30_spill] sm:$0xff] }
 0x3bf   :  { %17915 = vmatprep.subr.bf16.mxu0 %v19334_v27  ;;  %v1348_v27 = vadd.f32 %v23044_v17, %v25614_v45 }
 0x3c0   :  { %17900 = vmatpush3.bf16.msra.mxu1 %v19331_v3  ;;  %v19348_v3 = vld [vmem:[%s25427_s3 + $0x11a8] sm:$0xff]  }
 0x3c1   :  { %17901 = vmatprep.subr.bf16.mxu1 %v19333_v51  ;;  %v8468_v51 = vrot.slane %v23356_v14, 7  ;;  %v23374_v2 = vmax.f32 %v1348_v27, 0.0  ;;  %v19364_v27 = vld [vmem:[%s25427_s3 + $0x1228] sm:$0xff]  }
 0x3c2   :  { %17916 = vmatpush3.bf16.msra.mxu0 %v19336_v49  ;;  %v19350_v49 = vld [vmem:[%s25427_s3 + $0x11e0] sm:$0xff]  }
 0x3c3   :  { %17917 = vmatprep.subr.bf16.mxu0 %v19337_v25  ;;  %v19354_v25 = vld [vmem:[%s25427_s3 + $0x1278] sm:$0xff]  }
 0x3c4   :  { %17902 = vmatpush3.bf16.msra.mxu1 %v19335_v48  ;;  %v19352_v48 = vld [vmem:[%s25427_s3 + $0x11a0] sm:$0xff]  }
 0x3c5   :  { %17931 = vmatprep.subr.bf16.mxu1 %v19338_v29  ;;  %v8484_v29 = vsel %vm2729_vm1, %v23374_v2, %v8468_v51 }
 0x3c6   :  { %17918 = vmatpush3.bf16.msra.mxu0 %v19339_v56  ;;  %v19353_v56 = vld [vmem:[%s25427_s3 + $0x11d8] sm:$0xff]  }
 0x3c7   :  { %v17639_v18 = vpop.f32.mrf.mxu1  ;;  %9081 = vmatmul.mubr.bf16.vlgmr.msra.gmra.mxu1 %v8490_v57  ;;  %17919 = vmatprep.subr.bf16.mxu0 %v19341_v36  ;;  %v19356_v36 = vld [vmem:[%s25427_s3 + $0x1238] sm:$0xff]  }
 0x3c8   :  { %17932 = vmatpush3.bf16.msra.mxu1 %v19340_v38  ;;  %9160 = vmatprep.mubr.bf16.mxu1 %v8495_v40  ;;  %v19355_v38 = vld [vmem:[%s25427_s3 + $0x1198] sm:$0xff]   ;;  %v19357_v40 = vld [vmem:[%s25427_s3 + $0x11d0] sm:$0xff]  }
 0x3c9   :  { %v17640_v8 = vpop.f32.mrf.mxu1  ;;  %17933 = vmatprep.subr.bf16.mxu1 %v19342_v13  ;;  %v8492_v13 = vpack.c.bf16 %v8484_v29, %v8484_v29  ;;  %v19371_v29 = vld [vmem:[%s25427_s3 + $0x1218] sm:$0xff]  }
 0x3ca   :  { %v17641_v26 = vadd.f32 %v17640_v8, %v17639_v18  ;;  %17920 = vmatpush3.bf16.msra.mxu0 %v19343_v43  ;;  %v9202_v43 = vpack.c.bf16 %v9194_v31, %v9194_v31  ;;  %v19360_v18 = vld [vmem:[%s25427_s3 + $0x1230] sm:$0xff]   ;;  %v19361_v8 = vld [vmem:[%s25427_s3 + $0x11c8] sm:$0xff]  }
 0x3cb   :  { %v17642_v7 = vpop.f32.mrf.mxu1  ;;  %17921 = vmatprep.subr.bf16.mxu0 %v19345_v28 }
 0x3cc   :  { %v6928_v30 = vadd.f32 %v17641_v26, %v23281_v50  ;;  %17934 = vmatpush3.bf16.msra.mxu1 %v19344_v55  ;;  %v19351_v50 = vld [vmem:[%s25427_s3 + $0x1100] sm:$0xff]   ;;  %v19362_v55 = vld [vmem:[%s25427_s3 + $0x1268] sm:$0xff]  }
 0x3cd   :  { %v17643_v41 = vpop.f32.mrf.mxu1  ;;  %17935 = vmatprep.subr.bf16.mxu1 %v19346_v4  ;;  %v23416_v4 = vmax.f32 %v2671_v6, 0.0  ;;  %v19366_v26 = vld [vmem:[%s25427_s3 + $0x1260] sm:$0xff]   ;;  %v19375_v6 = vld [vmem:[%s25427_s3 + $0x1210] sm:$0xff]  }
 0x3ce   :  { %17922 = vmatpush3.bf16.msra.mxu0 %v19347_v19  ;;  %v19363_v41 = vld [vmem:[%s25427_s3 + $0x1188] sm:$0xff]  }
 0x3cf   :  { %17923 = vmatprep.subr.bf16.mxu0 %v19349_v20 }
 0x3d0   :  { %17936 = vmatpush3.bf16.msra.mxu1 %v19348_v3  ;;  %v25615_v3 = vld [vmem:[#allocation8_spill] sm:$0xff] }
 0x3d1   :  { %17937 = vmatprep.subr.bf16.mxu1 %v19350_v49  ;;  %v1350_v51 = vadd.f32 %v23044_v17, %v25615_v3  ;;  %v19368_v49 = vld [vmem:[%s25427_s3 + $0x1220] sm:$0xff]   ;;  %v19369_v17 = vld [vmem:[%s25427_s3 + $0x1258] sm:$0xff]  }
 0x3d2   :  { %17924 = vmatpush3.bf16.msra.mxu0 %v19351_v50  ;;  %v8470_v50 = vrot.slane %v23416_v4, 7 }
 0x3d3   :  { %17953 = vmatprep.subr.bf16.mxu0 %v19354_v25  ;;  %v23442_v25 = vmax.f32 %v1350_v51, 0.0 }
 0x3d4   :  { %17938 = vmatpush3.bf16.msra.mxu1 %v19352_v48  ;;  %v19370_v48 = vld [vmem:[%s25427_s3 + $0x12f8] sm:$0xff]  }
 0x3d5   :  { %v17661_v57 = vpop.f32.mrf.mxu0  ;;  %9121 = vmatmul.mubr.bf16.vlgmr.msra.gmra.mxu0 %v8492_v13  ;;  %17939 = vmatprep.subr.bf16.mxu1 %v19353_v56  ;;  %v9180_v56 = vrot.slane %v23174_v15, 1  ;;  %v8486_v31 = vsel %vm2729_vm1, %v23442_v25, %v8470_v50  ;;  %v19374_v13 = vld [vmem:[%s25427_s3 + $0x12f0] sm:$0xff]   ;;  %v19386_v50 = vld [vmem:[%s25427_s3 + $0x1378] sm:$0xff]  }
 0x3d6   :  { %17954 = vmatpush3.bf16.msra.mxu0 %v19356_v36  ;;  %9753 = vmatprep.mubr.bf16.mxu0 %v9202_v43  ;;  %v19373_v36 = vld [vmem:[%s25427_s3 + $0x1250] sm:$0xff]   ;;  %v8494_v43 = vpack.c.bf16 %v8486_v31, %v8486_v31 }
 0x3d7   :  { %v17662_v28 = vpop.f32.mrf.mxu0  ;;  %17955 = vmatprep.subr.bf16.mxu0 %v19358_v37  ;;  %v9196_v37 = vsel %vm2729_vm1, %v9180_v56, %v23132_v21  ;;  %v19387_v56 = vld [vmem:[%s25427_s3 + $0x1298] sm:$0xff]  }
 0x3d8   :  { %17940 = vmatpush3.bf16.msra.mxu1 %v19355_v38  ;;  %v17663_v19 = vadd.f32 %v17662_v28, %v17661_v57  ;;  %v19372_v38 = vld [vmem:[%s25427_s3 + $0x12b8] sm:$0xff]   ;;  %v9204_v57 = vpack.c.bf16 %v9196_v37, %v9196_v37  ;;  %v19379_v28 = vld [vmem:[%s25427_s3 + $0x1208] sm:$0xff]  }
 0x3d9   :  { %v17664_v20 = vpop.f32.mrf.mxu0  ;;  %17941 = vmatprep.subr.bf16.mxu1 %v19357_v40 }
 0x3da   :  { %v6968_v45 = vadd.f32 %v17663_v19, %v6928_v30  ;;  %17956 = vmatpush3.bf16.msra.mxu0 %v19360_v18  ;;  %v19365_v30 = vld [vmem:[%s25427_s3 + $0x11c0] sm:$0xff]   ;;  %v19376_v18 = vld [vmem:[%s25427_s3 + $0x12b0] sm:$0xff]  }
 0x3db   :  { %v17665_v7 = vpop.f32.mrf.mxu0  ;;  %17957 = vmatprep.subr.bf16.mxu0 %v19362_v55  ;;  %v19377_v55 = vld [vmem:[%s25427_s3 + $0x1248] sm:$0xff]  }
 0x3dc   :  { %17942 = vmatpush3.bf16.msra.mxu1 %v19359_v62  ;;  %v19378_v62 = vld [vmem:[%s25427_s3 + $0x12e8] sm:$0xff]   ;;  %v19382_v7 = vld [vmem:[%s25427_s3 + $0x12e0] sm:$0xff]  }
 0x3dd   :  { %17943 = vmatprep.subr.bf16.mxu1 %v19361_v8  ;;  %v19381_v8 = vld [vmem:[%s25427_s3 + $0x1240] sm:$0xff]  }
 0x3de   :  { %17958 = vmatpush3.bf16.msra.mxu0 %v19364_v27  ;;  %v19380_v27 = vld [vmem:[%s25427_s3 + $0x12a8] sm:$0xff]  }
 0x3df   :  { %17959 = vmatprep.subr.bf16.mxu0 %v19366_v26 }
 0x3e0   :  { %17944 = vmatpush3.bf16.msra.mxu1 %v19363_v41 }
 0x3e1   :  { %17945 = vmatprep.subr.bf16.mxu1 %v19365_v30  ;;  %v19383_v30 = vld [vmem:[%s25427_s3 + $0x1200] sm:$0xff]  }
 0x3e2   :  { %17960 = vmatpush3.bf16.msra.mxu0 %v19368_v49  ;;  %v9177_v49 = vrot.slane %v23237_v47, 1 }
 0x3e3   :  { %17961 = vmatprep.subr.bf16.mxu0 %v19369_v17 }
 0x3e4   :  { %17946 = vmatpush3.bf16.msra.mxu1 %v19367_v54  ;;  %v9193_v17 = vsel %vm2729_vm1, %v9177_v49, %v23176_v10  ;;  %v19385_v54 = vld [vmem:[%s25427_s3 + $0x12d8] sm:$0xff]  }
 0x3e5   :  { %17975 = vmatprep.subr.bf16.mxu1 %v19370_v48  ;;  %v19388_v48 = vld [vmem:[%s25427_s3 + $0x1338] sm:$0xff]   ;;  %v9201_v31 = vpack.c.bf16 %v9193_v17, %v9193_v17 }
 0x3e6   :  { %17962 = vmatpush3.bf16.msra.mxu0 %v19371_v29  ;;  %v19403_v49 = vld [vmem:[%s25427_s3 + $0x1318] sm:$0xff]  }
 0x3e7   :  { %v17683_v40 = vpop.f32.mrf.mxu1  ;;  %9161 = vmatmul.mubr.bf16.vlgmr.msra.gmra.mxu1 %v8494_v43  ;;  %17963 = vmatprep.subr.bf16.mxu0 %v19373_v36  ;;  %v19390_v36 = vld [vmem:[%s25427_s3 + $0x1370] sm:$0xff]   ;;  %v19394_v43 = vld [vmem:[%s25427_s3 + $0x1368] sm:$0xff]   ;;  %v19404_v17 = vld [vmem:[%s25427_s3 + $0x13b8] sm:$0xff]  }
 0x3e8   :  { %17976 = vmatpush3.bf16.msra.mxu1 %v19372_v38  ;;  %9793 = vmatprep.mubr.bf16.mxu1 %v9204_v57 }
 0x3e9   :  { %v17684_v19 = vpop.f32.mrf.mxu1  ;;  %17977 = vmatprep.subr.bf16.mxu1 %v19374_v13  ;;  %v19389_v13 = vld [vmem:[%s25427_s3 + $0x12d0] sm:$0xff]  }
 0x3ea   :  { %v17685_v20 = vadd.f32 %v17684_v19, %v17683_v40  ;;  %17964 = vmatpush3.bf16.msra.mxu0 %v19375_v6  ;;  %v19392_v6 = vld [vmem:[%s25427_s3 + $0x1330] sm:$0xff]   ;;  %v19398_v19 = vld [vmem:[%s25427_s3 + $0x1360] sm:$0xff]  }
 0x3eb   :  { %v17686_v26 = vpop.f32.mrf.mxu1  ;;  %17965 = vmatprep.subr.bf16.mxu0 %v19377_v55 }
 0x3ec   :  { %v7008_v3 = vadd.f32 %v17685_v20, %v6968_v45  ;;  %17978 = vmatpush3.bf16.msra.mxu1 %v19376_v18  ;;  %v9182_v45 = vrot.slane %v23239_v16, 1  ;;  %v19391_v18 = vld [vmem:[%s25427_s3 + $0x1290] sm:$0xff]   ;;  %v19395_v20 = vld [vmem:[%s25427_s3 + $0x1288] sm:$0xff]   ;;  %v19400_v26 = vld [vmem:[%s25427_s3 + $0x1320] sm:$0xff]  }
 0x3ed   :  { %v17687_v51 = vpop.f32.mrf.mxu1  ;;  %17979 = vmatprep.subr.bf16.mxu1 %v19378_v62  ;;  %v19393_v62 = vld [vmem:[%s25427_s3 + $0x12c8] sm:$0xff]  }
 0x3ee   :  { %v23492_v41 = vadd.f32 %v7008_v3, %v23232_v24  ;;  %17966 = vmatpush3.bf16.msra.mxu0 %v19379_v28  ;;  %v19384_v24 = vld [vmem:[%s25427_s3 + $0x12a0] sm:$0xff]   ;;  %v9198_v29 = vsel %vm2729_vm1, %v9182_v45, %v23195_v0  ;;  %v19396_v28 = vld [vmem:[%s25427_s3 + $0x1328] sm:$0xff]   ;;  %v9179_v51 = vrot.slane %v23316_v53, 1  ;;  %v19405_v45 = vld [vmem:[%s25427_s3 + $0x1350] sm:$0xff]  }
 0x3ef   :  { %17967 = vmatprep.subr.bf16.mxu0 %v19381_v8  ;;  %v9206_v38 = vpack.c.bf16 %v9198_v29, %v9198_v29  ;;  %v19399_v3 = vld [vmem:[%s25427_s3 + $0x1280] sm:$0xff]   ;;  %v19407_v29 = vld [vmem:[%s25427_s3 + $0x1310] sm:$0xff]  }
 0x3f0   :  { %17980 = vmatpush3.bf16.msra.mxu1 %v19380_v27  ;;  %v19397_v27 = vld [vmem:[%s25427_s3 + $0x12c0] sm:$0xff]  }
 0x3f1   :  { %17981 = vmatprep.subr.bf16.mxu1 %v19382_v7  ;;  %v19401_v7 = vld [vmem:[%s25427_s3 + $0x1358] sm:$0xff]  }
 0x3f2   :  { %17968 = vmatpush3.bf16.msra.mxu0 %v19383_v30  ;;  %v19402_v30 = vld [vmem:[%s25427_s3 + $0x13f8] sm:$0xff]  }
 0x3f3   :  { %17997 = vmatprep.subr.bf16.mxu0 %v19386_v50  ;;  %v9184_v50 = vrot.slane %v23324_v35, 1 }
 0x3f4   :  { %17982 = vmatpush3.bf16.msra.mxu1 %v19384_v24  ;;  %v9195_v24 = vsel %vm2729_vm1, %v9179_v51, %v23286_v39 }
 0x3f5   :  { %v17705_v37 = vpop.f32.mrf.mxu0  ;;  %9754 = vmatmul.mubr.bf16.vlgmr.msra.gmra.mxu0 %v9201_v31  ;;  %17983 = vmatprep.subr.bf16.mxu1 %v19385_v54  ;;  %v9200_v54 = vsel %vm2729_vm1, %v9184_v50, %v23288_v9 }
 0x3f6   :  { %17998 = vmatpush3.bf16.msra.mxu0 %v19388_v48  ;;  %9833 = vmatprep.mubr.bf16.mxu0 %v9206_v38  ;;  %v19406_v48 = vld [vmem:[%s25427_s3 + $0x13f0] sm:$0xff]  }
 0x3f7   :  { %v17706_v57 = vpop.f32.mrf.mxu0  ;;  %17999 = vmatprep.subr.bf16.mxu0 %v19390_v36  ;;  %v9208_v36 = vpack.c.bf16 %v9200_v54, %v9200_v54  ;;  %v19408_v38 = vld [vmem:[%s25427_s3 + $0x13b0] sm:$0xff]  }
 0x3f8   :  { %17984 = vmatpush3.bf16.msra.mxu1 %v19387_v56  ;;  %v17707_v40 = vadd.f32 %v17706_v57, %v17705_v37  ;;  %v9203_v56 = vpack.c.bf16 %v9195_v24, %v9195_v24  ;;  %v19409_v37 = vld [vmem:[%s25427_s3 + $0x1348] sm:$0xff]   ;;  %v19413_v57 = vld [vmem:[%s25427_s3 + $0x1340] sm:$0xff]   ;;  %v19422_v24 = vld [vmem:[%s25427_s3 + $0x1470] sm:$0xff]  }
 0x3f9   :  { %v17708_v55 = vpop.f32.mrf.mxu0  ;;  %17985 = vmatprep.subr.bf16.mxu1 %v19389_v13  ;;  %v19410_v13 = vld [vmem:[%s25427_s3 + $0x13e8] sm:$0xff]  }
 0x3fa   :  { %18000 = vmatpush3.bf16.msra.mxu0 %v19392_v6  ;;  %v19411_v6 = vld [vmem:[%s25427_s3 + $0x1308] sm:$0xff]  }
 0x3fb   :  { %v17709_v8 = vpop.f32.mrf.mxu0  ;;  %18001 = vmatprep.subr.bf16.mxu0 %v19394_v43 }
 0x3fc   :  { %17986 = vmatpush3.bf16.msra.mxu1 %v19391_v18  ;;  %v19414_v8 = vld [vmem:[%s25427_s3 + $0x13e0] sm:$0xff]  }
 0x3fd   :  { %17987 = vmatprep.subr.bf16.mxu1 %v19393_v62 }
 0x3fe   :  { %18002 = vmatpush3.bf16.msra.mxu0 %v19396_v28  ;;  %v19412_v28 = vld [vmem:[%s25427_s3 + $0x13a8] sm:$0xff]  }
 0x3ff   :  { %18003 = vmatprep.subr.bf16.mxu0 %v19398_v19 }
 0x400   :  { %17988 = vmatpush3.bf16.msra.mxu1 %v19395_v20  ;;  %v9899_v20 = vrot.slane %v23065_v44, 1 }
 0x401   :  { %17989 = vmatprep.subr.bf16.mxu1 %v19397_v27  ;;  %v19415_v27 = vld [vmem:[%s25427_s3 + $0x1300] sm:$0xff]  }
 0x402   :  { %18004 = vmatpush3.bf16.msra.mxu0 %v19400_v26  ;;  %v19418_v26 = vld [vmem:[%s25427_s3 + $0x1478] sm:$0xff]  }
 0x403   :  { %18005 = vmatprep.subr.bf16.mxu0 %v19401_v7  ;;  %v9883_v7 = vrot.slane %v23095_v34, 2 }
 0x404   :  { %17990 = vmatpush3.bf16.msra.mxu1 %v19399_v3  ;;  %v19416_v3 = vld [vmem:[%s25427_s3 + $0x13a0] sm:$0xff]  }
 0x405   :  { %18019 = vmatprep.subr.bf16.mxu1 %v19402_v30  ;;  %v19417_v30 = vld [vmem:[%s25427_s3 + $0x13d8] sm:$0xff]   ;;  %v9915_v50 = vsel %vm2729_vm1, %v9883_v7, %v9899_v20  ;;  %v9901_v20 = vrot.slane %v23132_v21, 1 }
 0x406   :  { %18006 = vmatpush3.bf16.msra.mxu0 %v19403_v49  ;;  %v19420_v49 = vld [vmem:[%s25427_s3 + $0x1438] sm:$0xff]   ;;  %v9923_v54 = vpack.c.bf16 %v9915_v50, %v9915_v50 }
 0x407   :  { %v17727_v31 = vpop.f32.mrf.mxu1  ;;  %9794 = vmatmul.mubr.bf16.vlgmr.msra.gmra.mxu1 %v9203_v56  ;;  %18007 = vmatprep.subr.bf16.mxu0 %v19405_v45  ;;  %v19419_v45 = vld [vmem:[%s25427_s3 + $0x1398] sm:$0xff]   ;;  %v19424_v56 = vld [vmem:[%s25427_s3 + $0x1430] sm:$0xff]  }
 0x408   :  { %18020 = vmatpush3.bf16.msra.mxu1 %v19404_v17  ;;  %9873 = vmatprep.mubr.bf16.mxu1 %v9208_v36  ;;  %v19426_v36 = vld [vmem:[%s25427_s3 + $0x1468] sm:$0xff]   ;;  %v19435_v7 = vld [vmem:[%s25427_s3 + $0x1418] sm:$0xff]  }
 0x409   :  { %v17728_v43 = vpop.f32.mrf.mxu1  ;;  %18021 = vmatprep.subr.bf16.mxu1 %v19406_v48 }
 0x40a   :  { %v17729_v18 = vadd.f32 %v17728_v43, %v17727_v31  ;;  %18008 = vmatpush3.bf16.msra.mxu0 %v19407_v29  ;;  %v19421_v29 = vld [vmem:[%s25427_s3 + $0x13d0] sm:$0xff]  }
 0x40b   :  { %v17730_v55 = vpop.f32.mrf.mxu1  ;;  %18009 = vmatprep.subr.bf16.mxu0 %v19409_v37  ;;  %v19423_v31 = vld [vmem:[%s25427_s3 + $0x1390] sm:$0xff]  }
 0x40c   :  { %v7649_v62 = vadd.f32 %v17729_v18, %v17707_v40  ;;  %18022 = vmatpush3.bf16.msra.mxu1 %v19408_v38  ;;  %v9181_v40 = vrot.slane %v23374_v2, 1  ;;  %v19430_v18 = vld [vmem:[%s25427_s3 + $0x1460] sm:$0xff]  }
 0x40d   :  { %v17731_v19 = vpop.f32.mrf.mxu1  ;;  %18023 = vmatprep.subr.bf16.mxu1 %v19410_v13  ;;  %v19425_v13 = vld [vmem:[%s25427_s3 + $0x13c8] sm:$0xff]  }
 0x40e   :  { %18010 = vmatpush3.bf16.msra.mxu0 %v19411_v6  ;;  %v9197_v51 = vsel %vm2729_vm1, %v9181_v40, %v23356_v14  ;;  %v19432_v19 = vld [vmem:[%s25427_s3 + $0x1420] sm:$0xff]   ;;  %v9183_v40 = vrot.slane %v23442_v25, 1 }
 0x40f   :  { %18011 = vmatprep.subr.bf16.mxu0 %v19413_v57  ;;  %v9205_v17 = vpack.c.bf16 %v9197_v51, %v9197_v51  ;;  %v19428_v57 = vld [vmem:[%s25427_s3 + $0x1428] sm:$0xff]   ;;  %v19437_v51 = vld [vmem:[%s25427_s3 + $0x1450] sm:$0xff]  }
 0x410   :  { %18024 = vmatpush3.bf16.msra.mxu1 %v19412_v28  ;;  %v19427_v28 = vld [vmem:[%s25427_s3 + $0x1388] sm:$0xff]  }
 0x411   :  { %18025 = vmatprep.subr.bf16.mxu1 %v19414_v8  ;;  %v19433_v8 = vld [vmem:[%s25427_s3 + $0x1458] sm:$0xff]  }
 0x412   :  { %18012 = vmatpush3.bf16.msra.mxu0 %v19415_v27  ;;  %v19431_v27 = vld [vmem:[%s25427_s3 + $0x1380] sm:$0xff]  }
 0x413   :  { %18041 = vmatprep.subr.bf16.mxu0 %v19418_v26  ;;  %v19434_v26 = vld [vmem:[%s25427_s3 + $0x14f8] sm:$0xff]  }
 0x414   :  { %18026 = vmatpush3.bf16.msra.mxu1 %v19416_v3  ;;  %v9885_v3 = vrot.slane %v23174_v15, 2 }
 0x415   :  { %v17749_v48 = vpop.f32.mrf.mxu0  ;;  %9834 = vmatmul.mubr.bf16.vlgmr.msra.gmra.mxu0 %v9205_v17  ;;  %18027 = vmatprep.subr.bf16.mxu1 %v19417_v30  ;;  %v9199_v30 = vsel %vm2729_vm1, %v9183_v40, %v23416_v4  ;;  %v19450_v40 = vld [vmem:[%s25427_s3 + $0x1578] sm:$0xff]  }
 0x416   :  { %18042 = vmatpush3.bf16.msra.mxu0 %v19420_v49  ;;  %10474 = vmatprep.mubr.bf16.mxu0 %v9923_v54  ;;  %v19436_v49 = vld [vmem:[%s25427_s3 + $0x14b8] sm:$0xff]   ;;  %v9917_v50 = vsel %vm2729_vm1, %v9885_v3, %v9901_v20  ;;  %v9207_v17 = vpack.c.bf16 %v9199_v30, %v9199_v30  ;;  %v19447_v20 = vld [vmem:[%s25427_s3 + $0x1400] sm:$0xff]  }
 0x417   :  { %v17750_v38 = vpop.f32.mrf.mxu0  ;;  %18043 = vmatprep.subr.bf16.mxu0 %v19422_v24  ;;  %v19439_v24 = vld [vmem:[%s25427_s3 + $0x1410] sm:$0xff]   ;;  %v9925_v54 = vpack.c.bf16 %v9917_v50, %v9917_v50  ;;  %v19452_v3 = vld [vmem:[%s25427_s3 + $0x1538] sm:$0xff]  }
 0x418   :  { %18028 = vmatpush3.bf16.msra.mxu1 %v19419_v45  ;;  %v17751_v37 = vadd.f32 %v17750_v38, %v17749_v48  ;;  %v19438_v45 = vld [vmem:[%s25427_s3 + $0x14f0] sm:$0xff]   ;;  %v19443_v38 = vld [vmem:[%s25427_s3 + $0x1408] sm:$0xff]   ;;  %v19451_v30 = vld [vmem:[%s25427_s3 + $0x1498] sm:$0xff]  }
 0x419   :  { %v17752_v6 = vpop.f32.mrf.mxu0  ;;  %18029 = vmatprep.subr.bf16.mxu1 %v19421_v29  ;;  %v19440_v29 = vld [vmem:[%s25427_s3 + $0x14b0] sm:$0xff]  }
 0x41a   :  { %v7689_v43 = vadd.f32 %v17751_v37, %v7649_v62  ;;  %18044 = vmatpush3.bf16.msra.mxu0 %v19424_v56  ;;  %v19429_v62 = vld [vmem:[%s25427_s3 + $0x13c0] sm:$0xff]   ;;  %v19441_v56 = vld [vmem:[%s25427_s3 + $0x1448] sm:$0xff]   ;;  %v9903_v37 = vrot.slane %v23195_v0, 1 }
 0x41b   :  { %v17753_v55 = vpop.f32.mrf.mxu0  ;;  %18045 = vmatprep.subr.bf16.mxu0 %v19426_v36  ;;  %v19442_v36 = vld [vmem:[%s25427_s3 + $0x14e8] sm:$0xff]   ;;  %v19445_v6 = vld [vmem:[%s25427_s3 + $0x1440] sm:$0xff]  }
 0x41c   :  { %18030 = vmatpush3.bf16.msra.mxu1 %v19423_v31  ;;  %v9898_v31 = vrot.slane %v23176_v10, 1 }
 0x41d   :  { %18031 = vmatprep.subr.bf16.mxu1 %v19425_v13 }
 0x41e   :  { %18046 = vmatpush3.bf16.msra.mxu0 %v19428_v57 }
 0x41f   :  { %18047 = vmatprep.subr.bf16.mxu0 %v19430_v18  ;;  %v19444_v18 = vld [vmem:[%s25427_s3 + $0x14a8] sm:$0xff]  }
 0x420   :  { %18032 = vmatpush3.bf16.msra.mxu1 %v19427_v28  ;;  %v19446_v28 = vld [vmem:[%s25427_s3 + $0x14e0] sm:$0xff]  }
 0x421   :  { %18033 = vmatprep.subr.bf16.mxu1 %v19429_v62 }
 0x422   :  { %18048 = vmatpush3.bf16.msra.mxu0 %v19432_v19 }
 0x423   :  { %18049 = vmatprep.subr.bf16.mxu0 %v19433_v8 }
 0x424   :  { %18034 = vmatpush3.bf16.msra.mxu1 %v19431_v27  ;;  %v9882_v27 = vrot.slane %v23237_v47, 2 }
 0x425   :  { %18063 = vmatprep.subr.bf16.mxu1 %v19434_v26 }
 0x426   :  { %18050 = vmatpush3.bf16.msra.mxu0 %v19435_v7  ;;  %v9914_v26 = vsel %vm2729_vm1, %v9882_v27, %v9898_v31  ;;  %v19449_v7 = vld [vmem:[%s25427_s3 + $0x14d8] sm:$0xff]   ;;  %v9884_v27 = vrot.slane %v23316_v53, 2 }
 0x427   :  { %v17771_v48 = vpop.f32.mrf.mxu1  ;;  %9874 = vmatmul.mubr.bf16.vlgmr.msra.gmra.mxu1 %v9207_v17  ;;  %18051 = vmatprep.subr.bf16.mxu0 %v19437_v51  ;;  %v9922_v50 = vpack.c.bf16 %v9914_v26, %v9914_v26  ;;  %v19453_v17 = vld [vmem:[%s25427_s3 + $0x14d0] sm:$0xff]  }
 0x428   :  { %18064 = vmatpush3.bf16.msra.mxu1 %v19436_v49  ;;  %10514 = vmatprep.mubr.bf16.mxu1 %v9925_v54  ;;  %v19454_v49 = vld [vmem:[%s25427_s3 + $0x1570] sm:$0xff]  }
 0x429   :  { %v17772_v13 = vpop.f32.mrf.mxu1  ;;  %18065 = vmatprep.subr.bf16.mxu1 %v19438_v45  ;;  %v19456_v54 = vld [vmem:[%s25427_s3 + $0x1530] sm:$0xff]  }
 0x42a   :  { %v17773_v57 = vadd.f32 %v17772_v13, %v17771_v48  ;;  %18052 = vmatpush3.bf16.msra.mxu0 %v19439_v24  ;;  %v19458_v48 = vld [vmem:[%s25427_s3 + $0x1568] sm:$0xff]   ;;  %v19462_v13 = vld [vmem:[%s25427_s3 + $0x1560] sm:$0xff]   ;;  %v19469_v26 = vld [vmem:[%s25427_s3 + $0x1550] sm:$0xff]  }
 0x42b   :  { %v17774_v55 = vpop.f32.mrf.mxu1  ;;  %18053 = vmatprep.subr.bf16.mxu0 %v19441_v56 }
 0x42c   :  { %v7729_v62 = vadd.f32 %v17773_v57, %v7689_v43  ;;  %18066 = vmatpush3.bf16.msra.mxu1 %v19440_v29  ;;  %v9887_v43 = vrot.slane %v23239_v16, 2  ;;  %v19459_v57 = vld [vmem:[%s25427_s3 + $0x1488] sm:$0xff]   ;;  %v19464_v55 = vld [vmem:[%s25427_s3 + $0x1520] sm:$0xff]  }
 0x42d   :  { %v17775_v19 = vpop.f32.mrf.mxu1  ;;  %18067 = vmatprep.subr.bf16.mxu1 %v19442_v36  ;;  %v19455_v36 = vld [vmem:[%s25427_s3 + $0x1490] sm:$0xff]  }
 0x42e   :  { %v23713_v8 = vadd.f32 %v7729_v62, %v23492_v41  ;;  %18054 = vmatpush3.bf16.msra.mxu0 %v19443_v38  ;;  %v19448_v41 = vld [vmem:[%s25427_s3 + $0x14a0] sm:$0xff]   ;;  %v9919_v51 = vsel %vm2729_vm1, %v9887_v43, %v9903_v37  ;;  %v19457_v38 = vld [vmem:[%s25427_s3 + $0x14c8] sm:$0xff]   ;;  %v19465_v62 = vld [vmem:[%s25427_s3 + $0x1558] sm:$0xff]   ;;  %v9905_v19 = vrot.slane %v23288_v9, 1 }
 0x42f   :  { %18055 = vmatprep.subr.bf16.mxu0 %v19445_v6  ;;  %v9927_v45 = vpack.c.bf16 %v9919_v51, %v9919_v51  ;;  %v19460_v37 = vld [vmem:[%s25427_s3 + $0x1528] sm:$0xff]   ;;  %v19467_v43 = vld [vmem:[%s25427_s3 + $0x1518] sm:$0xff]  }
 0x430   :  { %18068 = vmatpush3.bf16.msra.mxu1 %v19444_v18  ;;  %v19461_v18 = vld [vmem:[%s25427_s3 + $0x14c0] sm:$0xff]  }
 0x431   :  { %18069 = vmatprep.subr.bf16.mxu1 %v19446_v28  ;;  %v9900_v28 = vrot.slane %v23286_v39, 1 }
 0x432   :  { %18056 = vmatpush3.bf16.msra.mxu0 %v19447_v20  ;;  %v19463_v20 = vld [vmem:[%s25427_s3 + $0x1480] sm:$0xff]  }
 0x433   :  { %18085 = vmatprep.subr.bf16.mxu0 %v19450_v40  ;;  %v19466_v40 = vld [vmem:[%s25427_s3 + $0x15f8] sm:$0xff]  }
 0x434   :  { %18070 = vmatpush3.bf16.msra.mxu1 %v19448_v41  ;;  %v9889_v41 = vrot.slane %v23324_v35, 2 }
 0x435   :  { %v17793_v24 = vpop.f32.mrf.mxu0  ;;  %10475 = vmatmul.mubr.bf16.vlgmr.msra.gmra.mxu0 %v9922_v50  ;;  %18071 = vmatprep.subr.bf16.mxu1 %v19449_v7  ;;  %v9916_v7 = vsel %vm2729_vm1, %v9884_v27, %v9900_v28  ;;  %v10620_v28 = vrot.slane %v23065_v44, 2  ;;  %v19480_v27 = vld [vmem:[%s25427_s3 + $0x15a0] sm:$0xff]  }
 0x436   :  { %18086 = vmatpush3.bf16.msra.mxu0 %v19452_v3  ;;  %10554 = vmatprep.mubr.bf16.mxu0 %v9927_v45  ;;  %v19468_v3 = vld [vmem:[%s25427_s3 + $0x15b8] sm:$0xff]   ;;  %v9921_v51 = vsel %vm2729_vm1, %v9889_v41, %v9905_v19  ;;  %v9924_v50 = vpack.c.bf16 %v9916_v7, %v9916_v7 }
 0x437   :  { %v17794_v29 = vpop.f32.mrf.mxu0  ;;  %18087 = vmatprep.subr.bf16.mxu0 %v19454_v49  ;;  %v19471_v49 = vld [vmem:[%s25427_s3 + $0x1510] sm:$0xff]   ;;  %v9929_v45 = vpack.c.bf16 %v9921_v51, %v9921_v51  ;;  %v19482_v19 = vld [vmem:[%s25427_s3 + $0x1678] sm:$0xff]  }
 0x438   :  { %18072 = vmatpush3.bf16.msra.mxu1 %v19451_v30  ;;  %v17795_v56 = vadd.f32 %v17794_v29, %v17793_v24  ;;  %v19470_v30 = vld [vmem:[%s25427_s3 + $0x15f0] sm:$0xff]   ;;  %v19475_v29 = vld [vmem:[%s25427_s3 + $0x1508] sm:$0xff]   ;;  %v19484_v41 = vld [vmem:[%s25427_s3 + $0x1638] sm:$0xff]  }
 0x439   :  { %v17796_v31 = vpop.f32.mrf.mxu0  ;;  %18073 = vmatprep.subr.bf16.mxu1 %v19453_v17  ;;  %v19472_v17 = vld [vmem:[%s25427_s3 + $0x15b0] sm:$0xff]   ;;  %v19483_v7 = vld [vmem:[%s25427_s3 + $0x1598] sm:$0xff]  }
 0x43a   :  { %18088 = vmatpush3.bf16.msra.mxu0 %v19456_v54  ;;  %v19473_v54 = vld [vmem:[%s25427_s3 + $0x1548] sm:$0xff]   ;;  %v19477_v31 = vld [vmem:[%s25427_s3 + $0x1540] sm:$0xff]  }
 0x43b   :  { %v17797_v6 = vpop.f32.mrf.mxu0  ;;  %18089 = vmatprep.subr.bf16.mxu0 %v19458_v48  ;;  %v19474_v48 = vld [vmem:[%s25427_s3 + $0x15e8] sm:$0xff]  }
 0x43c   :  { %18074 = vmatpush3.bf16.msra.mxu1 %v19455_v36  ;;  %v19476_v6 = vld [vmem:[%s25427_s3 + $0x15a8] sm:$0xff]  }
 0x43d   :  { %18075 = vmatprep.subr.bf16.mxu1 %v19457_v38 }
 0x43e   :  { %18090 = vmatpush3.bf16.msra.mxu0 %v19460_v37 }
 0x43f   :  { %18091 = vmatprep.subr.bf16.mxu0 %v19462_v13 }
 0x440   :  { %18076 = vmatpush3.bf16.msra.mxu1 %v19459_v57  ;;  %v9902_v57 = vrot.slane %v23356_v14, 1 }
 0x441   :  { %18077 = vmatprep.subr.bf16.mxu1 %v19461_v18 }
 0x442   :  { %18092 = vmatpush3.bf16.msra.mxu0 %v19464_v55  ;;  %v19478_v55 = vld [vmem:[%s25427_s3 + $0x15e0] sm:$0xff]  }
 0x443   :  { %18093 = vmatprep.subr.bf16.mxu0 %v19465_v62  ;;  %v9886_v62 = vrot.slane %v23374_v2, 2 }
 0x444   :  { %18078 = vmatpush3.bf16.msra.mxu1 %v19463_v20  ;;  %v10604_v20 = vrot.slane %v23095_v34, 3 }
 0x445   :  { %18107 = vmatprep.subr.bf16.mxu1 %v19466_v40  ;;  %v9918_v40 = vsel %vm2729_vm1, %v9886_v62, %v9902_v57 }
 0x446   :  { %18094 = vmatpush3.bf16.msra.mxu0 %v19467_v43  ;;  %v19481_v43 = vld [vmem:[%s25427_s3 + $0x15d8] sm:$0xff]   ;;  %v9926_v51 = vpack.c.bf16 %v9918_v40, %v9918_v40 }
 0x447   :  { %v17815_v24 = vpop.f32.mrf.mxu1  ;;  %10515 = vmatmul.mubr.bf16.vlgmr.msra.gmra.mxu1 %v9924_v50  ;;  %18095 = vmatprep.subr.bf16.mxu0 %v19469_v26  ;;  %v10636_v26 = vsel %vm2729_vm1, %v10604_v20, %v10620_v28  ;;  %v19485_v50 = vld [vmem:[%s25427_s3 + $0x15d0] sm:$0xff]  }
 0x448   :  { %18108 = vmatpush3.bf16.msra.mxu1 %v19468_v3  ;;  %10594 = vmatprep.mubr.bf16.mxu1 %v9929_v45  ;;  %v19486_v3 = vld [vmem:[%s25427_s3 + $0x1670] sm:$0xff]  }
 0x449   :  { %v17816_v36 = vpop.f32.mrf.mxu1  ;;  %18109 = vmatprep.subr.bf16.mxu1 %v19470_v30  ;;  %v10644_v30 = vpack.c.bf16 %v10636_v26, %v10636_v26  ;;  %v19488_v45 = vld [vmem:[%s25427_s3 + $0x1630] sm:$0xff]  }
 0x44a   :  { %v17817_v38 = vadd.f32 %v17816_v36, %v17815_v24  ;;  %18096 = vmatpush3.bf16.msra.mxu0 %v19471_v49  ;;  %v19490_v24 = vld [vmem:[%s25427_s3 + $0x1668] sm:$0xff]  }
 0x44b   :  { %v17818_v37 = vpop.f32.mrf.mxu1  ;;  %18097 = vmatprep.subr.bf16.mxu0 %v19473_v54  ;;  %v19489_v36 = vld [vmem:[%s25427_s3 + $0x15c8] sm:$0xff]  }
 0x44c   :  { %v8370_v13 = vadd.f32 %v17817_v38, %v17795_v56  ;;  %18110 = vmatpush3.bf16.msra.mxu1 %v19472_v17  ;;  %v19479_v56 = vld [vmem:[%s25427_s3 + $0x1500] sm:$0xff]  }
 0x44d   :  { %v17819_v18 = vpop.f32.mrf.mxu1  ;;  %18111 = vmatprep.subr.bf16.mxu1 %v19474_v48  ;;  %v19487_v48 = vld [vmem:[%s25427_s3 + $0x1590] sm:$0xff]  }
 0x44e   :  { %18098 = vmatpush3.bf16.msra.mxu0 %v19475_v29 }
 0x44f   :  { %18099 = vmatprep.subr.bf16.mxu0 %v19477_v31 }
 0x450   :  { %18112 = vmatpush3.bf16.msra.mxu1 %v19476_v6 }
 0x451   :  { %18113 = vmatprep.subr.bf16.mxu1 %v19478_v55 }
 0x452   :  { %18100 = vmatpush3.bf16.msra.mxu0 %v19479_v56 }
 0x453   :  { %18129 = vmatprep.subr.bf16.mxu0 %v19482_v19 }
 0x454   :  { %18114 = vmatpush3.bf16.msra.mxu1 %v19480_v27 }
 0x455   :  { %v17837_v49 = vpop.f32.mrf.mxu0  ;;  %10555 = vmatmul.mubr.bf16.vlgmr.msra.gmra.mxu0 %v9926_v51  ;;  %18115 = vmatprep.subr.bf16.mxu1 %v19481_v43 }
 0x456   :  { %18130 = vmatpush3.bf16.msra.mxu0 %v19484_v41  ;;  %11195 = vmatprep.mubr.bf16.mxu0 %v10644_v30 }
 0x457   :  { %v17838_v17 = vpop.f32.mrf.mxu0  ;;  %18131 = vmatprep.subr.bf16.mxu0 %v19486_v3 }
 0x458   :  { %18116 = vmatpush3.bf16.msra.mxu1 %v19483_v7  ;;  %v17839_v54 = vadd.f32 %v17838_v17, %v17837_v49 }
 0x459   :  { %v17840_v29 = vpop.f32.mrf.mxu0  ;;  %18117 = vmatprep.subr.bf16.mxu1 %v19485_v50 }
 0x45a   :  { %12 = vsyncpa [#allocation3], 0  ;;  %v8410_v31 = vadd.f32 %v17839_v54, %v8370_v13  ;;  %18132 = vmatpush3.bf16.msra.mxu0 %v19488_v45  ;;  %v19492_v38 = vld [vmem:[%s25427_s3 + $0x1628] sm:$0xff]   ;;  %v19494_v6 = vld [vmem:[%s25427_s3 + $0x1660] sm:$0xff]   ;;  %v9904_v55 = vrot.slane %v23416_v4, 1  ;;  %v10622_v56 = vrot.slane %v23132_v21, 2 }
 0x45b   :  { %v17841_v37 = vpop.f32.mrf.mxu0  ;;  %18133 = vmatprep.subr.bf16.mxu0 %v19490_v24  ;;  %v19491_v57 = vld [vmem:[%s25427_s3 + $0x1588] sm:$0xff]   ;;  %v19493_v13 = vld [vmem:[%s25427_s3 + $0x15c0] sm:$0xff]   ;;  %v19497_v28 = vld [vmem:[%s25427_s3 + $0x1658] sm:$0xff]   ;;  %v9888_v19 = vrot.slane %v23442_v25, 2  ;;  %v10606_v27 = vrot.slane %v23174_v15, 3  ;;  %vm19965_vm2 = vmmov 0  }
 0x45c   :  { %18118 = vmatpush3.bf16.msra.mxu1 %v19487_v48  ;;  %v19496_v18 = vld [vmem:[%s25427_s3 + $0x1620] sm:$0xff]   ;;  %v19498_v20 = vld [vmem:[%s25427_s3 + $0x16f8] sm:$0xff]   ;;  %v19501_v26 = vld [vmem:[%s25427_s3 + $0x1650] sm:$0xff]   ;;  %vm15658_vm3 = vcmask 523264   ;;  %s19966_s20 = smov [#allocation2]   ;;  %vm15732_vm4 = vcmask 9216  }
 0x45d   :  { %18119 = vmatprep.subr.bf16.mxu1 %v19489_v36  ;;  %v19495_v62 = vld [vmem:[%s25427_s3 + $0x1580] sm:$0xff]   ;;  %v9920_v40 = vsel %vm2729_vm1, %v9888_v19, %v9904_v55  ;;  %v19499_v43 = vld [vmem:[%s25427_s3 + $0x1618] sm:$0xff]   ;;  %v10638_v41 = vsel %vm2729_vm1, %v10606_v27, %v10622_v56  ;;  %v19502_v51 = vld [vmem:[%s25427_s3 + $0x16f0] sm:$0xff]   ;;  %v10624_v55 = vrot.slane %v23195_v0, 2  ;;  %v10603_v56 = vrot.slane %v23237_v47, 3  ;;  %s15740_s21 = sshll.u32 %s19966_s20, 4  ;;  %s15741_s21 = int_to_ptr.vmem [resolvable:$true] %s15740_s21 }
 0x45e   :  { %18134 = vmatpush3.bf16.msra.mxu0 %v19492_v38  ;;  %v19500_v7 = vld [vmem:[%s25427_s3 + $0x16b8] sm:$0xff]   ;;  %v9928_v3 = vpack.c.bf16 %v9920_v40, %v9920_v40  ;;  %v10646_v30 = vpack.c.bf16 %v10638_v41, %v10638_v41  ;;  %v19503_v49 = vld [vmem:[%s25427_s3 + $0x1610] sm:$0xff]   ;;  %v19505_v45 = vld [vmem:[%s25427_s3 + $0x1648] sm:$0xff]   ;;  %v10608_v19 = vrot.slane %v23239_v16, 3  ;;  %s19941_s2 = scalar_lea.vmem %s15741_s21, 32  ;;  %p19946_p1 = scmp.lt.s32.totalorder %s15741_s21, %s15741_s21 }
 0x45f   :  { %18135 = vmatprep.subr.bf16.mxu0 %v19494_v6  ;;  %v19504_v24 = vld [vmem:[%s25427_s3 + $0x16b0] sm:$0xff]   ;;  %v19506_v54 = vld [vmem:[%s25427_s3 + $0x16e8] sm:$0xff]   ;;  %v19509_v38 = vld [vmem:[%s25427_s3 + $0x1640] sm:$0xff]   ;;  %p19942_p0 = scmp.ne.s32.totalorder %s15741_s21, %s19941_s2  ;;  %p19947_p2 = scmp.lt.s32.totalorder %s19941_s2, %s19941_s2 }
 0x460   :  { %18120 = vmatpush3.bf16.msra.mxu1 %v19491_v57  ;;  %v19507_v29 = vld [vmem:[%s25427_s3 + $0x1608] sm:$0xff]   ;;  %v10619_v57 = vrot.slane %v23176_v10, 2  ;;  %v19513_v27 = vld [vmem:[%s25427_s3 + $0x16d8] sm:$0xff]   ;;  %v10640_v40 = vsel %vm2729_vm1, %v10608_v19, %v10624_v55  ;;  %v10626_v55 = vrot.slane %v23288_v9, 2  ;;  %v10610_v19 = vrot.slane %v23324_v35, 3 }
 0x461   :  { %18121 = vmatprep.subr.bf16.mxu1 %v19493_v13  ;;  %v19508_v6 = vld [vmem:[%s25427_s3 + $0x16a8] sm:$0xff]   ;;  %p19948_p3 = por %p19947_p2, %p19946_p1 }
 0x462   :  { %18136 = vmatpush3.bf16.msra.mxu0 %v19496_v18  ;;  %v19510_v18 = vld [vmem:[%s25427_s3 + $0x16e0] sm:$0xff]  }
 0x463   :  { %18137 = vmatprep.subr.bf16.mxu0 %v19497_v28  ;;  %p19949_p4 = pnand %p19948_p3, %p19942_p0 }
 0x464   :  { %18122 = vmatpush3.bf16.msra.mxu1 %v19495_v62  ;;  %v19514_v62 = vld [vmem:[%s25427_s3 + $0x1778] sm:$0xff]  }
 0x465   :  { %18151 = vmatprep.subr.bf16.mxu1 %v19498_v20  ;;  %v10635_v20 = vsel %vm2729_vm1, %v10603_v56, %v10619_v57  ;;  %v19528_v57 = vld [vmem:[%s25427_s3 + $0x1720] sm:$0xff]   ;;  %v10605_v56 = vrot.slane %v23316_v53, 3 }
 0x466   :  { %18138 = vmatpush3.bf16.msra.mxu0 %v19499_v43  ;;  %v19516_v43 = vld [vmem:[%s25427_s3 + $0x1738] sm:$0xff]   ;;  %v10643_v41 = vpack.c.bf16 %v10635_v20, %v10635_v20 }
 0x467   :  { %v17859_v50 = vpop.f32.mrf.mxu1  ;;  %10595 = vmatmul.mubr.bf16.vlgmr.msra.gmra.mxu1 %v9928_v3  ;;  %18139 = vmatprep.subr.bf16.mxu0 %v19501_v26  ;;  %v19518_v26 = vld [vmem:[%s25427_s3 + $0x1770] sm:$0xff]   ;;  %v10648_v3 = vpack.c.bf16 %v10640_v40, %v10640_v40  ;;  %v19531_v20 = vld [vmem:[%s25427_s3 + $0x1718] sm:$0xff]  }
 0x468   :  { %18152 = vmatpush3.bf16.msra.mxu1 %v19500_v7  ;;  %11235 = vmatprep.mubr.bf16.mxu1 %v10646_v30  ;;  %v19515_v7 = vld [vmem:[%s25427_s3 + $0x1698] sm:$0xff]   ;;  %v19517_v30 = vld [vmem:[%s25427_s3 + $0x16d0] sm:$0xff]  }
 0x469   :  { %v17860_v17 = vpop.f32.mrf.mxu1  ;;  %18153 = vmatprep.subr.bf16.mxu1 %v19502_v51  ;;  %v19533_v40 = vld [vmem:[%s25427_s3 + $0x1750] sm:$0xff]  }
 0x46a   :  { %v17861_v48 = vadd.f32 %v17860_v17, %v17859_v50  ;;  %18140 = vmatpush3.bf16.msra.mxu0 %v19503_v49  ;;  %v19520_v49 = vld [vmem:[%s25427_s3 + $0x1730] sm:$0xff]  }
 0x46b   :  { %v17862_v36 = vpop.f32.mrf.mxu1  ;;  %18141 = vmatprep.subr.bf16.mxu0 %v19505_v45  ;;  %v19522_v45 = vld [vmem:[%s25427_s3 + $0x1768] sm:$0xff]   ;;  %v19519_v17 = vld [vmem:[%s25427_s3 + $0x1690] sm:$0xff]  }
 0x46c   :  { %v8450_v37 = vadd.f32 %v17861_v48, %v8410_v31  ;;  %18154 = vmatpush3.bf16.msra.mxu1 %v19504_v24  ;;  %v19511_v31 = vld [vmem:[%s25427_s3 + $0x1600] sm:$0xff]   ;;  %v19521_v48 = vld [vmem:[%s25427_s3 + $0x16c8] sm:$0xff]  }
 0x46d   :  { %v17863_v13 = vpop.f32.mrf.mxu1  ;;  %18155 = vmatprep.subr.bf16.mxu1 %v19506_v54 }
 0x46e   :  { %v23932_v28 = vadd.f32 %v8450_v37, %v23713_v8  ;;  %18142 = vmatpush3.bf16.msra.mxu0 %v19507_v29  ;;  %v19512_v8 = vld [vmem:[%s25427_s3 + $0x16a0] sm:$0xff]   ;;  %v19524_v29 = vld [vmem:[%s25427_s3 + $0x1728] sm:$0xff]   ;;  %v10621_v13 = vrot.slane %v23286_v39, 2 }
 0x46f   :  { %18143 = vmatprep.subr.bf16.mxu0 %v19509_v38  ;;  %v19526_v38 = vld [vmem:[%s25427_s3 + $0x1760] sm:$0xff]   ;;  %v19523_v37 = vld [vmem:[%s25427_s3 + $0x1688] sm:$0xff]  }
 0x470   :  { %18156 = vmatpush3.bf16.msra.mxu1 %v19508_v6  ;;  %v19525_v6 = vld [vmem:[%s25427_s3 + $0x16c0] sm:$0xff]  }
 0x471   :  { %18157 = vmatprep.subr.bf16.mxu1 %v19510_v18  ;;  %v19529_v18 = vld [vmem:[%s25427_s3 + $0x1758] sm:$0xff]  }
 0x472   :  { %18144 = vmatpush3.bf16.msra.mxu0 %v19511_v31  ;;  %v19527_v31 = vld [vmem:[%s25427_s3 + $0x1680] sm:$0xff]  }
 0x473   :  { %18173 = vmatprep.subr.bf16.mxu0 %v19514_v62  ;;  %v19530_v62 = vld [vmem:[%s25427_s3 + $0x17f8] sm:$0xff]  }
 0x474   :  { %18158 = vmatpush3.bf16.msra.mxu1 %v19512_v8  ;;  %v10637_v8 = vsel %vm2729_vm1, %v10605_v56, %v10621_v13  ;;  %v11341_v13 = vrot.slane %v23065_v44, 3  ;;  %v19544_v56 = vld [vmem:[%s25427_s3 + $0x17a0] sm:$0xff]  }
 0x475   :  { %v17881_v51 = vpop.f32.mrf.mxu0  ;;  %11196 = vmatmul.mubr.bf16.vlgmr.msra.gmra.mxu0 %v10643_v41  ;;  %18159 = vmatprep.subr.bf16.mxu1 %v19513_v27  ;;  %v10642_v27 = vsel %vm2729_vm1, %v10610_v19, %v10626_v55  ;;  %v10645_v41 = vpack.c.bf16 %v10637_v8, %v10637_v8  ;;  %v19546_v55 = vld [vmem:[%s25427_s3 + $0x1878] sm:$0xff]  }
 0x476   :  { %18174 = vmatpush3.bf16.msra.mxu0 %v19516_v43  ;;  %11275 = vmatprep.mubr.bf16.mxu0 %v10648_v3  ;;  %v19532_v43 = vld [vmem:[%s25427_s3 + $0x17b8] sm:$0xff]   ;;  %v19535_v3 = vld [vmem:[%s25427_s3 + $0x1710] sm:$0xff]  }
 0x477   :  { %v17882_v50 = vpop.f32.mrf.mxu0  ;;  %18175 = vmatprep.subr.bf16.mxu0 %v19518_v26  ;;  %v19534_v26 = vld [vmem:[%s25427_s3 + $0x17f0] sm:$0xff]   ;;  %v19545_v19 = vld [vmem:[%s25427_s3 + $0x17d8] sm:$0xff]  }
 0x478   :  { %18160 = vmatpush3.bf16.msra.mxu1 %v19515_v7  ;;  %v17883_v24 = vadd.f32 %v17882_v50, %v17881_v51  ;;  %v10650_v7 = vpack.c.bf16 %v10642_v27, %v10642_v27 }
 0x479   :  { %v17884_v54 = vpop.f32.mrf.mxu0  ;;  %18161 = vmatprep.subr.bf16.mxu1 %v19517_v30  ;;  %v19537_v30 = vld [vmem:[%s25427_s3 + $0x1748] sm:$0xff]  }
 0x47a   :  { %18176 = vmatpush3.bf16.msra.mxu0 %v19520_v49  ;;  %v19536_v49 = vld [vmem:[%s25427_s3 + $0x17b0] sm:$0xff]   ;;  %v19539_v54 = vld [vmem:[%s25427_s3 + $0x1708] sm:$0xff]  }
 0x47b   :  { %v17885_v36 = vpop.f32.mrf.mxu0  ;;  %18177 = vmatprep.subr.bf16.mxu0 %v19522_v45  ;;  %v19538_v45 = vld [vmem:[%s25427_s3 + $0x17e8] sm:$0xff]  }
 0x47c   :  { %18162 = vmatpush3.bf16.msra.mxu1 %v19519_v17 }
 0x47d   :  { %18163 = vmatprep.subr.bf16.mxu1 %v19521_v48 }
 0x47e   :  { %18178 = vmatpush3.bf16.msra.mxu0 %v19524_v29  ;;  %v19541_v29 = vld [vmem:[%s25427_s3 + $0x1740] sm:$0xff]  }
 0x47f   :  { %18179 = vmatprep.subr.bf16.mxu0 %v19526_v38  ;;  %v19540_v38 = vld [vmem:[%s25427_s3 + $0x17a8] sm:$0xff]  }
 0x480   :  { %18164 = vmatpush3.bf16.msra.mxu1 %v19523_v37  ;;  %v10623_v37 = vrot.slane %v23356_v14, 2 }
 0x481   :  { %18165 = vmatprep.subr.bf16.mxu1 %v19525_v6 }
 0x482   :  { %18180 = vmatpush3.bf16.msra.mxu0 %v19528_v57  ;;  %v19542_v57 = vld [vmem:[%s25427_s3 + $0x17e0] sm:$0xff]  }
 0x483   :  { %18181 = vmatprep.subr.bf16.mxu0 %v19529_v18  ;;  %v10607_v18 = vrot.slane %v23374_v2, 3 }
 0x484   :  { %18166 = vmatpush3.bf16.msra.mxu1 %v19527_v31  ;;  %v11325_v31 = vrot.slane %v23095_v34, 4 }
 0x485   :  { %18195 = vmatprep.subr.bf16.mxu1 %v19530_v62  ;;  %v10639_v62 = vsel %vm2729_vm1, %v10607_v18, %v10623_v37  ;;  %v19555_v37 = vld [vmem:[%s25427_s3 + $0x1788] sm:$0xff]   ;;  %v19559_v18 = vld [vmem:[%s25427_s3 + $0x1780] sm:$0xff]  }
 0x486   :  { %18182 = vmatpush3.bf16.msra.mxu0 %v19531_v20  ;;  %v11357_v8 = vsel %vm2729_vm1, %v11325_v31, %v11341_v13  ;;  %v19548_v20 = vld [vmem:[%s25427_s3 + $0x1838] sm:$0xff]   ;;  %v10647_v27 = vpack.c.bf16 %v10639_v62, %v10639_v62 }
 0x487   :  { %v17903_v51 = vpop.f32.mrf.mxu1  ;;  %11236 = vmatmul.mubr.bf16.vlgmr.msra.gmra.mxu1 %v10645_v41  ;;  %18183 = vmatprep.subr.bf16.mxu0 %v19533_v40  ;;  %v19550_v40 = vld [vmem:[%s25427_s3 + $0x1870] sm:$0xff]   ;;  %v11365_v41 = vpack.c.bf16 %v11357_v8, %v11357_v8  ;;  %v19561_v13 = vld [vmem:[%s25427_s3 + $0x1858] sm:$0xff]  }
 0x488   :  { %18196 = vmatpush3.bf16.msra.mxu1 %v19532_v43  ;;  %11315 = vmatprep.mubr.bf16.mxu1 %v10650_v7  ;;  %v19547_v43 = vld [vmem:[%s25427_s3 + $0x1798] sm:$0xff]   ;;  %v19549_v7 = vld [vmem:[%s25427_s3 + $0x17d0] sm:$0xff]  }
 0x489   :  { %v17904_v50 = vpop.f32.mrf.mxu1  ;;  %18197 = vmatprep.subr.bf16.mxu1 %v19534_v26  ;;  %v19562_v31 = vld [vmem:[%s25427_s3 + $0x18f8] sm:$0xff]  }
 0x48a   :  { %v17905_v17 = vadd.f32 %v17904_v50, %v17903_v51  ;;  %18184 = vmatpush3.bf16.msra.mxu0 %v19535_v3  ;;  %v19552_v3 = vld [vmem:[%s25427_s3 + $0x1830] sm:$0xff]  }
 0x48b   :  { %v17906_v48 = vpop.f32.mrf.mxu1  ;;  %18185 = vmatprep.subr.bf16.mxu0 %v19537_v30  ;;  %v19554_v30 = vld [vmem:[%s25427_s3 + $0x1868] sm:$0xff]   ;;  %v19551_v50 = vld [vmem:[%s25427_s3 + $0x1790] sm:$0xff]  }
 0x48c   :  { %v9083_v36 = vadd.f32 %v17905_v17, %v17883_v24  ;;  %18198 = vmatpush3.bf16.msra.mxu1 %v19536_v49  ;;  %v19543_v24 = vld [vmem:[%s25427_s3 + $0x1700] sm:$0xff]   ;;  %v19553_v17 = vld [vmem:[%s25427_s3 + $0x17c8] sm:$0xff]  }
 0x48d   :  { %v17907_v6 = vpop.f32.mrf.mxu1  ;;  %18199 = vmatprep.subr.bf16.mxu1 %v19538_v45  ;;  %v19556_v48 = vld [vmem:[%s25427_s3 + $0x1828] sm:$0xff]  }
 0x48e   :  { %18186 = vmatpush3.bf16.msra.mxu0 %v19539_v54  ;;  %v19560_v6 = vld [vmem:[%s25427_s3 + $0x1820] sm:$0xff]  }
 0x48f   :  { %18187 = vmatprep.subr.bf16.mxu0 %v19541_v29 }
 0x490   :  { %18200 = vmatpush3.bf16.msra.mxu1 %v19540_v38  ;;  %v19558_v38 = vld [vmem:[%s25427_s3 + $0x1860] sm:$0xff]  }
 0x491   :  { %18201 = vmatprep.subr.bf16.mxu1 %v19542_v57  ;;  %v10625_v57 = vrot.slane %v23416_v4, 2 }
 0x492   :  { %18188 = vmatpush3.bf16.msra.mxu0 %v19543_v24  ;;  %v11343_v24 = vrot.slane %v23132_v21, 3 }
 0x493   :  { %18217 = vmatprep.subr.bf16.mxu0 %v19546_v55  ;;  %v10609_v55 = vrot.slane %v23442_v25, 3 }
 0x494   :  { %18202 = vmatpush3.bf16.msra.mxu1 %v19544_v56  ;;  %v11327_v56 = vrot.slane %v23174_v15, 4 }
 0x495   :  { %v17925_v26 = vpop.f32.mrf.mxu0  ;;  %11276 = vmatmul.mubr.bf16.vlgmr.msra.gmra.mxu0 %v10647_v27  ;;  %18203 = vmatprep.subr.bf16.mxu1 %v19545_v19  ;;  %v10641_v62 = vsel %vm2729_vm1, %v10609_v55, %v10625_v57  ;;  %v19563_v19 = vld [vmem:[%s25427_s3 + $0x1818] sm:$0xff]   ;;  %v11345_v57 = vrot.slane %v23195_v0, 3  ;;  %v11329_v55 = vrot.slane %v23239_v16, 4 }
 0x496   :  { %18218 = vmatpush3.bf16.msra.mxu0 %v19548_v20  ;;  %11916 = vmatprep.mubr.bf16.mxu0 %v11365_v41  ;;  %v11359_v8 = vsel %vm2729_vm1, %v11327_v56, %v11343_v24  ;;  %v19565_v20 = vld [vmem:[%s25427_s3 + $0x1850] sm:$0xff]   ;;  %v19564_v27 = vld [vmem:[%s25427_s3 + $0x18b8] sm:$0xff]   ;;  %v11324_v24 = vrot.slane %v23237_v47, 4 }
 0x497   :  { %v17926_v51 = vpop.f32.mrf.mxu0  ;;  %18219 = vmatprep.subr.bf16.mxu0 %v19550_v40  ;;  %v10649_v40 = vpack.c.bf16 %v10641_v62, %v10641_v62  ;;  %v11367_v41 = vpack.c.bf16 %v11359_v8, %v11359_v8  ;;  %v19577_v56 = vld [vmem:[%s25427_s3 + $0x18d8] sm:$0xff]   ;;  %v11361_v62 = vsel %vm2729_vm1, %v11329_v55, %v11345_v57  ;;  %v11347_v57 = vrot.slane %v23288_v9, 3 }
 0x498   :  { %18204 = vmatpush3.bf16.msra.mxu1 %v19547_v43  ;;  %v17927_v49 = vadd.f32 %v17926_v51, %v17925_v26  ;;  %v19566_v43 = vld [vmem:[%s25427_s3 + $0x18f0] sm:$0xff]   ;;  %v11331_v55 = vrot.slane %v23324_v35, 4 }
 0x499   :  { %v17928_v45 = vpop.f32.mrf.mxu0  ;;  %18205 = vmatprep.subr.bf16.mxu1 %v19549_v7  ;;  %v19567_v26 = vld [vmem:[%s25427_s3 + $0x1810] sm:$0xff]  }
 0x49a   :  { %v9123_v54 = vadd.f32 %v17927_v49, %v9083_v36  ;;  %18220 = vmatpush3.bf16.msra.mxu0 %v19552_v3  ;;  %v19557_v36 = vld [vmem:[%s25427_s3 + $0x17c0] sm:$0xff]   ;;  %v19569_v3 = vld [vmem:[%s25427_s3 + $0x1848] sm:$0xff]   ;;  %v19568_v51 = vld [vmem:[%s25427_s3 + $0x18b0] sm:$0xff]  }
 0x49b   :  { %v17929_v29 = vpop.f32.mrf.mxu0  ;;  %18221 = vmatprep.subr.bf16.mxu0 %v19554_v30  ;;  %v19570_v49 = vld [vmem:[%s25427_s3 + $0x18e8] sm:$0xff]  }
 0x49c   :  { %18206 = vmatpush3.bf16.msra.mxu1 %v19551_v50  ;;  %v19571_v45 = vld [vmem:[%s25427_s3 + $0x1808] sm:$0xff]  }
 0x49d   :  { %18207 = vmatprep.subr.bf16.mxu1 %v19553_v17 }
 0x49e   :  { %18222 = vmatpush3.bf16.msra.mxu0 %v19556_v48  ;;  %v19573_v48 = vld [vmem:[%s25427_s3 + $0x1840] sm:$0xff]  }
 0x49f   :  { %18223 = vmatprep.subr.bf16.mxu0 %v19558_v38  ;;  %v19572_v38 = vld [vmem:[%s25427_s3 + $0x18a8] sm:$0xff]  }
 0x4a0   :  { %18208 = vmatpush3.bf16.msra.mxu1 %v19555_v37  ;;  %v11340_v37 = vrot.slane %v23176_v10, 3 }
 0x4a1   :  { %18209 = vmatprep.subr.bf16.mxu1 %v19557_v36 }
 0x4a2   :  { %18224 = vmatpush3.bf16.msra.mxu0 %v19560_v6  ;;  %v19574_v6 = vld [vmem:[%s25427_s3 + $0x18e0] sm:$0xff]  }
 0x4a3   :  { %18225 = vmatprep.subr.bf16.mxu0 %v19561_v13 }
 0x4a4   :  { %18210 = vmatpush3.bf16.msra.mxu1 %v19559_v18  ;;  %v19578_v18 = vld [vmem:[%s25427_s3 + $0x1978] sm:$0xff]  }
 0x4a5   :  { %18239 = vmatprep.subr.bf16.mxu1 %v19562_v31  ;;  %v11356_v31 = vsel %vm2729_vm1, %v11324_v24, %v11340_v37  ;;  %v19592_v37 = vld [vmem:[%s25427_s3 + $0x1920] sm:$0xff]   ;;  %v11326_v24 = vrot.slane %v23316_v53, 4 }
 0x4a6   :  { %18226 = vmatpush3.bf16.msra.mxu0 %v19563_v19  ;;  %v19580_v19 = vld [vmem:[%s25427_s3 + $0x1938] sm:$0xff]   ;;  %v11364_v8 = vpack.c.bf16 %v11356_v31, %v11356_v31 }
 0x4a7   :  { %v17947_v7 = vpop.f32.mrf.mxu1  ;;  %11316 = vmatmul.mubr.bf16.vlgmr.msra.gmra.mxu1 %v10649_v40  ;;  %18227 = vmatprep.subr.bf16.mxu0 %v19565_v20  ;;  %v19582_v20 = vld [vmem:[%s25427_s3 + $0x1970] sm:$0xff]   ;;  %v11369_v40 = vpack.c.bf16 %v11361_v62, %v11361_v62  ;;  %v19595_v31 = vld [vmem:[%s25427_s3 + $0x1918] sm:$0xff]  }
 0x4a8   :  { %18240 = vmatpush3.bf16.msra.mxu1 %v19564_v27  ;;  %11956 = vmatprep.mubr.bf16.mxu1 %v11367_v41  ;;  %v19579_v27 = vld [vmem:[%s25427_s3 + $0x1898] sm:$0xff]   ;;  %v19581_v41 = vld [vmem:[%s25427_s3 + $0x18d0] sm:$0xff]  }
 0x4a9   :  { %v17948_v30 = vpop.f32.mrf.mxu1  ;;  %18241 = vmatprep.subr.bf16.mxu1 %v19566_v43  ;;  %v19597_v62 = vld [vmem:[%s25427_s3 + $0x1950] sm:$0xff]  }
 0x4aa   :  { %v17949_v50 = vadd.f32 %v17948_v30, %v17947_v7  ;;  %18228 = vmatpush3.bf16.msra.mxu0 %v19567_v26  ;;  %v19584_v26 = vld [vmem:[%s25427_s3 + $0x1930] sm:$0xff]  }
 0x4ab   :  { %v17950_v17 = vpop.f32.mrf.mxu1  ;;  %18229 = vmatprep.subr.bf16.mxu0 %v19569_v3  ;;  %v19586_v3 = vld [vmem:[%s25427_s3 + $0x1968] sm:$0xff]   ;;  %v19583_v30 = vld [vmem:[%s25427_s3 + $0x1890] sm:$0xff]  }
 0x4ac   :  { %v9163_v29 = vadd.f32 %v17949_v50, %v9123_v54  ;;  %18242 = vmatpush3.bf16.msra.mxu1 %v19568_v51  ;;  %v19575_v54 = vld [vmem:[%s25427_s3 + $0x1800] sm:$0xff]   ;;  %v19585_v50 = vld [vmem:[%s25427_s3 + $0x18c8] sm:$0xff]  }
 0x4ad   :  { %v17951_v36 = vpop.f32.mrf.mxu1  ;;  %18243 = vmatprep.subr.bf16.mxu1 %v19570_v49 }
 0x4ae   :  { %v24151_v13 = vadd.f32 %v9163_v29, %v23932_v28  ;;  %18230 = vmatpush3.bf16.msra.mxu0 %v19571_v45  ;;  %v19576_v28 = vld [vmem:[%s25427_s3 + $0x18a0] sm:$0xff]   ;;  %v19588_v45 = vld [vmem:[%s25427_s3 + $0x1928] sm:$0xff]   ;;  %v11342_v36 = vrot.slane %v23286_v39, 3 }
 0x4af   :  { %18231 = vmatprep.subr.bf16.mxu0 %v19573_v48  ;;  %v19590_v48 = vld [vmem:[%s25427_s3 + $0x1960] sm:$0xff]   ;;  %v19587_v29 = vld [vmem:[%s25427_s3 + $0x1888] sm:$0xff]  }
 0x4b0   :  { %18244 = vmatpush3.bf16.msra.mxu1 %v19572_v38  ;;  %v19589_v38 = vld [vmem:[%s25427_s3 + $0x18c0] sm:$0xff]  }
 0x4b1   :  { %18245 = vmatprep.subr.bf16.mxu1 %v19574_v6  ;;  %v19593_v6 = vld [vmem:[%s25427_s3 + $0x1958] sm:$0xff]  }
 0x4b2   :  { %18232 = vmatpush3.bf16.msra.mxu0 %v19575_v54  ;;  %v19591_v54 = vld [vmem:[%s25427_s3 + $0x1880] sm:$0xff]  }
 0x4b3   :  { %18261 = vmatprep.subr.bf16.mxu0 %v19578_v18  ;;  %v19594_v18 = vld [vmem:[%s25427_s3 + $0x19f8] sm:$0xff]  }
 0x4b4   :  { %18246 = vmatpush3.bf16.msra.mxu1 %v19576_v28  ;;  %v11358_v28 = vsel %vm2729_vm1, %v11326_v24, %v11342_v36  ;;  %v12062_v36 = vrot.slane %v23065_v44, 4  ;;  %v19608_v24 = vld [vmem:[%s25427_s3 + $0x19a0] sm:$0xff]  }
 0x4b5   :  { %v17969_v43 = vpop.f32.mrf.mxu0  ;;  %11917 = vmatmul.mubr.bf16.vlgmr.msra.gmra.mxu0 %v11364_v8  ;;  %18247 = vmatprep.subr.bf16.mxu1 %v19577_v56  ;;  %v11363_v56 = vsel %vm2729_vm1, %v11331_v55, %v11347_v57  ;;  %v11366_v8 = vpack.c.bf16 %v11358_v28, %v11358_v28  ;;  %v19610_v57 = vld [vmem:[%s25427_s3 + $0x1a78] sm:$0xff]  }
 0x4b6   :  { %18262 = vmatpush3.bf16.msra.mxu0 %v19580_v19  ;;  %11996 = vmatprep.mubr.bf16.mxu0 %v11369_v40  ;;  %v19596_v19 = vld [vmem:[%s25427_s3 + $0x19b8] sm:$0xff]   ;;  %v19599_v40 = vld [vmem:[%s25427_s3 + $0x1910] sm:$0xff]  }
 0x4b7   :  { %v17970_v7 = vpop.f32.mrf.mxu0  ;;  %18263 = vmatprep.subr.bf16.mxu0 %v19582_v20  ;;  %v19598_v20 = vld [vmem:[%s25427_s3 + $0x19f0] sm:$0xff]   ;;  %v19609_v55 = vld [vmem:[%s25427_s3 + $0x19d8] sm:$0xff]  }
 0x4b8   :  { %18248 = vmatpush3.bf16.msra.mxu1 %v19579_v27  ;;  %v17971_v51 = vadd.f32 %v17970_v7, %v17969_v43  ;;  %v11371_v27 = vpack.c.bf16 %v11363_v56, %v11363_v56 }
 0x4b9   :  { %v17972_v49 = vpop.f32.mrf.mxu0  ;;  %18249 = vmatprep.subr.bf16.mxu1 %v19581_v41  ;;  %v19601_v41 = vld [vmem:[%s25427_s3 + $0x1948] sm:$0xff]  }
 0x4ba   :  { %18264 = vmatpush3.bf16.msra.mxu0 %v19584_v26  ;;  %v19600_v26 = vld [vmem:[%s25427_s3 + $0x19b0] sm:$0xff]   ;;  %v19603_v49 = vld [vmem:[%s25427_s3 + $0x1908] sm:$0xff]  }
 0x4bb   :  { %v17973_v17 = vpop.f32.mrf.mxu0  ;;  %18265 = vmatprep.subr.bf16.mxu0 %v19586_v3  ;;  %v19602_v3 = vld [vmem:[%s25427_s3 + $0x19e8] sm:$0xff]  }
 0x4bc   :  { %18250 = vmatpush3.bf16.msra.mxu1 %v19583_v30 }
 0x4bd   :  { %18251 = vmatprep.subr.bf16.mxu1 %v19585_v50 }
 0x4be   :  { %18266 = vmatpush3.bf16.msra.mxu0 %v19588_v45  ;;  %v19605_v45 = vld [vmem:[%s25427_s3 + $0x1940] sm:$0xff]  }
 0x4bf   :  { %18267 = vmatprep.subr.bf16.mxu0 %v19590_v48  ;;  %v19604_v48 = vld [vmem:[%s25427_s3 + $0x19a8] sm:$0xff]  }
 0x4c0   :  { %18252 = vmatpush3.bf16.msra.mxu1 %v19587_v29  ;;  %v11344_v29 = vrot.slane %v23356_v14, 3 }
 0x4c1   :  { %18253 = vmatprep.subr.bf16.mxu1 %v19589_v38 }
 0x4c2   :  { %18268 = vmatpush3.bf16.msra.mxu0 %v19592_v37  ;;  %v19606_v37 = vld [vmem:[%s25427_s3 + $0x19e0] sm:$0xff]  }
 0x4c3   :  { %18269 = vmatprep.subr.bf16.mxu0 %v19593_v6  ;;  %v11328_v6 = vrot.slane %v23374_v2, 4 }
 0x4c4   :  { %18254 = vmatpush3.bf16.msra.mxu1 %v19591_v54  ;;  %v12046_v54 = vrot.slane %v23095_v34, 5 }
 0x4c5   :  { %18283 = vmatprep.subr.bf16.mxu1 %v19594_v18  ;;  %v11360_v18 = vsel %vm2729_vm1, %v11328_v6, %v11344_v29  ;;  %v19619_v29 = vld [vmem:[%s25427_s3 + $0x1988] sm:$0xff]   ;;  %v19623_v6 = vld [vmem:[%s25427_s3 + $0x1980] sm:$0xff]  }
 0x4c6   :  { %18270 = vmatpush3.bf16.msra.mxu0 %v19595_v31  ;;  %v12078_v28 = vsel %vm2729_vm1, %v12046_v54, %v12062_v36  ;;  %v19612_v31 = vld [vmem:[%s25427_s3 + $0x1a38] sm:$0xff]   ;;  %v11368_v56 = vpack.c.bf16 %v11360_v18, %v11360_v18 }
 0x4c7   :  { %v17991_v43 = vpop.f32.mrf.mxu1  ;;  %11957 = vmatmul.mubr.bf16.vlgmr.msra.gmra.mxu1 %v11366_v8  ;;  %18271 = vmatprep.subr.bf16.mxu0 %v19597_v62  ;;  %v19614_v62 = vld [vmem:[%s25427_s3 + $0x1a70] sm:$0xff]   ;;  %v12086_v8 = vpack.c.bf16 %v12078_v28, %v12078_v28  ;;  %v19625_v36 = vld [vmem:[%s25427_s3 + $0x1a58] sm:$0xff]  }
 0x4c8   :  { %18284 = vmatpush3.bf16.msra.mxu1 %v19596_v19  ;;  %12036 = vmatprep.mubr.bf16.mxu1 %v11371_v27  ;;  %v19611_v19 = vld [vmem:[%s25427_s3 + $0x1998] sm:$0xff]   ;;  %v19613_v27 = vld [vmem:[%s25427_s3 + $0x19d0] sm:$0xff]  }
 0x4c9   :  { %v17992_v7 = vpop.f32.mrf.mxu1  ;;  %18285 = vmatprep.subr.bf16.mxu1 %v19598_v20  ;;  %v19626_v54 = vld [vmem:[%s25427_s3 + $0x1af8] sm:$0xff]  }
 0x4ca   :  { %v17993_v30 = vadd.f32 %v17992_v7, %v17991_v43  ;;  %18272 = vmatpush3.bf16.msra.mxu0 %v19599_v40  ;;  %v19616_v40 = vld [vmem:[%s25427_s3 + $0x1a30] sm:$0xff]  }
 0x4cb   :  { %v17994_v50 = vpop.f32.mrf.mxu1  ;;  %18273 = vmatprep.subr.bf16.mxu0 %v19601_v41  ;;  %v19618_v41 = vld [vmem:[%s25427_s3 + $0x1a68] sm:$0xff]   ;;  %v19615_v7 = vld [vmem:[%s25427_s3 + $0x1990] sm:$0xff]  }
 0x4cc   :  { %v9796_v17 = vadd.f32 %v17993_v30, %v17971_v51  ;;  %18286 = vmatpush3.bf16.msra.mxu1 %v19600_v26  ;;  %v19607_v51 = vld [vmem:[%s25427_s3 + $0x1900] sm:$0xff]   ;;  %v19617_v30 = vld [vmem:[%s25427_s3 + $0x19c8] sm:$0xff]  }
 0x4cd   :  { %v17995_v38 = vpop.f32.mrf.mxu1  ;;  %18287 = vmatprep.subr.bf16.mxu1 %v19602_v3  ;;  %v19620_v50 = vld [vmem:[%s25427_s3 + $0x1a28] sm:$0xff]  }
 0x4ce   :  { %18274 = vmatpush3.bf16.msra.mxu0 %v19603_v49  ;;  %v19624_v38 = vld [vmem:[%s25427_s3 + $0x1a20] sm:$0xff]  }
 0x4cf   :  { %18275 = vmatprep.subr.bf16.mxu0 %v19605_v45 }
 0x4d0   :  { %18288 = vmatpush3.bf16.msra.mxu1 %v19604_v48  ;;  %v19622_v48 = vld [vmem:[%s25427_s3 + $0x1a60] sm:$0xff]  }
 0x4d1   :  { %18289 = vmatprep.subr.bf16.mxu1 %v19606_v37  ;;  %v11346_v37 = vrot.slane %v23416_v4, 3 }
 0x4d2   :  { %18276 = vmatpush3.bf16.msra.mxu0 %v19607_v51  ;;  %v12064_v51 = vrot.slane %v23132_v21, 4 }
 0x4d3   :  { %18305 = vmatprep.subr.bf16.mxu0 %v19610_v57  ;;  %v11330_v57 = vrot.slane %v23442_v25, 4 }
 0x4d4   :  { %18290 = vmatpush3.bf16.msra.mxu1 %v19608_v24  ;;  %v12048_v24 = vrot.slane %v23174_v15, 5 }
 0x4d5   :  { %v18013_v20 = vpop.f32.mrf.mxu0  ;;  %11997 = vmatmul.mubr.bf16.vlgmr.msra.gmra.mxu0 %v11368_v56  ;;  %18291 = vmatprep.subr.bf16.mxu1 %v19609_v55  ;;  %v11362_v18 = vsel %vm2729_vm1, %v11330_v57, %v11346_v37  ;;  %v19627_v55 = vld [vmem:[%s25427_s3 + $0x1a18] sm:$0xff]   ;;  %v12066_v37 = vrot.slane %v23195_v0, 4  ;;  %v12050_v57 = vrot.slane %v23239_v16, 5 }
 0x4d6   :  { %18306 = vmatpush3.bf16.msra.mxu0 %v19612_v31  ;;  %12637 = vmatprep.mubr.bf16.mxu0 %v12086_v8  ;;  %v12080_v28 = vsel %vm2729_vm1, %v12048_v24, %v12064_v51  ;;  %v19629_v31 = vld [vmem:[%s25427_s3 + $0x1a50] sm:$0xff]   ;;  %v19628_v56 = vld [vmem:[%s25427_s3 + $0x1ab8] sm:$0xff]   ;;  %v12045_v51 = vrot.slane %v23237_v47, 5 }
 0x4d7   :  { %v18014_v43 = vpop.f32.mrf.mxu0  ;;  %18307 = vmatprep.subr.bf16.mxu0 %v19614_v62  ;;  %v11370_v62 = vpack.c.bf16 %v11362_v18, %v11362_v18  ;;  %v12088_v8 = vpack.c.bf16 %v12080_v28, %v12080_v28  ;;  %v19641_v24 = vld [vmem:[%s25427_s3 + $0x1ad8] sm:$0xff]   ;;  %v12082_v18 = vsel %vm2729_vm1, %v12050_v57, %v12066_v37  ;;  %v12068_v37 = vrot.slane %v23288_v9, 4 }
 0x4d8   :  { %18292 = vmatpush3.bf16.msra.mxu1 %v19611_v19  ;;  %v18015_v26 = vadd.f32 %v18014_v43, %v18013_v20  ;;  %v19630_v19 = vld [vmem:[%s25427_s3 + $0x1af0] sm:$0xff]   ;;  %v12052_v57 = vrot.slane %v23324_v35, 5 }
 0x4d9   :  { %v18016_v3 = vpop.f32.mrf.mxu0  ;;  %18293 = vmatprep.subr.bf16.mxu1 %v19613_v27  ;;  %v19631_v20 = vld [vmem:[%s25427_s3 + $0x1a10] sm:$0xff]  }
 0x4da   :  { %v9836_v49 = vadd.f32 %v18015_v26, %v9796_v17  ;;  %18308 = vmatpush3.bf16.msra.mxu0 %v19616_v40  ;;  %v19621_v17 = vld [vmem:[%s25427_s3 + $0x19c0] sm:$0xff]   ;;  %v19633_v40 = vld [vmem:[%s25427_s3 + $0x1a48] sm:$0xff]   ;;  %v19632_v43 = vld [vmem:[%s25427_s3 + $0x1ab0] sm:$0xff]  }
 0x4db   :  { %v18017_v45 = vpop.f32.mrf.mxu0  ;;  %18309 = vmatprep.subr.bf16.mxu0 %v19618_v41  ;;  %v19634_v26 = vld [vmem:[%s25427_s3 + $0x1ae8] sm:$0xff]  }
 0x4dc   :  { %18294 = vmatpush3.bf16.msra.mxu1 %v19615_v7  ;;  %v19635_v3 = vld [vmem:[%s25427_s3 + $0x1a08] sm:$0xff]  }
 0x4dd   :  { %18295 = vmatprep.subr.bf16.mxu1 %v19617_v30 }
 0x4de   :  { %18310 = vmatpush3.bf16.msra.mxu0 %v19620_v50  ;;  %v19637_v50 = vld [vmem:[%s25427_s3 + $0x1a40] sm:$0xff]  }
 0x4df   :  { %18311 = vmatprep.subr.bf16.mxu0 %v19622_v48  ;;  %v19636_v48 = vld [vmem:[%s25427_s3 + $0x1aa8] sm:$0xff]  }
 0x4e0   :  { %18296 = vmatpush3.bf16.msra.mxu1 %v19619_v29  ;;  %v12061_v29 = vrot.slane %v23176_v10, 4 }
 0x4e1   :  { %18297 = vmatprep.subr.bf16.mxu1 %v19621_v17 }
 0x4e2   :  { %18312 = vmatpush3.bf16.msra.mxu0 %v19624_v38  ;;  %v19638_v38 = vld [vmem:[%s25427_s3 + $0x1ae0] sm:$0xff]  }
 0x4e3   :  { %18313 = vmatprep.subr.bf16.mxu0 %v19625_v36 }
 0x4e4   :  { %18298 = vmatpush3.bf16.msra.mxu1 %v19623_v6  ;;  %v19642_v6 = vld [vmem:[%s25427_s3 + $0x1b78] sm:$0xff]  }
 0x4e5   :  { %18327 = vmatprep.subr.bf16.mxu1 %v19626_v54  ;;  %v12077_v54 = vsel %vm2729_vm1, %v12045_v51, %v12061_v29  ;;  %v19656_v29 = vld [vmem:[%s25427_s3 + $0x1b20] sm:$0xff]   ;;  %v12047_v51 = vrot.slane %v23316_v53, 5 }
 0x4e6   :  { %18314 = vmatpush3.bf16.msra.mxu0 %v19627_v55  ;;  %v19644_v55 = vld [vmem:[%s25427_s3 + $0x1b38] sm:$0xff]   ;;  %v12085_v28 = vpack.c.bf16 %v12077_v54, %v12077_v54 }
 0x4e7   :  { %v18035_v27 = vpop.f32.mrf.mxu1  ;;  %12037 = vmatmul.mubr.bf16.vlgmr.msra.gmra.mxu1 %v11370_v62  ;;  %18315 = vmatprep.subr.bf16.mxu0 %v19629_v31  ;;  %v19646_v31 = vld [vmem:[%s25427_s3 + $0x1b70] sm:$0xff]   ;;  %v12090_v62 = vpack.c.bf16 %v12082_v18, %v12082_v18  ;;  %v19659_v54 = vld [vmem:[%s25427_s3 + $0x1b18] sm:$0xff]  }
 0x4e8   :  { %18328 = vmatpush3.bf16.msra.mxu1 %v19628_v56  ;;  %12677 = vmatprep.mubr.bf16.mxu1 %v12088_v8  ;;  %v19643_v56 = vld [vmem:[%s25427_s3 + $0x1a98] sm:$0xff]   ;;  %v19645_v8 = vld [vmem:[%s25427_s3 + $0x1ad0] sm:$0xff]  }
 0x4e9   :  { %v18036_v41 = vpop.f32.mrf.mxu1  ;;  %18329 = vmatprep.subr.bf16.mxu1 %v19630_v19  ;;  %v19661_v18 = vld [vmem:[%s25427_s3 + $0x1b50] sm:$0xff]  }
 0x4ea   :  { %v18037_v7 = vadd.f32 %v18036_v41, %v18035_v27  ;;  %18316 = vmatpush3.bf16.msra.mxu0 %v19631_v20  ;;  %v19648_v20 = vld [vmem:[%s25427_s3 + $0x1b30] sm:$0xff]  }
 0x4eb   :  { %v18038_v30 = vpop.f32.mrf.mxu1  ;;  %18317 = vmatprep.subr.bf16.mxu0 %v19633_v40  ;;  %v19650_v40 = vld [vmem:[%s25427_s3 + $0x1b68] sm:$0xff]   ;;  %v19647_v41 = vld [vmem:[%s25427_s3 + $0x1a90] sm:$0xff]  }
 0x4ec   :  { %v9876_v45 = vadd.f32 %v18037_v7, %v9836_v49  ;;  %18330 = vmatpush3.bf16.msra.mxu1 %v19632_v43  ;;  %v19639_v49 = vld [vmem:[%s25427_s3 + $0x1a00] sm:$0xff]   ;;  %v19649_v7 = vld [vmem:[%s25427_s3 + $0x1ac8] sm:$0xff]  }
 0x4ed   :  { %v18039_v17 = vpop.f32.mrf.mxu1  ;;  %18331 = vmatprep.subr.bf16.mxu1 %v19634_v26 }
 0x4ee   :  { %v24370_v36 = vadd.f32 %v9876_v45, %v24151_v13  ;;  %18318 = vmatpush3.bf16.msra.mxu0 %v19635_v3  ;;  %v19640_v13 = vld [vmem:[%s25427_s3 + $0x1aa0] sm:$0xff]   ;;  %v19652_v3 = vld [vmem:[%s25427_s3 + $0x1b28] sm:$0xff]   ;;  %v12063_v17 = vrot.slane %v23286_v39, 4 }
 0x4ef   :  { %18319 = vmatprep.subr.bf16.mxu0 %v19637_v50  ;;  %v19654_v50 = vld [vmem:[%s25427_s3 + $0x1b60] sm:$0xff]   ;;  %v19651_v45 = vld [vmem:[%s25427_s3 + $0x1a88] sm:$0xff]  }
 0x4f0   :  { %18332 = vmatpush3.bf16.msra.mxu1 %v19636_v48  ;;  %v19653_v48 = vld [vmem:[%s25427_s3 + $0x1ac0] sm:$0xff]  }
 0x4f1   :  { %18333 = vmatprep.subr.bf16.mxu1 %v19638_v38  ;;  %v19657_v38 = vld [vmem:[%s25427_s3 + $0x1b58] sm:$0xff]  }
 0x4f2   :  { %18320 = vmatpush3.bf16.msra.mxu0 %v19639_v49  ;;  %v19655_v49 = vld [vmem:[%s25427_s3 + $0x1a80] sm:$0xff]  }
 0x4f3   :  { %18349 = vmatprep.subr.bf16.mxu0 %v19642_v6  ;;  %v19658_v6 = vld [vmem:[%s25427_s3 + $0x1bf8] sm:$0xff]  }
 0x4f4   :  { %18334 = vmatpush3.bf16.msra.mxu1 %v19640_v13  ;;  %v12079_v13 = vsel %vm2729_vm1, %v12047_v51, %v12063_v17  ;;  %v12783_v17 = vrot.slane %v23065_v44, 5  ;;  %v19672_v51 = vld [vmem:[%s25427_s3 + $0x1ba0] sm:$0xff]  }
 0x4f5   :  { %v18057_v19 = vpop.f32.mrf.mxu0  ;;  %12638 = vmatmul.mubr.bf16.vlgmr.msra.gmra.mxu0 %v12085_v28  ;;  %18335 = vmatprep.subr.bf16.mxu1 %v19641_v24  ;;  %v12084_v24 = vsel %vm2729_vm1, %v12052_v57, %v12068_v37  ;;  %v12087_v28 = vpack.c.bf16 %v12079_v13, %v12079_v13  ;;  %v19674_v37 = vld [vmem:[%s25427_s3 + $0x1c78] sm:$0xff]  }
 0x4f6   :  { %18350 = vmatpush3.bf16.msra.mxu0 %v19644_v55  ;;  %12717 = vmatprep.mubr.bf16.mxu0 %v12090_v62  ;;  %v19660_v55 = vld [vmem:[%s25427_s3 + $0x1bb8] sm:$0xff]   ;;  %v19663_v62 = vld [vmem:[%s25427_s3 + $0x1b10] sm:$0xff]  }
 0x4f7   :  { %v18058_v27 = vpop.f32.mrf.mxu0  ;;  %18351 = vmatprep.subr.bf16.mxu0 %v19646_v31  ;;  %v19662_v31 = vld [vmem:[%s25427_s3 + $0x1bf0] sm:$0xff]   ;;  %v19673_v57 = vld [vmem:[%s25427_s3 + $0x1bd8] sm:$0xff]  }
 0x4f8   :  { %18336 = vmatpush3.bf16.msra.mxu1 %v19643_v56  ;;  %v18059_v43 = vadd.f32 %v18058_v27, %v18057_v19  ;;  %v12092_v56 = vpack.c.bf16 %v12084_v24, %v12084_v24 }
 0x4f9   :  { %v18060_v26 = vpop.f32.mrf.mxu0  ;;  %18337 = vmatprep.subr.bf16.mxu1 %v19645_v8  ;;  %v19665_v8 = vld [vmem:[%s25427_s3 + $0x1b48] sm:$0xff]  }
 0x4fa   :  { %18352 = vmatpush3.bf16.msra.mxu0 %v19648_v20  ;;  %v19664_v20 = vld [vmem:[%s25427_s3 + $0x1bb0] sm:$0xff]   ;;  %v19667_v26 = vld [vmem:[%s25427_s3 + $0x1b08] sm:$0xff]  }
 0x4fb   :  { %v18061_v30 = vpop.f32.mrf.mxu0  ;;  %18353 = vmatprep.subr.bf16.mxu0 %v19650_v40  ;;  %v19666_v40 = vld [vmem:[%s25427_s3 + $0x1be8] sm:$0xff]  }
 0x4fc   :  { %18338 = vmatpush3.bf16.msra.mxu1 %v19647_v41 }
 0x4fd   :  { %18339 = vmatprep.subr.bf16.mxu1 %v19649_v7 }
 0x4fe   :  { %18354 = vmatpush3.bf16.msra.mxu0 %v19652_v3  ;;  %v19669_v3 = vld [vmem:[%s25427_s3 + $0x1b40] sm:$0xff]  }
 0x4ff   :  { %18355 = vmatprep.subr.bf16.mxu0 %v19654_v50  ;;  %v19668_v50 = vld [vmem:[%s25427_s3 + $0x1ba8] sm:$0xff]  }
 0x500   :  { %18340 = vmatpush3.bf16.msra.mxu1 %v19651_v45  ;;  %v12065_v45 = vrot.slane %v23356_v14, 4 }
 0x501   :  { %18341 = vmatprep.subr.bf16.mxu1 %v19653_v48 }
 0x502   :  { %18356 = vmatpush3.bf16.msra.mxu0 %v19656_v29  ;;  %v19670_v29 = vld [vmem:[%s25427_s3 + $0x1be0] sm:$0xff]  }
 0x503   :  { %18357 = vmatprep.subr.bf16.mxu0 %v19657_v38  ;;  %v12049_v38 = vrot.slane %v23374_v2, 5 }
 0x504   :  { %18342 = vmatpush3.bf16.msra.mxu1 %v19655_v49  ;;  %v12767_v49 = vrot.slane %v23095_v34, 6 }
 0x505   :  { %18371 = vmatprep.subr.bf16.mxu1 %v19658_v6  ;;  %v12081_v6 = vsel %vm2729_vm1, %v12049_v38, %v12065_v45  ;;  %v19683_v45 = vld [vmem:[%s25427_s3 + $0x1b88] sm:$0xff]   ;;  %v19687_v38 = vld [vmem:[%s25427_s3 + $0x1b80] sm:$0xff]  }
 0x506   :  { %18358 = vmatpush3.bf16.msra.mxu0 %v19659_v54  ;;  %v12799_v13 = vsel %vm2729_vm1, %v12767_v49, %v12783_v17  ;;  %v19676_v54 = vld [vmem:[%s25427_s3 + $0x1c38] sm:$0xff]   ;;  %v12089_v24 = vpack.c.bf16 %v12081_v6, %v12081_v6 }
 0x507   :  { %v18079_v19 = vpop.f32.mrf.mxu1  ;;  %12678 = vmatmul.mubr.bf16.vlgmr.msra.gmra.mxu1 %v12087_v28  ;;  %18359 = vmatprep.subr.bf16.mxu0 %v19661_v18  ;;  %v19678_v18 = vld [vmem:[%s25427_s3 + $0x1c70] sm:$0xff]   ;;  %v12807_v28 = vpack.c.bf16 %v12799_v13, %v12799_v13  ;;  %v19689_v17 = vld [vmem:[%s25427_s3 + $0x1c58] sm:$0xff]  }
 0x508   :  { %18372 = vmatpush3.bf16.msra.mxu1 %v19660_v55  ;;  %12757 = vmatprep.mubr.bf16.mxu1 %v12092_v56  ;;  %v19675_v55 = vld [vmem:[%s25427_s3 + $0x1b98] sm:$0xff]   ;;  %v19677_v56 = vld [vmem:[%s25427_s3 + $0x1bd0] sm:$0xff]  }
 0x509   :  { %v18080_v27 = vpop.f32.mrf.mxu1  ;;  %18373 = vmatprep.subr.bf16.mxu1 %v19662_v31  ;;  %v19690_v49 = vld [vmem:[%s25427_s3 + $0x1cf8] sm:$0xff]  }
 0x50a   :  { %v18081_v41 = vadd.f32 %v18080_v27, %v18079_v19  ;;  %18360 = vmatpush3.bf16.msra.mxu0 %v19663_v62  ;;  %v19680_v62 = vld [vmem:[%s25427_s3 + $0x1c30] sm:$0xff]  }
 0x50b   :  { %v18082_v7 = vpop.f32.mrf.mxu1  ;;  %18361 = vmatprep.subr.bf16.mxu0 %v19665_v8  ;;  %v19682_v8 = vld [vmem:[%s25427_s3 + $0x1c68] sm:$0xff]   ;;  %v19679_v27 = vld [vmem:[%s25427_s3 + $0x1b90] sm:$0xff]  }
 0x50c   :  { %v10517_v30 = vadd.f32 %v18081_v41, %v18059_v43  ;;  %18374 = vmatpush3.bf16.msra.mxu1 %v19664_v20  ;;  %v19671_v43 = vld [vmem:[%s25427_s3 + $0x1b00] sm:$0xff]   ;;  %v19681_v41 = vld [vmem:[%s25427_s3 + $0x1bc8] sm:$0xff]  }
 0x50d   :  { %v18083_v48 = vpop.f32.mrf.mxu1  ;;  %18375 = vmatprep.subr.bf16.mxu1 %v19666_v40  ;;  %v19684_v7 = vld [vmem:[%s25427_s3 + $0x1c28] sm:$0xff]  }
 0x50e   :  { %18362 = vmatpush3.bf16.msra.mxu0 %v19667_v26  ;;  %v19688_v48 = vld [vmem:[%s25427_s3 + $0x1c20] sm:$0xff]  }
 0x50f   :  { %18363 = vmatprep.subr.bf16.mxu0 %v19669_v3 }
 0x510   :  { %18376 = vmatpush3.bf16.msra.mxu1 %v19668_v50  ;;  %v19686_v50 = vld [vmem:[%s25427_s3 + $0x1c60] sm:$0xff]  }
 0x511   :  { %18377 = vmatprep.subr.bf16.mxu1 %v19670_v29  ;;  %v12067_v29 = vrot.slane %v23416_v4, 4 }
 0x512   :  { %18364 = vmatpush3.bf16.msra.mxu0 %v19671_v43  ;;  %v12785_v43 = vrot.slane %v23132_v21, 5 }
 0x513   :  { %18393 = vmatprep.subr.bf16.mxu0 %v19674_v37  ;;  %v12051_v37 = vrot.slane %v23442_v25, 5 }
 0x514   :  { %18378 = vmatpush3.bf16.msra.mxu1 %v19672_v51  ;;  %v12769_v51 = vrot.slane %v23174_v15, 6 }
 0x515   :  { %v18101_v31 = vpop.f32.mrf.mxu0  ;;  %12718 = vmatmul.mubr.bf16.vlgmr.msra.gmra.mxu0 %v12089_v24  ;;  %18379 = vmatprep.subr.bf16.mxu1 %v19673_v57  ;;  %v12083_v6 = vsel %vm2729_vm1, %v12051_v37, %v12067_v29  ;;  %v19691_v57 = vld [vmem:[%s25427_s3 + $0x1c18] sm:$0xff]   ;;  %v12787_v29 = vrot.slane %v23195_v0, 5  ;;  %v12771_v37 = vrot.slane %v23239_v16, 6 }
 0x516   :  { %18394 = vmatpush3.bf16.msra.mxu0 %v19676_v54  ;;  %13358 = vmatprep.mubr.bf16.mxu0 %v12807_v28  ;;  %v12801_v13 = vsel %vm2729_vm1, %v12769_v51, %v12785_v43  ;;  %v19693_v54 = vld [vmem:[%s25427_s3 + $0x1c50] sm:$0xff]   ;;  %v19692_v24 = vld [vmem:[%s25427_s3 + $0x1cb8] sm:$0xff]   ;;  %v12766_v43 = vrot.slane %v23237_v47, 6 }
 0x517   :  { %v18102_v19 = vpop.f32.mrf.mxu0  ;;  %18395 = vmatprep.subr.bf16.mxu0 %v19678_v18  ;;  %v12091_v18 = vpack.c.bf16 %v12083_v6, %v12083_v6  ;;  %v12809_v28 = vpack.c.bf16 %v12801_v13, %v12801_v13  ;;  %v19705_v51 = vld [vmem:[%s25427_s3 + $0x1cd8] sm:$0xff]   ;;  %v12803_v6 = vsel %vm2729_vm1, %v12771_v37, %v12787_v29  ;;  %v12789_v29 = vrot.slane %v23288_v9, 5 }
 0x518   :  { %18380 = vmatpush3.bf16.msra.mxu1 %v19675_v55  ;;  %v18103_v20 = vadd.f32 %v18102_v19, %v18101_v31  ;;  %v19694_v55 = vld [vmem:[%s25427_s3 + $0x1cf0] sm:$0xff]   ;;  %v12773_v37 = vrot.slane %v23324_v35, 6 }
 0x519   :  { %v18104_v40 = vpop.f32.mrf.mxu0  ;;  %18381 = vmatprep.subr.bf16.mxu1 %v19677_v56  ;;  %v19695_v31 = vld [vmem:[%s25427_s3 + $0x1c10] sm:$0xff]  }
 0x51a   :  { %v10557_v26 = vadd.f32 %v18103_v20, %v10517_v30  ;;  %18396 = vmatpush3.bf16.msra.mxu0 %v19680_v62  ;;  %v19685_v30 = vld [vmem:[%s25427_s3 + $0x1bc0] sm:$0xff]   ;;  %v19697_v62 = vld [vmem:[%s25427_s3 + $0x1c48] sm:$0xff]   ;;  %v19696_v19 = vld [vmem:[%s25427_s3 + $0x1cb0] sm:$0xff]  }
 0x51b   :  { %v18105_v3 = vpop.f32.mrf.mxu0  ;;  %18397 = vmatprep.subr.bf16.mxu0 %v19682_v8  ;;  %v19698_v20 = vld [vmem:[%s25427_s3 + $0x1ce8] sm:$0xff]  }
 0x51c   :  { %18382 = vmatpush3.bf16.msra.mxu1 %v19679_v27  ;;  %v19699_v40 = vld [vmem:[%s25427_s3 + $0x1c08] sm:$0xff]  }
 0x51d   :  { %18383 = vmatprep.subr.bf16.mxu1 %v19681_v41 }
 0x51e   :  { %18398 = vmatpush3.bf16.msra.mxu0 %v19684_v7  ;;  %v19701_v7 = vld [vmem:[%s25427_s3 + $0x1c40] sm:$0xff]  }
 0x51f   :  { %18399 = vmatprep.subr.bf16.mxu0 %v19686_v50  ;;  %v19700_v50 = vld [vmem:[%s25427_s3 + $0x1ca8] sm:$0xff]  }
 0x520   :  { %18384 = vmatpush3.bf16.msra.mxu1 %v19683_v45  ;;  %v12782_v45 = vrot.slane %v23176_v10, 5 }
 0x521   :  { %18385 = vmatprep.subr.bf16.mxu1 %v19685_v30 }
 0x522   :  { %18400 = vmatpush3.bf16.msra.mxu0 %v19688_v48  ;;  %v19702_v48 = vld [vmem:[%s25427_s3 + $0x1ce0] sm:$0xff]  }
 0x523   :  { %18401 = vmatprep.subr.bf16.mxu0 %v19689_v17 }
 0x524   :  { %18386 = vmatpush3.bf16.msra.mxu1 %v19687_v38  ;;  %v19706_v38 = vld [vmem:[%s25427_s3 + $0x1d78] sm:$0xff]  }
 0x525   :  { %18415 = vmatprep.subr.bf16.mxu1 %v19690_v49  ;;  %v12798_v49 = vsel %vm2729_vm1, %v12766_v43, %v12782_v45  ;;  %v19720_v45 = vld [vmem:[%s25427_s3 + $0x1d20] sm:$0xff]   ;;  %v12768_v43 = vrot.slane %v23316_v53, 6 }
 0x526   :  { %18402 = vmatpush3.bf16.msra.mxu0 %v19691_v57  ;;  %v19708_v57 = vld [vmem:[%s25427_s3 + $0x1d38] sm:$0xff]   ;;  %v12806_v13 = vpack.c.bf16 %v12798_v49, %v12798_v49 }
 0x527   :  { %v18123_v56 = vpop.f32.mrf.mxu1  ;;  %12758 = vmatmul.mubr.bf16.vlgmr.msra.gmra.mxu1 %v12091_v18  ;;  %18403 = vmatprep.subr.bf16.mxu0 %v19693_v54  ;;  %v19710_v54 = vld [vmem:[%s25427_s3 + $0x1d70] sm:$0xff]   ;;  %v12811_v18 = vpack.c.bf16 %v12803_v6, %v12803_v6  ;;  %v19723_v49 = vld [vmem:[%s25427_s3 + $0x1d18] sm:$0xff]  }
 0x528   :  { %18416 = vmatpush3.bf16.msra.mxu1 %v19692_v24  ;;  %13398 = vmatprep.mubr.bf16.mxu1 %v12809_v28  ;;  %v19707_v24 = vld [vmem:[%s25427_s3 + $0x1c98] sm:$0xff]   ;;  %v19709_v28 = vld [vmem:[%s25427_s3 + $0x1cd0] sm:$0xff]  }
 0x529   :  { %v18124_v8 = vpop.f32.mrf.mxu1  ;;  %18417 = vmatprep.subr.bf16.mxu1 %v19694_v55  ;;  %v19725_v6 = vld [vmem:[%s25427_s3 + $0x1d50] sm:$0xff]  }
 0x52a   :  { %v18125_v27 = vadd.f32 %v18124_v8, %v18123_v56  ;;  %18404 = vmatpush3.bf16.msra.mxu0 %v19695_v31  ;;  %v19712_v31 = vld [vmem:[%s25427_s3 + $0x1d30] sm:$0xff]  }
 0x52b   :  { %v18126_v41 = vpop.f32.mrf.mxu1  ;;  %18405 = vmatprep.subr.bf16.mxu0 %v19697_v62  ;;  %v19714_v62 = vld [vmem:[%s25427_s3 + $0x1d68] sm:$0xff]   ;;  %v19711_v8 = vld [vmem:[%s25427_s3 + $0x1c90] sm:$0xff]  }
 0x52c   :  { %v10597_v3 = vadd.f32 %v18125_v27, %v10557_v26  ;;  %18418 = vmatpush3.bf16.msra.mxu1 %v19696_v19  ;;  %v19703_v26 = vld [vmem:[%s25427_s3 + $0x1c00] sm:$0xff]   ;;  %v19713_v27 = vld [vmem:[%s25427_s3 + $0x1cc8] sm:$0xff]  }
 0x52d   :  { %v18127_v30 = vpop.f32.mrf.mxu1  ;;  %18419 = vmatprep.subr.bf16.mxu1 %v19698_v20 }
 0x52e   :  { %v24589_v17 = vadd.f32 %v10597_v3, %v24370_v36  ;;  %18406 = vmatpush3.bf16.msra.mxu0 %v19699_v40  ;;  %v19704_v36 = vld [vmem:[%s25427_s3 + $0x1ca0] sm:$0xff]   ;;  %v19716_v40 = vld [vmem:[%s25427_s3 + $0x1d28] sm:$0xff]   ;;  %v12784_v30 = vrot.slane %v23286_v39, 5 }
 0x52f   :  { %18407 = vmatprep.subr.bf16.mxu0 %v19701_v7  ;;  %v19718_v7 = vld [vmem:[%s25427_s3 + $0x1d60] sm:$0xff]   ;;  %v19715_v3 = vld [vmem:[%s25427_s3 + $0x1c88] sm:$0xff]  }
 0x530   :  { %18420 = vmatpush3.bf16.msra.mxu1 %v19700_v50  ;;  %v19717_v50 = vld [vmem:[%s25427_s3 + $0x1cc0] sm:$0xff]  }
 0x531   :  { %18421 = vmatprep.subr.bf16.mxu1 %v19702_v48  ;;  %v19721_v48 = vld [vmem:[%s25427_s3 + $0x1d58] sm:$0xff]  }
 0x532   :  { %18408 = vmatpush3.bf16.msra.mxu0 %v19703_v26  ;;  %v19719_v26 = vld [vmem:[%s25427_s3 + $0x1c80] sm:$0xff]  }
 0x533   :  { %18437 = vmatprep.subr.bf16.mxu0 %v19706_v38  ;;  %v19722_v38 = vld [vmem:[%s25427_s3 + $0x1df8] sm:$0xff]  }
 0x534   :  { %18422 = vmatpush3.bf16.msra.mxu1 %v19704_v36  ;;  %v12800_v36 = vsel %vm2729_vm1, %v12768_v43, %v12784_v30  ;;  %v13504_v30 = vrot.slane %v23065_v44, 6  ;;  %v19736_v43 = vld [vmem:[%s25427_s3 + $0x1da0] sm:$0xff]  }
 0x535   :  { %v18145_v55 = vpop.f32.mrf.mxu0  ;;  %13359 = vmatmul.mubr.bf16.vlgmr.msra.gmra.mxu0 %v12806_v13  ;;  %18423 = vmatprep.subr.bf16.mxu1 %v19705_v51  ;;  %v12805_v51 = vsel %vm2729_vm1, %v12773_v37, %v12789_v29  ;;  %v12808_v13 = vpack.c.bf16 %v12800_v36, %v12800_v36  ;;  %v19738_v29 = vld [vmem:[%s25427_s3 + $0x1e78] sm:$0xff]  }
 0x536   :  { %18438 = vmatpush3.bf16.msra.mxu0 %v19708_v57  ;;  %13438 = vmatprep.mubr.bf16.mxu0 %v12811_v18  ;;  %v19724_v57 = vld [vmem:[%s25427_s3 + $0x1db8] sm:$0xff]   ;;  %v19727_v18 = vld [vmem:[%s25427_s3 + $0x1d10] sm:$0xff]  }
 0x537   :  { %v18146_v56 = vpop.f32.mrf.mxu0  ;;  %18439 = vmatprep.subr.bf16.mxu0 %v19710_v54  ;;  %v19726_v54 = vld [vmem:[%s25427_s3 + $0x1df0] sm:$0xff]   ;;  %v19740_v36 = vld [vmem:[%s25427_s3 + $0x1e38] sm:$0xff]  }
 0x538   :  { %18424 = vmatpush3.bf16.msra.mxu1 %v19707_v24  ;;  %v18147_v19 = vadd.f32 %v18146_v56, %v18145_v55  ;;  %v12813_v24 = vpack.c.bf16 %v12805_v51, %v12805_v51  ;;  %v19739_v51 = vld [vmem:[%s25427_s3 + $0x1d98] sm:$0xff]  }
 0x539   :  { %v18148_v20 = vpop.f32.mrf.mxu0  ;;  %18425 = vmatprep.subr.bf16.mxu1 %v19709_v28  ;;  %v19729_v28 = vld [vmem:[%s25427_s3 + $0x1d48] sm:$0xff]  }
 0x53a   :  { %18440 = vmatpush3.bf16.msra.mxu0 %v19712_v31  ;;  %v19728_v31 = vld [vmem:[%s25427_s3 + $0x1db0] sm:$0xff]   ;;  %v19731_v20 = vld [vmem:[%s25427_s3 + $0x1d08] sm:$0xff]  }
 0x53b   :  { %v18149_v41 = vpop.f32.mrf.mxu0  ;;  %18441 = vmatprep.subr.bf16.mxu0 %v19714_v62  ;;  %v19730_v62 = vld [vmem:[%s25427_s3 + $0x1de8] sm:$0xff]  }
 0x53c   :  { %18426 = vmatpush3.bf16.msra.mxu1 %v19711_v8 }
 0x53d   :  { %18427 = vmatprep.subr.bf16.mxu1 %v19713_v27 }
 0x53e   :  { %18442 = vmatpush3.bf16.msra.mxu0 %v19716_v40  ;;  %v19733_v40 = vld [vmem:[%s25427_s3 + $0x1d40] sm:$0xff]  }
 0x53f   :  { %18443 = vmatprep.subr.bf16.mxu0 %v19718_v7  ;;  %v19732_v7 = vld [vmem:[%s25427_s3 + $0x1da8] sm:$0xff]  }
 0x540   :  { %18428 = vmatpush3.bf16.msra.mxu1 %v19715_v3  ;;  %v12786_v3 = vrot.slane %v23356_v14, 5 }
 0x541   :  { %18429 = vmatprep.subr.bf16.mxu1 %v19717_v50 }
 0x542   :  { %18444 = vmatpush3.bf16.msra.mxu0 %v19720_v45  ;;  %v19734_v45 = vld [vmem:[%s25427_s3 + $0x1de0] sm:$0xff]  }
 0x543   :  { %18445 = vmatprep.subr.bf16.mxu0 %v19721_v48  ;;  %v12770_v48 = vrot.slane %v23374_v2, 6 }
 0x544   :  { %18430 = vmatpush3.bf16.msra.mxu1 %v19719_v26  ;;  %v13488_v26 = vrot.slane %v23095_v34, 7 }
 0x545   :  { %18459 = vmatprep.subr.bf16.mxu1 %v19722_v38  ;;  %v12802_v44 = vsel %vm2729_vm1, %v12770_v48, %v12786_v3  ;;  %v19737_v38 = vld [vmem:[%s25427_s3 + $0x1dd8] sm:$0xff]   ;;  %v12788_v3 = vrot.slane %v23416_v4, 5 }
 0x546   :  { %18446 = vmatpush3.bf16.msra.mxu0 %v19723_v49  ;;  %v13520_v37 = vsel %vm2729_vm1, %v13488_v26, %v13504_v30  ;;  %v12810_v34 = vpack.c.bf16 %v12802_v44, %v12802_v44  ;;  %v19742_v49 = vld [vmem:[%s25427_s3 + $0x1e70] sm:$0xff]   ;;  %v19751_v30 = vld [vmem:[%s25427_s3 + $0x1d80] sm:$0xff]   ;;  %v19754_v48 = vld [vmem:[%s25427_s3 + $0x1ef8] sm:$0xff]  }
 0x547   :  { %v18167_v55 = vpop.f32.mrf.mxu1  ;;  %13399 = vmatmul.mubr.bf16.vlgmr.msra.gmra.mxu1 %v12808_v13  ;;  %18447 = vmatprep.subr.bf16.mxu0 %v19725_v6  ;;  %v13528_v6 = vpack.c.bf16 %v13520_v37, %v13520_v37  ;;  %v19741_v13 = vld [vmem:[%s25427_s3 + $0x1dd0] sm:$0xff]  }
 0x548   :  { %18460 = vmatpush3.bf16.msra.mxu1 %v19724_v57  ;;  %13478 = vmatprep.mubr.bf16.mxu1 %v12813_v24  ;;  %v19757_v44 = vld [vmem:[%s25427_s3 + $0x1e50] sm:$0xff]  }
 0x549   :  { %v18168_v56 = vpop.f32.mrf.mxu1  ;;  %18461 = vmatprep.subr.bf16.mxu1 %v19726_v54  ;;  %v19744_v54 = vld [vmem:[%s25427_s3 + $0x1e30] sm:$0xff]  }
 0x54a   :  { %v18169_v8 = vadd.f32 %v18168_v56, %v18167_v55  ;;  %18448 = vmatpush3.bf16.msra.mxu0 %v19727_v18  ;;  %v19746_v18 = vld [vmem:[%s25427_s3 + $0x1e68] sm:$0xff]   ;;  %v19758_v37 = vld [vmem:[%s25427_s3 + $0x1ef0] sm:$0xff]  }
 0x54b   :  { %v18170_v27 = vpop.f32.mrf.mxu1  ;;  %18449 = vmatprep.subr.bf16.mxu0 %v19729_v28  ;;  %v19743_v28 = vld [vmem:[%s25427_s3 + $0x1d90] sm:$0xff]   ;;  %v19745_v56 = vld [vmem:[%s25427_s3 + $0x1dc8] sm:$0xff]  }
 0x54c   :  { %v11238_v41 = vadd.f32 %v18169_v8, %v18147_v19  ;;  %18462 = vmatpush3.bf16.msra.mxu1 %v19728_v31  ;;  %v19735_v19 = vld [vmem:[%s25427_s3 + $0x1d00] sm:$0xff]   ;;  %v19748_v8 = vld [vmem:[%s25427_s3 + $0x1e28] sm:$0xff]  }
 0x54d   :  { %v18171_v50 = vpop.f32.mrf.mxu1  ;;  %18463 = vmatprep.subr.bf16.mxu1 %v19730_v62  ;;  %v19750_v27 = vld [vmem:[%s25427_s3 + $0x1e60] sm:$0xff]  }
 0x54e   :  { %18450 = vmatpush3.bf16.msra.mxu0 %v19731_v20  ;;  %v19753_v50 = vld [vmem:[%s25427_s3 + $0x1e58] sm:$0xff]  }
 0x54f   :  { %18451 = vmatprep.subr.bf16.mxu0 %v19733_v40  ;;  %v19747_v40 = vld [vmem:[%s25427_s3 + $0x1d88] sm:$0xff]  }
 0x550   :  { %18464 = vmatpush3.bf16.msra.mxu1 %v19732_v7  ;;  %v19752_v7 = vld [vmem:[%s25427_s3 + $0x1e20] sm:$0xff]  }
 0x551   :  { %18465 = vmatprep.subr.bf16.mxu1 %v19734_v45  ;;  %v13506_v45 = vrot.slane %v23132_v21, 6  ;;  %v19755_v21 = vld [vmem:[%s25427_s3 + $0x1e18] sm:$0xff]  }
 0x552   :  { %18452 = vmatpush3.bf16.msra.mxu0 %v19735_v19  ;;  %v12772_v19 = vrot.slane %v23442_v25, 6 }
 0x553   :  { %18481 = vmatprep.subr.bf16.mxu0 %v19738_v29  ;;  %v13490_v29 = vrot.slane %v23174_v15, 7 }
 0x554   :  { %18466 = vmatpush3.bf16.msra.mxu1 %v19736_v43  ;;  %v12804_v26 = vsel %vm2729_vm1, %v12772_v19, %v12788_v3  ;;  %v19769_v3 = vld [vmem:[%s25427_s3 + $0x1ed8] sm:$0xff]  }
 0x555   :  { %v18189_v57 = vpop.f32.mrf.mxu0  ;;  %13439 = vmatmul.mubr.bf16.vlgmr.msra.gmra.mxu0 %v12810_v34  ;;  %18467 = vmatprep.subr.bf16.mxu1 %v19737_v38  ;;  %v13522_v43 = vsel %vm2729_vm1, %v13490_v29, %v13506_v45  ;;  %v19756_v38 = vld [vmem:[%s25427_s3 + $0x1eb8] sm:$0xff]   ;;  %v12812_v15 = vpack.c.bf16 %v12804_v26, %v12804_v26  ;;  %v19759_v34 = vld [vmem:[%s25427_s3 + $0x1e10] sm:$0xff]  }
 0x556   :  { %18482 = vmatpush3.bf16.msra.mxu0 %v19740_v36  ;;  %14079 = vmatprep.mubr.bf16.mxu0 %v13528_v6  ;;  %v13530_v36 = vpack.c.bf16 %v13522_v43, %v13522_v43  ;;  %v19760_v6 = vld [vmem:[%s25427_s3 + $0x1eb0] sm:$0xff]   ;;  %v19778_v43 = vld [vmem:[%s25427_s3 + $0x1f68] sm:$0xff]  }
 0x557   :  { %v18190_v24 = vpop.f32.mrf.mxu0  ;;  %18483 = vmatprep.subr.bf16.mxu0 %v19742_v49  ;;  %v19774_v45 = vld [vmem:[%s25427_s3 + $0x1f70] sm:$0xff]  }
 0x558   :  { %18468 = vmatpush3.bf16.msra.mxu1 %v19739_v51  ;;  %v18191_v55 = vadd.f32 %v18190_v24, %v18189_v57  ;;  %v19761_v51 = vld [vmem:[%s25427_s3 + $0x1e48] sm:$0xff]   ;;  %v19773_v29 = vld [vmem:[%s25427_s3 + $0x1ed0] sm:$0xff]  }
 0x559   :  { %v18192_v31 = vpop.f32.mrf.mxu0  ;;  %18469 = vmatprep.subr.bf16.mxu1 %v19741_v13  ;;  %v19762_v13 = vld [vmem:[%s25427_s3 + $0x1ee8] sm:$0xff]   ;;  %v19776_v26 = vld [vmem:[%s25427_s3 + $0x1f30] sm:$0xff]  }
 0x55a   :  { %v11278_v62 = vadd.f32 %v18191_v55, %v11238_v41  ;;  %18484 = vmatpush3.bf16.msra.mxu0 %v19744_v54  ;;  %v19749_v41 = vld [vmem:[%s25427_s3 + $0x1dc0] sm:$0xff]   ;;  %v19763_v24 = vld [vmem:[%s25427_s3 + $0x1e08] sm:$0xff]  }
 0x55b   :  { %v18193_v20 = vpop.f32.mrf.mxu0  ;;  %18485 = vmatprep.subr.bf16.mxu0 %v19746_v18  ;;  %v19765_v55 = vld [vmem:[%s25427_s3 + $0x1e40] sm:$0xff]   ;;  %v19764_v31 = vld [vmem:[%s25427_s3 + $0x1ea8] sm:$0xff]  }
 0x55c   :  { %18470 = vmatpush3.bf16.msra.mxu1 %v19743_v28  ;;  %v19766_v20 = vld [vmem:[%s25427_s3 + $0x1ee0] sm:$0xff]  }
 0x55d   :  { %18471 = vmatprep.subr.bf16.mxu1 %v19745_v56  ;;  %v13503_v56 = vrot.slane %v23176_v10, 6  ;;  %v19770_v10 = vld [vmem:[%s25427_s3 + $0x1f78] sm:$0xff]  }
 0x55e   :  { %18486 = vmatpush3.bf16.msra.mxu0 %v19748_v8 }
 0x55f   :  { %18487 = vmatprep.subr.bf16.mxu0 %v19750_v27  ;;  %v13508_v27 = vrot.slane %v23195_v0, 6  ;;  %v19768_v0 = vld [vmem:[%s25427_s3 + $0x1ea0] sm:$0xff]  }
 0x560   :  { %18472 = vmatpush3.bf16.msra.mxu1 %v19747_v40 }
 0x561   :  { %18473 = vmatprep.subr.bf16.mxu1 %v19749_v41  ;;  %v13487_v41 = vrot.slane %v23237_v47, 7 }
 0x562   :  { %18488 = vmatpush3.bf16.msra.mxu0 %v19752_v7  ;;  %v13492_v7 = vrot.slane %v23239_v16, 7 }
 0x563   :  { %18489 = vmatprep.subr.bf16.mxu0 %v19753_v50  ;;  %v19772_v50 = vld [vmem:[%s25427_s3 + $0x1f38] sm:$0xff]  }
 0x564   :  { %18474 = vmatpush3.bf16.msra.mxu1 %v19751_v30  ;;  %v13524_v47 = vsel %vm2729_vm1, %v13492_v7, %v13508_v27  ;;  %v19771_v30 = vld [vmem:[%s25427_s3 + $0x1e98] sm:$0xff]   ;;  %v19790_v27 = vld [vmem:[%s25427_s3 + $0x1ff0] sm:$0xff]  }
 0x565   :  { %18503 = vmatprep.subr.bf16.mxu1 %v19754_v48  ;;  %v13532_v19 = vpack.c.bf16 %v13524_v47, %v13524_v47  ;;  %v19792_v7 = vld [vmem:[%s25427_s3 + $0x1fb0] sm:$0xff]  }
 0x566   :  { %18490 = vmatpush3.bf16.msra.mxu0 %v19755_v21 }
 0x567   :  { %v18211_v49 = vpop.f32.mrf.mxu1  ;;  %13479 = vmatmul.mubr.bf16.vlgmr.msra.gmra.mxu1 %v12812_v15  ;;  %18491 = vmatprep.subr.bf16.mxu0 %v19757_v44 }
 0x568   :  { %18504 = vmatpush3.bf16.msra.mxu1 %v19756_v38  ;;  %14119 = vmatprep.mubr.bf16.mxu1 %v13530_v36  ;;  %v19775_v38 = vld [vmem:[%s25427_s3 + $0x1e90] sm:$0xff]   ;;  %v19780_v36 = vld [vmem:[%s25427_s3 + $0x1f28] sm:$0xff]  }
 0x569   :  { %v18212_v57 = vpop.f32.mrf.mxu1  ;;  %18505 = vmatprep.subr.bf16.mxu1 %v19758_v37  ;;  %v19777_v37 = vld [vmem:[%s25427_s3 + $0x1ec8] sm:$0xff]  }
 0x56a   :  { %v18213_v54 = vadd.f32 %v18212_v57, %v18211_v49  ;;  %18492 = vmatpush3.bf16.msra.mxu0 %v19759_v34  ;;  %v19782_v49 = vld [vmem:[%s25427_s3 + $0x1f60] sm:$0xff]  }
 0x56b   :  { %v18214_v18 = vpop.f32.mrf.mxu1  ;;  %18493 = vmatprep.subr.bf16.mxu0 %v19761_v51  ;;  %v19779_v51 = vld [vmem:[%s25427_s3 + $0x1e88] sm:$0xff]   ;;  %v19784_v57 = vld [vmem:[%s25427_s3 + $0x1f20] sm:$0xff]  }
 0x56c   :  { %v11318_v28 = vadd.f32 %v18213_v54, %v11278_v62  ;;  %18506 = vmatpush3.bf16.msra.mxu1 %v19760_v6  ;;  %v19767_v62 = vld [vmem:[%s25427_s3 + $0x1e00] sm:$0xff]   ;;  %v19785_v54 = vld [vmem:[%s25427_s3 + $0x1f58] sm:$0xff]  }
 0x56d   :  { %v18215_v8 = vpop.f32.mrf.mxu1  ;;  %18507 = vmatprep.subr.bf16.mxu1 %v19762_v13  ;;  %v19781_v6 = vld [vmem:[%s25427_s3 + $0x1ec0] sm:$0xff]   ;;  %v13505_v13 = vrot.slane %v23286_v39, 6  ;;  %v13494_v39 = vrot.slane %v23324_v35, 7  ;;  %v24891_v35 = vadd.f32 %v21256_v22, %v21207_v5  ;;  %v19793_v22 = vld [vmem:[%s25427_s3 + $0x1f48] sm:$0xff]  }
 0x56e   :  { %v24808_v40 = vadd.f32 %v11318_v28, %v24589_v17  ;;  %18494 = vmatpush3.bf16.msra.mxu0 %v19763_v24  ;;  %v13519_v17 = vsel %vm2729_vm1, %v13487_v41, %v13503_v56  ;;  %v13510_v24 = vrot.slane %v23288_v9, 6  ;;  %v19783_v18 = vld [vmem:[%s25427_s3 + $0x1e80] sm:$0xff]   ;;  %v19786_v28 = vld [vmem:[%s25427_s3 + $0x1ff8] sm:$0xff]   ;;  %v19791_v41 = vld [vmem:[%s25427_s3 + $0x1f10] sm:$0xff]  }
 0x56f   :  { %18495 = vmatprep.subr.bf16.mxu0 %v19765_v55  ;;  %v13527_v16 = vpack.c.bf16 %v13519_v17, %v13519_v17  ;;  %v13489_v55 = vrot.slane %v23316_v53, 7  ;;  %v19787_v9 = vld [vmem:[%s25427_s3 + $0x1f18] sm:$0xff]   ;;  %v19789_v53 = vld [vmem:[%s25427_s3 + $0x1f50] sm:$0xff]  }
 0x570   :  { %18508 = vmatpush3.bf16.msra.mxu1 %v19764_v31  ;;  %v13526_v56 = vsel %vm2729_vm1, %v13494_v39, %v13510_v24  ;;  %v19788_v8 = vld [vmem:[%s25427_s3 + $0x1fb8] sm:$0xff]   ;;  %v19805_v24 = vld [vmem:[%s25427_s3 + $0x1fd0] sm:$0xff]  }
 0x571   :  { %18509 = vmatprep.subr.bf16.mxu1 %v19766_v20  ;;  %v13521_v31 = vsel %vm2729_vm1, %v13489_v55, %v13505_v13 }
 0x572   :  { %18496 = vmatpush3.bf16.msra.mxu0 %v19767_v62  ;;  %v13529_v20 = vpack.c.bf16 %v13521_v31, %v13521_v31  ;;  %v13534_v62 = vpack.c.bf16 %v13526_v56, %v13526_v56  ;;  %v19807_v31 = vld [vmem:[%s25427_s3 + $0x1f90] sm:$0xff]   ;;  %v19809_v56 = vld [vmem:[%s25427_s3 + $0x1fc8] sm:$0xff]  }
 0x573   :  { %18525 = vmatprep.subr.bf16.mxu0 %v19770_v10 }
 0x574   :  { %18510 = vmatpush3.bf16.msra.mxu1 %v19768_v0  ;;  %v2698_v0 = vmax.f32 %v24891_v35, 0.0  ;;  %v19867_v35 = vld [vmem:[%s25427_s3 + $0x2198] sm:$0xff]  }
 0x575   :  { %v18233_v48 = vpop.f32.mrf.mxu0  ;;  %14080 = vmatmul.mubr.bf16.vlgmr.msra.gmra.mxu0 %v13527_v16  ;;  %18511 = vmatprep.subr.bf16.mxu1 %v19769_v3  ;;  %v19794_v3 = vld [vmem:[%s25427_s3 + $0x1fe8] sm:$0xff]  }
 0x576   :  { %18526 = vmatpush3.bf16.msra.mxu0 %v19772_v50  ;;  %14159 = vmatprep.mubr.bf16.mxu0 %v13532_v19  ;;  %v19795_v50 = vld [vmem:[%s25427_s3 + $0x1f08] sm:$0xff]  }
 0x577   :  { %v18234_v21 = vpop.f32.mrf.mxu0  ;;  %18527 = vmatprep.subr.bf16.mxu0 %v19774_v45  ;;  %v19797_v45 = vld [vmem:[%s25427_s3 + $0x1f40] sm:$0xff]  }
 0x578   :  { %18512 = vmatpush3.bf16.msra.mxu1 %v19771_v30  ;;  %v18235_v44 = vadd.f32 %v18234_v21, %v18233_v48  ;;  %v25616_v30 = vld [vmem:[#allocation25_spill] sm:$0xff]  ;;  %v14217_v21 = vrot.slane %v2698_v0, 7 }
 0x579   :  { %v18236_v15 = vpop.f32.mrf.mxu0  ;;  %18513 = vmatprep.subr.bf16.mxu1 %v19773_v29  ;;  %v24917_v19 = vadd.f32 %v21207_v5, %v25616_v30  ;;  %v19796_v29 = vld [vmem:[%s25427_s3 + $0x1fa8] sm:$0xff]   ;;  %v19799_v5 = vld [vmem:[%s25427_s3 + $0x1f00] sm:$0xff]   ;;  %v19822_v30 = vld [vmem:[%s25427_s3 + $0x20f0] sm:$0xff]  }
 0x57a   :  { %18528 = vmatpush3.bf16.msra.mxu0 %v19776_v26  ;;  %v13507_v26 = vrot.slane %v23356_v14, 6  ;;  %v19802_v14 = vld [vmem:[%s25427_s3 + $0x2078] sm:$0xff]  }
 0x57b   :  { %v18237_v34 = vpop.f32.mrf.mxu0  ;;  %18529 = vmatprep.subr.bf16.mxu0 %v19778_v43  ;;  %v1377_v15 = vmax.f32 %v24917_v19, 0.0  ;;  %v19868_v19 = vld [vmem:[%s25427_s3 + $0x2238] sm:$0xff]  }
 0x57c   :  { %18514 = vmatpush3.bf16.msra.mxu1 %v19775_v38  ;;  %v19798_v38 = vld [vmem:[%s25427_s3 + $0x1fe0] sm:$0xff]   ;;  %v19801_v34 = vld [vmem:[%s25427_s3 + $0x1fd8] sm:$0xff]  }
 0x57d   :  { %18515 = vmatprep.subr.bf16.mxu1 %v19777_v37  ;;  %v19800_v37 = vld [vmem:[%s25427_s3 + $0x1fa0] sm:$0xff]  }
 0x57e   :  { %18530 = vmatpush3.bf16.msra.mxu0 %v19780_v36 }
 0x57f   :  { %18531 = vmatprep.subr.bf16.mxu0 %v19782_v49  ;;  %v19804_v49 = vld [vmem:[%s25427_s3 + $0x2038] sm:$0xff]  }
 0x580   :  { %18516 = vmatpush3.bf16.msra.mxu1 %v19779_v51 }
 0x581   :  { %18517 = vmatprep.subr.bf16.mxu1 %v19781_v6  ;;  %v19806_v6 = vld [vmem:[%s25427_s3 + $0x2070] sm:$0xff]  }
 0x582   :  { %18532 = vmatpush3.bf16.msra.mxu0 %v19784_v57  ;;  %v19803_v57 = vld [vmem:[%s25427_s3 + $0x1f98] sm:$0xff]  }
 0x583   :  { %18533 = vmatprep.subr.bf16.mxu0 %v19785_v54 }
 0x584   :  { %18518 = vmatpush3.bf16.msra.mxu1 %v19783_v18  ;;  %v19808_v18 = vld [vmem:[%s25427_s3 + $0x2030] sm:$0xff]  }
 0x585   :  { %18547 = vmatprep.subr.bf16.mxu1 %v19786_v28  ;;  %v19810_v28 = vld [vmem:[%s25427_s3 + $0x2068] sm:$0xff]  }
 0x586   :  { %18534 = vmatpush3.bf16.msra.mxu0 %v19787_v9 }
 0x587   :  { %v18255_v10 = vpop.f32.mrf.mxu1  ;;  %14120 = vmatmul.mubr.bf16.vlgmr.msra.gmra.mxu1 %v13529_v20  ;;  %18535 = vmatprep.subr.bf16.mxu0 %v19789_v53 }
 0x588   :  { %18548 = vmatpush3.bf16.msra.mxu1 %v19788_v8  ;;  %14199 = vmatprep.mubr.bf16.mxu1 %v13534_v62  ;;  %v19812_v8 = vld [vmem:[%s25427_s3 + $0x2028] sm:$0xff]  }
 0x589   :  { %v18256_v17 = vpop.f32.mrf.mxu1  ;;  %18549 = vmatprep.subr.bf16.mxu1 %v19790_v27  ;;  %v19814_v27 = vld [vmem:[%s25427_s3 + $0x2060] sm:$0xff]   ;;  %v19811_v62 = vld [vmem:[%s25427_s3 + $0x1f88] sm:$0xff]  }
 0x58a   :  { %v18257_v47 = vadd.f32 %v18256_v17, %v18255_v10  ;;  %18536 = vmatpush3.bf16.msra.mxu0 %v19791_v41  ;;  %v19813_v41 = vld [vmem:[%s25427_s3 + $0x1fc0] sm:$0xff]  }
 0x58b   :  { %v18258_v16 = vpop.f32.mrf.mxu1  ;;  %18537 = vmatprep.subr.bf16.mxu0 %v19793_v22  ;;  %v19816_v10 = vld [vmem:[%s25427_s3 + $0x2020] sm:$0xff]   ;;  %v13509_v22 = vrot.slane %v23416_v4, 6 }
 0x58c   :  { %v11959_v48 = vadd.f32 %v18257_v47, %v18235_v44  ;;  %18550 = vmatpush3.bf16.msra.mxu1 %v19792_v7  ;;  %v13491_v44 = vrot.slane %v23374_v2, 7  ;;  %v14233_v2 = vsel %vm2729_vm1, %v1377_v15, %v14217_v21  ;;  %v19817_v7 = vld [vmem:[%s25427_s3 + $0x2058] sm:$0xff]   ;;  %v19815_v17 = vld [vmem:[%s25427_s3 + $0x1f80] sm:$0xff]   ;;  %v19821_v16 = vld [vmem:[%s25427_s3 + $0x2050] sm:$0xff]  }
 0x58d   :  { %v18259_v43 = vpop.f32.mrf.mxu1  ;;  %18551 = vmatprep.subr.bf16.mxu1 %v19794_v3  ;;  %v14241_v13 = vpack.c.bf16 %v14233_v2, %v14233_v2  ;;  %v13493_v3 = vrot.slane %v23442_v25, 7  ;;  %v19818_v47 = vld [vmem:[%s25427_s3 + $0x20f8] sm:$0xff]   ;;  %v19825_v21 = vld [vmem:[%s25427_s3 + $0x2048] sm:$0xff]  }
 0x58e   :  { %18538 = vmatpush3.bf16.msra.mxu0 %v19795_v50  ;;  %v13523_v36 = vsel %vm2729_vm1, %v13491_v44, %v13507_v26  ;;  %v19819_v50 = vld [vmem:[%s25427_s3 + $0x2018] sm:$0xff]   ;;  %v19824_v43 = vld [vmem:[%s25427_s3 + $0x20b0] sm:$0xff]   ;;  %v19827_v44 = vld [vmem:[%s25427_s3 + $0x2008] sm:$0xff]  }
 0x58f   :  { %18539 = vmatprep.subr.bf16.mxu0 %v19797_v45  ;;  %v13531_v51 = vpack.c.bf16 %v13523_v36, %v13523_v36  ;;  %v13525_v4 = vsel %vm2729_vm1, %v13493_v3, %v13509_v22  ;;  %v19820_v25 = vld [vmem:[%s25427_s3 + $0x20b8] sm:$0xff]   ;;  %v19845_v22 = vld [vmem:[%s25427_s3 + $0x20c0] sm:$0xff]  }
 0x590   :  { %18552 = vmatpush3.bf16.msra.mxu1 %v19796_v29  ;;  %v13533_v45 = vpack.c.bf16 %v13525_v4, %v13525_v4  ;;  %v19823_v29 = vld [vmem:[%s25427_s3 + $0x2010] sm:$0xff]   ;;  %v19847_v3 = vld [vmem:[%s25427_s3 + $0x2080] sm:$0xff]   ;;  %v19851_v4 = vld [vmem:[%s25427_s3 + $0x2118] sm:$0xff]  }
 0x591   :  { %18553 = vmatprep.subr.bf16.mxu1 %v19798_v38 }
 0x592   :  { %18540 = vmatpush3.bf16.msra.mxu0 %v19799_v5 }
 0x593   :  { %18569 = vmatprep.subr.bf16.mxu0 %v19802_v14 }
 0x594   :  { %18554 = vmatpush3.bf16.msra.mxu1 %v19800_v37  ;;  %v19829_v37 = vld [vmem:[%s25427_s3 + $0x2040] sm:$0xff]  }
 0x595   :  { %v18277_v54 = vpop.f32.mrf.mxu0  ;;  %14160 = vmatmul.mubr.bf16.vlgmr.msra.gmra.mxu0 %v13531_v51  ;;  %18555 = vmatprep.subr.bf16.mxu1 %v19801_v34  ;;  %v19828_v34 = vld [vmem:[%s25427_s3 + $0x20a8] sm:$0xff]  }
 0x596   :  { %18570 = vmatpush3.bf16.msra.mxu0 %v19804_v49  ;;  %14792 = vmatprep.mubr.bf16.mxu0 %v14241_v13  ;;  %v19830_v49 = vld [vmem:[%s25427_s3 + $0x20e0] sm:$0xff]  }
 0x597   :  { %v18278_v55 = vpop.f32.mrf.mxu0  ;;  %18571 = vmatprep.subr.bf16.mxu0 %v19806_v6  ;;  %v19831_v6 = vld [vmem:[%s25427_s3 + $0x2000] sm:$0xff]  }
 0x598   :  { %18556 = vmatpush3.bf16.msra.mxu1 %v19803_v57  ;;  %v18279_v39 = vadd.f32 %v18278_v55, %v18277_v54  ;;  %v19834_v57 = vld [vmem:[%s25427_s3 + $0x2178] sm:$0xff]   ;;  %v19832_v13 = vld [vmem:[%s25427_s3 + $0x20a0] sm:$0xff]  }
 0x599   :  { %v18280_v9 = vpop.f32.mrf.mxu0  ;;  %18557 = vmatprep.subr.bf16.mxu1 %v19805_v24  ;;  %v19836_v54 = vld [vmem:[%s25427_s3 + $0x2138] sm:$0xff]   ;;  %v14240_v24 = vpack.c.bf16 %v21289_v1, %v21289_v1  ;;  %v19837_v1 = vld [vmem:[%s25427_s3 + $0x20d0] sm:$0xff]  }
 0x59a   :  { %v11999_v53 = vadd.f32 %v18279_v39, %v11959_v48  ;;  %18572 = vmatpush3.bf16.msra.mxu0 %v19808_v18  ;;  %v14243_v48 = vpack.c.bf16 %v21712_v63, %v21712_v63  ;;  %v19826_v63 = vld [vmem:[%s25427_s3 + $0x20e8] sm:$0xff]   ;;  %v19838_v18 = vld [vmem:[%s25427_s3 + $0x2170] sm:$0xff]   ;;  %v19835_v55 = vld [vmem:[%s25427_s3 + $0x2098] sm:$0xff]  }
 0x59b   :  { %v18281_v20 = vpop.f32.mrf.mxu0  ;;  %18573 = vmatprep.subr.bf16.mxu0 %v19810_v28  ;;  %v14245_v28 = vpack.c.bf16 %v21715_v33, %v21715_v33 }
 0x59c   :  { %18558 = vmatpush3.bf16.msra.mxu1 %v19807_v31  ;;  %v19840_v31 = vld [vmem:[%s25427_s3 + $0x2130] sm:$0xff]   ;;  %v19841_v20 = vld [vmem:[%s25427_s3 + $0x20c8] sm:$0xff]  }
 0x59d   :  { %18559 = vmatprep.subr.bf16.mxu1 %v19809_v56  ;;  %v19842_v56 = vld [vmem:[%s25427_s3 + $0x2168] sm:$0xff]  }
 0x59e   :  { %18574 = vmatpush3.bf16.msra.mxu0 %v19812_v8 }
 0x59f   :  { %18575 = vmatprep.subr.bf16.mxu0 %v19814_v27  ;;  %v19844_v27 = vld [vmem:[%s25427_s3 + $0x2128] sm:$0xff]  }
 0x5a0   :  { %18560 = vmatpush3.bf16.msra.mxu1 %v19811_v62 }
 0x5a1   :  { %18561 = vmatprep.subr.bf16.mxu1 %v19813_v41  ;;  %v19846_v41 = vld [vmem:[%s25427_s3 + $0x2160] sm:$0xff]  }
 0x5a2   :  { %18576 = vmatpush3.bf16.msra.mxu0 %v19816_v10  ;;  %v19843_v10 = vld [vmem:[%s25427_s3 + $0x2088] sm:$0xff]  }
 0x5a3   :  { %18577 = vmatprep.subr.bf16.mxu0 %v19817_v7  ;;  %v19848_v7 = vld [vmem:[%s25427_s3 + $0x2120] sm:$0xff]  }
 0x5a4   :  { %18562 = vmatpush3.bf16.msra.mxu1 %v19815_v17  ;;  %v19849_v17 = vld [vmem:[%s25427_s3 + $0x2158] sm:$0xff]  }
 0x5a5   :  { %18591 = vmatprep.subr.bf16.mxu1 %v19818_v47  ;;  %v19850_v47 = vld [vmem:[%s25427_s3 + $0x21f8] sm:$0xff]  }
 0x5a6   :  { %18578 = vmatpush3.bf16.msra.mxu0 %v19819_v50  ;;  %v19853_v50 = vld [vmem:[%s25427_s3 + $0x2150] sm:$0xff]  }
 0x5a7   :  { %v18299_v26 = vpop.f32.mrf.mxu1  ;;  %14200 = vmatmul.mubr.bf16.vlgmr.msra.gmra.mxu1 %v13533_v45  ;;  %18579 = vmatprep.subr.bf16.mxu0 %v19821_v16  ;;  %v19852_v16 = vld [vmem:[%s25427_s3 + $0x21b8] sm:$0xff]   ;;  %v19854_v45 = vld [vmem:[%s25427_s3 + $0x21f0] sm:$0xff]  }
 0x5a8   :  { %18592 = vmatpush3.bf16.msra.mxu1 %v19820_v25  ;;  %14832 = vmatprep.mubr.bf16.mxu1 %v14243_v48  ;;  %v14242_v25 = vpack.c.bf16 %v21423_v58, %v21423_v58  ;;  %v19855_v48 = vld [vmem:[%s25427_s3 + $0x2110] sm:$0xff]   ;;  %v19857_v58 = vld [vmem:[%s25427_s3 + $0x2148] sm:$0xff]  }
 0x5a9   :  { %v18300_v38 = vpop.f32.mrf.mxu1  ;;  %18593 = vmatprep.subr.bf16.mxu1 %v19822_v30  ;;  %v14247_v30 = vpack.c.bf16 %v21726_v42, %v21726_v42  ;;  %v19858_v42 = vld [vmem:[%s25427_s3 + $0x21e8] sm:$0xff]  }
 0x5aa   :  { %v18301_v5 = vadd.f32 %v18300_v38, %v18299_v26  ;;  %18580 = vmatpush3.bf16.msra.mxu0 %v19823_v29  ;;  %v19856_v26 = vld [vmem:[%s25427_s3 + $0x21b0] sm:$0xff]   ;;  %v19859_v38 = vld [vmem:[%s25427_s3 + $0x2108] sm:$0xff]  }
 0x5ab   :  { %v18302_v14 = vpop.f32.mrf.mxu1  ;;  %18581 = vmatprep.subr.bf16.mxu0 %v19825_v21 }
 0x5ac   :  { %v12039_v36 = vadd.f32 %v18301_v5, %v11999_v53  ;;  %18594 = vmatpush3.bf16.msra.mxu1 %v19824_v43  ;;  %v19839_v53 = vld [vmem:[%s25427_s3 + $0x2090] sm:$0xff]   ;;  %v19861_v5 = vld [vmem:[%s25427_s3 + $0x2140] sm:$0xff]   ;;  %v19860_v14 = vld [vmem:[%s25427_s3 + $0x21a8] sm:$0xff]  }
 0x5ad   :  { %v18303_v2 = vpop.f32.mrf.mxu1  ;;  %18595 = vmatprep.subr.bf16.mxu1 %v19826_v63 }
 0x5ae   :  { %v25036_v51 = vadd.f32 %v12039_v36, %v24808_v40  ;;  %18582 = vmatpush3.bf16.msra.mxu0 %v19827_v44  ;;  %v19833_v40 = vld [vmem:[%s25427_s3 + $0x20d8] sm:$0xff]   ;;  %v19862_v36 = vld [vmem:[%s25427_s3 + $0x21e0] sm:$0xff]  }
 0x5af   :  { %18583 = vmatprep.subr.bf16.mxu0 %v19829_v37  ;;  %v19866_v2 = vld [vmem:[%s25427_s3 + $0x2278] sm:$0xff]  }
 0x5b0   :  { %18596 = vmatpush3.bf16.msra.mxu1 %v19828_v34  ;;  %v19863_v34 = vld [vmem:[%s25427_s3 + $0x2100] sm:$0xff]  }
 0x5b1   :  { %18597 = vmatprep.subr.bf16.mxu1 %v19830_v49  ;;  %v14930_v49 = vrot.slane %v1377_v15, 1  ;;  %v14244_v15 = vpack.c.bf16 %v21436_v59, %v21436_v59  ;;  %v19872_v59 = vld [vmem:[%s25427_s3 + $0x2230] sm:$0xff]  }
 0x5b2   :  { %18584 = vmatpush3.bf16.msra.mxu0 %v19831_v6  ;;  %v19864_v6 = vld [vmem:[%s25427_s3 + $0x21a0] sm:$0xff]  }
 0x5b3   :  { %18613 = vmatprep.subr.bf16.mxu0 %v19834_v57  ;;  %v19865_v57 = vld [vmem:[%s25427_s3 + $0x21d8] sm:$0xff]  }
 0x5b4   :  { %18598 = vmatpush3.bf16.msra.mxu1 %v19832_v13  ;;  %v14946_v13 = vsel %vm2729_vm1, %v14930_v49, %v2698_v0 }
 0x5b5   :  { %v18321_v39 = vpop.f32.mrf.mxu0  ;;  %14793 = vmatmul.mubr.bf16.vlgmr.msra.gmra.mxu0 %v14240_v24  ;;  %18599 = vmatprep.subr.bf16.mxu1 %v19833_v40  ;;  %v19870_v40 = vld [vmem:[%s25427_s3 + $0x2270] sm:$0xff]  }
 0x5b6   :  { %18614 = vmatpush3.bf16.msra.mxu0 %v19836_v54  ;;  %14872 = vmatprep.mubr.bf16.mxu0 %v14245_v28  ;;  %v14954_v54 = vpack.c.bf16 %v14946_v13, %v14946_v13  ;;  %v19869_v24 = vld [vmem:[%s25427_s3 + $0x21d0] sm:$0xff]   ;;  %v19906_v13 = vld [vmem:[%s25427_s3 + $0x2368] sm:$0xff]  }
 0x5b7   :  { %v18322_v9 = vpop.f32.mrf.mxu0  ;;  %18615 = vmatprep.subr.bf16.mxu0 %v19838_v18 }
 0x5b8   :  { %18600 = vmatpush3.bf16.msra.mxu1 %v19835_v55  ;;  %v18323_v33 = vadd.f32 %v18322_v9, %v18321_v39  ;;  %v19874_v55 = vld [vmem:[%s25427_s3 + $0x2268] sm:$0xff]   ;;  %v19871_v39 = vld [vmem:[%s25427_s3 + $0x2190] sm:$0xff]  }
 0x5b9   :  { %v18324_v8 = vpop.f32.mrf.mxu0  ;;  %18601 = vmatprep.subr.bf16.mxu1 %v19837_v1 }
 0x5ba   :  { %18616 = vmatpush3.bf16.msra.mxu0 %v19840_v31  ;;  %v19873_v31 = vld [vmem:[%s25427_s3 + $0x21c8] sm:$0xff]  }
 0x5bb   :  { %v18325_v62 = vpop.f32.mrf.mxu0  ;;  %18617 = vmatprep.subr.bf16.mxu0 %v19842_v56  ;;  %v19876_v56 = vld [vmem:[%s25427_s3 + $0x2228] sm:$0xff]  }
 0x5bc   :  { %18602 = vmatpush3.bf16.msra.mxu1 %v19839_v53  ;;  %v19878_v53 = vld [vmem:[%s25427_s3 + $0x2260] sm:$0xff]   ;;  %v19875_v8 = vld [vmem:[%s25427_s3 + $0x2188] sm:$0xff]   ;;  %v19881_v62 = vld [vmem:[%s25427_s3 + $0x2258] sm:$0xff]  }
 0x5bd   :  { %18603 = vmatprep.subr.bf16.mxu1 %v19841_v20  ;;  %v19877_v20 = vld [vmem:[%s25427_s3 + $0x21c0] sm:$0xff]  }
 0x5be   :  { %18618 = vmatpush3.bf16.msra.mxu0 %v19844_v27  ;;  %v19880_v27 = vld [vmem:[%s25427_s3 + $0x2220] sm:$0xff]  }
 0x5bf   :  { %18619 = vmatprep.subr.bf16.mxu0 %v19846_v41  ;;  %v19879_v41 = vld [vmem:[%s25427_s3 + $0x2180] sm:$0xff]  }
 0x5c0   :  { %18604 = vmatpush3.bf16.msra.mxu1 %v19843_v10  ;;  %v19882_v10 = vld [vmem:[%s25427_s3 + $0x22f8] sm:$0xff]  }
 0x5c1   :  { %18605 = vmatprep.subr.bf16.mxu1 %v19845_v22  ;;  %v19883_v22 = vld [vmem:[%s25427_s3 + $0x2218] sm:$0xff]  }
 0x5c2   :  { %18620 = vmatpush3.bf16.msra.mxu0 %v19848_v7  ;;  %v19885_v7 = vld [vmem:[%s25427_s3 + $0x2250] sm:$0xff]  }
 0x5c3   :  { %18621 = vmatprep.subr.bf16.mxu0 %v19849_v17  ;;  %v19884_v17 = vld [vmem:[%s25427_s3 + $0x22b8] sm:$0xff]  }
 0x5c4   :  { %18606 = vmatpush3.bf16.msra.mxu1 %v19847_v3  ;;  %v14246_v3 = vpack.c.bf16 %v21530_v32, %v21530_v32  ;;  %v19889_v32 = vld [vmem:[%s25427_s3 + $0x2248] sm:$0xff]  }
 0x5c5   :  { %18635 = vmatprep.subr.bf16.mxu1 %v19850_v47  ;;  %v19886_v47 = vld [vmem:[%s25427_s3 + $0x22f0] sm:$0xff]  }
 0x5c6   :  { %18622 = vmatpush3.bf16.msra.mxu0 %v19851_v4  ;;  %v14956_v4 = vpack.c.bf16 %v21729_v12, %v21729_v12  ;;  %v19890_v12 = vld [vmem:[%s25427_s3 + $0x22e8] sm:$0xff]  }
 0x5c7   :  { %v18343_v29 = vpop.f32.mrf.mxu1  ;;  %14833 = vmatmul.mubr.bf16.vlgmr.msra.gmra.mxu1 %v14242_v25  ;;  %18623 = vmatprep.subr.bf16.mxu0 %v19853_v50  ;;  %v19887_v50 = vld [vmem:[%s25427_s3 + $0x2210] sm:$0xff]  }
 0x5c8   :  { %18636 = vmatpush3.bf16.msra.mxu1 %v19852_v16  ;;  %14912 = vmatprep.mubr.bf16.mxu1 %v14247_v30  ;;  %v19888_v25 = vld [vmem:[%s25427_s3 + $0x22b0] sm:$0xff]  }
 0x5c9   :  { %v18344_v21 = vpop.f32.mrf.mxu1  ;;  %18637 = vmatprep.subr.bf16.mxu1 %v19854_v45 }
 0x5ca   :  { %v18345_v43 = vadd.f32 %v18344_v21, %v18343_v29  ;;  %18624 = vmatpush3.bf16.msra.mxu0 %v19855_v48  ;;  %v19891_v48 = vld [vmem:[%s25427_s3 + $0x2208] sm:$0xff]  }
 0x5cb   :  { %v18346_v63 = vpop.f32.mrf.mxu1  ;;  %18625 = vmatprep.subr.bf16.mxu0 %v19857_v58  ;;  %v19893_v58 = vld [vmem:[%s25427_s3 + $0x2240] sm:$0xff]   ;;  %v19892_v21 = vld [vmem:[%s25427_s3 + $0x22a8] sm:$0xff]  }
 0x5cc   :  { %v12680_v44 = vadd.f32 %v18345_v43, %v18323_v33  ;;  %18638 = vmatpush3.bf16.msra.mxu1 %v19856_v26  ;;  %v19894_v43 = vld [vmem:[%s25427_s3 + $0x22e0] sm:$0xff]  }
 0x5cd   :  { %v18347_v37 = vpop.f32.mrf.mxu1  ;;  %18639 = vmatprep.subr.bf16.mxu1 %v19858_v42  ;;  %v19895_v63 = vld [vmem:[%s25427_s3 + $0x2200] sm:$0xff]  }
 0x5ce   :  { %18626 = vmatpush3.bf16.msra.mxu0 %v19859_v38  ;;  %v14953_v37 = vpack.c.bf16 %v21273_v11, %v21273_v11  ;;  %v19901_v11 = vld [vmem:[%s25427_s3 + $0x22d0] sm:$0xff]  }
 0x5cf   :  { %18627 = vmatprep.subr.bf16.mxu0 %v19861_v5  ;;  %v19898_v5 = vld [vmem:[%s25427_s3 + $0x2378] sm:$0xff]  }
 0x5d0   :  { %18640 = vmatpush3.bf16.msra.mxu1 %v19860_v14  ;;  %v19900_v14 = vld [vmem:[%s25427_s3 + $0x2338] sm:$0xff]  }
 0x5d1   :  { %18641 = vmatprep.subr.bf16.mxu1 %v19862_v36  ;;  %v19902_v36 = vld [vmem:[%s25427_s3 + $0x2370] sm:$0xff]  }
 0x5d2   :  { %18628 = vmatpush3.bf16.msra.mxu0 %v19863_v34  ;;  %v19899_v34 = vld [vmem:[%s25427_s3 + $0x2298] sm:$0xff]  }
 0x5d3   :  { %18657 = vmatprep.subr.bf16.mxu0 %v19866_v2  ;;  %v14958_v2 = vpack.c.bf16 %v21744_v52, %v21744_v52 }
 0x5d4   :  { %18642 = vmatpush3.bf16.msra.mxu1 %v19864_v6  ;;  %v19904_v6 = vld [vmem:[%s25427_s3 + $0x2330] sm:$0xff]  }
 0x5d5   :  { %v18365_v0 = vpop.f32.mrf.mxu0  ;;  %14873 = vmatmul.mubr.bf16.vlgmr.msra.gmra.mxu0 %v14244_v15  ;;  %18643 = vmatprep.subr.bf16.mxu1 %v19865_v57 }
 0x5d6   :  { %18658 = vmatpush3.bf16.msra.mxu0 %v19868_v19  ;;  %15505 = vmatprep.mubr.bf16.mxu0 %v14954_v54  ;;  %v19903_v19 = vld [vmem:[%s25427_s3 + $0x2290] sm:$0xff]  }
 0x5d7   :  { %v18366_v18 = vpop.f32.mrf.mxu0  ;;  %18659 = vmatprep.subr.bf16.mxu0 %v19870_v40  ;;  %v19905_v40 = vld [vmem:[%s25427_s3 + $0x22c8] sm:$0xff]  }
 0x5d8   :  { %18644 = vmatpush3.bf16.msra.mxu1 %v19867_v35  ;;  %v18367_v28 = vadd.f32 %v18366_v18, %v18365_v0  ;;  %v19908_v35 = vld [vmem:[%s25427_s3 + $0x2328] sm:$0xff]   ;;  %v19910_v0 = vld [vmem:[%s25427_s3 + $0x2360] sm:$0xff]  }
 0x5d9   :  { %v18368_v1 = vpop.f32.mrf.mxu0  ;;  %18645 = vmatprep.subr.bf16.mxu1 %v19869_v24  ;;  %v19907_v24 = vld [vmem:[%s25427_s3 + $0x2288] sm:$0xff]   ;;  %v19912_v18 = vld [vmem:[%s25427_s3 + $0x2320] sm:$0xff]  }
 0x5da   :  { %v12720_v9 = vadd.f32 %v18367_v28, %v12680_v44  ;;  %18660 = vmatpush3.bf16.msra.mxu0 %v19872_v59  ;;  %v19896_v44 = vld [vmem:[%s25427_s3 + $0x22a0] sm:$0xff]   ;;  %v19915_v1 = vld [vmem:[%s25427_s3 + $0x2318] sm:$0xff]  }
 0x5db   :  { %v18369_v33 = vpop.f32.mrf.mxu0  ;;  %18661 = vmatprep.subr.bf16.mxu0 %v19874_v55  ;;  %v19909_v59 = vld [vmem:[%s25427_s3 + $0x22c0] sm:$0xff]   ;;  %v19913_v55 = vld [vmem:[%s25427_s3 + $0x2358] sm:$0xff]  }
 0x5dc   :  { %18646 = vmatpush3.bf16.msra.mxu1 %v19871_v39  ;;  %v19911_v28 = vld [vmem:[%s25427_s3 + $0x2280] sm:$0xff]   ;;  %v19914_v39 = vld [vmem:[%s25427_s3 + $0x23f8] sm:$0xff]   ;;  %v19918_v33 = vld [vmem:[%s25427_s3 + $0x23f0] sm:$0xff]  }
 0x5dd   :  { %18647 = vmatprep.subr.bf16.mxu1 %v19873_v31  ;;  %v19917_v31 = vld [vmem:[%s25427_s3 + $0x2350] sm:$0xff]  }
 0x5de   :  { %18662 = vmatpush3.bf16.msra.mxu0 %v19876_v56  ;;  %v14955_v56 = vpack.c.bf16 %v21405_v23, %v21405_v23  ;;  %v19921_v23 = vld [vmem:[%s25427_s3 + $0x2348] sm:$0xff]  }
 0x5df   :  { %18663 = vmatprep.subr.bf16.mxu0 %v19878_v53  ;;  %v14960_v53 = vpack.c.bf16 %v21747_v60, %v21747_v60  ;;  %v19922_v60 = vld [vmem:[%s25427_s3 + $0x23e8] sm:$0xff]  }
 0x5e0   :  { %18648 = vmatpush3.bf16.msra.mxu1 %v19875_v8  ;;  %v19919_v8 = vld [vmem:[%s25427_s3 + $0x2310] sm:$0xff]  }
 0x5e1   :  { %18649 = vmatprep.subr.bf16.mxu1 %v19877_v20 }
 0x5e2   :  { %18664 = vmatpush3.bf16.msra.mxu0 %v19880_v27  ;;  %v19920_v27 = vld [vmem:[%s25427_s3 + $0x23b0] sm:$0xff]  }
 0x5e3   :  { %18665 = vmatprep.subr.bf16.mxu0 %v19881_v62 }
 0x5e4   :  { %18650 = vmatpush3.bf16.msra.mxu1 %v19879_v41 }
 0x5e5   :  { %18679 = vmatprep.subr.bf16.mxu1 %v19882_v10  ;;  %v19923_v10 = vld [vmem:[%s25427_s3 + $0x2308] sm:$0xff]  }
 0x5e6   :  { %18666 = vmatpush3.bf16.msra.mxu0 %v19883_v22 }
 0x5e7   :  { %v18387_v16 = vpop.f32.mrf.mxu1  ;;  %14913 = vmatmul.mubr.bf16.vlgmr.msra.gmra.mxu1 %v14246_v3  ;;  %18667 = vmatprep.subr.bf16.mxu0 %v19885_v7  ;;  %v19925_v7 = vld [vmem:[%s25427_s3 + $0x2340] sm:$0xff]   ;;  %v19924_v3 = vld [vmem:[%s25427_s3 + $0x23a8] sm:$0xff]  }
 0x5e8   :  { %18680 = vmatpush3.bf16.msra.mxu1 %v19884_v17  ;;  %15545 = vmatprep.mubr.bf16.mxu1 %v14956_v4  ;;  %v19926_v4 = vld [vmem:[%s25427_s3 + $0x23e0] sm:$0xff]  }
 0x5e9   :  { %v18388_v45 = vpop.f32.mrf.mxu1  ;;  %18681 = vmatprep.subr.bf16.mxu1 %v19886_v47 }
 0x5ea   :  { %v18389_v30 = vadd.f32 %v18388_v45, %v18387_v16  ;;  %18668 = vmatpush3.bf16.msra.mxu0 %v19887_v50  ;;  %v19927_v50 = vld [vmem:[%s25427_s3 + $0x2300] sm:$0xff]   ;;  %v19930_v45 = vld [vmem:[%s25427_s3 + $0x2398] sm:$0xff]  }
 0x5eb   :  { %v18390_v29 = vpop.f32.mrf.mxu1  ;;  %18669 = vmatprep.subr.bf16.mxu0 %v19889_v32  ;;  %v19928_v16 = vld [vmem:[%s25427_s3 + $0x23a0] sm:$0xff]   ;;  %v19929_v32 = vld [vmem:[%s25427_s3 + $0x23d8] sm:$0xff]  }
 0x5ec   :  { %v12760_v26 = vadd.f32 %v18389_v30, %v12720_v9  ;;  %18682 = vmatpush3.bf16.msra.mxu1 %v19888_v25  ;;  %v19916_v9 = vld [vmem:[%s25427_s3 + $0x23b8] sm:$0xff]   ;;  %v14957_v25 = vpack.c.bf16 %v21411_v46, %v21411_v46  ;;  %v19931_v30 = vld [vmem:[%s25427_s3 + $0x23d0] sm:$0xff]  }
 0x5ed   :  { %v18391_v42 = vpop.f32.mrf.mxu1  ;;  %18683 = vmatprep.subr.bf16.mxu1 %v19890_v12 }
 0x5ee   :  { %v25250_v38 = vadd.f32 %v12760_v26, %v25036_v51  ;;  %18670 = vmatpush3.bf16.msra.mxu0 %v19891_v48  ;;  %v19897_v51 = vld [vmem:[%s25427_s3 + $0x22d8] sm:$0xff]   ;;  %v19933_v26 = vld [vmem:[%s25427_s3 + $0x23c8] sm:$0xff]  }
 0x5ef   :  { %18671 = vmatprep.subr.bf16.mxu0 %v19893_v58  ;;  %v19932_v58 = vld [vmem:[%s25427_s3 + $0x2390] sm:$0xff]  }
 0x5f0   :  { %18684 = vmatpush3.bf16.msra.mxu1 %v19892_v21 }
 0x5f1   :  { %18685 = vmatprep.subr.bf16.mxu1 %v19894_v43  ;;  %v19934_v43 = vld [vmem:[%s25427_s3 + $0x2388] sm:$0xff]  }
 0x5f2   :  { %18672 = vmatpush3.bf16.msra.mxu0 %v19895_v63  ;;  %v19935_v63 = vld [vmem:[%s25427_s3 + $0x23c0] sm:$0xff]  }
 0x5f3   :  { %18701 = vmatprep.subr.bf16.mxu0 %v19898_v5  ;;  %v19936_v5 = vld [vmem:[%s25427_s3 + $0x2380] sm:$0xff]  }
 0x5f4   :  { %18686 = vmatpush3.bf16.msra.mxu1 %v19896_v44  ;;  %v14959_v44 = vpack.c.bf16 %v21518_v61, %v21518_v61 }
 0x5f5   :  { %v18409_v49 = vpop.f32.mrf.mxu0  ;;  %15506 = vmatmul.mubr.bf16.vlgmr.msra.gmra.mxu0 %v14953_v37  ;;  %18687 = vmatprep.subr.bf16.mxu1 %v19897_v51 }
 0x5f6   :  { %18702 = vmatpush3.bf16.msra.mxu0 %v19900_v14  ;;  %15585 = vmatprep.mubr.bf16.mxu0 %v14958_v2 }
 0x5f7   :  { %v18410_v57 = vpop.f32.mrf.mxu0  ;;  %18703 = vmatprep.subr.bf16.mxu0 %v19902_v36 }
 0x5f8   :  { %18688 = vmatpush3.bf16.msra.mxu1 %v19899_v34  ;;  %v18411_v52 = vadd.f32 %v18410_v57, %v18409_v49 }
 0x5f9   :  { %v18412_v15 = vpop.f32.mrf.mxu0  ;;  %18689 = vmatprep.subr.bf16.mxu1 %v19901_v11 }
 0x5fa   :  { %18704 = vmatpush3.bf16.msra.mxu0 %v19904_v6 }
 0x5fb   :  { %v18413_v54 = vpop.f32.mrf.mxu0  ;;  %18705 = vmatprep.subr.bf16.mxu0 %v19906_v13 }
 0x5fc   :  { %18690 = vmatpush3.bf16.msra.mxu1 %v19903_v19 }
 0x5fd   :  { %18691 = vmatprep.subr.bf16.mxu1 %v19905_v40 }
 0x5fe   :  { %18706 = vmatpush3.bf16.msra.mxu0 %v19908_v35 }
 0x5ff   :  { %18707 = vmatprep.subr.bf16.mxu0 %v19910_v0 }
 0x600   :  { %18692 = vmatpush3.bf16.msra.mxu1 %v19907_v24 }
 0x601   :  { %18693 = vmatprep.subr.bf16.mxu1 %v19909_v59 }
 0x602   :  { %18708 = vmatpush3.bf16.msra.mxu0 %v19912_v18 }
 0x603   :  { %18709 = vmatprep.subr.bf16.mxu0 %v19913_v55 }
 0x604   :  { %18694 = vmatpush3.bf16.msra.mxu1 %v19911_v28 }
 0x605   :  { %18723 = vmatprep.subr.bf16.mxu1 %v19914_v39  ;;  %v19964_v39 = vmov 0.0  }
 0x606   :  { %18710 = vmatpush3.bf16.msra.mxu0 %v19915_v1 }
 0x607   :  { %v18431_v20 = vpop.f32.mrf.mxu1  ;;  %15546 = vmatmul.mubr.bf16.vlgmr.msra.gmra.mxu1 %v14955_v56  ;;  %18711 = vmatprep.subr.bf16.mxu0 %v19917_v31  ;;  %v15649_v31 = vld [vmem:[%s25429_s5 + $0x30] sm:$0xff] }
 0x608   :  { %18724 = vmatpush3.bf16.msra.mxu1 %v19916_v9  ;;  %15625 = vmatprep.mubr.bf16.mxu1 %v14960_v53 }
 0x609   :  { %v18432_v62 = vpop.f32.mrf.mxu1  ;;  %18725 = vmatprep.subr.bf16.mxu1 %v19918_v33 }
 0x60a   :  { %v18433_v41 = vadd.f32 %v18432_v62, %v18431_v20  ;;  %18712 = vmatpush3.bf16.msra.mxu0 %v19919_v8  ;;  %v15646_v62 = vld [vmem:[%s25429_s5 + $0x18] sm:$0xff] }
 0x60b   :  { %v18434_v22 = vpop.f32.mrf.mxu1  ;;  %18713 = vmatprep.subr.bf16.mxu0 %v19921_v23  ;;  %v15648_v23 = vld [vmem:[%s25429_s5 + $0x28] sm:$0xff] }
 0x60c   :  { %v13401_v17 = vadd.f32 %v18433_v41, %v18411_v52  ;;  %18726 = vmatpush3.bf16.msra.mxu1 %v19920_v27  ;;  %v15647_v27 = vld [vmem:[%s25429_s5 + $0x20] sm:$0xff]  ;;  %v15645_v41 = vld [vmem:[%s25429_s5 + $0x10] sm:$0xff] }
 0x60d   :  { %v18435_v47 = vpop.f32.mrf.mxu1  ;;  %18727 = vmatprep.subr.bf16.mxu1 %v19922_v60 }
 0x60e   :  { %18714 = vmatpush3.bf16.msra.mxu0 %v19923_v10 }
 0x60f   :  { %18715 = vmatprep.subr.bf16.mxu0 %v19925_v7  ;;  %v15644_v7 = vld [vmem:[%s25429_s5 + $0x8] sm:$0xff] }
 0x610   :  { %18728 = vmatpush3.bf16.msra.mxu1 %v19924_v3  ;;  %v15643_v3 = vld [vmem:[%s25429_s5] sm:$0xff] }
 0x611   :  { %18729 = vmatprep.subr.bf16.mxu1 %v19926_v4 }
 0x612   :  { %18716 = vmatpush3.bf16.msra.mxu0 %v19927_v50 }
 0x613   :  { %18754 = vmatprep.subr.mxu0 %v19964_v39 }
 0x614   :  { %18730 = vmatpush3.bf16.msra.mxu1 %v19928_v16 }
 0x615   :  { %v18453_v12 = vpop.f32.mrf.mxu0  ;;  %15586 = vmatmul.mubr.bf16.vlgmr.msra.gmra.mxu0 %v14957_v25  ;;  %18731 = vmatprep.subr.bf16.mxu1 %v19929_v32 }
 0x616   :  { %18770 = vmatprep.mubr.msk.f32.mxu0 %vm19965_vm2, %v19964_v39 }
 0x617   :  { %v18454_v48 = vpop.f32.mrf.mxu0 }
 0x618   :  { %18732 = vmatpush3.bf16.msra.mxu1 %v19930_v45  ;;  %v18455_v29 = vadd.f32 %v18454_v48, %v18453_v12 }
 0x619   :  { %v18456_v46 = vpop.f32.mrf.mxu0  ;;  %18733 = vmatprep.subr.bf16.mxu1 %v19931_v30 }
 0x61a   :  { %v13441_v21 = vadd.f32 %v18455_v29, %v13401_v17 }
 0x61b   :  { %v18457_v42 = vpop.f32.mrf.mxu0 }
 0x61c   :  { %18734 = vmatpush3.bf16.msra.mxu1 %v19932_v58 }
 0x61d   :  { %18735 = vmatprep.subr.bf16.mxu1 %v19933_v26 }
 0x620   :  { %18736 = vmatpush3.bf16.msra.mxu1 %v19934_v43 }
 0x621   :  { %18737 = vmatprep.subr.bf16.mxu1 %v19935_v63 }
 0x624   :  { %18738 = vmatpush3.bf16.msra.mxu1 %v19936_v5 }
 0x627   :  { %v18475_v51 = vpop.f32.mrf.mxu1  ;;  %15626 = vmatmul.mubr.bf16.vlgmr.msra.gmra.mxu1 %v14959_v44 }
 0x629   :  { %v18476_v14 = vpop.f32.mrf.mxu1 }
 0x62a   :  { %v18477_v37 = vadd.f32 %v18476_v14, %v18475_v51 }
 0x62b   :  { %v18478_v36 = vpop.f32.mrf.mxu1 }
 0x62c   :  { %v13481_v34 = vadd.f32 %v18477_v37, %v13441_v21 }
 0x62d   :  { %v18479_v2 = vpop.f32.mrf.mxu1 }
 0x62e   :  { %v13486_v49 = vadd.f32 %v13481_v34, %v25250_v38  ;;  %v15650_v38 = vld [vmem:[%s25429_s5 + $0x38] sm:$0xff] }
 0x62f   :  { %18755 = vmatpush3.msra.mxu0 %v15650_v38 }
 0x630   :  { %18756 = vmatprep.subr.mxu0 %v19964_v39 }
 0x631   :  { %18757 = vmatpush3.msra.mxu0 %v15649_v31  ;;  %v17159_v31 = vld [vmem:[%s25430_s6] ss:$0 sm:$0xff] }
 0x632   :  { %18758 = vmatprep.subr.mxu0 %v19964_v39 }
 0x633   :  { %18759 = vmatpush3.msra.mxu0 %v15648_v23 }
 0x634   :  { %18760 = vmatprep.subr.mxu0 %v19964_v39 }
 0x635   :  { %v18497_v11 = vpop.f32.mrf.mxu0  ;;  %18761 = vmatpush3.msra.mxu0 %v15647_v27 }
 0x636   :  { %18762 = vmatprep.subr.mxu0 %v19964_v39 }
 0x637   :  { %v18498_v6 = vpop.f32.mrf.mxu0  ;;  %18763 = vmatpush3.msra.mxu0 %v15646_v62 }
 0x638   :  { %v18499_v57 = vadd.f32 %v18498_v6, %v18497_v11  ;;  %18764 = vmatprep.subr.mxu0 %v19964_v39 }
 0x639   :  { %v18500_v13 = vpop.f32.mrf.mxu0  ;;  %18765 = vmatpush3.msra.mxu0 %v15645_v41 }
 0x63a   :  { %18766 = vmatprep.subr.mxu0 %v19964_v39 }
 0x63b   :  { %v18501_v52 = vpop.f32.mrf.mxu0  ;;  %18767 = vmatpush3.msra.mxu0 %v15644_v7 }
 0x63c   :  { %18768 = vmatprep.subr.mxu0 %v19964_v39 }
 0x63d   :  { %18769 = vmatpush3.msra.mxu0 %v15643_v3 }
 0x647   :  { %v18519_v19 = vpop.f32.mrf.mxu1 }
 0x649   :  { %v18520_v15 = vpop.f32.mrf.mxu1 }
 0x64a   :  { %v18521_v40 = vadd.f32 %v18520_v15, %v18519_v19 }
 0x64b   :  { %v18522_v35 = vpop.f32.mrf.mxu1 }
 0x64c   :  { %v14122_v54 = vadd.f32 %v18521_v40, %v18499_v57 }
 0x64d   :  { %v18523_v61 = vpop.f32.mrf.mxu1 }
 0x655   :  { %v18541_v0 = vpop.f32.mrf.mxu0 }
 0x657   :  { %v18542_v24 = vpop.f32.mrf.mxu0 }
 0x658   :  { %v18543_v59 = vadd.f32 %v18542_v24, %v18541_v0 }
 0x659   :  { %v18544_v18 = vpop.f32.mrf.mxu0 }
 0x65a   :  { %v14162_v55 = vadd.f32 %v18543_v59, %v14122_v54 }
 0x65b   :  { %v18545_v28 = vpop.f32.mrf.mxu0 }
 0x667   :  { %v18563_v1 = vpop.f32.mrf.mxu1 }
 0x669   :  { %v18564_v9 = vpop.f32.mrf.mxu1 }
 0x66a   :  { %v18565_v56 = vadd.f32 %v18564_v9, %v18563_v1 }
 0x66b   :  { %v18566_v33 = vpop.f32.mrf.mxu1 }
 0x66c   :  { %v14202_v53 = vadd.f32 %v18565_v56, %v14162_v55  ;;  %v17158_v55 = vld [vmem:[%s25428_s4] ss:$0 sm:$0xff] }
 0x66d   :  { %v18567_v8 = vpop.f32.mrf.mxu1 }
 0x66e   :  { %v14207_v20 = vadd.f32 %v14202_v53, %v13486_v49 }
 0x675   :  { %v18585_v60 = vpop.f32.mrf.mxu0 }
 0x677   :  { %v18586_v10 = vpop.f32.mrf.mxu0 }
 0x678   :  { %v18587_v22 = vadd.f32 %v18586_v10, %v18585_v60 }
 0x679   :  { %v18588_v17 = vpop.f32.mrf.mxu0 }
 0x67b   :  { %v18589_v47 = vpop.f32.mrf.mxu0 }
 0x687   :  { %v18607_v4 = vpop.f32.mrf.mxu1 }
 0x689   :  { %v18608_v50 = vpop.f32.mrf.mxu1 }
 0x68a   :  { %v18609_v16 = vadd.f32 %v18608_v50, %v18607_v4 }
 0x68b   :  { %v18610_v32 = vpop.f32.mrf.mxu1 }
 0x68c   :  { %v14835_v25 = vadd.f32 %v18609_v16, %v18587_v22 }
 0x68d   :  { %v18611_v45 = vpop.f32.mrf.mxu1 }
 0x695   :  { %v18629_v12 = vpop.f32.mrf.mxu0 }
 0x697   :  { %v18630_v30 = vpop.f32.mrf.mxu0 }
 0x698   :  { %v18631_v48 = vadd.f32 %v18630_v30, %v18629_v12 }
 0x699   :  { %v18632_v29 = vpop.f32.mrf.mxu0 }
 0x69a   :  { %v14875_v58 = vadd.f32 %v18631_v48, %v14835_v25 }
 0x69b   :  { %v18633_v46 = vpop.f32.mrf.mxu0 }
 0x6a7   :  { %v18651_v26 = vpop.f32.mrf.mxu1 }
 0x6a9   :  { %v18652_v21 = vpop.f32.mrf.mxu1 }
 0x6aa   :  { %v18653_v42 = vadd.f32 %v18652_v21, %v18651_v26 }
 0x6ab   :  { %v18654_v43 = vpop.f32.mrf.mxu1 }
 0x6ac   :  { %v14915_v63 = vadd.f32 %v18653_v42, %v14875_v58 }
 0x6ad   :  { %v18655_v5 = vpop.f32.mrf.mxu1 }
 0x6ae   :  { %v14920_v44 = vadd.f32 %v14915_v63, %v14207_v20 }
 0x6b5   :  { %v18673_v51 = vpop.f32.mrf.mxu0 }
 0x6b7   :  { %v18674_v14 = vpop.f32.mrf.mxu0 }
 0x6b8   :  { %v18675_v15 = vadd.f32 %v18674_v14, %v18673_v51 }
 0x6b9   :  { %v18676_v37 = vpop.f32.mrf.mxu0 }
 0x6bb   :  { %v18677_v36 = vpop.f32.mrf.mxu0 }
 0x6c7   :  { %v18695_v34 = vpop.f32.mrf.mxu1 }
 0x6c9   :  { %v18696_v2 = vpop.f32.mrf.mxu1 }
 0x6ca   :  { %v18697_v19 = vadd.f32 %v18696_v2, %v18695_v34 }
 0x6cb   :  { %v18698_v49 = vpop.f32.mrf.mxu1 }
 0x6cc   :  { %v15548_v54 = vadd.f32 %v18697_v19, %v18675_v15 }
 0x6cd   :  { %v18699_v11 = vpop.f32.mrf.mxu1 }
 0x6d5   :  { %v18717_v6 = vpop.f32.mrf.mxu0 }
 0x6d7   :  { %v18718_v57 = vpop.f32.mrf.mxu0 }
 0x6d8   :  { %v18719_v40 = vadd.f32 %v18718_v57, %v18717_v6 }
 0x6d9   :  { %v18720_v13 = vpop.f32.mrf.mxu0 }
 0x6da   :  { %v15588_v0 = vadd.f32 %v18719_v40, %v15548_v54 }
 0x6db   :  { %v18721_v52 = vpop.f32.mrf.mxu0 }
 0x6e7   :  { %v18739_v35 = vpop.f32.mrf.mxu1 }
 0x6e9   :  { %v18740_v61 = vpop.f32.mrf.mxu1 }
 0x6ea   :  { %v18741_v24 = vadd.f32 %v18740_v61, %v18739_v35 }
 0x6eb   :  { %v18742_v59 = vpop.f32.mrf.mxu1 }
 0x6ec   :  { %v15628_v18 = vadd.f32 %v18741_v24, %v15588_v0 }
 0x6ed   :  { %v18743_v28 = vpop.f32.mrf.mxu1 }
 0x6ee   :  { %v15633_v38 = vadd.f32 %v15628_v18, %v14920_v44 }
 0x6f0   :  { %v15641_v39 = vadd.f32 %v17158_v55, %v15633_v38 }
 0x6f2   :  { %v15642_v1 = vmax.f32 %v15641_v39, 0.0 }
 0x6f4   :  { %18771 = vmatmul.mubr.msk.f32.vlgmr.msra.gmra.mxu0 %vm15658_vm3, %v15642_v1 }
 0x7b4   :  { %v15728_v9 = vpop.f32.mrf.mxu0 }
 0x7b5   :  { %v15729_v56 = vadd.f32 %v17159_v31, %v15728_v9 }
 0x7b6   :  { %v18772_v33 = vpop.f32.mrf.mxu0 }
 0x7b7   :  { %15733 = vst.msk [vmem:[#allocation2] sm:$0x3] %vm15732_vm4, %v15729_v56 }
 0x7b8   :  { %19952 = shalt.err (!%p19949_p4)
}
 0x7b9   :  { %15743 = dma.vmem_to_hbm [thread:$0]  %s15741_s21, 32, %s25431_s7, [#allocation3]  }
 0x7ba   :  { %19961 = dma.done.wait [#allocation3], 32  }
 0x7bb   :  { %19962 = vsyncadd [#allocation3], 4294967264 }
 0x7bc   :  { %15747 = vsyncpa [#allocation3], 1 }

</bundles_post_ra>
